<compile_context>
chip_gen: v6e
topology: v6e:2x2x1
jax: 0.10.0
libtpu: 0.0.40
codegen_flags: <defaults>
</compile_context>

<pallas_src>
import jax
import jax.numpy as jnp
from jax.experimental import pallas as pl
from jax.experimental.pallas import tpu as pltpu


def _vmem_limit_bytes():
    """Generation-aware scoped-VMEM cap: ~75% of physical, capped at 100 MiB."""
    try:
        cap = pltpu.get_tpu_info().vmem_capacity_bytes
    except Exception:
        cap = 64 << 20          # conservative: v7x per-TC physical VMEM
    return int(min(cap * 3 // 4, 100 << 20))


VMEM_LIMIT = _vmem_limit_bytes()


def _pick_chunk(S, B, cap):
    """Largest T<=cap with S%T==0 and (T*B)%8==0; else whole sequence (nC=1)."""
    for t in range(min(S, cap), 0, -1):
        if S % t == 0 and (t * B) % 8 == 0:
            return t
    return S


def _pick_tile(n, cap):
    """Largest row tile <= cap dividing n, sublane aligned (or the full n)."""
    for t in range(min(n, cap), 0, -1):
        if n % t == 0 and (t % 8 == 0 or t == n):
            return t
    return n


def _pick_batch_block(B, Sp, Sh, D2, budget_bytes):
    """Largest divisor of B whose attention working set fits the VMEM budget."""
    for bb in range(B, 0, -1):
        if B % bb:
            continue
        io = 2 * (2 * bb * Sp * D2 * 2 + 2 * bb * Sh * D2 * 2
                  + bb * (Sp + Sh) * 4)             # double-buffered blocks
        inter = 4 * bb * Sp * Sh * 4                # e / exp / masked / weights
        if io + inter <= budget_bytes:
            return bb
    return 1


# ----------------------------------------------------------------------------
# Fused bidirectional LSTM kernels
#   grid = (2, S // T): axis 0 = direction ("parallel": 2 TCs on v7x),
#                       axis 1 = time chunk ("arbitrary": carried state).
#   Input x is time-major flattened: (S*B, Din), bf16.
#   Weights stacked per direction: wih (2, Din, 4H) bf16, whh (2, H, 4H) bf16,
#   b (2, 1, 4H) f32.  Gate order i|f|g|o (PyTorch; b == b_ih + b_hh).
# TODO(synk): at production sizes pad H to a multiple of 128 so the gate
#             slices and the direct (S,B,2H) output path are lane aligned.
# ----------------------------------------------------------------------------
def _lstm_chunk(x_ref, wih_ref, whh_ref, b_ref, h_sc, c_sc, xg_sc, emit):
    """Run one chunk of T steps; emit(row, h_t) per step (row = chunk-local t)."""
    d = pl.program_id(0)                       # 0 = forward, 1 = backward
    B, H = h_sc.shape
    T = x_ref.shape[0] // B

    # Hoisted input projection: ONE (T*B, Din) x (Din, 4H) bf16 matmul per
    # chunk, parked in VMEM scratch.  The recurrence only carries dot(h, whh).
    xg_sc[...] = jnp.dot(x_ref[...], wih_ref[...],
                         preferred_element_type=jnp.float32)

    whh = whh_ref[...]                                       # (H, 4H) bf16
    bias = jnp.broadcast_to(b_ref[...], (B, 4 * H))          # hoisted, f32

    h = h_sc[...]
    c = c_sc[...]
    for i in range(T):                         # static unroll
        row = i * (1 - 2 * d) + d * (T - 1)    # fwd: i   bwd: T-1-i (traced)
        # Static VMEM slices for both directions + a cheap VPU select; this
        # keeps the unrolled loop free of scalar-dependent addressing.
        xg_f = xg_sc[i * B:(i + 1) * B, :]
        xg_b = xg_sc[(T - 1 - i) * B:(T - i) * B, :]
        xg_t = jnp.where(d == 0, xg_f, xg_b)   # (B, 4H) f32
        g = (xg_t
             + jnp.dot(h.astype(jnp.bfloat16), whh,
                       preferred_element_type=jnp.float32)
             + bias)                           # (B, 4H): single fused gate matmul
        i_g = jax.nn.sigmoid(g[:, 0 * H:1 * H])
        f_g = jax.nn.sigmoid(g[:, 1 * H:2 * H])
        g_g = jnp.tanh(g[:, 2 * H:3 * H])
        o_g = jax.nn.sigmoid(g[:, 3 * H:4 * H])
        c = f_g * c + i_g * g_g
        h = o_g * jnp.tanh(c)
        emit(row, h)
    h_sc[...] = h
    c_sc[...] = c


def _bilstm_seq_kernel(x_ref, wih_ref, whh_ref, b_ref, out_ref,
                       h_sc, c_sc, xg_sc):
    """Full-sequence output variant (input-encoding stage)."""
    @pl.when(pl.program_id(1) == 0)
    def _():
        h_sc[...] = jnp.zeros_like(h_sc)
        c_sc[...] = jnp.zeros_like(c_sc)

    def emit(row, h_t):
        out_ref[row] = h_t.astype(out_ref.dtype)

    _lstm_chunk(x_ref, wih_ref, whh_ref, b_ref, h_sc, c_sc, xg_sc, emit)


def _bilstm_pool_kernel(x_ref, wih_ref, whh_ref, b_ref,
                        sum_ref, max_ref, h_sc, c_sc, xg_sc):
    """Pooled-output variant (composition stage): sum & max over time."""
    @pl.when(pl.program_id(1) == 0)
    def _():
        h_sc[...] = jnp.zeros_like(h_sc)
        c_sc[...] = jnp.zeros_like(c_sc)
        sum_ref[...] = jnp.zeros_like(sum_ref)
        max_ref[...] = jnp.full_like(max_ref, -jnp.inf)

    acc_sum = [jnp.zeros(h_sc.shape, jnp.float32)]
    acc_max = [jnp.full(h_sc.shape, -jnp.inf, jnp.float32)]

    def emit(row, h_t):
        del row
        acc_sum[0] = acc_sum[0] + h_t
        acc_max[0] = jnp.maximum(acc_max[0], h_t)

    _lstm_chunk(x_ref, wih_ref, whh_ref, b_ref, h_sc, c_sc, xg_sc, emit)

    sum_ref[...] = sum_ref[...] + acc_sum[0]
    max_ref[...] = jnp.maximum(max_ref[...], acc_max[0])


def _bilstm_pallas(x2d, S, B, wih, whh, b, *, pooled, t_cap=32):
    """x2d: (S*B, Din) time-major flattened, bf16."""
    Din = x2d.shape[-1]
    H = whh.shape[1]
    T = _pick_chunk(S, B, t_cap)
    nC = S // T

    x_map = lambda d, c: (c + d * (nC - 1 - 2 * c), 0)       # fwd: c, bwd: nC-1-c
    w_map = lambda d, c: (d, 0, 0)

    in_specs = [
        pl.BlockSpec((T * B, Din), x_map),
        pl.BlockSpec((None, Din, 4 * H), w_map),
        pl.BlockSpec((None, H, 4 * H), w_map),
        pl.BlockSpec((None, 1, 4 * H), w_map),
    ]
    scratch = [pltpu.VMEM((B, H), jnp.float32),
               pltpu.VMEM((B, H), jnp.float32),
               pltpu.VMEM((T * B, 4 * H), jnp.float32)]

    if pooled:
        kernel = _bilstm_pool_kernel
        out_shape = (jax.ShapeDtypeStruct((2, B, H), jnp.float32),
                     jax.ShapeDtypeStruct((2, B, H), jnp.float32))
        out_specs = (pl.BlockSpec((None, B, H), w_map),
                     pl.BlockSpec((None, B, H), w_map))
    elif H % 128 == 0:
        # Direct (S, B, 2H) layout: fwd writes lanes [0:H], bwd [H:2H];
        # kills the (2,S,B,H) rearrange and keeps stores lane-dense.
        kernel = _bilstm_seq_kernel
        out_shape = jax.ShapeDtypeStruct((S, B, 2 * H), jnp.bfloat16)
        out_specs = pl.BlockSpec(
            (T, B, H), lambda d, c: (c + d * (nC - 1 - 2 * c), 0, d))
    else:
        kernel = _bilstm_seq_kernel
        out_shape = jax.ShapeDtypeStruct((2, S, B, H), jnp.bfloat16)
        out_specs = pl.BlockSpec(
            (None, T, B, H), lambda d, c: (d, c + d * (nC - 1 - 2 * c), 0, 0))

    return pl.pallas_call(
        kernel,
        out_shape=out_shape,
        grid_spec=pltpu.PrefetchScalarGridSpec(
            num_scalar_prefetch=0,
            grid=(2, nC),
            in_specs=in_specs,
            out_specs=out_specs,
            scratch_shapes=scratch),
        compiler_params=pltpu.CompilerParams(
            dimension_semantics=("parallel", "arbitrary"),
            vmem_limit_bytes=VMEM_LIMIT),
    )(x2d, wih, whh, b)


def bilstm_seq(x2d, S, B, prm):
    """(S*B, Din) time-major bf16 -> (B, S, 2H) bf16 (fwd features first)."""
    H = prm["whh"].shape[1]
    out = _bilstm_pallas(x2d, S, B, prm["wih"], prm["whh"], prm["b"],
                         pooled=False)
    if out.ndim == 3:                                   # direct (S, B, 2H)
        return jnp.transpose(out, (1, 0, 2))
    return jnp.transpose(out, (2, 1, 0, 3)).reshape(B, S, 2 * H)


def bilstm_pooled(x2d, S, B, prm):
    """(S*B, Din) time-major bf16 -> (sum_over_t, max_over_t), each (B, 2H)."""
    s, m = _bilstm_pallas(x2d, S, B, prm["wih"], prm["whh"], prm["b"],
                          pooled=True)
    cat = lambda t: jnp.transpose(t, (1, 0, 2)).reshape(B, -1)
    return cat(s), cat(m)


# ----------------------------------------------------------------------------
# Local inference (attention): single exp pass, multiplicative 0/1 keep masks,
# approx reciprocal normalizers, batched bf16 einsums, batch-block per step.
# TODO(synk): keep masks could move to SMEM scalar-prefetched lengths +
#             in-kernel iota; kept as tiny VMEM tiles for lowering safety.
# ----------------------------------------------------------------------------
def _local_inf_kernel(px_ref, hx_ref, pk_ref, hk_ref, pxhat_ref, hxhat_ref):
    px = px_ref[...]                                       # (bb, Sp, D2) bf16
    hx = hx_ref[...]                                       # (bb, Sh, D2) bf16
    e = jnp.einsum("bpd,bhd->bph", px, hx,
                   preferred_element_type=jnp.float32)     # (bb, Sp, Sh) f32
    # Shared stabilizer (per-batch global max) -> one exp pass for both softmaxes.
    m = jnp.max(jnp.max(e, axis=2, keepdims=True), axis=1, keepdims=True)
    p = jnp.exp(e - m)
    # weight_b = softmax over hypothesis positions (torch dim=2)
    pb = p * hk_ref[...]                                   # hk: (bb, 1, Sh) 0/1
    wb = pb * pl.reciprocal(jnp.sum(pb, axis=2, keepdims=True) + 1e-20,
                            approx=True)
    pxhat_ref[...] = jnp.einsum(
        "bph,bhd->bpd", wb.astype(hx.dtype), hx,
        preferred_element_type=jnp.float32).astype(pxhat_ref.dtype)
    # weight_a = softmax over premise positions (torch dim=1)
    pa = p * pk_ref[...]                                   # pk: (bb, Sp, 1) 0/1
    wa = pa * pl.reciprocal(jnp.sum(pa, axis=1, keepdims=True) + 1e-20,
                            approx=True)
    hxhat_ref[...] = jnp.einsum(
        "bph,bpd->bhd", wa.astype(px.dtype), px,
        preferred_element_type=jnp.float32).astype(hxhat_ref.dtype)


def local_inference(px, hx, p_keep3, h_keep3):
    B, Sp, D2 = px.shape
    Sh = hx.shape[1]
    bb = _pick_batch_block(B, Sp, Sh, D2, VMEM_LIMIT - (8 << 20))
    return pl.pallas_call(
        _local_inf_kernel,
        out_shape=(jax.ShapeDtypeStruct((B, Sp, D2), jnp.bfloat16),
                   jax.ShapeDtypeStruct((B, Sh, D2), jnp.bfloat16)),
        grid=(B // bb,),
        in_specs=[
            pl.BlockSpec((bb, Sp, D2), lambda i: (i, 0, 0)),
            pl.BlockSpec((bb, Sh, D2), lambda i: (i, 0, 0)),
            pl.BlockSpec((bb, Sp, 1), lambda i: (i, 0, 0)),
            pl.BlockSpec((bb, 1, Sh), lambda i: (i, 0, 0)),
        ],
        out_specs=(pl.BlockSpec((bb, Sp, D2), lambda i: (i, 0, 0)),
                   pl.BlockSpec((bb, Sh, D2), lambda i: (i, 0, 0))),
        compiler_params=pltpu.CompilerParams(
            dimension_semantics=("parallel",),
            vmem_limit_bytes=VMEM_LIMIT),
    )(px, hx, p_keep3, h_keep3)


# ----------------------------------------------------------------------------
# Enhancement (cat[x, xhat, x-xhat, x*xhat]) + Linear + ReLU
#   algebra folded into the weights -> 3 bf16 dots; divisor row tiles.
# ----------------------------------------------------------------------------
def _enhance_project_kernel(x_ref, xh_ref, wx_ref, wxh_ref, wm_ref, b_ref,
                            o_ref):
    x = x_ref[...]                                         # bf16
    xh = xh_ref[...]                                       # bf16
    acc = (jnp.dot(x, wx_ref[...], preferred_element_type=jnp.float32)
           + jnp.dot(xh, wxh_ref[...], preferred_element_type=jnp.float32)
           + jnp.dot(x * xh, wm_ref[...], preferred_element_type=jnp.float32)
           + b_ref[...])
    o_ref[...] = jnp.maximum(acc, 0.0).astype(o_ref.dtype)


def enhance_project(x, xhat, w4, bias):
    """ReLU(cat[x, xhat, x-xhat, x*xhat] @ W + b); (x-xhat) folded into W."""
    N, D2 = x.shape
    d_out = w4.shape[-1]
    wx = (w4[0] + w4[2]).astype(jnp.bfloat16)
    wxh = (w4[1] - w4[2]).astype(jnp.bfloat16)
    wm = w4[3].astype(jnp.bfloat16)
    tile_n = _pick_tile(N, 1024)
    return pl.pallas_call(
        _enhance_project_kernel,
        out_shape=jax.ShapeDtypeStruct((N, d_out), jnp.bfloat16),
        grid=(N // tile_n,),
        in_specs=[
            pl.BlockSpec((tile_n, D2), lambda i: (i, 0)),
            pl.BlockSpec((tile_n, D2), lambda i: (i, 0)),
            pl.BlockSpec((D2, d_out), lambda i: (0, 0)),
            pl.BlockSpec((D2, d_out), lambda i: (0, 0)),
            pl.BlockSpec((D2, d_out), lambda i: (0, 0)),
            pl.BlockSpec((1, d_out), lambda i: (0, 0)),
        ],
        out_specs=pl.BlockSpec((tile_n, d_out), lambda i: (i, 0)),
        compiler_params=pltpu.CompilerParams(
            dimension_semantics=("parallel",),
            vmem_limit_bytes=VMEM_LIMIT),
    )(x, xhat, wx, wxh, wm, bias)


# ----------------------------------------------------------------------------
# MLP head on pooled features (Linear, Tanh, Linear, Softmax) -- bf16 weights
# ----------------------------------------------------------------------------
def _mlp_kernel(f_ref, w1_ref, b1_ref, w2_ref, b2_ref, o_ref):
    h1 = jnp.tanh(jnp.dot(f_ref[...].astype(jnp.bfloat16), w1_ref[...],
                          preferred_element_type=jnp.float32) + b1_ref[...])
    logits = jnp.dot(h1.astype(jnp.bfloat16), w2_ref[...],
                     preferred_element_type=jnp.float32) + b2_ref[...]
    o_ref[...] = jax.nn.softmax(logits, axis=-1)


def mlp_head(feat, w1, b1, w2, b2):
    B, F = feat.shape
    T = w2.shape[-1]
    return pl.pallas_call(
        _mlp_kernel,
        out_shape=jax.ShapeDtypeStruct((B, T), jnp.float32),
        grid=(1,),
        in_specs=[
            pl.BlockSpec((B, F), lambda i: (0, 0)),
            pl.BlockSpec((F, F), lambda i: (0, 0)),
            pl.BlockSpec((1, F), lambda i: (0, 0)),
            pl.BlockSpec((F, T), lambda i: (0, 0)),
            pl.BlockSpec((1, T), lambda i: (0, 0)),
        ],
        out_specs=pl.BlockSpec((B, T), lambda i: (0, 0)),
        compiler_params=pltpu.CompilerParams(vmem_limit_bytes=VMEM_LIMIT),
    )(feat, w1.astype(jnp.bfloat16), b1, w2.astype(jnp.bfloat16), b2)


# ----------------------------------------------------------------------------
# Full ESIM forward
# ----------------------------------------------------------------------------
@jax.jit
def esim_forward(params, p, h, p_mask, h_mask):
    emb = params["embedding"]
    B, Sp = p.shape
    Sh = h.shape[1]
    dim = emb.shape[1]
    D2 = 2 * dim

    # Embedding gather (glue), time-major flattened, bf16 for the LSTM matmuls.
    px_e = jnp.transpose(emb[p], (1, 0, 2)).reshape(Sp * B, dim).astype(jnp.bfloat16)
    hx_e = jnp.transpose(emb[h], (1, 0, 2)).reshape(Sh * B, dim).astype(jnp.bfloat16)

    # Reference InputEncoding uses lstm_p for BOTH premise and hypothesis.
    px = bilstm_seq(px_e, Sp, B, params["lstm_p"])         # (B, Sp, 2*dim) bf16
    hx = bilstm_seq(hx_e, Sh, B, params["lstm_p"])         # (B, Sh, 2*dim) bf16

    # 0/1 keep masks (multiplicative; exactly reproduces softmax(-inf) masking
    # for real rows and is NaN-safe for fully padded rows).
    p_keep3 = (~p_mask).astype(jnp.float32)[:, :, None]    # (B, Sp, 1)
    h_keep3 = (~h_mask).astype(jnp.float32)[:, None, :]    # (B, 1, Sh)

    px_hat, hx_hat = local_inference(px, hx, p_keep3, h_keep3)

    mp = enhance_project(px.reshape(B * Sp, D2), px_hat.reshape(B * Sp, D2),
                         params["proj_px_w"], params["proj_px_b"])  # (B*Sp, dim)
    mh = enhance_project(hx.reshape(B * Sh, D2), hx_hat.reshape(B * Sh, D2),
                         params["proj_hx_w"], params["proj_hx_b"])  # (B*Sh, dim)

    # Back to time-major for the composition BiLSTMs (fused mean/max pooling:
    # the (B,S,2d) composed activations never round-trip through HBM).
    mp_tm = jnp.transpose(mp.reshape(B, Sp, dim), (1, 0, 2)).reshape(Sp * B, dim)
    mh_tm = jnp.transpose(mh.reshape(B, Sh, dim), (1, 0, 2)).reshape(Sh * B, dim)

    vp_sum, vp_max = bilstm_pooled(mp_tm, Sp, B, params["lstm_px"])
    vh_sum, vh_max = bilstm_pooled(mh_tm, Sh, B, params["lstm_hx"])
    feat = jnp.concatenate(
        [vp_sum / Sp, vp_max, vh_sum / Sh, vh_max], axis=-1)   # (B, 8*dim) f32

    return mlp_head(feat, params["mlp_w1"], params["mlp_b1"],
                    params["mlp_w2"], params["mlp_b2"])


# ----------------------------------------------------------------------------
# Deterministic synthetic parameter init
# ----------------------------------------------------------------------------
def init_bilstm(key, din, h):
    k1, k2, k3 = jax.random.split(key, 3)
    return dict(
        wih=(0.1 * jax.random.normal(k1, (2, din, 4 * h), jnp.float32)
             ).astype(jnp.bfloat16),
        whh=(0.1 * jax.random.normal(k2, (2, h, 4 * h), jnp.float32)
             ).astype(jnp.bfloat16),
        # single bias per direction == PyTorch b_ih + b_hh pre-summed (f32)
        b=0.1 * jax.random.normal(k3, (2, 1, 4 * h), jnp.float32),
    )


def init_params(key, vocab_size, dim, task_nums):
    ks = jax.random.split(key, 12)
    d2 = 2 * dim
    d8 = 8 * dim
    emb = 0.1 * jax.random.normal(ks[0], (vocab_size, dim), jnp.float32)
    emb = emb.at[0].set(0.0)                        # padding_idx=0
    return dict(
        embedding=emb,
        lstm_p=init_bilstm(ks[1], dim, dim),
        lstm_px=init_bilstm(ks[2], dim, dim),
        lstm_hx=init_bilstm(ks[3], dim, dim),
        # projection weight split into the 4 enhancement chunks [x,xhat,diff,prod]
        proj_px_w=0.1 * jax.random.normal(ks[4], (4, d2, dim), jnp.float32),
        proj_px_b=0.1 * jax.random.normal(ks[5], (1, dim), jnp.float32),
        proj_hx_w=0.1 * jax.random.normal(ks[6], (4, d2, dim), jnp.float32),
        proj_hx_b=0.1 * jax.random.normal(ks[7], (1, dim), jnp.float32),
        mlp_w1=0.1 * jax.random.normal(ks[8], (d8, d8), jnp.float32),
        mlp_b1=0.1 * jax.random.normal(ks[9], (1, d8), jnp.float32),
        mlp_w2=0.1 * jax.random.normal(ks[10], (d8, task_nums), jnp.float32),
        mlp_b2=0.1 * jax.random.normal(ks[11], (1, task_nums), jnp.float32),
    )


if __name__ == "__main__":
    key = jax.random.PRNGKey(0)
    vocab_size, dim, task_nums = 50, 16, 3
    B, Sp, Sh = 2, 8, 10

    k_params, k_p, k_h = jax.random.split(key, 3)
    params = init_params(k_params, vocab_size, dim, task_nums)

    # masks: True = padded position (matches masked_fill_ semantics)
    p_len = jnp.array([6, 8])
    h_len = jnp.array([7, 10])
    p_mask = jnp.arange(Sp)[None, :] >= p_len[:, None]
    h_mask = jnp.arange(Sh)[None, :] >= h_len[:, None]

    p = jax.random.randint(k_p, (B, Sp), 1, vocab_size)
    h = jax.random.randint(k_h, (B, Sh), 1, vocab_size)
    p = jnp.where(p_mask, 0, p).astype(jnp.int32)
    h = jnp.where(h_mask, 0, h).astype(jnp.int32)

    y = esim_forward(params, p, h, p_mask, h_mask)
    jax.block_until_ready(y)
    assert y.shape == (B, task_nums)
    assert bool(jnp.all(jnp.isfinite(y)))
    print("KERNEL_OK")
</pallas_src>

<mosaic_0001>
module attributes {stable_mosaic.version = 11 : i64} {
  func.func @_bilstm_seq_kernel(%arg0: i32, %arg1: i32, %arg2: memref<20x16xbf16, #tpu.memory_space<vmem>>, %arg3: memref<1x16x64xbf16, #tpu.memory_space<vmem>>, %arg4: memref<1x16x64xbf16, #tpu.memory_space<vmem>>, %arg5: memref<1x1x64xf32, #tpu.memory_space<vmem>>, %arg6: memref<1x10x2x16xbf16, #tpu.memory_space<vmem>>, %arg7: memref<2x16xf32, #tpu.memory_space<vmem>>, %arg8: memref<2x16xf32, #tpu.memory_space<vmem>>, %arg9: memref<20x64xf32, #tpu.memory_space<vmem>>) attributes {dimension_semantics = [#tpu.dimension_semantics<parallel>, #tpu.dimension_semantics<arbitrary>], iteration_bounds = array<i64: 2, 1>, scalar_prefetch = 0 : i64, scratch_operands = 3 : i64, tpu.core_type = #tpu.core_type<tc>, window_params = [{transform_indices = @transform_0, window_bounds = array<i64: 20, 16>}, {transform_indices = @transform_1, window_bounds = array<i64: 1, 16, 64>}, {transform_indices = @transform_2, window_bounds = array<i64: 1, 16, 64>}, {transform_indices = @transform_3, window_bounds = array<i64: 1, 1, 64>}, {transform_indices = @transform_4, window_bounds = array<i64: 1, 10, 2, 16>}]} {
    %c0_i32 = arith.constant 0 : i32
    %0 = arith.cmpi eq, %arg1, %c0_i32 : i32
    %1 = arith.extui %0 : i1 to i32
    %c0_i32_0 = arith.constant 0 : i32
    %2 = arith.cmpi ne, %1, %c0_i32_0 : i32
    scf.if %2 {
      %cst_163 = arith.constant 0.000000e+00 : f32
      %448 = vector.broadcast %cst_163 : f32 to vector<2x16xf32>
      %c0_164 = arith.constant 0 : index
      %c0_165 = arith.constant 0 : index
      %449 = vector.load %arg7[%c0_164, %c0_165] : memref<2x16xf32, #tpu.memory_space<vmem>>, vector<2x16xf32>
      tpu.vector_store %arg7[%c0_164, %c0_165], %448 {strides = array<i32>} : memref<2x16xf32, #tpu.memory_space<vmem>>, vector<2x16xf32>,
      %cst_166 = arith.constant 0.000000e+00 : f32
      %450 = vector.broadcast %cst_166 : f32 to vector<2x16xf32>
      %c0_167 = arith.constant 0 : index
      %c0_168 = arith.constant 0 : index
      %451 = vector.load %arg8[%c0_167, %c0_168] : memref<2x16xf32, #tpu.memory_space<vmem>>, vector<2x16xf32>
      tpu.vector_store %arg8[%c0_167, %c0_168], %450 {strides = array<i32>} : memref<2x16xf32, #tpu.memory_space<vmem>>, vector<2x16xf32>,
    } else {
    }
    %c0 = arith.constant 0 : index
    %c0_1 = arith.constant 0 : index
    %3 = vector.load %arg2[%c0, %c0_1] : memref<20x16xbf16, #tpu.memory_space<vmem>>, vector<20x16xbf16>
    %c0_2 = arith.constant 0 : index
    %c0_3 = arith.constant 0 : index
    %c0_4 = arith.constant 0 : index
    %4 = vector.load %arg3[%c0_2, %c0_3, %c0_4] : memref<1x16x64xbf16, #tpu.memory_space<vmem>>, vector<1x16x64xbf16>
    %5 = vector.shape_cast %4 : vector<1x16x64xbf16> to vector<16x64xbf16>
    %cst = arith.constant dense<0.000000e+00> : vector<20x64xf32>
    %6 = tpu.matmul %3, %5, %cst {dimension_numbers = #tpu.dot_dimension_numbers<[1], [0], [0], [1], [0, 0, 1, 1], [], []>} : vector<20x16xbf16>, vector<16x64xbf16>, vector<20x64xf32> -> vector<20x64xf32>
    %c0_5 = arith.constant 0 : index
    %c0_6 = arith.constant 0 : index
    %7 = vector.load %arg9[%c0_5, %c0_6] : memref<20x64xf32, #tpu.memory_space<vmem>>, vector<20x64xf32>
    tpu.vector_store %arg9[%c0_5, %c0_6], %6 {strides = array<i32>} : memref<20x64xf32, #tpu.memory_space<vmem>>, vector<20x64xf32>,
    %c0_7 = arith.constant 0 : index
    %c0_8 = arith.constant 0 : index
    %c0_9 = arith.constant 0 : index
    %8 = vector.load %arg4[%c0_7, %c0_8, %c0_9] : memref<1x16x64xbf16, #tpu.memory_space<vmem>>, vector<1x16x64xbf16>
    %9 = vector.shape_cast %8 : vector<1x16x64xbf16> to vector<16x64xbf16>
    %c0_10 = arith.constant 0 : index
    %c0_11 = arith.constant 0 : index
    %c0_12 = arith.constant 0 : index
    %10 = vector.load %arg5[%c0_10, %c0_11, %c0_12] : memref<1x1x64xf32, #tpu.memory_space<vmem>>, vector<1x1x64xf32>
    %11 = vector.shape_cast %10 : vector<1x1x64xf32> to vector<1x64xf32>
    %12 = vector.shape_cast %11 : vector<1x64xf32> to vector<1x64xf32>
    %13 = vector.broadcast %12 : vector<1x64xf32> to vector<2x64xf32>
    %c0_13 = arith.constant 0 : index
    %c0_14 = arith.constant 0 : index
    %14 = vector.load %arg7[%c0_13, %c0_14] : memref<2x16xf32, #tpu.memory_space<vmem>>, vector<2x16xf32>
    %c0_15 = arith.constant 0 : index
    %c0_16 = arith.constant 0 : index
    %15 = vector.load %arg8[%c0_15, %c0_16] : memref<2x16xf32, #tpu.memory_space<vmem>>, vector<2x16xf32>
    %c2_i32 = arith.constant 2 : i32
    %16 = arith.muli %c2_i32, %arg0 : i32
    %c1_i32 = arith.constant 1 : i32
    %17 = arith.subi %c1_i32, %16 : i32
    %c0_i32_17 = arith.constant 0 : i32
    %18 = arith.muli %c0_i32_17, %17 : i32
    %c9_i32 = arith.constant 9 : i32
    %19 = arith.muli %arg0, %c9_i32 : i32
    %20 = arith.addi %18, %19 : i32
    %c0_18 = arith.constant 0 : index
    %c0_19 = arith.constant 0 : index
    %21 = vector.load %arg9[%c0_18, %c0_19] : memref<20x64xf32, #tpu.memory_space<vmem>>, vector<2x64xf32>
    %c18 = arith.constant 18 : index
    %c0_20 = arith.constant 0 : index
    %22 = vector.load %arg9[%c18, %c0_20] : memref<20x64xf32, #tpu.memory_space<vmem>>, vector<2x64xf32>
    %c0_i32_21 = arith.constant 0 : i32
    %23 = arith.cmpi eq, %arg0, %c0_i32_21 : i32
    %24 = arith.select %23, %21, %22 : vector<2x64xf32>
    %25 = arith.truncf %14 : vector<2x16xf32> to vector<2x16xbf16>
    %cst_22 = arith.constant dense<0.000000e+00> : vector<2x64xf32>
    %26 = tpu.matmul %25, %9, %cst_22 {dimension_numbers = #tpu.dot_dimension_numbers<[1], [0], [0], [1], [0, 0, 1, 1], [], []>} : vector<2x16xbf16>, vector<16x64xbf16>, vector<2x64xf32> -> vector<2x64xf32>
    %27 = arith.addf %24, %26 : vector<2x64xf32>
    %28 = arith.addf %27, %13 : vector<2x64xf32>
    %29 = vector.extract_strided_slice %28 {offsets = [0, 0], sizes = [2, 16], strides = [1, 1]} : vector<2x64xf32> to vector<2x16xf32>
    %30 = arith.negf %29 : vector<2x16xf32>
    %31 = math.exp %30 : vector<2x16xf32>
    %cst_23 = arith.constant 1.000000e+00 : f32
    %32 = vector.broadcast %cst_23 : f32 to vector<2x16xf32>
    %33 = arith.addf %32, %31 : vector<2x16xf32>
    %34 = arith.divf %32, %33 : vector<2x16xf32>
    %35 = vector.extract_strided_slice %28 {offsets = [0, 16], sizes = [2, 16], strides = [1, 1]} : vector<2x64xf32> to vector<2x16xf32>
    %36 = arith.negf %35 : vector<2x16xf32>
    %37 = math.exp %36 : vector<2x16xf32>
    %cst_24 = arith.constant 1.000000e+00 : f32
    %38 = vector.broadcast %cst_24 : f32 to vector<2x16xf32>
    %39 = arith.addf %38, %37 : vector<2x16xf32>
    %40 = arith.divf %38, %39 : vector<2x16xf32>
    %41 = vector.extract_strided_slice %28 {offsets = [0, 32], sizes = [2, 16], strides = [1, 1]} : vector<2x64xf32> to vector<2x16xf32>
    %42 = math.tanh %41 : vector<2x16xf32>
    %43 = vector.extract_strided_slice %28 {offsets = [0, 48], sizes = [2, 16], strides = [1, 1]} : vector<2x64xf32> to vector<2x16xf32>
    %44 = arith.negf %43 : vector<2x16xf32>
    %45 = math.exp %44 : vector<2x16xf32>
    %cst_25 = arith.constant 1.000000e+00 : f32
    %46 = vector.broadcast %cst_25 : f32 to vector<2x16xf32>
    %47 = arith.addf %46, %45 : vector<2x16xf32>
    %48 = arith.divf %46, %47 : vector<2x16xf32>
    %49 = arith.mulf %40, %15 : vector<2x16xf32>
    %50 = arith.mulf %34, %42 : vector<2x16xf32>
    %51 = arith.addf %49, %50 : vector<2x16xf32>
    %52 = math.tanh %51 : vector<2x16xf32>
    %53 = arith.mulf %48, %52 : vector<2x16xf32>
    %54 = arith.truncf %53 : vector<2x16xf32> to vector<2x16xbf16>
    %c0_26 = arith.constant 0 : index
    %55 = arith.index_cast %20 : i32 to index
    %c0_27 = arith.constant 0 : index
    %c0_28 = arith.constant 0 : index
    %56 = vector.load %arg6[%c0_26, %55, %c0_27, %c0_28] : memref<1x10x2x16xbf16, #tpu.memory_space<vmem>>, vector<1x1x2x16xbf16>
    %57 = vector.shape_cast %56 : vector<1x1x2x16xbf16> to vector<2x16xbf16>
    %58 = vector.shape_cast %54 : vector<2x16xbf16> to vector<1x1x2x16xbf16>
    tpu.vector_store %arg6[%c0_26, %55, %c0_27, %c0_28], %58 {strides = array<i32>} : memref<1x10x2x16xbf16, #tpu.memory_space<vmem>>, vector<1x1x2x16xbf16>,
    %c2_i32_29 = arith.constant 2 : i32
    %59 = arith.muli %c2_i32_29, %arg0 : i32
    %c1_i32_30 = arith.constant 1 : i32
    %60 = arith.subi %c1_i32_30, %59 : i32
    %c1_i32_31 = arith.constant 1 : i32
    %61 = arith.muli %c1_i32_31, %60 : i32
    %c9_i32_32 = arith.constant 9 : i32
    %62 = arith.muli %arg0, %c9_i32_32 : i32
    %63 = arith.addi %61, %62 : i32
    %c2 = arith.constant 2 : index
    %c0_33 = arith.constant 0 : index
    %64 = vector.load %arg9[%c2, %c0_33] : memref<20x64xf32, #tpu.memory_space<vmem>>, vector<2x64xf32>
    %c16 = arith.constant 16 : index
    %c0_34 = arith.constant 0 : index
    %65 = vector.load %arg9[%c16, %c0_34] : memref<20x64xf32, #tpu.memory_space<vmem>>, vector<2x64xf32>
    %c0_i32_35 = arith.constant 0 : i32
    %66 = arith.cmpi eq, %arg0, %c0_i32_35 : i32
    %67 = arith.select %66, %64, %65 : vector<2x64xf32>
    %68 = arith.truncf %53 : vector<2x16xf32> to vector<2x16xbf16>
    %cst_36 = arith.constant dense<0.000000e+00> : vector<2x64xf32>
    %69 = tpu.matmul %68, %9, %cst_36 {dimension_numbers = #tpu.dot_dimension_numbers<[1], [0], [0], [1], [0, 0, 1, 1], [], []>} : vector<2x16xbf16>, vector<16x64xbf16>, vector<2x64xf32> -> vector<2x64xf32>
    %70 = arith.addf %67, %69 : vector<2x64xf32>
    %71 = arith.addf %70, %13 : vector<2x64xf32>
    %72 = vector.extract_strided_slice %71 {offsets = [0, 0], sizes = [2, 16], strides = [1, 1]} : vector<2x64xf32> to vector<2x16xf32>
    %73 = arith.negf %72 : vector<2x16xf32>
    %74 = math.exp %73 : vector<2x16xf32>
    %cst_37 = arith.constant 1.000000e+00 : f32
    %75 = vector.broadcast %cst_37 : f32 to vector<2x16xf32>
    %76 = arith.addf %75, %74 : vector<2x16xf32>
    %77 = arith.divf %75, %76 : vector<2x16xf32>
    %78 = vector.extract_strided_slice %71 {offsets = [0, 16], sizes = [2, 16], strides = [1, 1]} : vector<2x64xf32> to vector<2x16xf32>
    %79 = arith.negf %78 : vector<2x16xf32>
    %80 = math.exp %79 : vector<2x16xf32>
    %cst_38 = arith.constant 1.000000e+00 : f32
    %81 = vector.broadcast %cst_38 : f32 to vector<2x16xf32>
    %82 = arith.addf %81, %80 : vector<2x16xf32>
    %83 = arith.divf %81, %82 : vector<2x16xf32>
    %84 = vector.extract_strided_slice %71 {offsets = [0, 32], sizes = [2, 16], strides = [1, 1]} : vector<2x64xf32> to vector<2x16xf32>
    %85 = math.tanh %84 : vector<2x16xf32>
    %86 = vector.extract_strided_slice %71 {offsets = [0, 48], sizes = [2, 16], strides = [1, 1]} : vector<2x64xf32> to vector<2x16xf32>
    %87 = arith.negf %86 : vector<2x16xf32>
    %88 = math.exp %87 : vector<2x16xf32>
    %cst_39 = arith.constant 1.000000e+00 : f32
    %89 = vector.broadcast %cst_39 : f32 to vector<2x16xf32>
    %90 = arith.addf %89, %88 : vector<2x16xf32>
    %91 = arith.divf %89, %90 : vector<2x16xf32>
    %92 = arith.mulf %83, %51 : vector<2x16xf32>
    %93 = arith.mulf %77, %85 : vector<2x16xf32>
    %94 = arith.addf %92, %93 : vector<2x16xf32>
    %95 = math.tanh %94 : vector<2x16xf32>
    %96 = arith.mulf %91, %95 : vector<2x16xf32>
    %97 = arith.truncf %96 : vector<2x16xf32> to vector<2x16xbf16>
    %c0_40 = arith.constant 0 : index
    %98 = arith.index_cast %63 : i32 to index
    %c0_41 = arith.constant 0 : index
    %c0_42 = arith.constant 0 : index
    %99 = vector.load %arg6[%c0_40, %98, %c0_41, %c0_42] : memref<1x10x2x16xbf16, #tpu.memory_space<vmem>>, vector<1x1x2x16xbf16>
    %100 = vector.shape_cast %99 : vector<1x1x2x16xbf16> to vector<2x16xbf16>
    %101 = vector.shape_cast %97 : vector<2x16xbf16> to vector<1x1x2x16xbf16>
    tpu.vector_store %arg6[%c0_40, %98, %c0_41, %c0_42], %101 {strides = array<i32>} : memref<1x10x2x16xbf16, #tpu.memory_space<vmem>>, vector<1x1x2x16xbf16>,
    %c2_i32_43 = arith.constant 2 : i32
    %102 = arith.muli %c2_i32_43, %arg0 : i32
    %c1_i32_44 = arith.constant 1 : i32
    %103 = arith.subi %c1_i32_44, %102 : i32
    %c2_i32_45 = arith.constant 2 : i32
    %104 = arith.muli %c2_i32_45, %103 : i32
    %c9_i32_46 = arith.constant 9 : i32
    %105 = arith.muli %arg0, %c9_i32_46 : i32
    %106 = arith.addi %104, %105 : i32
    %c4 = arith.constant 4 : index
    %c0_47 = arith.constant 0 : index
    %107 = vector.load %arg9[%c4, %c0_47] : memref<20x64xf32, #tpu.memory_space<vmem>>, vector<2x64xf32>
    %c14 = arith.constant 14 : index
    %c0_48 = arith.constant 0 : index
    %108 = vector.load %arg9[%c14, %c0_48] : memref<20x64xf32, #tpu.memory_space<vmem>>, vector<2x64xf32>
    %c0_i32_49 = arith.constant 0 : i32
    %109 = arith.cmpi eq, %arg0, %c0_i32_49 : i32
    %110 = arith.select %109, %107, %108 : vector<2x64xf32>
    %111 = arith.truncf %96 : vector<2x16xf32> to vector<2x16xbf16>
    %cst_50 = arith.constant dense<0.000000e+00> : vector<2x64xf32>
    %112 = tpu.matmul %111, %9, %cst_50 {dimension_numbers = #tpu.dot_dimension_numbers<[1], [0], [0], [1], [0, 0, 1, 1], [], []>} : vector<2x16xbf16>, vector<16x64xbf16>, vector<2x64xf32> -> vector<2x64xf32>
    %113 = arith.addf %110, %112 : vector<2x64xf32>
    %114 = arith.addf %113, %13 : vector<2x64xf32>
    %115 = vector.extract_strided_slice %114 {offsets = [0, 0], sizes = [2, 16], strides = [1, 1]} : vector<2x64xf32> to vector<2x16xf32>
    %116 = arith.negf %115 : vector<2x16xf32>
    %117 = math.exp %116 : vector<2x16xf32>
    %cst_51 = arith.constant 1.000000e+00 : f32
    %118 = vector.broadcast %cst_51 : f32 to vector<2x16xf32>
    %119 = arith.addf %118, %117 : vector<2x16xf32>
    %120 = arith.divf %118, %119 : vector<2x16xf32>
    %121 = vector.extract_strided_slice %114 {offsets = [0, 16], sizes = [2, 16], strides = [1, 1]} : vector<2x64xf32> to vector<2x16xf32>
    %122 = arith.negf %121 : vector<2x16xf32>
    %123 = math.exp %122 : vector<2x16xf32>
    %cst_52 = arith.constant 1.000000e+00 : f32
    %124 = vector.broadcast %cst_52 : f32 to vector<2x16xf32>
    %125 = arith.addf %124, %123 : vector<2x16xf32>
    %126 = arith.divf %124, %125 : vector<2x16xf32>
    %127 = vector.extract_strided_slice %114 {offsets = [0, 32], sizes = [2, 16], strides = [1, 1]} : vector<2x64xf32> to vector<2x16xf32>
    %128 = math.tanh %127 : vector<2x16xf32>
    %129 = vector.extract_strided_slice %114 {offsets = [0, 48], sizes = [2, 16], strides = [1, 1]} : vector<2x64xf32> to vector<2x16xf32>
    %130 = arith.negf %129 : vector<2x16xf32>
    %131 = math.exp %130 : vector<2x16xf32>
    %cst_53 = arith.constant 1.000000e+00 : f32
    %132 = vector.broadcast %cst_53 : f32 to vector<2x16xf32>
    %133 = arith.addf %132, %131 : vector<2x16xf32>
    %134 = arith.divf %132, %133 : vector<2x16xf32>
    %135 = arith.mulf %126, %94 : vector<2x16xf32>
    %136 = arith.mulf %120, %128 : vector<2x16xf32>
    %137 = arith.addf %135, %136 : vector<2x16xf32>
    %138 = math.tanh %137 : vector<2x16xf32>
    %139 = arith.mulf %134, %138 : vector<2x16xf32>
    %140 = arith.truncf %139 : vector<2x16xf32> to vector<2x16xbf16>
    %c0_54 = arith.constant 0 : index
    %141 = arith.index_cast %106 : i32 to index
    %c0_55 = arith.constant 0 : index
    %c0_56 = arith.constant 0 : index
    %142 = vector.load %arg6[%c0_54, %141, %c0_55, %c0_56] : memref<1x10x2x16xbf16, #tpu.memory_space<vmem>>, vector<1x1x2x16xbf16>
    %143 = vector.shape_cast %142 : vector<1x1x2x16xbf16> to vector<2x16xbf16>
    %144 = vector.shape_cast %140 : vector<2x16xbf16> to vector<1x1x2x16xbf16>
    tpu.vector_store %arg6[%c0_54, %141, %c0_55, %c0_56], %144 {strides = array<i32>} : memref<1x10x2x16xbf16, #tpu.memory_space<vmem>>, vector<1x1x2x16xbf16>,
    %c2_i32_57 = arith.constant 2 : i32
    %145 = arith.muli %c2_i32_57, %arg0 : i32
    %c1_i32_58 = arith.constant 1 : i32
    %146 = arith.subi %c1_i32_58, %145 : i32
    %c3_i32 = arith.constant 3 : i32
    %147 = arith.muli %c3_i32, %146 : i32
    %c9_i32_59 = arith.constant 9 : i32
    %148 = arith.muli %arg0, %c9_i32_59 : i32
    %149 = arith.addi %147, %148 : i32
    %c6 = arith.constant 6 : index
    %c0_60 = arith.constant 0 : index
    %150 = vector.load %arg9[%c6, %c0_60] : memref<20x64xf32, #tpu.memory_space<vmem>>, vector<2x64xf32>
    %c12 = arith.constant 12 : index
    %c0_61 = arith.constant 0 : index
    %151 = vector.load %arg9[%c12, %c0_61] : memref<20x64xf32, #tpu.memory_space<vmem>>, vector<2x64xf32>
    %c0_i32_62 = arith.constant 0 : i32
    %152 = arith.cmpi eq, %arg0, %c0_i32_62 : i32
    %153 = arith.select %152, %150, %151 : vector<2x64xf32>
    %154 = arith.truncf %139 : vector<2x16xf32> to vector<2x16xbf16>
    %cst_63 = arith.constant dense<0.000000e+00> : vector<2x64xf32>
    %155 = tpu.matmul %154, %9, %cst_63 {dimension_numbers = #tpu.dot_dimension_numbers<[1], [0], [0], [1], [0, 0, 1, 1], [], []>} : vector<2x16xbf16>, vector<16x64xbf16>, vector<2x64xf32> -> vector<2x64xf32>
    %156 = arith.addf %153, %155 : vector<2x64xf32>
    %157 = arith.addf %156, %13 : vector<2x64xf32>
    %158 = vector.extract_strided_slice %157 {offsets = [0, 0], sizes = [2, 16], strides = [1, 1]} : vector<2x64xf32> to vector<2x16xf32>
    %159 = arith.negf %158 : vector<2x16xf32>
    %160 = math.exp %159 : vector<2x16xf32>
    %cst_64 = arith.constant 1.000000e+00 : f32
    %161 = vector.broadcast %cst_64 : f32 to vector<2x16xf32>
    %162 = arith.addf %161, %160 : vector<2x16xf32>
    %163 = arith.divf %161, %162 : vector<2x16xf32>
    %164 = vector.extract_strided_slice %157 {offsets = [0, 16], sizes = [2, 16], strides = [1, 1]} : vector<2x64xf32> to vector<2x16xf32>
    %165 = arith.negf %164 : vector<2x16xf32>
    %166 = math.exp %165 : vector<2x16xf32>
    %cst_65 = arith.constant 1.000000e+00 : f32
    %167 = vector.broadcast %cst_65 : f32 to vector<2x16xf32>
    %168 = arith.addf %167, %166 : vector<2x16xf32>
    %169 = arith.divf %167, %168 : vector<2x16xf32>
    %170 = vector.extract_strided_slice %157 {offsets = [0, 32], sizes = [2, 16], strides = [1, 1]} : vector<2x64xf32> to vector<2x16xf32>
    %171 = math.tanh %170 : vector<2x16xf32>
    %172 = vector.extract_strided_slice %157 {offsets = [0, 48], sizes = [2, 16], strides = [1, 1]} : vector<2x64xf32> to vector<2x16xf32>
    %173 = arith.negf %172 : vector<2x16xf32>
    %174 = math.exp %173 : vector<2x16xf32>
    %cst_66 = arith.constant 1.000000e+00 : f32
    %175 = vector.broadcast %cst_66 : f32 to vector<2x16xf32>
    %176 = arith.addf %175, %174 : vector<2x16xf32>
    %177 = arith.divf %175, %176 : vector<2x16xf32>
    %178 = arith.mulf %169, %137 : vector<2x16xf32>
    %179 = arith.mulf %163, %171 : vector<2x16xf32>
    %180 = arith.addf %178, %179 : vector<2x16xf32>
    %181 = math.tanh %180 : vector<2x16xf32>
    %182 = arith.mulf %177, %181 : vector<2x16xf32>
    %183 = arith.truncf %182 : vector<2x16xf32> to vector<2x16xbf16>
    %c0_67 = arith.constant 0 : index
    %184 = arith.index_cast %149 : i32 to index
    %c0_68 = arith.constant 0 : index
    %c0_69 = arith.constant 0 : index
    %185 = vector.load %arg6[%c0_67, %184, %c0_68, %c0_69] : memref<1x10x2x16xbf16, #tpu.memory_space<vmem>>, vector<1x1x2x16xbf16>
    %186 = vector.shape_cast %185 : vector<1x1x2x16xbf16> to vector<2x16xbf16>
    %187 = vector.shape_cast %183 : vector<2x16xbf16> to vector<1x1x2x16xbf16>
    tpu.vector_store %arg6[%c0_67, %184, %c0_68, %c0_69], %187 {strides = array<i32>} : memref<1x10x2x16xbf16, #tpu.memory_space<vmem>>, vector<1x1x2x16xbf16>,
    %c2_i32_70 = arith.constant 2 : i32
    %188 = arith.muli %c2_i32_70, %arg0 : i32
    %c1_i32_71 = arith.constant 1 : i32
    %189 = arith.subi %c1_i32_71, %188 : i32
    %c4_i32 = arith.constant 4 : i32
    %190 = arith.muli %c4_i32, %189 : i32
    %c9_i32_72 = arith.constant 9 : i32
    %191 = arith.muli %arg0, %c9_i32_72 : i32
    %192 = arith.addi %190, %191 : i32
    %c8 = arith.constant 8 : index
    %c0_73 = arith.constant 0 : index
    %193 = vector.load %arg9[%c8, %c0_73] : memref<20x64xf32, #tpu.memory_space<vmem>>, vector<2x64xf32>
    %c10 = arith.constant 10 : index
    %c0_74 = arith.constant 0 : index
    %194 = vector.load %arg9[%c10, %c0_74] : memref<20x64xf32, #tpu.memory_space<vmem>>, vector<2x64xf32>
    %c0_i32_75 = arith.constant 0 : i32
    %195 = arith.cmpi eq, %arg0, %c0_i32_75 : i32
    %196 = arith.select %195, %193, %194 : vector<2x64xf32>
    %197 = arith.truncf %182 : vector<2x16xf32> to vector<2x16xbf16>
    %cst_76 = arith.constant dense<0.000000e+00> : vector<2x64xf32>
    %198 = tpu.matmul %197, %9, %cst_76 {dimension_numbers = #tpu.dot_dimension_numbers<[1], [0], [0], [1], [0, 0, 1, 1], [], []>} : vector<2x16xbf16>, vector<16x64xbf16>, vector<2x64xf32> -> vector<2x64xf32>
    %199 = arith.addf %196, %198 : vector<2x64xf32>
    %200 = arith.addf %199, %13 : vector<2x64xf32>
    %201 = vector.extract_strided_slice %200 {offsets = [0, 0], sizes = [2, 16], strides = [1, 1]} : vector<2x64xf32> to vector<2x16xf32>
    %202 = arith.negf %201 : vector<2x16xf32>
    %203 = math.exp %202 : vector<2x16xf32>
    %cst_77 = arith.constant 1.000000e+00 : f32
    %204 = vector.broadcast %cst_77 : f32 to vector<2x16xf32>
    %205 = arith.addf %204, %203 : vector<2x16xf32>
    %206 = arith.divf %204, %205 : vector<2x16xf32>
    %207 = vector.extract_strided_slice %200 {offsets = [0, 16], sizes = [2, 16], strides = [1, 1]} : vector<2x64xf32> to vector<2x16xf32>
    %208 = arith.negf %207 : vector<2x16xf32>
    %209 = math.exp %208 : vector<2x16xf32>
    %cst_78 = arith.constant 1.000000e+00 : f32
    %210 = vector.broadcast %cst_78 : f32 to vector<2x16xf32>
    %211 = arith.addf %210, %209 : vector<2x16xf32>
    %212 = arith.divf %210, %211 : vector<2x16xf32>
    %213 = vector.extract_strided_slice %200 {offsets = [0, 32], sizes = [2, 16], strides = [1, 1]} : vector<2x64xf32> to vector<2x16xf32>
    %214 = math.tanh %213 : vector<2x16xf32>
    %215 = vector.extract_strided_slice %200 {offsets = [0, 48], sizes = [2, 16], strides = [1, 1]} : vector<2x64xf32> to vector<2x16xf32>
    %216 = arith.negf %215 : vector<2x16xf32>
    %217 = math.exp %216 : vector<2x16xf32>
    %cst_79 = arith.constant 1.000000e+00 : f32
    %218 = vector.broadcast %cst_79 : f32 to vector<2x16xf32>
    %219 = arith.addf %218, %217 : vector<2x16xf32>
    %220 = arith.divf %218, %219 : vector<2x16xf32>
    %221 = arith.mulf %212, %180 : vector<2x16xf32>
    %222 = arith.mulf %206, %214 : vector<2x16xf32>
    %223 = arith.addf %221, %222 : vector<2x16xf32>
    %224 = math.tanh %223 : vector<2x16xf32>
    %225 = arith.mulf %220, %224 : vector<2x16xf32>
    %226 = arith.truncf %225 : vector<2x16xf32> to vector<2x16xbf16>
    %c0_80 = arith.constant 0 : index
    %227 = arith.index_cast %192 : i32 to index
    %c0_81 = arith.constant 0 : index
    %c0_82 = arith.constant 0 : index
    %228 = vector.load %arg6[%c0_80, %227, %c0_81, %c0_82] : memref<1x10x2x16xbf16, #tpu.memory_space<vmem>>, vector<1x1x2x16xbf16>
    %229 = vector.shape_cast %228 : vector<1x1x2x16xbf16> to vector<2x16xbf16>
    %230 = vector.shape_cast %226 : vector<2x16xbf16> to vector<1x1x2x16xbf16>
    tpu.vector_store %arg6[%c0_80, %227, %c0_81, %c0_82], %230 {strides = array<i32>} : memref<1x10x2x16xbf16, #tpu.memory_space<vmem>>, vector<1x1x2x16xbf16>,
    %c2_i32_83 = arith.constant 2 : i32
    %231 = arith.muli %c2_i32_83, %arg0 : i32
    %c1_i32_84 = arith.constant 1 : i32
    %232 = arith.subi %c1_i32_84, %231 : i32
    %c5_i32 = arith.constant 5 : i32
    %233 = arith.muli %c5_i32, %232 : i32
    %c9_i32_85 = arith.constant 9 : i32
    %234 = arith.muli %arg0, %c9_i32_85 : i32
    %235 = arith.addi %233, %234 : i32
    %c10_86 = arith.constant 10 : index
    %c0_87 = arith.constant 0 : index
    %236 = vector.load %arg9[%c10_86, %c0_87] : memref<20x64xf32, #tpu.memory_space<vmem>>, vector<2x64xf32>
    %c8_88 = arith.constant 8 : index
    %c0_89 = arith.constant 0 : index
    %237 = vector.load %arg9[%c8_88, %c0_89] : memref<20x64xf32, #tpu.memory_space<vmem>>, vector<2x64xf32>
    %c0_i32_90 = arith.constant 0 : i32
    %238 = arith.cmpi eq, %arg0, %c0_i32_90 : i32
    %239 = arith.select %238, %236, %237 : vector<2x64xf32>
    %240 = arith.truncf %225 : vector<2x16xf32> to vector<2x16xbf16>
    %cst_91 = arith.constant dense<0.000000e+00> : vector<2x64xf32>
    %241 = tpu.matmul %240, %9, %cst_91 {dimension_numbers = #tpu.dot_dimension_numbers<[1], [0], [0], [1], [0, 0, 1, 1], [], []>} : vector<2x16xbf16>, vector<16x64xbf16>, vector<2x64xf32> -> vector<2x64xf32>
    %242 = arith.addf %239, %241 : vector<2x64xf32>
    %243 = arith.addf %242, %13 : vector<2x64xf32>
    %244 = vector.extract_strided_slice %243 {offsets = [0, 0], sizes = [2, 16], strides = [1, 1]} : vector<2x64xf32> to vector<2x16xf32>
    %245 = arith.negf %244 : vector<2x16xf32>
    %246 = math.exp %245 : vector<2x16xf32>
    %cst_92 = arith.constant 1.000000e+00 : f32
    %247 = vector.broadcast %cst_92 : f32 to vector<2x16xf32>
    %248 = arith.addf %247, %246 : vector<2x16xf32>
    %249 = arith.divf %247, %248 : vector<2x16xf32>
    %250 = vector.extract_strided_slice %243 {offsets = [0, 16], sizes = [2, 16], strides = [1, 1]} : vector<2x64xf32> to vector<2x16xf32>
    %251 = arith.negf %250 : vector<2x16xf32>
    %252 = math.exp %251 : vector<2x16xf32>
    %cst_93 = arith.constant 1.000000e+00 : f32
    %253 = vector.broadcast %cst_93 : f32 to vector<2x16xf32>
    %254 = arith.addf %253, %252 : vector<2x16xf32>
    %255 = arith.divf %253, %254 : vector<2x16xf32>
    %256 = vector.extract_strided_slice %243 {offsets = [0, 32], sizes = [2, 16], strides = [1, 1]} : vector<2x64xf32> to vector<2x16xf32>
    %257 = math.tanh %256 : vector<2x16xf32>
    %258 = vector.extract_strided_slice %243 {offsets = [0, 48], sizes = [2, 16], strides = [1, 1]} : vector<2x64xf32> to vector<2x16xf32>
    %259 = arith.negf %258 : vector<2x16xf32>
    %260 = math.exp %259 : vector<2x16xf32>
    %cst_94 = arith.constant 1.000000e+00 : f32
    %261 = vector.broadcast %cst_94 : f32 to vector<2x16xf32>
    %262 = arith.addf %261, %260 : vector<2x16xf32>
    %263 = arith.divf %261, %262 : vector<2x16xf32>
    %264 = arith.mulf %255, %223 : vector<2x16xf32>
    %265 = arith.mulf %249, %257 : vector<2x16xf32>
    %266 = arith.addf %264, %265 : vector<2x16xf32>
    %267 = math.tanh %266 : vector<2x16xf32>
    %268 = arith.mulf %263, %267 : vector<2x16xf32>
    %269 = arith.truncf %268 : vector<2x16xf32> to vector<2x16xbf16>
    %c0_95 = arith.constant 0 : index
    %270 = arith.index_cast %235 : i32 to index
    %c0_96 = arith.constant 0 : index
    %c0_97 = arith.constant 0 : index
    %271 = vector.load %arg6[%c0_95, %270, %c0_96, %c0_97] : memref<1x10x2x16xbf16, #tpu.memory_space<vmem>>, vector<1x1x2x16xbf16>
    %272 = vector.shape_cast %271 : vector<1x1x2x16xbf16> to vector<2x16xbf16>
    %273 = vector.shape_cast %269 : vector<2x16xbf16> to vector<1x1x2x16xbf16>
    tpu.vector_store %arg6[%c0_95, %270, %c0_96, %c0_97], %273 {strides = array<i32>} : memref<1x10x2x16xbf16, #tpu.memory_space<vmem>>, vector<1x1x2x16xbf16>,
    %c2_i32_98 = arith.constant 2 : i32
    %274 = arith.muli %c2_i32_98, %arg0 : i32
    %c1_i32_99 = arith.constant 1 : i32
    %275 = arith.subi %c1_i32_99, %274 : i32
    %c6_i32 = arith.constant 6 : i32
    %276 = arith.muli %c6_i32, %275 : i32
    %c9_i32_100 = arith.constant 9 : i32
    %277 = arith.muli %arg0, %c9_i32_100 : i32
    %278 = arith.addi %276, %277 : i32
    %c12_101 = arith.constant 12 : index
    %c0_102 = arith.constant 0 : index
    %279 = vector.load %arg9[%c12_101, %c0_102] : memref<20x64xf32, #tpu.memory_space<vmem>>, vector<2x64xf32>
    %c6_103 = arith.constant 6 : index
    %c0_104 = arith.constant 0 : index
    %280 = vector.load %arg9[%c6_103, %c0_104] : memref<20x64xf32, #tpu.memory_space<vmem>>, vector<2x64xf32>
    %c0_i32_105 = arith.constant 0 : i32
    %281 = arith.cmpi eq, %arg0, %c0_i32_105 : i32
    %282 = arith.select %281, %279, %280 : vector<2x64xf32>
    %283 = arith.truncf %268 : vector<2x16xf32> to vector<2x16xbf16>
    %cst_106 = arith.constant dense<0.000000e+00> : vector<2x64xf32>
    %284 = tpu.matmul %283, %9, %cst_106 {dimension_numbers = #tpu.dot_dimension_numbers<[1], [0], [0], [1], [0, 0, 1, 1], [], []>} : vector<2x16xbf16>, vector<16x64xbf16>, vector<2x64xf32> -> vector<2x64xf32>
    %285 = arith.addf %282, %284 : vector<2x64xf32>
    %286 = arith.addf %285, %13 : vector<2x64xf32>
    %287 = vector.extract_strided_slice %286 {offsets = [0, 0], sizes = [2, 16], strides = [1, 1]} : vector<2x64xf32> to vector<2x16xf32>
    %288 = arith.negf %287 : vector<2x16xf32>
    %289 = math.exp %288 : vector<2x16xf32>
    %cst_107 = arith.constant 1.000000e+00 : f32
    %290 = vector.broadcast %cst_107 : f32 to vector<2x16xf32>
    %291 = arith.addf %290, %289 : vector<2x16xf32>
    %292 = arith.divf %290, %291 : vector<2x16xf32>
    %293 = vector.extract_strided_slice %286 {offsets = [0, 16], sizes = [2, 16], strides = [1, 1]} : vector<2x64xf32> to vector<2x16xf32>
    %294 = arith.negf %293 : vector<2x16xf32>
    %295 = math.exp %294 : vector<2x16xf32>
    %cst_108 = arith.constant 1.000000e+00 : f32
    %296 = vector.broadcast %cst_108 : f32 to vector<2x16xf32>
    %297 = arith.addf %296, %295 : vector<2x16xf32>
    %298 = arith.divf %296, %297 : vector<2x16xf32>
    %299 = vector.extract_strided_slice %286 {offsets = [0, 32], sizes = [2, 16], strides = [1, 1]} : vector<2x64xf32> to vector<2x16xf32>
    %300 = math.tanh %299 : vector<2x16xf32>
    %301 = vector.extract_strided_slice %286 {offsets = [0, 48], sizes = [2, 16], strides = [1, 1]} : vector<2x64xf32> to vector<2x16xf32>
    %302 = arith.negf %301 : vector<2x16xf32>
    %303 = math.exp %302 : vector<2x16xf32>
    %cst_109 = arith.constant 1.000000e+00 : f32
    %304 = vector.broadcast %cst_109 : f32 to vector<2x16xf32>
    %305 = arith.addf %304, %303 : vector<2x16xf32>
    %306 = arith.divf %304, %305 : vector<2x16xf32>
    %307 = arith.mulf %298, %266 : vector<2x16xf32>
    %308 = arith.mulf %292, %300 : vector<2x16xf32>
    %309 = arith.addf %307, %308 : vector<2x16xf32>
    %310 = math.tanh %309 : vector<2x16xf32>
    %311 = arith.mulf %306, %310 : vector<2x16xf32>
    %312 = arith.truncf %311 : vector<2x16xf32> to vector<2x16xbf16>
    %c0_110 = arith.constant 0 : index
    %313 = arith.index_cast %278 : i32 to index
    %c0_111 = arith.constant 0 : index
    %c0_112 = arith.constant 0 : index
    %314 = vector.load %arg6[%c0_110, %313, %c0_111, %c0_112] : memref<1x10x2x16xbf16, #tpu.memory_space<vmem>>, vector<1x1x2x16xbf16>
    %315 = vector.shape_cast %314 : vector<1x1x2x16xbf16> to vector<2x16xbf16>
    %316 = vector.shape_cast %312 : vector<2x16xbf16> to vector<1x1x2x16xbf16>
    tpu.vector_store %arg6[%c0_110, %313, %c0_111, %c0_112], %316 {strides = array<i32>} : memref<1x10x2x16xbf16, #tpu.memory_space<vmem>>, vector<1x1x2x16xbf16>,
    %c2_i32_113 = arith.constant 2 : i32
    %317 = arith.muli %c2_i32_113, %arg0 : i32
    %c1_i32_114 = arith.constant 1 : i32
    %318 = arith.subi %c1_i32_114, %317 : i32
    %c7_i32 = arith.constant 7 : i32
    %319 = arith.muli %c7_i32, %318 : i32
    %c9_i32_115 = arith.constant 9 : i32
    %320 = arith.muli %arg0, %c9_i32_115 : i32
    %321 = arith.addi %319, %320 : i32
    %c14_116 = arith.constant 14 : index
    %c0_117 = arith.constant 0 : index
    %322 = vector.load %arg9[%c14_116, %c0_117] : memref<20x64xf32, #tpu.memory_space<vmem>>, vector<2x64xf32>
    %c4_118 = arith.constant 4 : index
    %c0_119 = arith.constant 0 : index
    %323 = vector.load %arg9[%c4_118, %c0_119] : memref<20x64xf32, #tpu.memory_space<vmem>>, vector<2x64xf32>
    %c0_i32_120 = arith.constant 0 : i32
    %324 = arith.cmpi eq, %arg0, %c0_i32_120 : i32
    %325 = arith.select %324, %322, %323 : vector<2x64xf32>
    %326 = arith.truncf %311 : vector<2x16xf32> to vector<2x16xbf16>
    %cst_121 = arith.constant dense<0.000000e+00> : vector<2x64xf32>
    %327 = tpu.matmul %326, %9, %cst_121 {dimension_numbers = #tpu.dot_dimension_numbers<[1], [0], [0], [1], [0, 0, 1, 1], [], []>} : vector<2x16xbf16>, vector<16x64xbf16>, vector<2x64xf32> -> vector<2x64xf32>
    %328 = arith.addf %325, %327 : vector<2x64xf32>
    %329 = arith.addf %328, %13 : vector<2x64xf32>
    %330 = vector.extract_strided_slice %329 {offsets = [0, 0], sizes = [2, 16], strides = [1, 1]} : vector<2x64xf32> to vector<2x16xf32>
    %331 = arith.negf %330 : vector<2x16xf32>
    %332 = math.exp %331 : vector<2x16xf32>
    %cst_122 = arith.constant 1.000000e+00 : f32
    %333 = vector.broadcast %cst_122 : f32 to vector<2x16xf32>
    %334 = arith.addf %333, %332 : vector<2x16xf32>
    %335 = arith.divf %333, %334 : vector<2x16xf32>
    %336 = vector.extract_strided_slice %329 {offsets = [0, 16], sizes = [2, 16], strides = [1, 1]} : vector<2x64xf32> to vector<2x16xf32>
    %337 = arith.negf %336 : vector<2x16xf32>
    %338 = math.exp %337 : vector<2x16xf32>
    %cst_123 = arith.constant 1.000000e+00 : f32
    %339 = vector.broadcast %cst_123 : f32 to vector<2x16xf32>
    %340 = arith.addf %339, %338 : vector<2x16xf32>
    %341 = arith.divf %339, %340 : vector<2x16xf32>
    %342 = vector.extract_strided_slice %329 {offsets = [0, 32], sizes = [2, 16], strides = [1, 1]} : vector<2x64xf32> to vector<2x16xf32>
    %343 = math.tanh %342 : vector<2x16xf32>
    %344 = vector.extract_strided_slice %329 {offsets = [0, 48], sizes = [2, 16], strides = [1, 1]} : vector<2x64xf32> to vector<2x16xf32>
    %345 = arith.negf %344 : vector<2x16xf32>
    %346 = math.exp %345 : vector<2x16xf32>
    %cst_124 = arith.constant 1.000000e+00 : f32
    %347 = vector.broadcast %cst_124 : f32 to vector<2x16xf32>
    %348 = arith.addf %347, %346 : vector<2x16xf32>
    %349 = arith.divf %347, %348 : vector<2x16xf32>
    %350 = arith.mulf %341, %309 : vector<2x16xf32>
    %351 = arith.mulf %335, %343 : vector<2x16xf32>
    %352 = arith.addf %350, %351 : vector<2x16xf32>
    %353 = math.tanh %352 : vector<2x16xf32>
    %354 = arith.mulf %349, %353 : vector<2x16xf32>
    %355 = arith.truncf %354 : vector<2x16xf32> to vector<2x16xbf16>
    %c0_125 = arith.constant 0 : index
    %356 = arith.index_cast %321 : i32 to index
    %c0_126 = arith.constant 0 : index
    %c0_127 = arith.constant 0 : index
    %357 = vector.load %arg6[%c0_125, %356, %c0_126, %c0_127] : memref<1x10x2x16xbf16, #tpu.memory_space<vmem>>, vector<1x1x2x16xbf16>
    %358 = vector.shape_cast %357 : vector<1x1x2x16xbf16> to vector<2x16xbf16>
    %359 = vector.shape_cast %355 : vector<2x16xbf16> to vector<1x1x2x16xbf16>
    tpu.vector_store %arg6[%c0_125, %356, %c0_126, %c0_127], %359 {strides = array<i32>} : memref<1x10x2x16xbf16, #tpu.memory_space<vmem>>, vector<1x1x2x16xbf16>,
    %c2_i32_128 = arith.constant 2 : i32
    %360 = arith.muli %c2_i32_128, %arg0 : i32
    %c1_i32_129 = arith.constant 1 : i32
    %361 = arith.subi %c1_i32_129, %360 : i32
    %c8_i32 = arith.constant 8 : i32
    %362 = arith.muli %c8_i32, %361 : i32
    %c9_i32_130 = arith.constant 9 : i32
    %363 = arith.muli %arg0, %c9_i32_130 : i32
    %364 = arith.addi %362, %363 : i32
    %c16_131 = arith.constant 16 : index
    %c0_132 = arith.constant 0 : index
    %365 = vector.load %arg9[%c16_131, %c0_132] : memref<20x64xf32, #tpu.memory_space<vmem>>, vector<2x64xf32>
    %c2_133 = arith.constant 2 : index
    %c0_134 = arith.constant 0 : index
    %366 = vector.load %arg9[%c2_133, %c0_134] : memref<20x64xf32, #tpu.memory_space<vmem>>, vector<2x64xf32>
    %c0_i32_135 = arith.constant 0 : i32
    %367 = arith.cmpi eq, %arg0, %c0_i32_135 : i32
    %368 = arith.select %367, %365, %366 : vector<2x64xf32>
    %369 = arith.truncf %354 : vector<2x16xf32> to vector<2x16xbf16>
    %cst_136 = arith.constant dense<0.000000e+00> : vector<2x64xf32>
    %370 = tpu.matmul %369, %9, %cst_136 {dimension_numbers = #tpu.dot_dimension_numbers<[1], [0], [0], [1], [0, 0, 1, 1], [], []>} : vector<2x16xbf16>, vector<16x64xbf16>, vector<2x64xf32> -> vector<2x64xf32>
    %371 = arith.addf %368, %370 : vector<2x64xf32>
    %372 = arith.addf %371, %13 : vector<2x64xf32>
    %373 = vector.extract_strided_slice %372 {offsets = [0, 0], sizes = [2, 16], strides = [1, 1]} : vector<2x64xf32> to vector<2x16xf32>
    %374 = arith.negf %373 : vector<2x16xf32>
    %375 = math.exp %374 : vector<2x16xf32>
    %cst_137 = arith.constant 1.000000e+00 : f32
    %376 = vector.broadcast %cst_137 : f32 to vector<2x16xf32>
    %377 = arith.addf %376, %375 : vector<2x16xf32>
    %378 = arith.divf %376, %377 : vector<2x16xf32>
    %379 = vector.extract_strided_slice %372 {offsets = [0, 16], sizes = [2, 16], strides = [1, 1]} : vector<2x64xf32> to vector<2x16xf32>
    %380 = arith.negf %379 : vector<2x16xf32>
    %381 = math.exp %380 : vector<2x16xf32>
    %cst_138 = arith.constant 1.000000e+00 : f32
    %382 = vector.broadcast %cst_138 : f32 to vector<2x16xf32>
    %383 = arith.addf %382, %381 : vector<2x16xf32>
    %384 = arith.divf %382, %383 : vector<2x16xf32>
    %385 = vector.extract_strided_slice %372 {offsets = [0, 32], sizes = [2, 16], strides = [1, 1]} : vector<2x64xf32> to vector<2x16xf32>
    %386 = math.tanh %385 : vector<2x16xf32>
    %387 = vector.extract_strided_slice %372 {offsets = [0, 48], sizes = [2, 16], strides = [1, 1]} : vector<2x64xf32> to vector<2x16xf32>
    %388 = arith.negf %387 : vector<2x16xf32>
    %389 = math.exp %388 : vector<2x16xf32>
    %cst_139 = arith.constant 1.000000e+00 : f32
    %390 = vector.broadcast %cst_139 : f32 to vector<2x16xf32>
    %391 = arith.addf %390, %389 : vector<2x16xf32>
    %392 = arith.divf %390, %391 : vector<2x16xf32>
    %393 = arith.mulf %384, %352 : vector<2x16xf32>
    %394 = arith.mulf %378, %386 : vector<2x16xf32>
    %395 = arith.addf %393, %394 : vector<2x16xf32>
    %396 = math.tanh %395 : vector<2x16xf32>
    %397 = arith.mulf %392, %396 : vector<2x16xf32>
    %398 = arith.truncf %397 : vector<2x16xf32> to vector<2x16xbf16>
    %c0_140 = arith.constant 0 : index
    %399 = arith.index_cast %364 : i32 to index
    %c0_141 = arith.constant 0 : index
    %c0_142 = arith.constant 0 : index
    %400 = vector.load %arg6[%c0_140, %399, %c0_141, %c0_142] : memref<1x10x2x16xbf16, #tpu.memory_space<vmem>>, vector<1x1x2x16xbf16>
    %401 = vector.shape_cast %400 : vector<1x1x2x16xbf16> to vector<2x16xbf16>
    %402 = vector.shape_cast %398 : vector<2x16xbf16> to vector<1x1x2x16xbf16>
    tpu.vector_store %arg6[%c0_140, %399, %c0_141, %c0_142], %402 {strides = array<i32>} : memref<1x10x2x16xbf16, #tpu.memory_space<vmem>>, vector<1x1x2x16xbf16>,
    %c2_i32_143 = arith.constant 2 : i32
    %403 = arith.muli %c2_i32_143, %arg0 : i32
    %c1_i32_144 = arith.constant 1 : i32
    %404 = arith.subi %c1_i32_144, %403 : i32
    %c9_i32_145 = arith.constant 9 : i32
    %405 = arith.muli %c9_i32_145, %404 : i32
    %c9_i32_146 = arith.constant 9 : i32
    %406 = arith.muli %arg0, %c9_i32_146 : i32
    %407 = arith.addi %405, %406 : i32
    %c18_147 = arith.constant 18 : index
    %c0_148 = arith.constant 0 : index
    %408 = vector.load %arg9[%c18_147, %c0_148] : memref<20x64xf32, #tpu.memory_space<vmem>>, vector<2x64xf32>
    %c0_149 = arith.constant 0 : index
    %c0_150 = arith.constant 0 : index
    %409 = vector.load %arg9[%c0_149, %c0_150] : memref<20x64xf32, #tpu.memory_space<vmem>>, vector<2x64xf32>
    %c0_i32_151 = arith.constant 0 : i32
    %410 = arith.cmpi eq, %arg0, %c0_i32_151 : i32
    %411 = arith.select %410, %408, %409 : vector<2x64xf32>
    %412 = arith.truncf %397 : vector<2x16xf32> to vector<2x16xbf16>
    %cst_152 = arith.constant dense<0.000000e+00> : vector<2x64xf32>
    %413 = tpu.matmul %412, %9, %cst_152 {dimension_numbers = #tpu.dot_dimension_numbers<[1], [0], [0], [1], [0, 0, 1, 1], [], []>} : vector<2x16xbf16>, vector<16x64xbf16>, vector<2x64xf32> -> vector<2x64xf32>
    %414 = arith.addf %411, %413 : vector<2x64xf32>
    %415 = arith.addf %414, %13 : vector<2x64xf32>
    %416 = vector.extract_strided_slice %415 {offsets = [0, 0], sizes = [2, 16], strides = [1, 1]} : vector<2x64xf32> to vector<2x16xf32>
    %417 = arith.negf %416 : vector<2x16xf32>
    %418 = math.exp %417 : vector<2x16xf32>
    %cst_153 = arith.constant 1.000000e+00 : f32
    %419 = vector.broadcast %cst_153 : f32 to vector<2x16xf32>
    %420 = arith.addf %419, %418 : vector<2x16xf32>
    %421 = arith.divf %419, %420 : vector<2x16xf32>
    %422 = vector.extract_strided_slice %415 {offsets = [0, 16], sizes = [2, 16], strides = [1, 1]} : vector<2x64xf32> to vector<2x16xf32>
    %423 = arith.negf %422 : vector<2x16xf32>
    %424 = math.exp %423 : vector<2x16xf32>
    %cst_154 = arith.constant 1.000000e+00 : f32
    %425 = vector.broadcast %cst_154 : f32 to vector<2x16xf32>
    %426 = arith.addf %425, %424 : vector<2x16xf32>
    %427 = arith.divf %425, %426 : vector<2x16xf32>
    %428 = vector.extract_strided_slice %415 {offsets = [0, 32], sizes = [2, 16], strides = [1, 1]} : vector<2x64xf32> to vector<2x16xf32>
    %429 = math.tanh %428 : vector<2x16xf32>
    %430 = vector.extract_strided_slice %415 {offsets = [0, 48], sizes = [2, 16], strides = [1, 1]} : vector<2x64xf32> to vector<2x16xf32>
    %431 = arith.negf %430 : vector<2x16xf32>
    %432 = math.exp %431 : vector<2x16xf32>
    %cst_155 = arith.constant 1.000000e+00 : f32
    %433 = vector.broadcast %cst_155 : f32 to vector<2x16xf32>
    %434 = arith.addf %433, %432 : vector<2x16xf32>
    %435 = arith.divf %433, %434 : vector<2x16xf32>
    %436 = arith.mulf %427, %395 : vector<2x16xf32>
    %437 = arith.mulf %421, %429 : vector<2x16xf32>
    %438 = arith.addf %436, %437 : vector<2x16xf32>
    %439 = math.tanh %438 : vector<2x16xf32>
    %440 = arith.mulf %435, %439 : vector<2x16xf32>
    %441 = arith.truncf %440 : vector<2x16xf32> to vector<2x16xbf16>
    %c0_156 = arith.constant 0 : index
    %442 = arith.index_cast %407 : i32 to index
    %c0_157 = arith.constant 0 : index
    %c0_158 = arith.constant 0 : index
    %443 = vector.load %arg6[%c0_156, %442, %c0_157, %c0_158] : memref<1x10x2x16xbf16, #tpu.memory_space<vmem>>, vector<1x1x2x16xbf16>
    %444 = vector.shape_cast %443 : vector<1x1x2x16xbf16> to vector<2x16xbf16>
    %445 = vector.shape_cast %441 : vector<2x16xbf16> to vector<1x1x2x16xbf16>
    tpu.vector_store %arg6[%c0_156, %442, %c0_157, %c0_158], %445 {strides = array<i32>} : memref<1x10x2x16xbf16, #tpu.memory_space<vmem>>, vector<1x1x2x16xbf16>,
    %c0_159 = arith.constant 0 : index
    %c0_160 = arith.constant 0 : index
    %446 = vector.load %arg7[%c0_159, %c0_160] : memref<2x16xf32, #tpu.memory_space<vmem>>, vector<2x16xf32>
    tpu.vector_store %arg7[%c0_159, %c0_160], %440 {strides = array<i32>} : memref<2x16xf32, #tpu.memory_space<vmem>>, vector<2x16xf32>,
    %c0_161 = arith.constant 0 : index
    %c0_162 = arith.constant 0 : index
    %447 = vector.load %arg8[%c0_161, %c0_162] : memref<2x16xf32, #tpu.memory_space<vmem>>, vector<2x16xf32>
    tpu.vector_store %arg8[%c0_161, %c0_162], %438 {strides = array<i32>} : memref<2x16xf32, #tpu.memory_space<vmem>>, vector<2x16xf32>,
    return
  }
  func.func @transform_0(%arg0: i32, %arg1: i32) -> (i32, i32) {
    %c2_i32 = arith.constant 2 : i32
    %0 = arith.muli %c2_i32, %arg1 : i32
    %c0_i32 = arith.constant 0 : i32
    %1 = arith.subi %c0_i32, %0 : i32
    %2 = arith.muli %arg0, %1 : i32
    %3 = arith.addi %arg1, %2 : i32
    %c0_i32_0 = arith.constant 0 : i32
    %c0_i32_1 = arith.constant 0 : i32
    return %3, %c0_i32_0 : i32, i32
  }
  func.func @transform_1(%arg0: i32, %arg1: i32) -> (i32, i32, i32) {
    %c0_i32 = arith.constant 0 : i32
    %c0_i32_0 = arith.constant 0 : i32
    %c0_i32_1 = arith.constant 0 : i32
    return %arg0, %c0_i32, %c0_i32_0 : i32, i32, i32
  }
  func.func @transform_2(%arg0: i32, %arg1: i32) -> (i32, i32, i32) {
    %c0_i32 = arith.constant 0 : i32
    %c0_i32_0 = arith.constant 0 : i32
    %c0_i32_1 = arith.constant 0 : i32
    return %arg0, %c0_i32, %c0_i32_0 : i32, i32, i32
  }
  func.func @transform_3(%arg0: i32, %arg1: i32) -> (i32, i32, i32) {
    %c0_i32 = arith.constant 0 : i32
    %c0_i32_0 = arith.constant 0 : i32
    %c0_i32_1 = arith.constant 0 : i32
    return %arg0, %c0_i32, %c0_i32_0 : i32, i32, i32
  }
  func.func @transform_4(%arg0: i32, %arg1: i32) -> (i32, i32, i32, i32) {
    %c2_i32 = arith.constant 2 : i32
    %0 = arith.muli %c2_i32, %arg1 : i32
    %c0_i32 = arith.constant 0 : i32
    %1 = arith.subi %c0_i32, %0 : i32
    %2 = arith.muli %arg0, %1 : i32
    %3 = arith.addi %arg1, %2 : i32
    %c0_i32_0 = arith.constant 0 : i32
    %c0_i32_1 = arith.constant 0 : i32
    %c0_i32_2 = arith.constant 0 : i32
    return %arg0, %3, %c0_i32_0, %c0_i32_1 : i32, i32, i32, i32
  }
}

module attributes {stable_mosaic.version = 11 : i64} {
  func.func @_bilstm_seq_kernel(%arg0: i32, %arg1: i32, %arg2: memref<16x16xbf16, #tpu.memory_space<vmem>>, %arg3: memref<1x16x64xbf16, #tpu.memory_space<vmem>>, %arg4: memref<1x16x64xbf16, #tpu.memory_space<vmem>>, %arg5: memref<1x1x64xf32, #tpu.memory_space<vmem>>, %arg6: memref<1x8x2x16xbf16, #tpu.memory_space<vmem>>, %arg7: memref<2x16xf32, #tpu.memory_space<vmem>>, %arg8: memref<2x16xf32, #tpu.memory_space<vmem>>, %arg9: memref<16x64xf32, #tpu.memory_space<vmem>>) attributes {dimension_semantics = [#tpu.dimension_semantics<parallel>, #tpu.dimension_semantics<arbitrary>], iteration_bounds = array<i64: 2, 1>, scalar_prefetch = 0 : i64, scratch_operands = 3 : i64, tpu.core_type = #tpu.core_type<tc>, window_params = [{transform_indices = @transform_0, window_bounds = array<i64: 16, 16>}, {transform_indices = @transform_1, window_bounds = array<i64: 1, 16, 64>}, {transform_indices = @transform_2, window_bounds = array<i64: 1, 16, 64>}, {transform_indices = @transform_3, window_bounds = array<i64: 1, 1, 64>}, {transform_indices = @transform_4, window_bounds = array<i64: 1, 8, 2, 16>}]} {
    %c0_i32 = arith.constant 0 : i32
    %0 = arith.cmpi eq, %arg1, %c0_i32 : i32
    %1 = arith.extui %0 : i1 to i32
    %c0_i32_0 = arith.constant 0 : i32
    %2 = arith.cmpi ne, %1, %c0_i32_0 : i32
    scf.if %2 {
      %cst_135 = arith.constant 0.000000e+00 : f32
      %362 = vector.broadcast %cst_135 : f32 to vector<2x16xf32>
      %c0_136 = arith.constant 0 : index
      %c0_137 = arith.constant 0 : index
      %363 = vector.load %arg7[%c0_136, %c0_137] : memref<2x16xf32, #tpu.memory_space<vmem>>, vector<2x16xf32>
      tpu.vector_store %arg7[%c0_136, %c0_137], %362 {strides = array<i32>} : memref<2x16xf32, #tpu.memory_space<vmem>>, vector<2x16xf32>,
      %cst_138 = arith.constant 0.000000e+00 : f32
      %364 = vector.broadcast %cst_138 : f32 to vector<2x16xf32>
      %c0_139 = arith.constant 0 : index
      %c0_140 = arith.constant 0 : index
      %365 = vector.load %arg8[%c0_139, %c0_140] : memref<2x16xf32, #tpu.memory_space<vmem>>, vector<2x16xf32>
      tpu.vector_store %arg8[%c0_139, %c0_140], %364 {strides = array<i32>} : memref<2x16xf32, #tpu.memory_space<vmem>>, vector<2x16xf32>,
    } else {
    }
    %c0 = arith.constant 0 : index
    %c0_1 = arith.constant 0 : index
    %3 = vector.load %arg2[%c0, %c0_1] : memref<16x16xbf16, #tpu.memory_space<vmem>>, vector<16x16xbf16>
    %c0_2 = arith.constant 0 : index
    %c0_3 = arith.constant 0 : index
    %c0_4 = arith.constant 0 : index
    %4 = vector.load %arg3[%c0_2, %c0_3, %c0_4] : memref<1x16x64xbf16, #tpu.memory_space<vmem>>, vector<1x16x64xbf16>
    %5 = vector.shape_cast %4 : vector<1x16x64xbf16> to vector<16x64xbf16>
    %cst = arith.constant dense<0.000000e+00> : vector<16x64xf32>
    %6 = tpu.matmul %3, %5, %cst {dimension_numbers = #tpu.dot_dimension_numbers<[1], [0], [0], [1], [0, 0, 1, 1], [], []>} : vector<16x16xbf16>, vector<16x64xbf16>, vector<16x64xf32> -> vector<16x64xf32>
    %c0_5 = arith.constant 0 : index
    %c0_6 = arith.constant 0 : index
    %7 = vector.load %arg9[%c0_5, %c0_6] : memref<16x64xf32, #tpu.memory_space<vmem>>, vector<16x64xf32>
    tpu.vector_store %arg9[%c0_5, %c0_6], %6 {strides = array<i32>} : memref<16x64xf32, #tpu.memory_space<vmem>>, vector<16x64xf32>,
    %c0_7 = arith.constant 0 : index
    %c0_8 = arith.constant 0 : index
    %c0_9 = arith.constant 0 : index
    %8 = vector.load %arg4[%c0_7, %c0_8, %c0_9] : memref<1x16x64xbf16, #tpu.memory_space<vmem>>, vector<1x16x64xbf16>
    %9 = vector.shape_cast %8 : vector<1x16x64xbf16> to vector<16x64xbf16>
    %c0_10 = arith.constant 0 : index
    %c0_11 = arith.constant 0 : index
    %c0_12 = arith.constant 0 : index
    %10 = vector.load %arg5[%c0_10, %c0_11, %c0_12] : memref<1x1x64xf32, #tpu.memory_space<vmem>>, vector<1x1x64xf32>
    %11 = vector.shape_cast %10 : vector<1x1x64xf32> to vector<1x64xf32>
    %12 = vector.shape_cast %11 : vector<1x64xf32> to vector<1x64xf32>
    %13 = vector.broadcast %12 : vector<1x64xf32> to vector<2x64xf32>
    %c0_13 = arith.constant 0 : index
    %c0_14 = arith.constant 0 : index
    %14 = vector.load %arg7[%c0_13, %c0_14] : memref<2x16xf32, #tpu.memory_space<vmem>>, vector<2x16xf32>
    %c0_15 = arith.constant 0 : index
    %c0_16 = arith.constant 0 : index
    %15 = vector.load %arg8[%c0_15, %c0_16] : memref<2x16xf32, #tpu.memory_space<vmem>>, vector<2x16xf32>
    %c2_i32 = arith.constant 2 : i32
    %16 = arith.muli %c2_i32, %arg0 : i32
    %c1_i32 = arith.constant 1 : i32
    %17 = arith.subi %c1_i32, %16 : i32
    %c0_i32_17 = arith.constant 0 : i32
    %18 = arith.muli %c0_i32_17, %17 : i32
    %c7_i32 = arith.constant 7 : i32
    %19 = arith.muli %arg0, %c7_i32 : i32
    %20 = arith.addi %18, %19 : i32
    %c0_18 = arith.constant 0 : index
    %c0_19 = arith.constant 0 : index
    %21 = vector.load %arg9[%c0_18, %c0_19] : memref<16x64xf32, #tpu.memory_space<vmem>>, vector<2x64xf32>
    %c14 = arith.constant 14 : index
    %c0_20 = arith.constant 0 : index
    %22 = vector.load %arg9[%c14, %c0_20] : memref<16x64xf32, #tpu.memory_space<vmem>>, vector<2x64xf32>
    %c0_i32_21 = arith.constant 0 : i32
    %23 = arith.cmpi eq, %arg0, %c0_i32_21 : i32
    %24 = arith.select %23, %21, %22 : vector<2x64xf32>
    %25 = arith.truncf %14 : vector<2x16xf32> to vector<2x16xbf16>
    %cst_22 = arith.constant dense<0.000000e+00> : vector<2x64xf32>
    %26 = tpu.matmul %25, %9, %cst_22 {dimension_numbers = #tpu.dot_dimension_numbers<[1], [0], [0], [1], [0, 0, 1, 1], [], []>} : vector<2x16xbf16>, vector<16x64xbf16>, vector<2x64xf32> -> vector<2x64xf32>
    %27 = arith.addf %24, %26 : vector<2x64xf32>
    %28 = arith.addf %27, %13 : vector<2x64xf32>
    %29 = vector.extract_strided_slice %28 {offsets = [0, 0], sizes = [2, 16], strides = [1, 1]} : vector<2x64xf32> to vector<2x16xf32>
    %30 = arith.negf %29 : vector<2x16xf32>
    %31 = math.exp %30 : vector<2x16xf32>
    %cst_23 = arith.constant 1.000000e+00 : f32
    %32 = vector.broadcast %cst_23 : f32 to vector<2x16xf32>
    %33 = arith.addf %32, %31 : vector<2x16xf32>
    %34 = arith.divf %32, %33 : vector<2x16xf32>
    %35 = vector.extract_strided_slice %28 {offsets = [0, 16], sizes = [2, 16], strides = [1, 1]} : vector<2x64xf32> to vector<2x16xf32>
    %36 = arith.negf %35 : vector<2x16xf32>
    %37 = math.exp %36 : vector<2x16xf32>
    %cst_24 = arith.constant 1.000000e+00 : f32
    %38 = vector.broadcast %cst_24 : f32 to vector<2x16xf32>
    %39 = arith.addf %38, %37 : vector<2x16xf32>
    %40 = arith.divf %38, %39 : vector<2x16xf32>
    %41 = vector.extract_strided_slice %28 {offsets = [0, 32], sizes = [2, 16], strides = [1, 1]} : vector<2x64xf32> to vector<2x16xf32>
    %42 = math.tanh %41 : vector<2x16xf32>
    %43 = vector.extract_strided_slice %28 {offsets = [0, 48], sizes = [2, 16], strides = [1, 1]} : vector<2x64xf32> to vector<2x16xf32>
    %44 = arith.negf %43 : vector<2x16xf32>
    %45 = math.exp %44 : vector<2x16xf32>
    %cst_25 = arith.constant 1.000000e+00 : f32
    %46 = vector.broadcast %cst_25 : f32 to vector<2x16xf32>
    %47 = arith.addf %46, %45 : vector<2x16xf32>
    %48 = arith.divf %46, %47 : vector<2x16xf32>
    %49 = arith.mulf %40, %15 : vector<2x16xf32>
    %50 = arith.mulf %34, %42 : vector<2x16xf32>
    %51 = arith.addf %49, %50 : vector<2x16xf32>
    %52 = math.tanh %51 : vector<2x16xf32>
    %53 = arith.mulf %48, %52 : vector<2x16xf32>
    %54 = arith.truncf %53 : vector<2x16xf32> to vector<2x16xbf16>
    %c0_26 = arith.constant 0 : index
    %55 = arith.index_cast %20 : i32 to index
    %c0_27 = arith.constant 0 : index
    %c0_28 = arith.constant 0 : index
    %56 = vector.load %arg6[%c0_26, %55, %c0_27, %c0_28] : memref<1x8x2x16xbf16, #tpu.memory_space<vmem>>, vector<1x1x2x16xbf16>
    %57 = vector.shape_cast %56 : vector<1x1x2x16xbf16> to vector<2x16xbf16>
    %58 = vector.shape_cast %54 : vector<2x16xbf16> to vector<1x1x2x16xbf16>
    tpu.vector_store %arg6[%c0_26, %55, %c0_27, %c0_28], %58 {strides = array<i32>} : memref<1x8x2x16xbf16, #tpu.memory_space<vmem>>, vector<1x1x2x16xbf16>,
    %c2_i32_29 = arith.constant 2 : i32
    %59 = arith.muli %c2_i32_29, %arg0 : i32
    %c1_i32_30 = arith.constant 1 : i32
    %60 = arith.subi %c1_i32_30, %59 : i32
    %c1_i32_31 = arith.constant 1 : i32
    %61 = arith.muli %c1_i32_31, %60 : i32
    %c7_i32_32 = arith.constant 7 : i32
    %62 = arith.muli %arg0, %c7_i32_32 : i32
    %63 = arith.addi %61, %62 : i32
    %c2 = arith.constant 2 : index
    %c0_33 = arith.constant 0 : index
    %64 = vector.load %arg9[%c2, %c0_33] : memref<16x64xf32, #tpu.memory_space<vmem>>, vector<2x64xf32>
    %c12 = arith.constant 12 : index
    %c0_34 = arith.constant 0 : index
    %65 = vector.load %arg9[%c12, %c0_34] : memref<16x64xf32, #tpu.memory_space<vmem>>, vector<2x64xf32>
    %c0_i32_35 = arith.constant 0 : i32
    %66 = arith.cmpi eq, %arg0, %c0_i32_35 : i32
    %67 = arith.select %66, %64, %65 : vector<2x64xf32>
    %68 = arith.truncf %53 : vector<2x16xf32> to vector<2x16xbf16>
    %cst_36 = arith.constant dense<0.000000e+00> : vector<2x64xf32>
    %69 = tpu.matmul %68, %9, %cst_36 {dimension_numbers = #tpu.dot_dimension_numbers<[1], [0], [0], [1], [0, 0, 1, 1], [], []>} : vector<2x16xbf16>, vector<16x64xbf16>, vector<2x64xf32> -> vector<2x64xf32>
    %70 = arith.addf %67, %69 : vector<2x64xf32>
    %71 = arith.addf %70, %13 : vector<2x64xf32>
    %72 = vector.extract_strided_slice %71 {offsets = [0, 0], sizes = [2, 16], strides = [1, 1]} : vector<2x64xf32> to vector<2x16xf32>
    %73 = arith.negf %72 : vector<2x16xf32>
    %74 = math.exp %73 : vector<2x16xf32>
    %cst_37 = arith.constant 1.000000e+00 : f32
    %75 = vector.broadcast %cst_37 : f32 to vector<2x16xf32>
    %76 = arith.addf %75, %74 : vector<2x16xf32>
    %77 = arith.divf %75, %76 : vector<2x16xf32>
    %78 = vector.extract_strided_slice %71 {offsets = [0, 16], sizes = [2, 16], strides = [1, 1]} : vector<2x64xf32> to vector<2x16xf32>
    %79 = arith.negf %78 : vector<2x16xf32>
    %80 = math.exp %79 : vector<2x16xf32>
    %cst_38 = arith.constant 1.000000e+00 : f32
    %81 = vector.broadcast %cst_38 : f32 to vector<2x16xf32>
    %82 = arith.addf %81, %80 : vector<2x16xf32>
    %83 = arith.divf %81, %82 : vector<2x16xf32>
    %84 = vector.extract_strided_slice %71 {offsets = [0, 32], sizes = [2, 16], strides = [1, 1]} : vector<2x64xf32> to vector<2x16xf32>
    %85 = math.tanh %84 : vector<2x16xf32>
    %86 = vector.extract_strided_slice %71 {offsets = [0, 48], sizes = [2, 16], strides = [1, 1]} : vector<2x64xf32> to vector<2x16xf32>
    %87 = arith.negf %86 : vector<2x16xf32>
    %88 = math.exp %87 : vector<2x16xf32>
    %cst_39 = arith.constant 1.000000e+00 : f32
    %89 = vector.broadcast %cst_39 : f32 to vector<2x16xf32>
    %90 = arith.addf %89, %88 : vector<2x16xf32>
    %91 = arith.divf %89, %90 : vector<2x16xf32>
    %92 = arith.mulf %83, %51 : vector<2x16xf32>
    %93 = arith.mulf %77, %85 : vector<2x16xf32>
    %94 = arith.addf %92, %93 : vector<2x16xf32>
    %95 = math.tanh %94 : vector<2x16xf32>
    %96 = arith.mulf %91, %95 : vector<2x16xf32>
    %97 = arith.truncf %96 : vector<2x16xf32> to vector<2x16xbf16>
    %c0_40 = arith.constant 0 : index
    %98 = arith.index_cast %63 : i32 to index
    %c0_41 = arith.constant 0 : index
    %c0_42 = arith.constant 0 : index
    %99 = vector.load %arg6[%c0_40, %98, %c0_41, %c0_42] : memref<1x8x2x16xbf16, #tpu.memory_space<vmem>>, vector<1x1x2x16xbf16>
    %100 = vector.shape_cast %99 : vector<1x1x2x16xbf16> to vector<2x16xbf16>
    %101 = vector.shape_cast %97 : vector<2x16xbf16> to vector<1x1x2x16xbf16>
    tpu.vector_store %arg6[%c0_40, %98, %c0_41, %c0_42], %101 {strides = array<i32>} : memref<1x8x2x16xbf16, #tpu.memory_space<vmem>>, vector<1x1x2x16xbf16>,
    %c2_i32_43 = arith.constant 2 : i32
    %102 = arith.muli %c2_i32_43, %arg0 : i32
    %c1_i32_44 = arith.constant 1 : i32
    %103 = arith.subi %c1_i32_44, %102 : i32
    %c2_i32_45 = arith.constant 2 : i32
    %104 = arith.muli %c2_i32_45, %103 : i32
    %c7_i32_46 = arith.constant 7 : i32
    %105 = arith.muli %arg0, %c7_i32_46 : i32
    %106 = arith.addi %104, %105 : i32
    %c4 = arith.constant 4 : index
    %c0_47 = arith.constant 0 : index
    %107 = vector.load %arg9[%c4, %c0_47] : memref<16x64xf32, #tpu.memory_space<vmem>>, vector<2x64xf32>
    %c10 = arith.constant 10 : index
    %c0_48 = arith.constant 0 : index
    %108 = vector.load %arg9[%c10, %c0_48] : memref<16x64xf32, #tpu.memory_space<vmem>>, vector<2x64xf32>
    %c0_i32_49 = arith.constant 0 : i32
    %109 = arith.cmpi eq, %arg0, %c0_i32_49 : i32
    %110 = arith.select %109, %107, %108 : vector<2x64xf32>
    %111 = arith.truncf %96 : vector<2x16xf32> to vector<2x16xbf16>
    %cst_50 = arith.constant dense<0.000000e+00> : vector<2x64xf32>
    %112 = tpu.matmul %111, %9, %cst_50 {dimension_numbers = #tpu.dot_dimension_numbers<[1], [0], [0], [1], [0, 0, 1, 1], [], []>} : vector<2x16xbf16>, vector<16x64xbf16>, vector<2x64xf32> -> vector<2x64xf32>
    %113 = arith.addf %110, %112 : vector<2x64xf32>
    %114 = arith.addf %113, %13 : vector<2x64xf32>
    %115 = vector.extract_strided_slice %114 {offsets = [0, 0], sizes = [2, 16], strides = [1, 1]} : vector<2x64xf32> to vector<2x16xf32>
    %116 = arith.negf %115 : vector<2x16xf32>
    %117 = math.exp %116 : vector<2x16xf32>
    %cst_51 = arith.constant 1.000000e+00 : f32
    %118 = vector.broadcast %cst_51 : f32 to vector<2x16xf32>
    %119 = arith.addf %118, %117 : vector<2x16xf32>
    %120 = arith.divf %118, %119 : vector<2x16xf32>
    %121 = vector.extract_strided_slice %114 {offsets = [0, 16], sizes = [2, 16], strides = [1, 1]} : vector<2x64xf32> to vector<2x16xf32>
    %122 = arith.negf %121 : vector<2x16xf32>
    %123 = math.exp %122 : vector<2x16xf32>
    %cst_52 = arith.constant 1.000000e+00 : f32
    %124 = vector.broadcast %cst_52 : f32 to vector<2x16xf32>
    %125 = arith.addf %124, %123 : vector<2x16xf32>
    %126 = arith.divf %124, %125 : vector<2x16xf32>
    %127 = vector.extract_strided_slice %114 {offsets = [0, 32], sizes = [2, 16], strides = [1, 1]} : vector<2x64xf32> to vector<2x16xf32>
    %128 = math.tanh %127 : vector<2x16xf32>
    %129 = vector.extract_strided_slice %114 {offsets = [0, 48], sizes = [2, 16], strides = [1, 1]} : vector<2x64xf32> to vector<2x16xf32>
    %130 = arith.negf %129 : vector<2x16xf32>
    %131 = math.exp %130 : vector<2x16xf32>
    %cst_53 = arith.constant 1.000000e+00 : f32
    %132 = vector.broadcast %cst_53 : f32 to vector<2x16xf32>
    %133 = arith.addf %132, %131 : vector<2x16xf32>
    %134 = arith.divf %132, %133 : vector<2x16xf32>
    %135 = arith.mulf %126, %94 : vector<2x16xf32>
    %136 = arith.mulf %120, %128 : vector<2x16xf32>
    %137 = arith.addf %135, %136 : vector<2x16xf32>
    %138 = math.tanh %137 : vector<2x16xf32>
    %139 = arith.mulf %134, %138 : vector<2x16xf32>
    %140 = arith.truncf %139 : vector<2x16xf32> to vector<2x16xbf16>
    %c0_54 = arith.constant 0 : index
    %141 = arith.index_cast %106 : i32 to index
    %c0_55 = arith.constant 0 : index
    %c0_56 = arith.constant 0 : index
    %142 = vector.load %arg6[%c0_54, %141, %c0_55, %c0_56] : memref<1x8x2x16xbf16, #tpu.memory_space<vmem>>, vector<1x1x2x16xbf16>
    %143 = vector.shape_cast %142 : vector<1x1x2x16xbf16> to vector<2x16xbf16>
    %144 = vector.shape_cast %140 : vector<2x16xbf16> to vector<1x1x2x16xbf16>
    tpu.vector_store %arg6[%c0_54, %141, %c0_55, %c0_56], %144 {strides = array<i32>} : memref<1x8x2x16xbf16, #tpu.memory_space<vmem>>, vector<1x1x2x16xbf16>,
    %c2_i32_57 = arith.constant 2 : i32
    %145 = arith.muli %c2_i32_57, %arg0 : i32
    %c1_i32_58 = arith.constant 1 : i32
    %146 = arith.subi %c1_i32_58, %145 : i32
    %c3_i32 = arith.constant 3 : i32
    %147 = arith.muli %c3_i32, %146 : i32
    %c7_i32_59 = arith.constant 7 : i32
    %148 = arith.muli %arg0, %c7_i32_59 : i32
    %149 = arith.addi %147, %148 : i32
    %c6 = arith.constant 6 : index
    %c0_60 = arith.constant 0 : index
    %150 = vector.load %arg9[%c6, %c0_60] : memref<16x64xf32, #tpu.memory_space<vmem>>, vector<2x64xf32>
    %c8 = arith.constant 8 : index
    %c0_61 = arith.constant 0 : index
    %151 = vector.load %arg9[%c8, %c0_61] : memref<16x64xf32, #tpu.memory_space<vmem>>, vector<2x64xf32>
    %c0_i32_62 = arith.constant 0 : i32
    %152 = arith.cmpi eq, %arg0, %c0_i32_62 : i32
    %153 = arith.select %152, %150, %151 : vector<2x64xf32>
    %154 = arith.truncf %139 : vector<2x16xf32> to vector<2x16xbf16>
    %cst_63 = arith.constant dense<0.000000e+00> : vector<2x64xf32>
    %155 = tpu.matmul %154, %9, %cst_63 {dimension_numbers = #tpu.dot_dimension_numbers<[1], [0], [0], [1], [0, 0, 1, 1], [], []>} : vector<2x16xbf16>, vector<16x64xbf16>, vector<2x64xf32> -> vector<2x64xf32>
    %156 = arith.addf %153, %155 : vector<2x64xf32>
    %157 = arith.addf %156, %13 : vector<2x64xf32>
    %158 = vector.extract_strided_slice %157 {offsets = [0, 0], sizes = [2, 16], strides = [1, 1]} : vector<2x64xf32> to vector<2x16xf32>
    %159 = arith.negf %158 : vector<2x16xf32>
    %160 = math.exp %159 : vector<2x16xf32>
    %cst_64 = arith.constant 1.000000e+00 : f32
    %161 = vector.broadcast %cst_64 : f32 to vector<2x16xf32>
    %162 = arith.addf %161, %160 : vector<2x16xf32>
    %163 = arith.divf %161, %162 : vector<2x16xf32>
    %164 = vector.extract_strided_slice %157 {offsets = [0, 16], sizes = [2, 16], strides = [1, 1]} : vector<2x64xf32> to vector<2x16xf32>
    %165 = arith.negf %164 : vector<2x16xf32>
    %166 = math.exp %165 : vector<2x16xf32>
    %cst_65 = arith.constant 1.000000e+00 : f32
    %167 = vector.broadcast %cst_65 : f32 to vector<2x16xf32>
    %168 = arith.addf %167, %166 : vector<2x16xf32>
    %169 = arith.divf %167, %168 : vector<2x16xf32>
    %170 = vector.extract_strided_slice %157 {offsets = [0, 32], sizes = [2, 16], strides = [1, 1]} : vector<2x64xf32> to vector<2x16xf32>
    %171 = math.tanh %170 : vector<2x16xf32>
    %172 = vector.extract_strided_slice %157 {offsets = [0, 48], sizes = [2, 16], strides = [1, 1]} : vector<2x64xf32> to vector<2x16xf32>
    %173 = arith.negf %172 : vector<2x16xf32>
    %174 = math.exp %173 : vector<2x16xf32>
    %cst_66 = arith.constant 1.000000e+00 : f32
    %175 = vector.broadcast %cst_66 : f32 to vector<2x16xf32>
    %176 = arith.addf %175, %174 : vector<2x16xf32>
    %177 = arith.divf %175, %176 : vector<2x16xf32>
    %178 = arith.mulf %169, %137 : vector<2x16xf32>
    %179 = arith.mulf %163, %171 : vector<2x16xf32>
    %180 = arith.addf %178, %179 : vector<2x16xf32>
    %181 = math.tanh %180 : vector<2x16xf32>
    %182 = arith.mulf %177, %181 : vector<2x16xf32>
    %183 = arith.truncf %182 : vector<2x16xf32> to vector<2x16xbf16>
    %c0_67 = arith.constant 0 : index
    %184 = arith.index_cast %149 : i32 to index
    %c0_68 = arith.constant 0 : index
    %c0_69 = arith.constant 0 : index
    %185 = vector.load %arg6[%c0_67, %184, %c0_68, %c0_69] : memref<1x8x2x16xbf16, #tpu.memory_space<vmem>>, vector<1x1x2x16xbf16>
    %186 = vector.shape_cast %185 : vector<1x1x2x16xbf16> to vector<2x16xbf16>
    %187 = vector.shape_cast %183 : vector<2x16xbf16> to vector<1x1x2x16xbf16>
    tpu.vector_store %arg6[%c0_67, %184, %c0_68, %c0_69], %187 {strides = array<i32>} : memref<1x8x2x16xbf16, #tpu.memory_space<vmem>>, vector<1x1x2x16xbf16>,
    %c2_i32_70 = arith.constant 2 : i32
    %188 = arith.muli %c2_i32_70, %arg0 : i32
    %c1_i32_71 = arith.constant 1 : i32
    %189 = arith.subi %c1_i32_71, %188 : i32
    %c4_i32 = arith.constant 4 : i32
    %190 = arith.muli %c4_i32, %189 : i32
    %c7_i32_72 = arith.constant 7 : i32
    %191 = arith.muli %arg0, %c7_i32_72 : i32
    %192 = arith.addi %190, %191 : i32
    %c8_73 = arith.constant 8 : index
    %c0_74 = arith.constant 0 : index
    %193 = vector.load %arg9[%c8_73, %c0_74] : memref<16x64xf32, #tpu.memory_space<vmem>>, vector<2x64xf32>
    %c6_75 = arith.constant 6 : index
    %c0_76 = arith.constant 0 : index
    %194 = vector.load %arg9[%c6_75, %c0_76] : memref<16x64xf32, #tpu.memory_space<vmem>>, vector<2x64xf32>
    %c0_i32_77 = arith.constant 0 : i32
    %195 = arith.cmpi eq, %arg0, %c0_i32_77 : i32
    %196 = arith.select %195, %193, %194 : vector<2x64xf32>
    %197 = arith.truncf %182 : vector<2x16xf32> to vector<2x16xbf16>
    %cst_78 = arith.constant dense<0.000000e+00> : vector<2x64xf32>
    %198 = tpu.matmul %197, %9, %cst_78 {dimension_numbers = #tpu.dot_dimension_numbers<[1], [0], [0], [1], [0, 0, 1, 1], [], []>} : vector<2x16xbf16>, vector<16x64xbf16>, vector<2x64xf32> -> vector<2x64xf32>
    %199 = arith.addf %196, %198 : vector<2x64xf32>
    %200 = arith.addf %199, %13 : vector<2x64xf32>
    %201 = vector.extract_strided_slice %200 {offsets = [0, 0], sizes = [2, 16], strides = [1, 1]} : vector<2x64xf32> to vector<2x16xf32>
    %202 = arith.negf %201 : vector<2x16xf32>
    %203 = math.exp %202 : vector<2x16xf32>
    %cst_79 = arith.constant 1.000000e+00 : f32
    %204 = vector.broadcast %cst_79 : f32 to vector<2x16xf32>
    %205 = arith.addf %204, %203 : vector<2x16xf32>
    %206 = arith.divf %204, %205 : vector<2x16xf32>
    %207 = vector.extract_strided_slice %200 {offsets = [0, 16], sizes = [2, 16], strides = [1, 1]} : vector<2x64xf32> to vector<2x16xf32>
    %208 = arith.negf %207 : vector<2x16xf32>
    %209 = math.exp %208 : vector<2x16xf32>
    %cst_80 = arith.constant 1.000000e+00 : f32
    %210 = vector.broadcast %cst_80 : f32 to vector<2x16xf32>
    %211 = arith.addf %210, %209 : vector<2x16xf32>
    %212 = arith.divf %210, %211 : vector<2x16xf32>
    %213 = vector.extract_strided_slice %200 {offsets = [0, 32], sizes = [2, 16], strides = [1, 1]} : vector<2x64xf32> to vector<2x16xf32>
    %214 = math.tanh %213 : vector<2x16xf32>
    %215 = vector.extract_strided_slice %200 {offsets = [0, 48], sizes = [2, 16], strides = [1, 1]} : vector<2x64xf32> to vector<2x16xf32>
    %216 = arith.negf %215 : vector<2x16xf32>
    %217 = math.exp %216 : vector<2x16xf32>
    %cst_81 = arith.constant 1.000000e+00 : f32
    %218 = vector.broadcast %cst_81 : f32 to vector<2x16xf32>
    %219 = arith.addf %218, %217 : vector<2x16xf32>
    %220 = arith.divf %218, %219 : vector<2x16xf32>
    %221 = arith.mulf %212, %180 : vector<2x16xf32>
    %222 = arith.mulf %206, %214 : vector<2x16xf32>
    %223 = arith.addf %221, %222 : vector<2x16xf32>
    %224 = math.tanh %223 : vector<2x16xf32>
    %225 = arith.mulf %220, %224 : vector<2x16xf32>
    %226 = arith.truncf %225 : vector<2x16xf32> to vector<2x16xbf16>
    %c0_82 = arith.constant 0 : index
    %227 = arith.index_cast %192 : i32 to index
    %c0_83 = arith.constant 0 : index
    %c0_84 = arith.constant 0 : index
    %228 = vector.load %arg6[%c0_82, %227, %c0_83, %c0_84] : memref<1x8x2x16xbf16, #tpu.memory_space<vmem>>, vector<1x1x2x16xbf16>
    %229 = vector.shape_cast %228 : vector<1x1x2x16xbf16> to vector<2x16xbf16>
    %230 = vector.shape_cast %226 : vector<2x16xbf16> to vector<1x1x2x16xbf16>
    tpu.vector_store %arg6[%c0_82, %227, %c0_83, %c0_84], %230 {strides = array<i32>} : memref<1x8x2x16xbf16, #tpu.memory_space<vmem>>, vector<1x1x2x16xbf16>,
    %c2_i32_85 = arith.constant 2 : i32
    %231 = arith.muli %c2_i32_85, %arg0 : i32
    %c1_i32_86 = arith.constant 1 : i32
    %232 = arith.subi %c1_i32_86, %231 : i32
    %c5_i32 = arith.constant 5 : i32
    %233 = arith.muli %c5_i32, %232 : i32
    %c7_i32_87 = arith.constant 7 : i32
    %234 = arith.muli %arg0, %c7_i32_87 : i32
    %235 = arith.addi %233, %234 : i32
    %c10_88 = arith.constant 10 : index
    %c0_89 = arith.constant 0 : index
    %236 = vector.load %arg9[%c10_88, %c0_89] : memref<16x64xf32, #tpu.memory_space<vmem>>, vector<2x64xf32>
    %c4_90 = arith.constant 4 : index
    %c0_91 = arith.constant 0 : index
    %237 = vector.load %arg9[%c4_90, %c0_91] : memref<16x64xf32, #tpu.memory_space<vmem>>, vector<2x64xf32>
    %c0_i32_92 = arith.constant 0 : i32
    %238 = arith.cmpi eq, %arg0, %c0_i32_92 : i32
    %239 = arith.select %238, %236, %237 : vector<2x64xf32>
    %240 = arith.truncf %225 : vector<2x16xf32> to vector<2x16xbf16>
    %cst_93 = arith.constant dense<0.000000e+00> : vector<2x64xf32>
    %241 = tpu.matmul %240, %9, %cst_93 {dimension_numbers = #tpu.dot_dimension_numbers<[1], [0], [0], [1], [0, 0, 1, 1], [], []>} : vector<2x16xbf16>, vector<16x64xbf16>, vector<2x64xf32> -> vector<2x64xf32>
    %242 = arith.addf %239, %241 : vector<2x64xf32>
    %243 = arith.addf %242, %13 : vector<2x64xf32>
    %244 = vector.extract_strided_slice %243 {offsets = [0, 0], sizes = [2, 16], strides = [1, 1]} : vector<2x64xf32> to vector<2x16xf32>
    %245 = arith.negf %244 : vector<2x16xf32>
    %246 = math.exp %245 : vector<2x16xf32>
    %cst_94 = arith.constant 1.000000e+00 : f32
    %247 = vector.broadcast %cst_94 : f32 to vector<2x16xf32>
    %248 = arith.addf %247, %246 : vector<2x16xf32>
    %249 = arith.divf %247, %248 : vector<2x16xf32>
    %250 = vector.extract_strided_slice %243 {offsets = [0, 16], sizes = [2, 16], strides = [1, 1]} : vector<2x64xf32> to vector<2x16xf32>
    %251 = arith.negf %250 : vector<2x16xf32>
    %252 = math.exp %251 : vector<2x16xf32>
    %cst_95 = arith.constant 1.000000e+00 : f32
    %253 = vector.broadcast %cst_95 : f32 to vector<2x16xf32>
    %254 = arith.addf %253, %252 : vector<2x16xf32>
    %255 = arith.divf %253, %254 : vector<2x16xf32>
    %256 = vector.extract_strided_slice %243 {offsets = [0, 32], sizes = [2, 16], strides = [1, 1]} : vector<2x64xf32> to vector<2x16xf32>
    %257 = math.tanh %256 : vector<2x16xf32>
    %258 = vector.extract_strided_slice %243 {offsets = [0, 48], sizes = [2, 16], strides = [1, 1]} : vector<2x64xf32> to vector<2x16xf32>
    %259 = arith.negf %258 : vector<2x16xf32>
    %260 = math.exp %259 : vector<2x16xf32>
    %cst_96 = arith.constant 1.000000e+00 : f32
    %261 = vector.broadcast %cst_96 : f32 to vector<2x16xf32>
    %262 = arith.addf %261, %260 : vector<2x16xf32>
    %263 = arith.divf %261, %262 : vector<2x16xf32>
    %264 = arith.mulf %255, %223 : vector<2x16xf32>
    %265 = arith.mulf %249, %257 : vector<2x16xf32>
    %266 = arith.addf %264, %265 : vector<2x16xf32>
    %267 = math.tanh %266 : vector<2x16xf32>
    %268 = arith.mulf %263, %267 : vector<2x16xf32>
    %269 = arith.truncf %268 : vector<2x16xf32> to vector<2x16xbf16>
    %c0_97 = arith.constant 0 : index
    %270 = arith.index_cast %235 : i32 to index
    %c0_98 = arith.constant 0 : index
    %c0_99 = arith.constant 0 : index
    %271 = vector.load %arg6[%c0_97, %270, %c0_98, %c0_99] : memref<1x8x2x16xbf16, #tpu.memory_space<vmem>>, vector<1x1x2x16xbf16>
    %272 = vector.shape_cast %271 : vector<1x1x2x16xbf16> to vector<2x16xbf16>
    %273 = vector.shape_cast %269 : vector<2x16xbf16> to vector<1x1x2x16xbf16>
    tpu.vector_store %arg6[%c0_97, %270, %c0_98, %c0_99], %273 {strides = array<i32>} : memref<1x8x2x16xbf16, #tpu.memory_space<vmem>>, vector<1x1x2x16xbf16>,
    %c2_i32_100 = arith.constant 2 : i32
    %274 = arith.muli %c2_i32_100, %arg0 : i32
    %c1_i32_101 = arith.constant 1 : i32
    %275 = arith.subi %c1_i32_101, %274 : i32
    %c6_i32 = arith.constant 6 : i32
    %276 = arith.muli %c6_i32, %275 : i32
    %c7_i32_102 = arith.constant 7 : i32
    %277 = arith.muli %arg0, %c7_i32_102 : i32
    %278 = arith.addi %276, %277 : i32
    %c12_103 = arith.constant 12 : index
    %c0_104 = arith.constant 0 : index
    %279 = vector.load %arg9[%c12_103, %c0_104] : memref<16x64xf32, #tpu.memory_space<vmem>>, vector<2x64xf32>
    %c2_105 = arith.constant 2 : index
    %c0_106 = arith.constant 0 : index
    %280 = vector.load %arg9[%c2_105, %c0_106] : memref<16x64xf32, #tpu.memory_space<vmem>>, vector<2x64xf32>
    %c0_i32_107 = arith.constant 0 : i32
    %281 = arith.cmpi eq, %arg0, %c0_i32_107 : i32
    %282 = arith.select %281, %279, %280 : vector<2x64xf32>
    %283 = arith.truncf %268 : vector<2x16xf32> to vector<2x16xbf16>
    %cst_108 = arith.constant dense<0.000000e+00> : vector<2x64xf32>
    %284 = tpu.matmul %283, %9, %cst_108 {dimension_numbers = #tpu.dot_dimension_numbers<[1], [0], [0], [1], [0, 0, 1, 1], [], []>} : vector<2x16xbf16>, vector<16x64xbf16>, vector<2x64xf32> -> vector<2x64xf32>
    %285 = arith.addf %282, %284 : vector<2x64xf32>
    %286 = arith.addf %285, %13 : vector<2x64xf32>
    %287 = vector.extract_strided_slice %286 {offsets = [0, 0], sizes = [2, 16], strides = [1, 1]} : vector<2x64xf32> to vector<2x16xf32>
    %288 = arith.negf %287 : vector<2x16xf32>
    %289 = math.exp %288 : vector<2x16xf32>
    %cst_109 = arith.constant 1.000000e+00 : f32
    %290 = vector.broadcast %cst_109 : f32 to vector<2x16xf32>
    %291 = arith.addf %290, %289 : vector<2x16xf32>
    %292 = arith.divf %290, %291 : vector<2x16xf32>
    %293 = vector.extract_strided_slice %286 {offsets = [0, 16], sizes = [2, 16], strides = [1, 1]} : vector<2x64xf32> to vector<2x16xf32>
    %294 = arith.negf %293 : vector<2x16xf32>
    %295 = math.exp %294 : vector<2x16xf32>
    %cst_110 = arith.constant 1.000000e+00 : f32
    %296 = vector.broadcast %cst_110 : f32 to vector<2x16xf32>
    %297 = arith.addf %296, %295 : vector<2x16xf32>
    %298 = arith.divf %296, %297 : vector<2x16xf32>
    %299 = vector.extract_strided_slice %286 {offsets = [0, 32], sizes = [2, 16], strides = [1, 1]} : vector<2x64xf32> to vector<2x16xf32>
    %300 = math.tanh %299 : vector<2x16xf32>
    %301 = vector.extract_strided_slice %286 {offsets = [0, 48], sizes = [2, 16], strides = [1, 1]} : vector<2x64xf32> to vector<2x16xf32>
    %302 = arith.negf %301 : vector<2x16xf32>
    %303 = math.exp %302 : vector<2x16xf32>
    %cst_111 = arith.constant 1.000000e+00 : f32
    %304 = vector.broadcast %cst_111 : f32 to vector<2x16xf32>
    %305 = arith.addf %304, %303 : vector<2x16xf32>
    %306 = arith.divf %304, %305 : vector<2x16xf32>
    %307 = arith.mulf %298, %266 : vector<2x16xf32>
    %308 = arith.mulf %292, %300 : vector<2x16xf32>
    %309 = arith.addf %307, %308 : vector<2x16xf32>
    %310 = math.tanh %309 : vector<2x16xf32>
    %311 = arith.mulf %306, %310 : vector<2x16xf32>
    %312 = arith.truncf %311 : vector<2x16xf32> to vector<2x16xbf16>
    %c0_112 = arith.constant 0 : index
    %313 = arith.index_cast %278 : i32 to index
    %c0_113 = arith.constant 0 : index
    %c0_114 = arith.constant 0 : index
    %314 = vector.load %arg6[%c0_112, %313, %c0_113, %c0_114] : memref<1x8x2x16xbf16, #tpu.memory_space<vmem>>, vector<1x1x2x16xbf16>
    %315 = vector.shape_cast %314 : vector<1x1x2x16xbf16> to vector<2x16xbf16>
    %316 = vector.shape_cast %312 : vector<2x16xbf16> to vector<1x1x2x16xbf16>
    tpu.vector_store %arg6[%c0_112, %313, %c0_113, %c0_114], %316 {strides = array<i32>} : memref<1x8x2x16xbf16, #tpu.memory_space<vmem>>, vector<1x1x2x16xbf16>,
    %c2_i32_115 = arith.constant 2 : i32
    %317 = arith.muli %c2_i32_115, %arg0 : i32
    %c1_i32_116 = arith.constant 1 : i32
    %318 = arith.subi %c1_i32_116, %317 : i32
    %c7_i32_117 = arith.constant 7 : i32
    %319 = arith.muli %c7_i32_117, %318 : i32
    %c7_i32_118 = arith.constant 7 : i32
    %320 = arith.muli %arg0, %c7_i32_118 : i32
    %321 = arith.addi %319, %320 : i32
    %c14_119 = arith.constant 14 : index
    %c0_120 = arith.constant 0 : index
    %322 = vector.load %arg9[%c14_119, %c0_120] : memref<16x64xf32, #tpu.memory_space<vmem>>, vector<2x64xf32>
    %c0_121 = arith.constant 0 : index
    %c0_122 = arith.constant 0 : index
    %323 = vector.load %arg9[%c0_121, %c0_122] : memref<16x64xf32, #tpu.memory_space<vmem>>, vector<2x64xf32>
    %c0_i32_123 = arith.constant 0 : i32
    %324 = arith.cmpi eq, %arg0, %c0_i32_123 : i32
    %325 = arith.select %324, %322, %323 : vector<2x64xf32>
    %326 = arith.truncf %311 : vector<2x16xf32> to vector<2x16xbf16>
    %cst_124 = arith.constant dense<0.000000e+00> : vector<2x64xf32>
    %327 = tpu.matmul %326, %9, %cst_124 {dimension_numbers = #tpu.dot_dimension_numbers<[1], [0], [0], [1], [0, 0, 1, 1], [], []>} : vector<2x16xbf16>, vector<16x64xbf16>, vector<2x64xf32> -> vector<2x64xf32>
    %328 = arith.addf %325, %327 : vector<2x64xf32>
    %329 = arith.addf %328, %13 : vector<2x64xf32>
    %330 = vector.extract_strided_slice %329 {offsets = [0, 0], sizes = [2, 16], strides = [1, 1]} : vector<2x64xf32> to vector<2x16xf32>
    %331 = arith.negf %330 : vector<2x16xf32>
    %332 = math.exp %331 : vector<2x16xf32>
    %cst_125 = arith.constant 1.000000e+00 : f32
    %333 = vector.broadcast %cst_125 : f32 to vector<2x16xf32>
    %334 = arith.addf %333, %332 : vector<2x16xf32>
    %335 = arith.divf %333, %334 : vector<2x16xf32>
    %336 = vector.extract_strided_slice %329 {offsets = [0, 16], sizes = [2, 16], strides = [1, 1]} : vector<2x64xf32> to vector<2x16xf32>
    %337 = arith.negf %336 : vector<2x16xf32>
    %338 = math.exp %337 : vector<2x16xf32>
    %cst_126 = arith.constant 1.000000e+00 : f32
    %339 = vector.broadcast %cst_126 : f32 to vector<2x16xf32>
    %340 = arith.addf %339, %338 : vector<2x16xf32>
    %341 = arith.divf %339, %340 : vector<2x16xf32>
    %342 = vector.extract_strided_slice %329 {offsets = [0, 32], sizes = [2, 16], strides = [1, 1]} : vector<2x64xf32> to vector<2x16xf32>
    %343 = math.tanh %342 : vector<2x16xf32>
    %344 = vector.extract_strided_slice %329 {offsets = [0, 48], sizes = [2, 16], strides = [1, 1]} : vector<2x64xf32> to vector<2x16xf32>
    %345 = arith.negf %344 : vector<2x16xf32>
    %346 = math.exp %345 : vector<2x16xf32>
    %cst_127 = arith.constant 1.000000e+00 : f32
    %347 = vector.broadcast %cst_127 : f32 to vector<2x16xf32>
    %348 = arith.addf %347, %346 : vector<2x16xf32>
    %349 = arith.divf %347, %348 : vector<2x16xf32>
    %350 = arith.mulf %341, %309 : vector<2x16xf32>
    %351 = arith.mulf %335, %343 : vector<2x16xf32>
    %352 = arith.addf %350, %351 : vector<2x16xf32>
    %353 = math.tanh %352 : vector<2x16xf32>
    %354 = arith.mulf %349, %353 : vector<2x16xf32>
    %355 = arith.truncf %354 : vector<2x16xf32> to vector<2x16xbf16>
    %c0_128 = arith.constant 0 : index
    %356 = arith.index_cast %321 : i32 to index
    %c0_129 = arith.constant 0 : index
    %c0_130 = arith.constant 0 : index
    %357 = vector.load %arg6[%c0_128, %356, %c0_129, %c0_130] : memref<1x8x2x16xbf16, #tpu.memory_space<vmem>>, vector<1x1x2x16xbf16>
    %358 = vector.shape_cast %357 : vector<1x1x2x16xbf16> to vector<2x16xbf16>
    %359 = vector.shape_cast %355 : vector<2x16xbf16> to vector<1x1x2x16xbf16>
    tpu.vector_store %arg6[%c0_128, %356, %c0_129, %c0_130], %359 {strides = array<i32>} : memref<1x8x2x16xbf16, #tpu.memory_space<vmem>>, vector<1x1x2x16xbf16>,
    %c0_131 = arith.constant 0 : index
    %c0_132 = arith.constant 0 : index
    %360 = vector.load %arg7[%c0_131, %c0_132] : memref<2x16xf32, #tpu.memory_space<vmem>>, vector<2x16xf32>
    tpu.vector_store %arg7[%c0_131, %c0_132], %354 {strides = array<i32>} : memref<2x16xf32, #tpu.memory_space<vmem>>, vector<2x16xf32>,
    %c0_133 = arith.constant 0 : index
    %c0_134 = arith.constant 0 : index
    %361 = vector.load %arg8[%c0_133, %c0_134] : memref<2x16xf32, #tpu.memory_space<vmem>>, vector<2x16xf32>
    tpu.vector_store %arg8[%c0_133, %c0_134], %352 {strides = array<i32>} : memref<2x16xf32, #tpu.memory_space<vmem>>, vector<2x16xf32>,
    return
  }
  func.func @transform_0(%arg0: i32, %arg1: i32) -> (i32, i32) {
    %c2_i32 = arith.constant 2 : i32
    %0 = arith.muli %c2_i32, %arg1 : i32
    %c0_i32 = arith.constant 0 : i32
    %1 = arith.subi %c0_i32, %0 : i32
    %2 = arith.muli %arg0, %1 : i32
    %3 = arith.addi %arg1, %2 : i32
    %c0_i32_0 = arith.constant 0 : i32
    %c0_i32_1 = arith.constant 0 : i32
    return %3, %c0_i32_0 : i32, i32
  }
  func.func @transform_1(%arg0: i32, %arg1: i32) -> (i32, i32, i32) {
    %c0_i32 = arith.constant 0 : i32
    %c0_i32_0 = arith.constant 0 : i32
    %c0_i32_1 = arith.constant 0 : i32
    return %arg0, %c0_i32, %c0_i32_0 : i32, i32, i32
  }
  func.func @transform_2(%arg0: i32, %arg1: i32) -> (i32, i32, i32) {
    %c0_i32 = arith.constant 0 : i32
    %c0_i32_0 = arith.constant 0 : i32
    %c0_i32_1 = arith.constant 0 : i32
    return %arg0, %c0_i32, %c0_i32_0 : i32, i32, i32
  }
  func.func @transform_3(%arg0: i32, %arg1: i32) -> (i32, i32, i32) {
    %c0_i32 = arith.constant 0 : i32
    %c0_i32_0 = arith.constant 0 : i32
    %c0_i32_1 = arith.constant 0 : i32
    return %arg0, %c0_i32, %c0_i32_0 : i32, i32, i32
  }
  func.func @transform_4(%arg0: i32, %arg1: i32) -> (i32, i32, i32, i32) {
    %c2_i32 = arith.constant 2 : i32
    %0 = arith.muli %c2_i32, %arg1 : i32
    %c0_i32 = arith.constant 0 : i32
    %1 = arith.subi %c0_i32, %0 : i32
    %2 = arith.muli %arg0, %1 : i32
    %3 = arith.addi %arg1, %2 : i32
    %c0_i32_0 = arith.constant 0 : i32
    %c0_i32_1 = arith.constant 0 : i32
    %c0_i32_2 = arith.constant 0 : i32
    return %arg0, %3, %c0_i32_0, %c0_i32_1 : i32, i32, i32, i32
  }
}

module attributes {stable_mosaic.version = 11 : i64} {
  func.func @_local_inf_kernel(%arg0: i32, %arg1: memref<2x8x32xbf16, #tpu.memory_space<vmem>>, %arg2: memref<2x10x32xbf16, #tpu.memory_space<vmem>>, %arg3: memref<2x8x1xf32, #tpu.memory_space<vmem>>, %arg4: memref<2x1x10xf32, #tpu.memory_space<vmem>>, %arg5: memref<2x8x32xbf16, #tpu.memory_space<vmem>>, %arg6: memref<2x10x32xbf16, #tpu.memory_space<vmem>>) attributes {dimension_semantics = [#tpu.dimension_semantics<parallel>], iteration_bounds = array<i64: 1>, scalar_prefetch = 0 : i64, scratch_operands = 0 : i64, tpu.core_type = #tpu.core_type<tc>, window_params = [{transform_indices = @transform_0, window_bounds = array<i64: 2, 8, 32>}, {transform_indices = @transform_1, window_bounds = array<i64: 2, 10, 32>}, {transform_indices = @transform_2, window_bounds = array<i64: 2, 8, 1>}, {transform_indices = @transform_3, window_bounds = array<i64: 2, 1, 10>}, {transform_indices = @transform_4, window_bounds = array<i64: 2, 8, 32>}, {transform_indices = @transform_5, window_bounds = array<i64: 2, 10, 32>}]} {
    %c0 = arith.constant 0 : index
    %c0_0 = arith.constant 0 : index
    %c0_1 = arith.constant 0 : index
    %0 = vector.load %arg1[%c0, %c0_0, %c0_1] : memref<2x8x32xbf16, #tpu.memory_space<vmem>>, vector<2x8x32xbf16>
    %c0_2 = arith.constant 0 : index
    %c0_3 = arith.constant 0 : index
    %c0_4 = arith.constant 0 : index
    %1 = vector.load %arg2[%c0_2, %c0_3, %c0_4] : memref<2x10x32xbf16, #tpu.memory_space<vmem>>, vector<2x10x32xbf16>
    "tpu.trace_start"() <{level = 10 : i32, message = "bpd,bhd->bph"}> : () -> ()
    %cst = arith.constant dense<0.000000e+00> : vector<2x8x10xf32>
    %2 = tpu.matmul %0, %1, %cst {dimension_numbers = #tpu.dot_dimension_numbers<[2], [2], [1], [1], [0, 0, 0, 1, 1, 1], [0], [0]>} : vector<2x8x32xbf16>, vector<2x10x32xbf16>, vector<2x8x10xf32> -> vector<2x8x10xf32>
    "tpu.trace_stop"() : () -> ()
    %cst_5 = arith.constant dense<0xFF800000> : vector<2x8xf32>
    %3 = vector.multi_reduction <maximumf>, %2, %cst_5 [2] : vector<2x8x10xf32> to vector<2x8xf32>
    %4 = vector.shape_cast %3 : vector<2x8xf32> to vector<2x8x1xf32>
    %cst_6 = arith.constant dense<0xFF800000> : vector<2x1xf32>
    %5 = vector.multi_reduction <maximumf>, %4, %cst_6 [1] : vector<2x8x1xf32> to vector<2x1xf32>
    %6 = vector.shape_cast %5 : vector<2x1xf32> to vector<2x1x1xf32>
    %7 = vector.broadcast %6 : vector<2x1x1xf32> to vector<2x8x10xf32>
    %8 = arith.subf %2, %7 : vector<2x8x10xf32>
    %9 = math.exp %8 : vector<2x8x10xf32>
    %c0_7 = arith.constant 0 : index
    %c0_8 = arith.constant 0 : index
    %c0_9 = arith.constant 0 : index
    %10 = vector.load %arg4[%c0_7, %c0_8, %c0_9] : memref<2x1x10xf32, #tpu.memory_space<vmem>>, vector<2x1x10xf32>
    %11 = vector.broadcast %10 : vector<2x1x10xf32> to vector<2x8x10xf32>
    %12 = arith.mulf %9, %11 : vector<2x8x10xf32>
    %cst_10 = arith.constant dense<0.000000e+00> : vector<2x8xf32>
    %13 = vector.multi_reduction <add>, %12, %cst_10 [2] : vector<2x8x10xf32> to vector<2x8xf32>
    %14 = vector.shape_cast %13 : vector<2x8xf32> to vector<2x8x1xf32>
    %cst_11 = arith.constant 9.99999968E-21 : f32
    %15 = vector.broadcast %cst_11 : f32 to vector<2x8x1xf32>
    %16 = arith.addf %14, %15 : vector<2x8x1xf32>
    %17 = tpu.reciprocal %16 {approx = true} : vector<2x8x1xf32> -> vector<2x8x1xf32>
    %18 = vector.broadcast %17 : vector<2x8x1xf32> to vector<2x8x10xf32>
    %19 = arith.mulf %12, %18 : vector<2x8x10xf32>
    %20 = arith.truncf %19 : vector<2x8x10xf32> to vector<2x8x10xbf16>
    "tpu.trace_start"() <{level = 10 : i32, message = "bph,bhd->bpd"}> : () -> ()
    %cst_12 = arith.constant dense<0.000000e+00> : vector<2x8x32xf32>
    %21 = tpu.matmul %20, %1, %cst_12 {dimension_numbers = #tpu.dot_dimension_numbers<[2], [1], [1], [2], [0, 0, 0, 1, 1, 2], [0], [0]>} : vector<2x8x10xbf16>, vector<2x10x32xbf16>, vector<2x8x32xf32> -> vector<2x8x32xf32>
    "tpu.trace_stop"() : () -> ()
    %22 = arith.truncf %21 : vector<2x8x32xf32> to vector<2x8x32xbf16>
    %c0_13 = arith.constant 0 : index
    %c0_14 = arith.constant 0 : index
    %c0_15 = arith.constant 0 : index
    %23 = vector.load %arg5[%c0_13, %c0_14, %c0_15] : memref<2x8x32xbf16, #tpu.memory_space<vmem>>, vector<2x8x32xbf16>
    tpu.vector_store %arg5[%c0_13, %c0_14, %c0_15], %22 {strides = array<i32>} : memref<2x8x32xbf16, #tpu.memory_space<vmem>>, vector<2x8x32xbf16>,
    %c0_16 = arith.constant 0 : index
    %c0_17 = arith.constant 0 : index
    %c0_18 = arith.constant 0 : index
    %24 = vector.load %arg3[%c0_16, %c0_17, %c0_18] : memref<2x8x1xf32, #tpu.memory_space<vmem>>, vector<2x8x1xf32>
    %25 = vector.broadcast %24 : vector<2x8x1xf32> to vector<2x8x10xf32>
    %26 = arith.mulf %9, %25 : vector<2x8x10xf32>
    %cst_19 = arith.constant dense<0.000000e+00> : vector<2x10xf32>
    %27 = vector.multi_reduction <add>, %26, %cst_19 [1] : vector<2x8x10xf32> to vector<2x10xf32>
    %28 = vector.shape_cast %27 : vector<2x10xf32> to vector<2x1x10xf32>
    %cst_20 = arith.constant 9.99999968E-21 : f32
    %29 = vector.broadcast %cst_20 : f32 to vector<2x1x10xf32>
    %30 = arith.addf %28, %29 : vector<2x1x10xf32>
    %31 = tpu.reciprocal %30 {approx = true} : vector<2x1x10xf32> -> vector<2x1x10xf32>
    %32 = vector.broadcast %31 : vector<2x1x10xf32> to vector<2x8x10xf32>
    %33 = arith.mulf %26, %32 : vector<2x8x10xf32>
    %34 = arith.truncf %33 : vector<2x8x10xf32> to vector<2x8x10xbf16>
    "tpu.trace_start"() <{level = 10 : i32, message = "bph,bpd->bhd"}> : () -> ()
    %cst_21 = arith.constant dense<0.000000e+00> : vector<2x10x32xf32>
    %35 = tpu.matmul %34, %0, %cst_21 {dimension_numbers = #tpu.dot_dimension_numbers<[1], [1], [2], [2], [0, 0, 0, 2, 1, 2], [0], [0]>} : vector<2x8x10xbf16>, vector<2x8x32xbf16>, vector<2x10x32xf32> -> vector<2x10x32xf32>
    "tpu.trace_stop"() : () -> ()
    %36 = arith.truncf %35 : vector<2x10x32xf32> to vector<2x10x32xbf16>
    %c0_22 = arith.constant 0 : index
    %c0_23 = arith.constant 0 : index
    %c0_24 = arith.constant 0 : index
    %37 = vector.load %arg6[%c0_22, %c0_23, %c0_24] : memref<2x10x32xbf16, #tpu.memory_space<vmem>>, vector<2x10x32xbf16>
    tpu.vector_store %arg6[%c0_22, %c0_23, %c0_24], %36 {strides = array<i32>} : memref<2x10x32xbf16, #tpu.memory_space<vmem>>, vector<2x10x32xbf16>,
    return
  }
  func.func @transform_0(%arg0: i32) -> (i32, i32, i32) {
    %c0_i32 = arith.constant 0 : i32
    %c0_i32_0 = arith.constant 0 : i32
    %c0_i32_1 = arith.constant 0 : i32
    return %arg0, %c0_i32, %c0_i32_0 : i32, i32, i32
  }
  func.func @transform_1(%arg0: i32) -> (i32, i32, i32) {
    %c0_i32 = arith.constant 0 : i32
    %c0_i32_0 = arith.constant 0 : i32
    %c0_i32_1 = arith.constant 0 : i32
    return %arg0, %c0_i32, %c0_i32_0 : i32, i32, i32
  }
  func.func @transform_2(%arg0: i32) -> (i32, i32, i32) {
    %c0_i32 = arith.constant 0 : i32
    %c0_i32_0 = arith.constant 0 : i32
    %c0_i32_1 = arith.constant 0 : i32
    return %arg0, %c0_i32, %c0_i32_0 : i32, i32, i32
  }
  func.func @transform_3(%arg0: i32) -> (i32, i32, i32) {
    %c0_i32 = arith.constant 0 : i32
    %c0_i32_0 = arith.constant 0 : i32
    %c0_i32_1 = arith.constant 0 : i32
    return %arg0, %c0_i32, %c0_i32_0 : i32, i32, i32
  }
  func.func @transform_4(%arg0: i32) -> (i32, i32, i32) {
    %c0_i32 = arith.constant 0 : i32
    %c0_i32_0 = arith.constant 0 : i32
    %c0_i32_1 = arith.constant 0 : i32
    return %arg0, %c0_i32, %c0_i32_0 : i32, i32, i32
  }
  func.func @transform_5(%arg0: i32) -> (i32, i32, i32) {
    %c0_i32 = arith.constant 0 : i32
    %c0_i32_0 = arith.constant 0 : i32
    %c0_i32_1 = arith.constant 0 : i32
    return %arg0, %c0_i32, %c0_i32_0 : i32, i32, i32
  }
}

module attributes {stable_mosaic.version = 11 : i64} {
  func.func @_enhance_project_kernel(%arg0: i32, %arg1: memref<16x32xbf16, #tpu.memory_space<vmem>>, %arg2: memref<16x32xbf16, #tpu.memory_space<vmem>>, %arg3: memref<32x16xbf16, #tpu.memory_space<vmem>>, %arg4: memref<32x16xbf16, #tpu.memory_space<vmem>>, %arg5: memref<32x16xbf16, #tpu.memory_space<vmem>>, %arg6: memref<1x16xf32, #tpu.memory_space<vmem>>, %arg7: memref<16x16xbf16, #tpu.memory_space<vmem>>) attributes {dimension_semantics = [#tpu.dimension_semantics<parallel>], iteration_bounds = array<i64: 1>, scalar_prefetch = 0 : i64, scratch_operands = 0 : i64, tpu.core_type = #tpu.core_type<tc>, window_params = [{transform_indices = @transform_0, window_bounds = array<i64: 16, 32>}, {transform_indices = @transform_1, window_bounds = array<i64: 16, 32>}, {pipeline_mode = #tpu.pipeline_mode<synchronous>, transform_indices = @transform_2, window_bounds = array<i64: 32, 16>}, {pipeline_mode = #tpu.pipeline_mode<synchronous>, transform_indices = @transform_3, window_bounds = array<i64: 32, 16>}, {pipeline_mode = #tpu.pipeline_mode<synchronous>, transform_indices = @transform_4, window_bounds = array<i64: 32, 16>}, {pipeline_mode = #tpu.pipeline_mode<synchronous>, transform_indices = @transform_5, window_bounds = array<i64: 1, 16>}, {transform_indices = @transform_6, window_bounds = array<i64: 16, 16>}]} {
    %c0 = arith.constant 0 : index
    %c0_0 = arith.constant 0 : index
    %0 = vector.load %arg1[%c0, %c0_0] : memref<16x32xbf16, #tpu.memory_space<vmem>>, vector<16x32xbf16>
    %c0_1 = arith.constant 0 : index
    %c0_2 = arith.constant 0 : index
    %1 = vector.load %arg2[%c0_1, %c0_2] : memref<16x32xbf16, #tpu.memory_space<vmem>>, vector<16x32xbf16>
    %c0_3 = arith.constant 0 : index
    %c0_4 = arith.constant 0 : index
    %2 = vector.load %arg3[%c0_3, %c0_4] : memref<32x16xbf16, #tpu.memory_space<vmem>>, vector<32x16xbf16>
    %cst = arith.constant dense<0.000000e+00> : vector<16x16xf32>
    %3 = tpu.matmul %0, %2, %cst {dimension_numbers = #tpu.dot_dimension_numbers<[1], [0], [0], [1], [0, 0, 1, 1], [], []>} : vector<16x32xbf16>, vector<32x16xbf16>, vector<16x16xf32> -> vector<16x16xf32>
    %c0_5 = arith.constant 0 : index
    %c0_6 = arith.constant 0 : index
    %4 = vector.load %arg4[%c0_5, %c0_6] : memref<32x16xbf16, #tpu.memory_space<vmem>>, vector<32x16xbf16>
    %cst_7 = arith.constant dense<0.000000e+00> : vector<16x16xf32>
    %5 = tpu.matmul %1, %4, %cst_7 {dimension_numbers = #tpu.dot_dimension_numbers<[1], [0], [0], [1], [0, 0, 1, 1], [], []>} : vector<16x32xbf16>, vector<32x16xbf16>, vector<16x16xf32> -> vector<16x16xf32>
    %6 = arith.addf %3, %5 : vector<16x16xf32>
    %7 = arith.mulf %0, %1 : vector<16x32xbf16>
    %c0_8 = arith.constant 0 : index
    %c0_9 = arith.constant 0 : index
    %8 = vector.load %arg5[%c0_8, %c0_9] : memref<32x16xbf16, #tpu.memory_space<vmem>>, vector<32x16xbf16>
    %cst_10 = arith.constant dense<0.000000e+00> : vector<16x16xf32>
    %9 = tpu.matmul %7, %8, %cst_10 {dimension_numbers = #tpu.dot_dimension_numbers<[1], [0], [0], [1], [0, 0, 1, 1], [], []>} : vector<16x32xbf16>, vector<32x16xbf16>, vector<16x16xf32> -> vector<16x16xf32>
    %10 = arith.addf %6, %9 : vector<16x16xf32>
    %c0_11 = arith.constant 0 : index
    %c0_12 = arith.constant 0 : index
    %11 = vector.load %arg6[%c0_11, %c0_12] : memref<1x16xf32, #tpu.memory_space<vmem>>, vector<1x16xf32>
    %12 = vector.broadcast %11 : vector<1x16xf32> to vector<16x16xf32>
    %13 = arith.addf %10, %12 : vector<16x16xf32>
    %cst_13 = arith.constant 0.000000e+00 : f32
    %14 = vector.broadcast %cst_13 : f32 to vector<16x16xf32>
    %15 = arith.maximumf %13, %14 : vector<16x16xf32>
    %16 = arith.truncf %15 : vector<16x16xf32> to vector<16x16xbf16>
    %c0_14 = arith.constant 0 : index
    %c0_15 = arith.constant 0 : index
    %17 = vector.load %arg7[%c0_14, %c0_15] : memref<16x16xbf16, #tpu.memory_space<vmem>>, vector<16x16xbf16>
    tpu.vector_store %arg7[%c0_14, %c0_15], %16 {strides = array<i32>} : memref<16x16xbf16, #tpu.memory_space<vmem>>, vector<16x16xbf16>,
    return
  }
  func.func @transform_0(%arg0: i32) -> (i32, i32) {
    %c0_i32 = arith.constant 0 : i32
    %c0_i32_0 = arith.constant 0 : i32
    return %arg0, %c0_i32 : i32, i32
  }
  func.func @transform_1(%arg0: i32) -> (i32, i32) {
    %c0_i32 = arith.constant 0 : i32
    %c0_i32_0 = arith.constant 0 : i32
    return %arg0, %c0_i32 : i32, i32
  }
  func.func @transform_2(%arg0: i32) -> (i32, i32) {
    %c0_i32 = arith.constant 0 : i32
    %c0_i32_0 = arith.constant 0 : i32
    %c0_i32_1 = arith.constant 0 : i32
    return %c0_i32, %c0_i32_0 : i32, i32
  }
  func.func @transform_3(%arg0: i32) -> (i32, i32) {
    %c0_i32 = arith.constant 0 : i32
    %c0_i32_0 = arith.constant 0 : i32
    %c0_i32_1 = arith.constant 0 : i32
    return %c0_i32, %c0_i32_0 : i32, i32
  }
  func.func @transform_4(%arg0: i32) -> (i32, i32) {
    %c0_i32 = arith.constant 0 : i32
    %c0_i32_0 = arith.constant 0 : i32
    %c0_i32_1 = arith.constant 0 : i32
    return %c0_i32, %c0_i32_0 : i32, i32
  }
  func.func @transform_5(%arg0: i32) -> (i32, i32) {
    %c0_i32 = arith.constant 0 : i32
    %c0_i32_0 = arith.constant 0 : i32
    %c0_i32_1 = arith.constant 0 : i32
    return %c0_i32, %c0_i32_0 : i32, i32
  }
  func.func @transform_6(%arg0: i32) -> (i32, i32) {
    %c0_i32 = arith.constant 0 : i32
    %c0_i32_0 = arith.constant 0 : i32
    return %arg0, %c0_i32 : i32, i32
  }
}

module attributes {stable_mosaic.version = 11 : i64} {
  func.func @_enhance_project_kernel(%arg0: i32, %arg1: memref<20x32xbf16, #tpu.memory_space<vmem>>, %arg2: memref<20x32xbf16, #tpu.memory_space<vmem>>, %arg3: memref<32x16xbf16, #tpu.memory_space<vmem>>, %arg4: memref<32x16xbf16, #tpu.memory_space<vmem>>, %arg5: memref<32x16xbf16, #tpu.memory_space<vmem>>, %arg6: memref<1x16xf32, #tpu.memory_space<vmem>>, %arg7: memref<20x16xbf16, #tpu.memory_space<vmem>>) attributes {dimension_semantics = [#tpu.dimension_semantics<parallel>], iteration_bounds = array<i64: 1>, scalar_prefetch = 0 : i64, scratch_operands = 0 : i64, tpu.core_type = #tpu.core_type<tc>, window_params = [{transform_indices = @transform_0, window_bounds = array<i64: 20, 32>}, {transform_indices = @transform_1, window_bounds = array<i64: 20, 32>}, {pipeline_mode = #tpu.pipeline_mode<synchronous>, transform_indices = @transform_2, window_bounds = array<i64: 32, 16>}, {pipeline_mode = #tpu.pipeline_mode<synchronous>, transform_indices = @transform_3, window_bounds = array<i64: 32, 16>}, {pipeline_mode = #tpu.pipeline_mode<synchronous>, transform_indices = @transform_4, window_bounds = array<i64: 32, 16>}, {pipeline_mode = #tpu.pipeline_mode<synchronous>, transform_indices = @transform_5, window_bounds = array<i64: 1, 16>}, {transform_indices = @transform_6, window_bounds = array<i64: 20, 16>}]} {
    %c0 = arith.constant 0 : index
    %c0_0 = arith.constant 0 : index
    %0 = vector.load %arg1[%c0, %c0_0] : memref<20x32xbf16, #tpu.memory_space<vmem>>, vector<20x32xbf16>
    %c0_1 = arith.constant 0 : index
    %c0_2 = arith.constant 0 : index
    %1 = vector.load %arg2[%c0_1, %c0_2] : memref<20x32xbf16, #tpu.memory_space<vmem>>, vector<20x32xbf16>
    %c0_3 = arith.constant 0 : index
    %c0_4 = arith.constant 0 : index
    %2 = vector.load %arg3[%c0_3, %c0_4] : memref<32x16xbf16, #tpu.memory_space<vmem>>, vector<32x16xbf16>
    %cst = arith.constant dense<0.000000e+00> : vector<20x16xf32>
    %3 = tpu.matmul %0, %2, %cst {dimension_numbers = #tpu.dot_dimension_numbers<[1], [0], [0], [1], [0, 0, 1, 1], [], []>} : vector<20x32xbf16>, vector<32x16xbf16>, vector<20x16xf32> -> vector<20x16xf32>
    %c0_5 = arith.constant 0 : index
    %c0_6 = arith.constant 0 : index
    %4 = vector.load %arg4[%c0_5, %c0_6] : memref<32x16xbf16, #tpu.memory_space<vmem>>, vector<32x16xbf16>
    %cst_7 = arith.constant dense<0.000000e+00> : vector<20x16xf32>
    %5 = tpu.matmul %1, %4, %cst_7 {dimension_numbers = #tpu.dot_dimension_numbers<[1], [0], [0], [1], [0, 0, 1, 1], [], []>} : vector<20x32xbf16>, vector<32x16xbf16>, vector<20x16xf32> -> vector<20x16xf32>
    %6 = arith.addf %3, %5 : vector<20x16xf32>
    %7 = arith.mulf %0, %1 : vector<20x32xbf16>
    %c0_8 = arith.constant 0 : index
    %c0_9 = arith.constant 0 : index
    %8 = vector.load %arg5[%c0_8, %c0_9] : memref<32x16xbf16, #tpu.memory_space<vmem>>, vector<32x16xbf16>
    %cst_10 = arith.constant dense<0.000000e+00> : vector<20x16xf32>
    %9 = tpu.matmul %7, %8, %cst_10 {dimension_numbers = #tpu.dot_dimension_numbers<[1], [0], [0], [1], [0, 0, 1, 1], [], []>} : vector<20x32xbf16>, vector<32x16xbf16>, vector<20x16xf32> -> vector<20x16xf32>
    %10 = arith.addf %6, %9 : vector<20x16xf32>
    %c0_11 = arith.constant 0 : index
    %c0_12 = arith.constant 0 : index
    %11 = vector.load %arg6[%c0_11, %c0_12] : memref<1x16xf32, #tpu.memory_space<vmem>>, vector<1x16xf32>
    %12 = vector.broadcast %11 : vector<1x16xf32> to vector<20x16xf32>
    %13 = arith.addf %10, %12 : vector<20x16xf32>
    %cst_13 = arith.constant 0.000000e+00 : f32
    %14 = vector.broadcast %cst_13 : f32 to vector<20x16xf32>
    %15 = arith.maximumf %13, %14 : vector<20x16xf32>
    %16 = arith.truncf %15 : vector<20x16xf32> to vector<20x16xbf16>
    %c0_14 = arith.constant 0 : index
    %c0_15 = arith.constant 0 : index
    %17 = vector.load %arg7[%c0_14, %c0_15] : memref<20x16xbf16, #tpu.memory_space<vmem>>, vector<20x16xbf16>
    tpu.vector_store %arg7[%c0_14, %c0_15], %16 {strides = array<i32>} : memref<20x16xbf16, #tpu.memory_space<vmem>>, vector<20x16xbf16>,
    return
  }
  func.func @transform_0(%arg0: i32) -> (i32, i32) {
    %c0_i32 = arith.constant 0 : i32
    %c0_i32_0 = arith.constant 0 : i32
    return %arg0, %c0_i32 : i32, i32
  }
  func.func @transform_1(%arg0: i32) -> (i32, i32) {
    %c0_i32 = arith.constant 0 : i32
    %c0_i32_0 = arith.constant 0 : i32
    return %arg0, %c0_i32 : i32, i32
  }
  func.func @transform_2(%arg0: i32) -> (i32, i32) {
    %c0_i32 = arith.constant 0 : i32
    %c0_i32_0 = arith.constant 0 : i32
    %c0_i32_1 = arith.constant 0 : i32
    return %c0_i32, %c0_i32_0 : i32, i32
  }
  func.func @transform_3(%arg0: i32) -> (i32, i32) {
    %c0_i32 = arith.constant 0 : i32
    %c0_i32_0 = arith.constant 0 : i32
    %c0_i32_1 = arith.constant 0 : i32
    return %c0_i32, %c0_i32_0 : i32, i32
  }
  func.func @transform_4(%arg0: i32) -> (i32, i32) {
    %c0_i32 = arith.constant 0 : i32
    %c0_i32_0 = arith.constant 0 : i32
    %c0_i32_1 = arith.constant 0 : i32
    return %c0_i32, %c0_i32_0 : i32, i32
  }
  func.func @transform_5(%arg0: i32) -> (i32, i32) {
    %c0_i32 = arith.constant 0 : i32
    %c0_i32_0 = arith.constant 0 : i32
    %c0_i32_1 = arith.constant 0 : i32
    return %c0_i32, %c0_i32_0 : i32, i32
  }
  func.func @transform_6(%arg0: i32) -> (i32, i32) {
    %c0_i32 = arith.constant 0 : i32
    %c0_i32_0 = arith.constant 0 : i32
    return %arg0, %c0_i32 : i32, i32
  }
}

module attributes {stable_mosaic.version = 11 : i64} {
  func.func @_bilstm_pool_kernel(%arg0: i32, %arg1: i32, %arg2: memref<16x16xbf16, #tpu.memory_space<vmem>>, %arg3: memref<1x16x64xbf16, #tpu.memory_space<vmem>>, %arg4: memref<1x16x64xbf16, #tpu.memory_space<vmem>>, %arg5: memref<1x1x64xf32, #tpu.memory_space<vmem>>, %arg6: memref<1x2x16xf32, #tpu.memory_space<vmem>>, %arg7: memref<1x2x16xf32, #tpu.memory_space<vmem>>, %arg8: memref<2x16xf32, #tpu.memory_space<vmem>>, %arg9: memref<2x16xf32, #tpu.memory_space<vmem>>, %arg10: memref<16x64xf32, #tpu.memory_space<vmem>>) attributes {dimension_semantics = [#tpu.dimension_semantics<parallel>, #tpu.dimension_semantics<arbitrary>], iteration_bounds = array<i64: 2, 1>, scalar_prefetch = 0 : i64, scratch_operands = 3 : i64, tpu.core_type = #tpu.core_type<tc>, window_params = [{transform_indices = @transform_0, window_bounds = array<i64: 16, 16>}, {transform_indices = @transform_1, window_bounds = array<i64: 1, 16, 64>}, {transform_indices = @transform_2, window_bounds = array<i64: 1, 16, 64>}, {transform_indices = @transform_3, window_bounds = array<i64: 1, 1, 64>}, {transform_indices = @transform_4, window_bounds = array<i64: 1, 2, 16>}, {transform_indices = @transform_5, window_bounds = array<i64: 1, 2, 16>}]} {
    %c0_i32 = arith.constant 0 : i32
    %0 = arith.cmpi eq, %arg1, %c0_i32 : i32
    %1 = arith.extui %0 : i1 to i32
    %c0_i32_0 = arith.constant 0 : i32
    %2 = arith.cmpi ne, %1, %c0_i32_0 : i32
    scf.if %2 {
      %cst_100 = arith.constant 0.000000e+00 : f32
      %312 = vector.broadcast %cst_100 : f32 to vector<2x16xf32>
      %c0_101 = arith.constant 0 : index
      %c0_102 = arith.constant 0 : index
      %313 = vector.load %arg8[%c0_101, %c0_102] : memref<2x16xf32, #tpu.memory_space<vmem>>, vector<2x16xf32>
      tpu.vector_store %arg8[%c0_101, %c0_102], %312 {strides = array<i32>} : memref<2x16xf32, #tpu.memory_space<vmem>>, vector<2x16xf32>,
      %cst_103 = arith.constant 0.000000e+00 : f32
      %314 = vector.broadcast %cst_103 : f32 to vector<2x16xf32>
      %c0_104 = arith.constant 0 : index
      %c0_105 = arith.constant 0 : index
      %315 = vector.load %arg9[%c0_104, %c0_105] : memref<2x16xf32, #tpu.memory_space<vmem>>, vector<2x16xf32>
      tpu.vector_store %arg9[%c0_104, %c0_105], %314 {strides = array<i32>} : memref<2x16xf32, #tpu.memory_space<vmem>>, vector<2x16xf32>,
      %cst_106 = arith.constant 0.000000e+00 : f32
      %316 = vector.broadcast %cst_106 : f32 to vector<2x16xf32>
      %c0_107 = arith.constant 0 : index
      %c0_108 = arith.constant 0 : index
      %c0_109 = arith.constant 0 : index
      %317 = vector.load %arg6[%c0_107, %c0_108, %c0_109] : memref<1x2x16xf32, #tpu.memory_space<vmem>>, vector<1x2x16xf32>
      %318 = vector.shape_cast %317 : vector<1x2x16xf32> to vector<2x16xf32>
      %319 = vector.shape_cast %316 : vector<2x16xf32> to vector<1x2x16xf32>
      tpu.vector_store %arg6[%c0_107, %c0_108, %c0_109], %319 {strides = array<i32>} : memref<1x2x16xf32, #tpu.memory_space<vmem>>, vector<1x2x16xf32>,
      %cst_110 = arith.constant 0xFF800000 : f32
      %320 = vector.broadcast %cst_110 : f32 to vector<2x16xf32>
      %c0_111 = arith.constant 0 : index
      %c0_112 = arith.constant 0 : index
      %c0_113 = arith.constant 0 : index
      %321 = vector.load %arg7[%c0_111, %c0_112, %c0_113] : memref<1x2x16xf32, #tpu.memory_space<vmem>>, vector<1x2x16xf32>
      %322 = vector.shape_cast %321 : vector<1x2x16xf32> to vector<2x16xf32>
      %323 = vector.shape_cast %320 : vector<2x16xf32> to vector<1x2x16xf32>
      tpu.vector_store %arg7[%c0_111, %c0_112, %c0_113], %323 {strides = array<i32>} : memref<1x2x16xf32, #tpu.memory_space<vmem>>, vector<1x2x16xf32>,
    } else {
    }
    %cst = arith.constant 0.000000e+00 : f32
    %3 = vector.broadcast %cst : f32 to vector<2x16xf32>
    %cst_1 = arith.constant 0xFF800000 : f32
    %4 = vector.broadcast %cst_1 : f32 to vector<2x16xf32>
    %c0 = arith.constant 0 : index
    %c0_2 = arith.constant 0 : index
    %5 = vector.load %arg2[%c0, %c0_2] : memref<16x16xbf16, #tpu.memory_space<vmem>>, vector<16x16xbf16>
    %c0_3 = arith.constant 0 : index
    %c0_4 = arith.constant 0 : index
    %c0_5 = arith.constant 0 : index
    %6 = vector.load %arg3[%c0_3, %c0_4, %c0_5] : memref<1x16x64xbf16, #tpu.memory_space<vmem>>, vector<1x16x64xbf16>
    %7 = vector.shape_cast %6 : vector<1x16x64xbf16> to vector<16x64xbf16>
    %cst_6 = arith.constant dense<0.000000e+00> : vector<16x64xf32>
    %8 = tpu.matmul %5, %7, %cst_6 {dimension_numbers = #tpu.dot_dimension_numbers<[1], [0], [0], [1], [0, 0, 1, 1], [], []>} : vector<16x16xbf16>, vector<16x64xbf16>, vector<16x64xf32> -> vector<16x64xf32>
    %c0_7 = arith.constant 0 : index
    %c0_8 = arith.constant 0 : index
    %9 = vector.load %arg10[%c0_7, %c0_8] : memref<16x64xf32, #tpu.memory_space<vmem>>, vector<16x64xf32>
    tpu.vector_store %arg10[%c0_7, %c0_8], %8 {strides = array<i32>} : memref<16x64xf32, #tpu.memory_space<vmem>>, vector<16x64xf32>,
    %c0_9 = arith.constant 0 : index
    %c0_10 = arith.constant 0 : index
    %c0_11 = arith.constant 0 : index
    %10 = vector.load %arg4[%c0_9, %c0_10, %c0_11] : memref<1x16x64xbf16, #tpu.memory_space<vmem>>, vector<1x16x64xbf16>
    %11 = vector.shape_cast %10 : vector<1x16x64xbf16> to vector<16x64xbf16>
    %c0_12 = arith.constant 0 : index
    %c0_13 = arith.constant 0 : index
    %c0_14 = arith.constant 0 : index
    %12 = vector.load %arg5[%c0_12, %c0_13, %c0_14] : memref<1x1x64xf32, #tpu.memory_space<vmem>>, vector<1x1x64xf32>
    %13 = vector.shape_cast %12 : vector<1x1x64xf32> to vector<1x64xf32>
    %14 = vector.shape_cast %13 : vector<1x64xf32> to vector<1x64xf32>
    %15 = vector.broadcast %14 : vector<1x64xf32> to vector<2x64xf32>
    %c0_15 = arith.constant 0 : index
    %c0_16 = arith.constant 0 : index
    %16 = vector.load %arg8[%c0_15, %c0_16] : memref<2x16xf32, #tpu.memory_space<vmem>>, vector<2x16xf32>
    %c0_17 = arith.constant 0 : index
    %c0_18 = arith.constant 0 : index
    %17 = vector.load %arg9[%c0_17, %c0_18] : memref<2x16xf32, #tpu.memory_space<vmem>>, vector<2x16xf32>
    %c0_19 = arith.constant 0 : index
    %c0_20 = arith.constant 0 : index
    %18 = vector.load %arg10[%c0_19, %c0_20] : memref<16x64xf32, #tpu.memory_space<vmem>>, vector<2x64xf32>
    %c14 = arith.constant 14 : index
    %c0_21 = arith.constant 0 : index
    %19 = vector.load %arg10[%c14, %c0_21] : memref<16x64xf32, #tpu.memory_space<vmem>>, vector<2x64xf32>
    %c0_i32_22 = arith.constant 0 : i32
    %20 = arith.cmpi eq, %arg0, %c0_i32_22 : i32
    %21 = arith.select %20, %18, %19 : vector<2x64xf32>
    %22 = arith.truncf %16 : vector<2x16xf32> to vector<2x16xbf16>
    %cst_23 = arith.constant dense<0.000000e+00> : vector<2x64xf32>
    %23 = tpu.matmul %22, %11, %cst_23 {dimension_numbers = #tpu.dot_dimension_numbers<[1], [0], [0], [1], [0, 0, 1, 1], [], []>} : vector<2x16xbf16>, vector<16x64xbf16>, vector<2x64xf32> -> vector<2x64xf32>
    %24 = arith.addf %21, %23 : vector<2x64xf32>
    %25 = arith.addf %24, %15 : vector<2x64xf32>
    %26 = vector.extract_strided_slice %25 {offsets = [0, 0], sizes = [2, 16], strides = [1, 1]} : vector<2x64xf32> to vector<2x16xf32>
    %27 = arith.negf %26 : vector<2x16xf32>
    %28 = math.exp %27 : vector<2x16xf32>
    %cst_24 = arith.constant 1.000000e+00 : f32
    %29 = vector.broadcast %cst_24 : f32 to vector<2x16xf32>
    %30 = arith.addf %29, %28 : vector<2x16xf32>
    %31 = arith.divf %29, %30 : vector<2x16xf32>
    %32 = vector.extract_strided_slice %25 {offsets = [0, 16], sizes = [2, 16], strides = [1, 1]} : vector<2x64xf32> to vector<2x16xf32>
    %33 = arith.negf %32 : vector<2x16xf32>
    %34 = math.exp %33 : vector<2x16xf32>
    %cst_25 = arith.constant 1.000000e+00 : f32
    %35 = vector.broadcast %cst_25 : f32 to vector<2x16xf32>
    %36 = arith.addf %35, %34 : vector<2x16xf32>
    %37 = arith.divf %35, %36 : vector<2x16xf32>
    %38 = vector.extract_strided_slice %25 {offsets = [0, 32], sizes = [2, 16], strides = [1, 1]} : vector<2x64xf32> to vector<2x16xf32>
    %39 = math.tanh %38 : vector<2x16xf32>
    %40 = vector.extract_strided_slice %25 {offsets = [0, 48], sizes = [2, 16], strides = [1, 1]} : vector<2x64xf32> to vector<2x16xf32>
    %41 = arith.negf %40 : vector<2x16xf32>
    %42 = math.exp %41 : vector<2x16xf32>
    %cst_26 = arith.constant 1.000000e+00 : f32
    %43 = vector.broadcast %cst_26 : f32 to vector<2x16xf32>
    %44 = arith.addf %43, %42 : vector<2x16xf32>
    %45 = arith.divf %43, %44 : vector<2x16xf32>
    %46 = arith.mulf %37, %17 : vector<2x16xf32>
    %47 = arith.mulf %31, %39 : vector<2x16xf32>
    %48 = arith.addf %46, %47 : vector<2x16xf32>
    %49 = math.tanh %48 : vector<2x16xf32>
    %50 = arith.mulf %45, %49 : vector<2x16xf32>
    %51 = arith.addf %3, %50 : vector<2x16xf32>
    %52 = arith.maximumf %4, %50 : vector<2x16xf32>
    %c2 = arith.constant 2 : index
    %c0_27 = arith.constant 0 : index
    %53 = vector.load %arg10[%c2, %c0_27] : memref<16x64xf32, #tpu.memory_space<vmem>>, vector<2x64xf32>
    %c12 = arith.constant 12 : index
    %c0_28 = arith.constant 0 : index
    %54 = vector.load %arg10[%c12, %c0_28] : memref<16x64xf32, #tpu.memory_space<vmem>>, vector<2x64xf32>
    %c0_i32_29 = arith.constant 0 : i32
    %55 = arith.cmpi eq, %arg0, %c0_i32_29 : i32
    %56 = arith.select %55, %53, %54 : vector<2x64xf32>
    %57 = arith.truncf %50 : vector<2x16xf32> to vector<2x16xbf16>
    %cst_30 = arith.constant dense<0.000000e+00> : vector<2x64xf32>
    %58 = tpu.matmul %57, %11, %cst_30 {dimension_numbers = #tpu.dot_dimension_numbers<[1], [0], [0], [1], [0, 0, 1, 1], [], []>} : vector<2x16xbf16>, vector<16x64xbf16>, vector<2x64xf32> -> vector<2x64xf32>
    %59 = arith.addf %56, %58 : vector<2x64xf32>
    %60 = arith.addf %59, %15 : vector<2x64xf32>
    %61 = vector.extract_strided_slice %60 {offsets = [0, 0], sizes = [2, 16], strides = [1, 1]} : vector<2x64xf32> to vector<2x16xf32>
    %62 = arith.negf %61 : vector<2x16xf32>
    %63 = math.exp %62 : vector<2x16xf32>
    %cst_31 = arith.constant 1.000000e+00 : f32
    %64 = vector.broadcast %cst_31 : f32 to vector<2x16xf32>
    %65 = arith.addf %64, %63 : vector<2x16xf32>
    %66 = arith.divf %64, %65 : vector<2x16xf32>
    %67 = vector.extract_strided_slice %60 {offsets = [0, 16], sizes = [2, 16], strides = [1, 1]} : vector<2x64xf32> to vector<2x16xf32>
    %68 = arith.negf %67 : vector<2x16xf32>
    %69 = math.exp %68 : vector<2x16xf32>
    %cst_32 = arith.constant 1.000000e+00 : f32
    %70 = vector.broadcast %cst_32 : f32 to vector<2x16xf32>
    %71 = arith.addf %70, %69 : vector<2x16xf32>
    %72 = arith.divf %70, %71 : vector<2x16xf32>
    %73 = vector.extract_strided_slice %60 {offsets = [0, 32], sizes = [2, 16], strides = [1, 1]} : vector<2x64xf32> to vector<2x16xf32>
    %74 = math.tanh %73 : vector<2x16xf32>
    %75 = vector.extract_strided_slice %60 {offsets = [0, 48], sizes = [2, 16], strides = [1, 1]} : vector<2x64xf32> to vector<2x16xf32>
    %76 = arith.negf %75 : vector<2x16xf32>
    %77 = math.exp %76 : vector<2x16xf32>
    %cst_33 = arith.constant 1.000000e+00 : f32
    %78 = vector.broadcast %cst_33 : f32 to vector<2x16xf32>
    %79 = arith.addf %78, %77 : vector<2x16xf32>
    %80 = arith.divf %78, %79 : vector<2x16xf32>
    %81 = arith.mulf %72, %48 : vector<2x16xf32>
    %82 = arith.mulf %66, %74 : vector<2x16xf32>
    %83 = arith.addf %81, %82 : vector<2x16xf32>
    %84 = math.tanh %83 : vector<2x16xf32>
    %85 = arith.mulf %80, %84 : vector<2x16xf32>
    %86 = arith.addf %51, %85 : vector<2x16xf32>
    %87 = arith.maximumf %52, %85 : vector<2x16xf32>
    %c4 = arith.constant 4 : index
    %c0_34 = arith.constant 0 : index
    %88 = vector.load %arg10[%c4, %c0_34] : memref<16x64xf32, #tpu.memory_space<vmem>>, vector<2x64xf32>
    %c10 = arith.constant 10 : index
    %c0_35 = arith.constant 0 : index
    %89 = vector.load %arg10[%c10, %c0_35] : memref<16x64xf32, #tpu.memory_space<vmem>>, vector<2x64xf32>
    %c0_i32_36 = arith.constant 0 : i32
    %90 = arith.cmpi eq, %arg0, %c0_i32_36 : i32
    %91 = arith.select %90, %88, %89 : vector<2x64xf32>
    %92 = arith.truncf %85 : vector<2x16xf32> to vector<2x16xbf16>
    %cst_37 = arith.constant dense<0.000000e+00> : vector<2x64xf32>
    %93 = tpu.matmul %92, %11, %cst_37 {dimension_numbers = #tpu.dot_dimension_numbers<[1], [0], [0], [1], [0, 0, 1, 1], [], []>} : vector<2x16xbf16>, vector<16x64xbf16>, vector<2x64xf32> -> vector<2x64xf32>
    %94 = arith.addf %91, %93 : vector<2x64xf32>
    %95 = arith.addf %94, %15 : vector<2x64xf32>
    %96 = vector.extract_strided_slice %95 {offsets = [0, 0], sizes = [2, 16], strides = [1, 1]} : vector<2x64xf32> to vector<2x16xf32>
    %97 = arith.negf %96 : vector<2x16xf32>
    %98 = math.exp %97 : vector<2x16xf32>
    %cst_38 = arith.constant 1.000000e+00 : f32
    %99 = vector.broadcast %cst_38 : f32 to vector<2x16xf32>
    %100 = arith.addf %99, %98 : vector<2x16xf32>
    %101 = arith.divf %99, %100 : vector<2x16xf32>
    %102 = vector.extract_strided_slice %95 {offsets = [0, 16], sizes = [2, 16], strides = [1, 1]} : vector<2x64xf32> to vector<2x16xf32>
    %103 = arith.negf %102 : vector<2x16xf32>
    %104 = math.exp %103 : vector<2x16xf32>
    %cst_39 = arith.constant 1.000000e+00 : f32
    %105 = vector.broadcast %cst_39 : f32 to vector<2x16xf32>
    %106 = arith.addf %105, %104 : vector<2x16xf32>
    %107 = arith.divf %105, %106 : vector<2x16xf32>
    %108 = vector.extract_strided_slice %95 {offsets = [0, 32], sizes = [2, 16], strides = [1, 1]} : vector<2x64xf32> to vector<2x16xf32>
    %109 = math.tanh %108 : vector<2x16xf32>
    %110 = vector.extract_strided_slice %95 {offsets = [0, 48], sizes = [2, 16], strides = [1, 1]} : vector<2x64xf32> to vector<2x16xf32>
    %111 = arith.negf %110 : vector<2x16xf32>
    %112 = math.exp %111 : vector<2x16xf32>
    %cst_40 = arith.constant 1.000000e+00 : f32
    %113 = vector.broadcast %cst_40 : f32 to vector<2x16xf32>
    %114 = arith.addf %113, %112 : vector<2x16xf32>
    %115 = arith.divf %113, %114 : vector<2x16xf32>
    %116 = arith.mulf %107, %83 : vector<2x16xf32>
    %117 = arith.mulf %101, %109 : vector<2x16xf32>
    %118 = arith.addf %116, %117 : vector<2x16xf32>
    %119 = math.tanh %118 : vector<2x16xf32>
    %120 = arith.mulf %115, %119 : vector<2x16xf32>
    %121 = arith.addf %86, %120 : vector<2x16xf32>
    %122 = arith.maximumf %87, %120 : vector<2x16xf32>
    %c6 = arith.constant 6 : index
    %c0_41 = arith.constant 0 : index
    %123 = vector.load %arg10[%c6, %c0_41] : memref<16x64xf32, #tpu.memory_space<vmem>>, vector<2x64xf32>
    %c8 = arith.constant 8 : index
    %c0_42 = arith.constant 0 : index
    %124 = vector.load %arg10[%c8, %c0_42] : memref<16x64xf32, #tpu.memory_space<vmem>>, vector<2x64xf32>
    %c0_i32_43 = arith.constant 0 : i32
    %125 = arith.cmpi eq, %arg0, %c0_i32_43 : i32
    %126 = arith.select %125, %123, %124 : vector<2x64xf32>
    %127 = arith.truncf %120 : vector<2x16xf32> to vector<2x16xbf16>
    %cst_44 = arith.constant dense<0.000000e+00> : vector<2x64xf32>
    %128 = tpu.matmul %127, %11, %cst_44 {dimension_numbers = #tpu.dot_dimension_numbers<[1], [0], [0], [1], [0, 0, 1, 1], [], []>} : vector<2x16xbf16>, vector<16x64xbf16>, vector<2x64xf32> -> vector<2x64xf32>
    %129 = arith.addf %126, %128 : vector<2x64xf32>
    %130 = arith.addf %129, %15 : vector<2x64xf32>
    %131 = vector.extract_strided_slice %130 {offsets = [0, 0], sizes = [2, 16], strides = [1, 1]} : vector<2x64xf32> to vector<2x16xf32>
    %132 = arith.negf %131 : vector<2x16xf32>
    %133 = math.exp %132 : vector<2x16xf32>
    %cst_45 = arith.constant 1.000000e+00 : f32
    %134 = vector.broadcast %cst_45 : f32 to vector<2x16xf32>
    %135 = arith.addf %134, %133 : vector<2x16xf32>
    %136 = arith.divf %134, %135 : vector<2x16xf32>
    %137 = vector.extract_strided_slice %130 {offsets = [0, 16], sizes = [2, 16], strides = [1, 1]} : vector<2x64xf32> to vector<2x16xf32>
    %138 = arith.negf %137 : vector<2x16xf32>
    %139 = math.exp %138 : vector<2x16xf32>
    %cst_46 = arith.constant 1.000000e+00 : f32
    %140 = vector.broadcast %cst_46 : f32 to vector<2x16xf32>
    %141 = arith.addf %140, %139 : vector<2x16xf32>
    %142 = arith.divf %140, %141 : vector<2x16xf32>
    %143 = vector.extract_strided_slice %130 {offsets = [0, 32], sizes = [2, 16], strides = [1, 1]} : vector<2x64xf32> to vector<2x16xf32>
    %144 = math.tanh %143 : vector<2x16xf32>
    %145 = vector.extract_strided_slice %130 {offsets = [0, 48], sizes = [2, 16], strides = [1, 1]} : vector<2x64xf32> to vector<2x16xf32>
    %146 = arith.negf %145 : vector<2x16xf32>
    %147 = math.exp %146 : vector<2x16xf32>
    %cst_47 = arith.constant 1.000000e+00 : f32
    %148 = vector.broadcast %cst_47 : f32 to vector<2x16xf32>
    %149 = arith.addf %148, %147 : vector<2x16xf32>
    %150 = arith.divf %148, %149 : vector<2x16xf32>
    %151 = arith.mulf %142, %118 : vector<2x16xf32>
    %152 = arith.mulf %136, %144 : vector<2x16xf32>
    %153 = arith.addf %151, %152 : vector<2x16xf32>
    %154 = math.tanh %153 : vector<2x16xf32>
    %155 = arith.mulf %150, %154 : vector<2x16xf32>
    %156 = arith.addf %121, %155 : vector<2x16xf32>
    %157 = arith.maximumf %122, %155 : vector<2x16xf32>
    %c8_48 = arith.constant 8 : index
    %c0_49 = arith.constant 0 : index
    %158 = vector.load %arg10[%c8_48, %c0_49] : memref<16x64xf32, #tpu.memory_space<vmem>>, vector<2x64xf32>
    %c6_50 = arith.constant 6 : index
    %c0_51 = arith.constant 0 : index
    %159 = vector.load %arg10[%c6_50, %c0_51] : memref<16x64xf32, #tpu.memory_space<vmem>>, vector<2x64xf32>
    %c0_i32_52 = arith.constant 0 : i32
    %160 = arith.cmpi eq, %arg0, %c0_i32_52 : i32
    %161 = arith.select %160, %158, %159 : vector<2x64xf32>
    %162 = arith.truncf %155 : vector<2x16xf32> to vector<2x16xbf16>
    %cst_53 = arith.constant dense<0.000000e+00> : vector<2x64xf32>
    %163 = tpu.matmul %162, %11, %cst_53 {dimension_numbers = #tpu.dot_dimension_numbers<[1], [0], [0], [1], [0, 0, 1, 1], [], []>} : vector<2x16xbf16>, vector<16x64xbf16>, vector<2x64xf32> -> vector<2x64xf32>
    %164 = arith.addf %161, %163 : vector<2x64xf32>
    %165 = arith.addf %164, %15 : vector<2x64xf32>
    %166 = vector.extract_strided_slice %165 {offsets = [0, 0], sizes = [2, 16], strides = [1, 1]} : vector<2x64xf32> to vector<2x16xf32>
    %167 = arith.negf %166 : vector<2x16xf32>
    %168 = math.exp %167 : vector<2x16xf32>
    %cst_54 = arith.constant 1.000000e+00 : f32
    %169 = vector.broadcast %cst_54 : f32 to vector<2x16xf32>
    %170 = arith.addf %169, %168 : vector<2x16xf32>
    %171 = arith.divf %169, %170 : vector<2x16xf32>
    %172 = vector.extract_strided_slice %165 {offsets = [0, 16], sizes = [2, 16], strides = [1, 1]} : vector<2x64xf32> to vector<2x16xf32>
    %173 = arith.negf %172 : vector<2x16xf32>
    %174 = math.exp %173 : vector<2x16xf32>
    %cst_55 = arith.constant 1.000000e+00 : f32
    %175 = vector.broadcast %cst_55 : f32 to vector<2x16xf32>
    %176 = arith.addf %175, %174 : vector<2x16xf32>
    %177 = arith.divf %175, %176 : vector<2x16xf32>
    %178 = vector.extract_strided_slice %165 {offsets = [0, 32], sizes = [2, 16], strides = [1, 1]} : vector<2x64xf32> to vector<2x16xf32>
    %179 = math.tanh %178 : vector<2x16xf32>
    %180 = vector.extract_strided_slice %165 {offsets = [0, 48], sizes = [2, 16], strides = [1, 1]} : vector<2x64xf32> to vector<2x16xf32>
    %181 = arith.negf %180 : vector<2x16xf32>
    %182 = math.exp %181 : vector<2x16xf32>
    %cst_56 = arith.constant 1.000000e+00 : f32
    %183 = vector.broadcast %cst_56 : f32 to vector<2x16xf32>
    %184 = arith.addf %183, %182 : vector<2x16xf32>
    %185 = arith.divf %183, %184 : vector<2x16xf32>
    %186 = arith.mulf %177, %153 : vector<2x16xf32>
    %187 = arith.mulf %171, %179 : vector<2x16xf32>
    %188 = arith.addf %186, %187 : vector<2x16xf32>
    %189 = math.tanh %188 : vector<2x16xf32>
    %190 = arith.mulf %185, %189 : vector<2x16xf32>
    %191 = arith.addf %156, %190 : vector<2x16xf32>
    %192 = arith.maximumf %157, %190 : vector<2x16xf32>
    %c10_57 = arith.constant 10 : index
    %c0_58 = arith.constant 0 : index
    %193 = vector.load %arg10[%c10_57, %c0_58] : memref<16x64xf32, #tpu.memory_space<vmem>>, vector<2x64xf32>
    %c4_59 = arith.constant 4 : index
    %c0_60 = arith.constant 0 : index
    %194 = vector.load %arg10[%c4_59, %c0_60] : memref<16x64xf32, #tpu.memory_space<vmem>>, vector<2x64xf32>
    %c0_i32_61 = arith.constant 0 : i32
    %195 = arith.cmpi eq, %arg0, %c0_i32_61 : i32
    %196 = arith.select %195, %193, %194 : vector<2x64xf32>
    %197 = arith.truncf %190 : vector<2x16xf32> to vector<2x16xbf16>
    %cst_62 = arith.constant dense<0.000000e+00> : vector<2x64xf32>
    %198 = tpu.matmul %197, %11, %cst_62 {dimension_numbers = #tpu.dot_dimension_numbers<[1], [0], [0], [1], [0, 0, 1, 1], [], []>} : vector<2x16xbf16>, vector<16x64xbf16>, vector<2x64xf32> -> vector<2x64xf32>
    %199 = arith.addf %196, %198 : vector<2x64xf32>
    %200 = arith.addf %199, %15 : vector<2x64xf32>
    %201 = vector.extract_strided_slice %200 {offsets = [0, 0], sizes = [2, 16], strides = [1, 1]} : vector<2x64xf32> to vector<2x16xf32>
    %202 = arith.negf %201 : vector<2x16xf32>
    %203 = math.exp %202 : vector<2x16xf32>
    %cst_63 = arith.constant 1.000000e+00 : f32
    %204 = vector.broadcast %cst_63 : f32 to vector<2x16xf32>
    %205 = arith.addf %204, %203 : vector<2x16xf32>
    %206 = arith.divf %204, %205 : vector<2x16xf32>
    %207 = vector.extract_strided_slice %200 {offsets = [0, 16], sizes = [2, 16], strides = [1, 1]} : vector<2x64xf32> to vector<2x16xf32>
    %208 = arith.negf %207 : vector<2x16xf32>
    %209 = math.exp %208 : vector<2x16xf32>
    %cst_64 = arith.constant 1.000000e+00 : f32
    %210 = vector.broadcast %cst_64 : f32 to vector<2x16xf32>
    %211 = arith.addf %210, %209 : vector<2x16xf32>
    %212 = arith.divf %210, %211 : vector<2x16xf32>
    %213 = vector.extract_strided_slice %200 {offsets = [0, 32], sizes = [2, 16], strides = [1, 1]} : vector<2x64xf32> to vector<2x16xf32>
    %214 = math.tanh %213 : vector<2x16xf32>
    %215 = vector.extract_strided_slice %200 {offsets = [0, 48], sizes = [2, 16], strides = [1, 1]} : vector<2x64xf32> to vector<2x16xf32>
    %216 = arith.negf %215 : vector<2x16xf32>
    %217 = math.exp %216 : vector<2x16xf32>
    %cst_65 = arith.constant 1.000000e+00 : f32
    %218 = vector.broadcast %cst_65 : f32 to vector<2x16xf32>
    %219 = arith.addf %218, %217 : vector<2x16xf32>
    %220 = arith.divf %218, %219 : vector<2x16xf32>
    %221 = arith.mulf %212, %188 : vector<2x16xf32>
    %222 = arith.mulf %206, %214 : vector<2x16xf32>
    %223 = arith.addf %221, %222 : vector<2x16xf32>
    %224 = math.tanh %223 : vector<2x16xf32>
    %225 = arith.mulf %220, %224 : vector<2x16xf32>
    %226 = arith.addf %191, %225 : vector<2x16xf32>
    %227 = arith.maximumf %192, %225 : vector<2x16xf32>
    %c12_66 = arith.constant 12 : index
    %c0_67 = arith.constant 0 : index
    %228 = vector.load %arg10[%c12_66, %c0_67] : memref<16x64xf32, #tpu.memory_space<vmem>>, vector<2x64xf32>
    %c2_68 = arith.constant 2 : index
    %c0_69 = arith.constant 0 : index
    %229 = vector.load %arg10[%c2_68, %c0_69] : memref<16x64xf32, #tpu.memory_space<vmem>>, vector<2x64xf32>
    %c0_i32_70 = arith.constant 0 : i32
    %230 = arith.cmpi eq, %arg0, %c0_i32_70 : i32
    %231 = arith.select %230, %228, %229 : vector<2x64xf32>
    %232 = arith.truncf %225 : vector<2x16xf32> to vector<2x16xbf16>
    %cst_71 = arith.constant dense<0.000000e+00> : vector<2x64xf32>
    %233 = tpu.matmul %232, %11, %cst_71 {dimension_numbers = #tpu.dot_dimension_numbers<[1], [0], [0], [1], [0, 0, 1, 1], [], []>} : vector<2x16xbf16>, vector<16x64xbf16>, vector<2x64xf32> -> vector<2x64xf32>
    %234 = arith.addf %231, %233 : vector<2x64xf32>
    %235 = arith.addf %234, %15 : vector<2x64xf32>
    %236 = vector.extract_strided_slice %235 {offsets = [0, 0], sizes = [2, 16], strides = [1, 1]} : vector<2x64xf32> to vector<2x16xf32>
    %237 = arith.negf %236 : vector<2x16xf32>
    %238 = math.exp %237 : vector<2x16xf32>
    %cst_72 = arith.constant 1.000000e+00 : f32
    %239 = vector.broadcast %cst_72 : f32 to vector<2x16xf32>
    %240 = arith.addf %239, %238 : vector<2x16xf32>
    %241 = arith.divf %239, %240 : vector<2x16xf32>
    %242 = vector.extract_strided_slice %235 {offsets = [0, 16], sizes = [2, 16], strides = [1, 1]} : vector<2x64xf32> to vector<2x16xf32>
    %243 = arith.negf %242 : vector<2x16xf32>
    %244 = math.exp %243 : vector<2x16xf32>
    %cst_73 = arith.constant 1.000000e+00 : f32
    %245 = vector.broadcast %cst_73 : f32 to vector<2x16xf32>
    %246 = arith.addf %245, %244 : vector<2x16xf32>
    %247 = arith.divf %245, %246 : vector<2x16xf32>
    %248 = vector.extract_strided_slice %235 {offsets = [0, 32], sizes = [2, 16], strides = [1, 1]} : vector<2x64xf32> to vector<2x16xf32>
    %249 = math.tanh %248 : vector<2x16xf32>
    %250 = vector.extract_strided_slice %235 {offsets = [0, 48], sizes = [2, 16], strides = [1, 1]} : vector<2x64xf32> to vector<2x16xf32>
    %251 = arith.negf %250 : vector<2x16xf32>
    %252 = math.exp %251 : vector<2x16xf32>
    %cst_74 = arith.constant 1.000000e+00 : f32
    %253 = vector.broadcast %cst_74 : f32 to vector<2x16xf32>
    %254 = arith.addf %253, %252 : vector<2x16xf32>
    %255 = arith.divf %253, %254 : vector<2x16xf32>
    %256 = arith.mulf %247, %223 : vector<2x16xf32>
    %257 = arith.mulf %241, %249 : vector<2x16xf32>
    %258 = arith.addf %256, %257 : vector<2x16xf32>
    %259 = math.tanh %258 : vector<2x16xf32>
    %260 = arith.mulf %255, %259 : vector<2x16xf32>
    %261 = arith.addf %226, %260 : vector<2x16xf32>
    %262 = arith.maximumf %227, %260 : vector<2x16xf32>
    %c14_75 = arith.constant 14 : index
    %c0_76 = arith.constant 0 : index
    %263 = vector.load %arg10[%c14_75, %c0_76] : memref<16x64xf32, #tpu.memory_space<vmem>>, vector<2x64xf32>
    %c0_77 = arith.constant 0 : index
    %c0_78 = arith.constant 0 : index
    %264 = vector.load %arg10[%c0_77, %c0_78] : memref<16x64xf32, #tpu.memory_space<vmem>>, vector<2x64xf32>
    %c0_i32_79 = arith.constant 0 : i32
    %265 = arith.cmpi eq, %arg0, %c0_i32_79 : i32
    %266 = arith.select %265, %263, %264 : vector<2x64xf32>
    %267 = arith.truncf %260 : vector<2x16xf32> to vector<2x16xbf16>
    %cst_80 = arith.constant dense<0.000000e+00> : vector<2x64xf32>
    %268 = tpu.matmul %267, %11, %cst_80 {dimension_numbers = #tpu.dot_dimension_numbers<[1], [0], [0], [1], [0, 0, 1, 1], [], []>} : vector<2x16xbf16>, vector<16x64xbf16>, vector<2x64xf32> -> vector<2x64xf32>
    %269 = arith.addf %266, %268 : vector<2x64xf32>
    %270 = arith.addf %269, %15 : vector<2x64xf32>
    %271 = vector.extract_strided_slice %270 {offsets = [0, 0], sizes = [2, 16], strides = [1, 1]} : vector<2x64xf32> to vector<2x16xf32>
    %272 = arith.negf %271 : vector<2x16xf32>
    %273 = math.exp %272 : vector<2x16xf32>
    %cst_81 = arith.constant 1.000000e+00 : f32
    %274 = vector.broadcast %cst_81 : f32 to vector<2x16xf32>
    %275 = arith.addf %274, %273 : vector<2x16xf32>
    %276 = arith.divf %274, %275 : vector<2x16xf32>
    %277 = vector.extract_strided_slice %270 {offsets = [0, 16], sizes = [2, 16], strides = [1, 1]} : vector<2x64xf32> to vector<2x16xf32>
    %278 = arith.negf %277 : vector<2x16xf32>
    %279 = math.exp %278 : vector<2x16xf32>
    %cst_82 = arith.constant 1.000000e+00 : f32
    %280 = vector.broadcast %cst_82 : f32 to vector<2x16xf32>
    %281 = arith.addf %280, %279 : vector<2x16xf32>
    %282 = arith.divf %280, %281 : vector<2x16xf32>
    %283 = vector.extract_strided_slice %270 {offsets = [0, 32], sizes = [2, 16], strides = [1, 1]} : vector<2x64xf32> to vector<2x16xf32>
    %284 = math.tanh %283 : vector<2x16xf32>
    %285 = vector.extract_strided_slice %270 {offsets = [0, 48], sizes = [2, 16], strides = [1, 1]} : vector<2x64xf32> to vector<2x16xf32>
    %286 = arith.negf %285 : vector<2x16xf32>
    %287 = math.exp %286 : vector<2x16xf32>
    %cst_83 = arith.constant 1.000000e+00 : f32
    %288 = vector.broadcast %cst_83 : f32 to vector<2x16xf32>
    %289 = arith.addf %288, %287 : vector<2x16xf32>
    %290 = arith.divf %288, %289 : vector<2x16xf32>
    %291 = arith.mulf %282, %258 : vector<2x16xf32>
    %292 = arith.mulf %276, %284 : vector<2x16xf32>
    %293 = arith.addf %291, %292 : vector<2x16xf32>
    %294 = math.tanh %293 : vector<2x16xf32>
    %295 = arith.mulf %290, %294 : vector<2x16xf32>
    %296 = arith.addf %261, %295 : vector<2x16xf32>
    %297 = arith.maximumf %262, %295 : vector<2x16xf32>
    %c0_84 = arith.constant 0 : index
    %c0_85 = arith.constant 0 : index
    %298 = vector.load %arg8[%c0_84, %c0_85] : memref<2x16xf32, #tpu.memory_space<vmem>>, vector<2x16xf32>
    tpu.vector_store %arg8[%c0_84, %c0_85], %295 {strides = array<i32>} : memref<2x16xf32, #tpu.memory_space<vmem>>, vector<2x16xf32>,
    %c0_86 = arith.constant 0 : index
    %c0_87 = arith.constant 0 : index
    %299 = vector.load %arg9[%c0_86, %c0_87] : memref<2x16xf32, #tpu.memory_space<vmem>>, vector<2x16xf32>
    tpu.vector_store %arg9[%c0_86, %c0_87], %293 {strides = array<i32>} : memref<2x16xf32, #tpu.memory_space<vmem>>, vector<2x16xf32>,
    %c0_88 = arith.constant 0 : index
    %c0_89 = arith.constant 0 : index
    %c0_90 = arith.constant 0 : index
    %300 = vector.load %arg6[%c0_88, %c0_89, %c0_90] : memref<1x2x16xf32, #tpu.memory_space<vmem>>, vector<1x2x16xf32>
    %301 = vector.shape_cast %300 : vector<1x2x16xf32> to vector<2x16xf32>
    %302 = arith.addf %301, %296 : vector<2x16xf32>
    %c0_91 = arith.constant 0 : index
    %c0_92 = arith.constant 0 : index
    %c0_93 = arith.constant 0 : index
    %303 = vector.load %arg6[%c0_91, %c0_92, %c0_93] : memref<1x2x16xf32, #tpu.memory_space<vmem>>, vector<1x2x16xf32>
    %304 = vector.shape_cast %303 : vector<1x2x16xf32> to vector<2x16xf32>
    %305 = vector.shape_cast %302 : vector<2x16xf32> to vector<1x2x16xf32>
    tpu.vector_store %arg6[%c0_91, %c0_92, %c0_93], %305 {strides = array<i32>} : memref<1x2x16xf32, #tpu.memory_space<vmem>>, vector<1x2x16xf32>,
    %c0_94 = arith.constant 0 : index
    %c0_95 = arith.constant 0 : index
    %c0_96 = arith.constant 0 : index
    %306 = vector.load %arg7[%c0_94, %c0_95, %c0_96] : memref<1x2x16xf32, #tpu.memory_space<vmem>>, vector<1x2x16xf32>
    %307 = vector.shape_cast %306 : vector<1x2x16xf32> to vector<2x16xf32>
    %308 = arith.maximumf %307, %297 : vector<2x16xf32>
    %c0_97 = arith.constant 0 : index
    %c0_98 = arith.constant 0 : index
    %c0_99 = arith.constant 0 : index
    %309 = vector.load %arg7[%c0_97, %c0_98, %c0_99] : memref<1x2x16xf32, #tpu.memory_space<vmem>>, vector<1x2x16xf32>
    %310 = vector.shape_cast %309 : vector<1x2x16xf32> to vector<2x16xf32>
    %311 = vector.shape_cast %308 : vector<2x16xf32> to vector<1x2x16xf32>
    tpu.vector_store %arg7[%c0_97, %c0_98, %c0_99], %311 {strides = array<i32>} : memref<1x2x16xf32, #tpu.memory_space<vmem>>, vector<1x2x16xf32>,
    return
  }
  func.func @transform_0(%arg0: i32, %arg1: i32) -> (i32, i32) {
    %c2_i32 = arith.constant 2 : i32
    %0 = arith.muli %c2_i32, %arg1 : i32
    %c0_i32 = arith.constant 0 : i32
    %1 = arith.subi %c0_i32, %0 : i32
    %2 = arith.muli %arg0, %1 : i32
    %3 = arith.addi %arg1, %2 : i32
    %c0_i32_0 = arith.constant 0 : i32
    %c0_i32_1 = arith.constant 0 : i32
    return %3, %c0_i32_0 : i32, i32
  }
  func.func @transform_1(%arg0: i32, %arg1: i32) -> (i32, i32, i32) {
    %c0_i32 = arith.constant 0 : i32
    %c0_i32_0 = arith.constant 0 : i32
    %c0_i32_1 = arith.constant 0 : i32
    return %arg0, %c0_i32, %c0_i32_0 : i32, i32, i32
  }
  func.func @transform_2(%arg0: i32, %arg1: i32) -> (i32, i32, i32) {
    %c0_i32 = arith.constant 0 : i32
    %c0_i32_0 = arith.constant 0 : i32
    %c0_i32_1 = arith.constant 0 : i32
    return %arg0, %c0_i32, %c0_i32_0 : i32, i32, i32
  }
  func.func @transform_3(%arg0: i32, %arg1: i32) -> (i32, i32, i32) {
    %c0_i32 = arith.constant 0 : i32
    %c0_i32_0 = arith.constant 0 : i32
    %c0_i32_1 = arith.constant 0 : i32
    return %arg0, %c0_i32, %c0_i32_0 : i32, i32, i32
  }
  func.func @transform_4(%arg0: i32, %arg1: i32) -> (i32, i32, i32) {
    %c0_i32 = arith.constant 0 : i32
    %c0_i32_0 = arith.constant 0 : i32
    %c0_i32_1 = arith.constant 0 : i32
    return %arg0, %c0_i32, %c0_i32_0 : i32, i32, i32
  }
  func.func @transform_5(%arg0: i32, %arg1: i32) -> (i32, i32, i32) {
    %c0_i32 = arith.constant 0 : i32
    %c0_i32_0 = arith.constant 0 : i32
    %c0_i32_1 = arith.constant 0 : i32
    return %arg0, %c0_i32, %c0_i32_0 : i32, i32, i32
  }
}

module attributes {stable_mosaic.version = 11 : i64} {
  func.func @_bilstm_pool_kernel(%arg0: i32, %arg1: i32, %arg2: memref<20x16xbf16, #tpu.memory_space<vmem>>, %arg3: memref<1x16x64xbf16, #tpu.memory_space<vmem>>, %arg4: memref<1x16x64xbf16, #tpu.memory_space<vmem>>, %arg5: memref<1x1x64xf32, #tpu.memory_space<vmem>>, %arg6: memref<1x2x16xf32, #tpu.memory_space<vmem>>, %arg7: memref<1x2x16xf32, #tpu.memory_space<vmem>>, %arg8: memref<2x16xf32, #tpu.memory_space<vmem>>, %arg9: memref<2x16xf32, #tpu.memory_space<vmem>>, %arg10: memref<20x64xf32, #tpu.memory_space<vmem>>) attributes {dimension_semantics = [#tpu.dimension_semantics<parallel>, #tpu.dimension_semantics<arbitrary>], iteration_bounds = array<i64: 2, 1>, scalar_prefetch = 0 : i64, scratch_operands = 3 : i64, tpu.core_type = #tpu.core_type<tc>, window_params = [{transform_indices = @transform_0, window_bounds = array<i64: 20, 16>}, {transform_indices = @transform_1, window_bounds = array<i64: 1, 16, 64>}, {transform_indices = @transform_2, window_bounds = array<i64: 1, 16, 64>}, {transform_indices = @transform_3, window_bounds = array<i64: 1, 1, 64>}, {transform_indices = @transform_4, window_bounds = array<i64: 1, 2, 16>}, {transform_indices = @transform_5, window_bounds = array<i64: 1, 2, 16>}]} {
    %c0_i32 = arith.constant 0 : i32
    %0 = arith.cmpi eq, %arg1, %c0_i32 : i32
    %1 = arith.extui %0 : i1 to i32
    %c0_i32_0 = arith.constant 0 : i32
    %2 = arith.cmpi ne, %1, %c0_i32_0 : i32
    scf.if %2 {
      %cst_116 = arith.constant 0.000000e+00 : f32
      %382 = vector.broadcast %cst_116 : f32 to vector<2x16xf32>
      %c0_117 = arith.constant 0 : index
      %c0_118 = arith.constant 0 : index
      %383 = vector.load %arg8[%c0_117, %c0_118] : memref<2x16xf32, #tpu.memory_space<vmem>>, vector<2x16xf32>
      tpu.vector_store %arg8[%c0_117, %c0_118], %382 {strides = array<i32>} : memref<2x16xf32, #tpu.memory_space<vmem>>, vector<2x16xf32>,
      %cst_119 = arith.constant 0.000000e+00 : f32
      %384 = vector.broadcast %cst_119 : f32 to vector<2x16xf32>
      %c0_120 = arith.constant 0 : index
      %c0_121 = arith.constant 0 : index
      %385 = vector.load %arg9[%c0_120, %c0_121] : memref<2x16xf32, #tpu.memory_space<vmem>>, vector<2x16xf32>
      tpu.vector_store %arg9[%c0_120, %c0_121], %384 {strides = array<i32>} : memref<2x16xf32, #tpu.memory_space<vmem>>, vector<2x16xf32>,
      %cst_122 = arith.constant 0.000000e+00 : f32
      %386 = vector.broadcast %cst_122 : f32 to vector<2x16xf32>
      %c0_123 = arith.constant 0 : index
      %c0_124 = arith.constant 0 : index
      %c0_125 = arith.constant 0 : index
      %387 = vector.load %arg6[%c0_123, %c0_124, %c0_125] : memref<1x2x16xf32, #tpu.memory_space<vmem>>, vector<1x2x16xf32>
      %388 = vector.shape_cast %387 : vector<1x2x16xf32> to vector<2x16xf32>
      %389 = vector.shape_cast %386 : vector<2x16xf32> to vector<1x2x16xf32>
      tpu.vector_store %arg6[%c0_123, %c0_124, %c0_125], %389 {strides = array<i32>} : memref<1x2x16xf32, #tpu.memory_space<vmem>>, vector<1x2x16xf32>,
      %cst_126 = arith.constant 0xFF800000 : f32
      %390 = vector.broadcast %cst_126 : f32 to vector<2x16xf32>
      %c0_127 = arith.constant 0 : index
      %c0_128 = arith.constant 0 : index
      %c0_129 = arith.constant 0 : index
      %391 = vector.load %arg7[%c0_127, %c0_128, %c0_129] : memref<1x2x16xf32, #tpu.memory_space<vmem>>, vector<1x2x16xf32>
      %392 = vector.shape_cast %391 : vector<1x2x16xf32> to vector<2x16xf32>
      %393 = vector.shape_cast %390 : vector<2x16xf32> to vector<1x2x16xf32>
      tpu.vector_store %arg7[%c0_127, %c0_128, %c0_129], %393 {strides = array<i32>} : memref<1x2x16xf32, #tpu.memory_space<vmem>>, vector<1x2x16xf32>,
    } else {
    }
    %cst = arith.constant 0.000000e+00 : f32
    %3 = vector.broadcast %cst : f32 to vector<2x16xf32>
    %cst_1 = arith.constant 0xFF800000 : f32
    %4 = vector.broadcast %cst_1 : f32 to vector<2x16xf32>
    %c0 = arith.constant 0 : index
    %c0_2 = arith.constant 0 : index
    %5 = vector.load %arg2[%c0, %c0_2] : memref<20x16xbf16, #tpu.memory_space<vmem>>, vector<20x16xbf16>
    %c0_3 = arith.constant 0 : index
    %c0_4 = arith.constant 0 : index
    %c0_5 = arith.constant 0 : index
    %6 = vector.load %arg3[%c0_3, %c0_4, %c0_5] : memref<1x16x64xbf16, #tpu.memory_space<vmem>>, vector<1x16x64xbf16>
    %7 = vector.shape_cast %6 : vector<1x16x64xbf16> to vector<16x64xbf16>
    %cst_6 = arith.constant dense<0.000000e+00> : vector<20x64xf32>
    %8 = tpu.matmul %5, %7, %cst_6 {dimension_numbers = #tpu.dot_dimension_numbers<[1], [0], [0], [1], [0, 0, 1, 1], [], []>} : vector<20x16xbf16>, vector<16x64xbf16>, vector<20x64xf32> -> vector<20x64xf32>
    %c0_7 = arith.constant 0 : index
    %c0_8 = arith.constant 0 : index
    %9 = vector.load %arg10[%c0_7, %c0_8] : memref<20x64xf32, #tpu.memory_space<vmem>>, vector<20x64xf32>
    tpu.vector_store %arg10[%c0_7, %c0_8], %8 {strides = array<i32>} : memref<20x64xf32, #tpu.memory_space<vmem>>, vector<20x64xf32>,
    %c0_9 = arith.constant 0 : index
    %c0_10 = arith.constant 0 : index
    %c0_11 = arith.constant 0 : index
    %10 = vector.load %arg4[%c0_9, %c0_10, %c0_11] : memref<1x16x64xbf16, #tpu.memory_space<vmem>>, vector<1x16x64xbf16>
    %11 = vector.shape_cast %10 : vector<1x16x64xbf16> to vector<16x64xbf16>
    %c0_12 = arith.constant 0 : index
    %c0_13 = arith.constant 0 : index
    %c0_14 = arith.constant 0 : index
    %12 = vector.load %arg5[%c0_12, %c0_13, %c0_14] : memref<1x1x64xf32, #tpu.memory_space<vmem>>, vector<1x1x64xf32>
    %13 = vector.shape_cast %12 : vector<1x1x64xf32> to vector<1x64xf32>
    %14 = vector.shape_cast %13 : vector<1x64xf32> to vector<1x64xf32>
    %15 = vector.broadcast %14 : vector<1x64xf32> to vector<2x64xf32>
    %c0_15 = arith.constant 0 : index
    %c0_16 = arith.constant 0 : index
    %16 = vector.load %arg8[%c0_15, %c0_16] : memref<2x16xf32, #tpu.memory_space<vmem>>, vector<2x16xf32>
    %c0_17 = arith.constant 0 : index
    %c0_18 = arith.constant 0 : index
    %17 = vector.load %arg9[%c0_17, %c0_18] : memref<2x16xf32, #tpu.memory_space<vmem>>, vector<2x16xf32>
    %c0_19 = arith.constant 0 : index
    %c0_20 = arith.constant 0 : index
    %18 = vector.load %arg10[%c0_19, %c0_20] : memref<20x64xf32, #tpu.memory_space<vmem>>, vector<2x64xf32>
    %c18 = arith.constant 18 : index
    %c0_21 = arith.constant 0 : index
    %19 = vector.load %arg10[%c18, %c0_21] : memref<20x64xf32, #tpu.memory_space<vmem>>, vector<2x64xf32>
    %c0_i32_22 = arith.constant 0 : i32
    %20 = arith.cmpi eq, %arg0, %c0_i32_22 : i32
    %21 = arith.select %20, %18, %19 : vector<2x64xf32>
    %22 = arith.truncf %16 : vector<2x16xf32> to vector<2x16xbf16>
    %cst_23 = arith.constant dense<0.000000e+00> : vector<2x64xf32>
    %23 = tpu.matmul %22, %11, %cst_23 {dimension_numbers = #tpu.dot_dimension_numbers<[1], [0], [0], [1], [0, 0, 1, 1], [], []>} : vector<2x16xbf16>, vector<16x64xbf16>, vector<2x64xf32> -> vector<2x64xf32>
    %24 = arith.addf %21, %23 : vector<2x64xf32>
    %25 = arith.addf %24, %15 : vector<2x64xf32>
    %26 = vector.extract_strided_slice %25 {offsets = [0, 0], sizes = [2, 16], strides = [1, 1]} : vector<2x64xf32> to vector<2x16xf32>
    %27 = arith.negf %26 : vector<2x16xf32>
    %28 = math.exp %27 : vector<2x16xf32>
    %cst_24 = arith.constant 1.000000e+00 : f32
    %29 = vector.broadcast %cst_24 : f32 to vector<2x16xf32>
    %30 = arith.addf %29, %28 : vector<2x16xf32>
    %31 = arith.divf %29, %30 : vector<2x16xf32>
    %32 = vector.extract_strided_slice %25 {offsets = [0, 16], sizes = [2, 16], strides = [1, 1]} : vector<2x64xf32> to vector<2x16xf32>
    %33 = arith.negf %32 : vector<2x16xf32>
    %34 = math.exp %33 : vector<2x16xf32>
    %cst_25 = arith.constant 1.000000e+00 : f32
    %35 = vector.broadcast %cst_25 : f32 to vector<2x16xf32>
    %36 = arith.addf %35, %34 : vector<2x16xf32>
    %37 = arith.divf %35, %36 : vector<2x16xf32>
    %38 = vector.extract_strided_slice %25 {offsets = [0, 32], sizes = [2, 16], strides = [1, 1]} : vector<2x64xf32> to vector<2x16xf32>
    %39 = math.tanh %38 : vector<2x16xf32>
    %40 = vector.extract_strided_slice %25 {offsets = [0, 48], sizes = [2, 16], strides = [1, 1]} : vector<2x64xf32> to vector<2x16xf32>
    %41 = arith.negf %40 : vector<2x16xf32>
    %42 = math.exp %41 : vector<2x16xf32>
    %cst_26 = arith.constant 1.000000e+00 : f32
    %43 = vector.broadcast %cst_26 : f32 to vector<2x16xf32>
    %44 = arith.addf %43, %42 : vector<2x16xf32>
    %45 = arith.divf %43, %44 : vector<2x16xf32>
    %46 = arith.mulf %37, %17 : vector<2x16xf32>
    %47 = arith.mulf %31, %39 : vector<2x16xf32>
    %48 = arith.addf %46, %47 : vector<2x16xf32>
    %49 = math.tanh %48 : vector<2x16xf32>
    %50 = arith.mulf %45, %49 : vector<2x16xf32>
    %51 = arith.addf %3, %50 : vector<2x16xf32>
    %52 = arith.maximumf %4, %50 : vector<2x16xf32>
    %c2 = arith.constant 2 : index
    %c0_27 = arith.constant 0 : index
    %53 = vector.load %arg10[%c2, %c0_27] : memref<20x64xf32, #tpu.memory_space<vmem>>, vector<2x64xf32>
    %c16 = arith.constant 16 : index
    %c0_28 = arith.constant 0 : index
    %54 = vector.load %arg10[%c16, %c0_28] : memref<20x64xf32, #tpu.memory_space<vmem>>, vector<2x64xf32>
    %c0_i32_29 = arith.constant 0 : i32
    %55 = arith.cmpi eq, %arg0, %c0_i32_29 : i32
    %56 = arith.select %55, %53, %54 : vector<2x64xf32>
    %57 = arith.truncf %50 : vector<2x16xf32> to vector<2x16xbf16>
    %cst_30 = arith.constant dense<0.000000e+00> : vector<2x64xf32>
    %58 = tpu.matmul %57, %11, %cst_30 {dimension_numbers = #tpu.dot_dimension_numbers<[1], [0], [0], [1], [0, 0, 1, 1], [], []>} : vector<2x16xbf16>, vector<16x64xbf16>, vector<2x64xf32> -> vector<2x64xf32>
    %59 = arith.addf %56, %58 : vector<2x64xf32>
    %60 = arith.addf %59, %15 : vector<2x64xf32>
    %61 = vector.extract_strided_slice %60 {offsets = [0, 0], sizes = [2, 16], strides = [1, 1]} : vector<2x64xf32> to vector<2x16xf32>
    %62 = arith.negf %61 : vector<2x16xf32>
    %63 = math.exp %62 : vector<2x16xf32>
    %cst_31 = arith.constant 1.000000e+00 : f32
    %64 = vector.broadcast %cst_31 : f32 to vector<2x16xf32>
    %65 = arith.addf %64, %63 : vector<2x16xf32>
    %66 = arith.divf %64, %65 : vector<2x16xf32>
    %67 = vector.extract_strided_slice %60 {offsets = [0, 16], sizes = [2, 16], strides = [1, 1]} : vector<2x64xf32> to vector<2x16xf32>
    %68 = arith.negf %67 : vector<2x16xf32>
    %69 = math.exp %68 : vector<2x16xf32>
    %cst_32 = arith.constant 1.000000e+00 : f32
    %70 = vector.broadcast %cst_32 : f32 to vector<2x16xf32>
    %71 = arith.addf %70, %69 : vector<2x16xf32>
    %72 = arith.divf %70, %71 : vector<2x16xf32>
    %73 = vector.extract_strided_slice %60 {offsets = [0, 32], sizes = [2, 16], strides = [1, 1]} : vector<2x64xf32> to vector<2x16xf32>
    %74 = math.tanh %73 : vector<2x16xf32>
    %75 = vector.extract_strided_slice %60 {offsets = [0, 48], sizes = [2, 16], strides = [1, 1]} : vector<2x64xf32> to vector<2x16xf32>
    %76 = arith.negf %75 : vector<2x16xf32>
    %77 = math.exp %76 : vector<2x16xf32>
    %cst_33 = arith.constant 1.000000e+00 : f32
    %78 = vector.broadcast %cst_33 : f32 to vector<2x16xf32>
    %79 = arith.addf %78, %77 : vector<2x16xf32>
    %80 = arith.divf %78, %79 : vector<2x16xf32>
    %81 = arith.mulf %72, %48 : vector<2x16xf32>
    %82 = arith.mulf %66, %74 : vector<2x16xf32>
    %83 = arith.addf %81, %82 : vector<2x16xf32>
    %84 = math.tanh %83 : vector<2x16xf32>
    %85 = arith.mulf %80, %84 : vector<2x16xf32>
    %86 = arith.addf %51, %85 : vector<2x16xf32>
    %87 = arith.maximumf %52, %85 : vector<2x16xf32>
    %c4 = arith.constant 4 : index
    %c0_34 = arith.constant 0 : index
    %88 = vector.load %arg10[%c4, %c0_34] : memref<20x64xf32, #tpu.memory_space<vmem>>, vector<2x64xf32>
    %c14 = arith.constant 14 : index
    %c0_35 = arith.constant 0 : index
    %89 = vector.load %arg10[%c14, %c0_35] : memref<20x64xf32, #tpu.memory_space<vmem>>, vector<2x64xf32>
    %c0_i32_36 = arith.constant 0 : i32
    %90 = arith.cmpi eq, %arg0, %c0_i32_36 : i32
    %91 = arith.select %90, %88, %89 : vector<2x64xf32>
    %92 = arith.truncf %85 : vector<2x16xf32> to vector<2x16xbf16>
    %cst_37 = arith.constant dense<0.000000e+00> : vector<2x64xf32>
    %93 = tpu.matmul %92, %11, %cst_37 {dimension_numbers = #tpu.dot_dimension_numbers<[1], [0], [0], [1], [0, 0, 1, 1], [], []>} : vector<2x16xbf16>, vector<16x64xbf16>, vector<2x64xf32> -> vector<2x64xf32>
    %94 = arith.addf %91, %93 : vector<2x64xf32>
    %95 = arith.addf %94, %15 : vector<2x64xf32>
    %96 = vector.extract_strided_slice %95 {offsets = [0, 0], sizes = [2, 16], strides = [1, 1]} : vector<2x64xf32> to vector<2x16xf32>
    %97 = arith.negf %96 : vector<2x16xf32>
    %98 = math.exp %97 : vector<2x16xf32>
    %cst_38 = arith.constant 1.000000e+00 : f32
    %99 = vector.broadcast %cst_38 : f32 to vector<2x16xf32>
    %100 = arith.addf %99, %98 : vector<2x16xf32>
    %101 = arith.divf %99, %100 : vector<2x16xf32>
    %102 = vector.extract_strided_slice %95 {offsets = [0, 16], sizes = [2, 16], strides = [1, 1]} : vector<2x64xf32> to vector<2x16xf32>
    %103 = arith.negf %102 : vector<2x16xf32>
    %104 = math.exp %103 : vector<2x16xf32>
    %cst_39 = arith.constant 1.000000e+00 : f32
    %105 = vector.broadcast %cst_39 : f32 to vector<2x16xf32>
    %106 = arith.addf %105, %104 : vector<2x16xf32>
    %107 = arith.divf %105, %106 : vector<2x16xf32>
    %108 = vector.extract_strided_slice %95 {offsets = [0, 32], sizes = [2, 16], strides = [1, 1]} : vector<2x64xf32> to vector<2x16xf32>
    %109 = math.tanh %108 : vector<2x16xf32>
    %110 = vector.extract_strided_slice %95 {offsets = [0, 48], sizes = [2, 16], strides = [1, 1]} : vector<2x64xf32> to vector<2x16xf32>
    %111 = arith.negf %110 : vector<2x16xf32>
    %112 = math.exp %111 : vector<2x16xf32>
    %cst_40 = arith.constant 1.000000e+00 : f32
    %113 = vector.broadcast %cst_40 : f32 to vector<2x16xf32>
    %114 = arith.addf %113, %112 : vector<2x16xf32>
    %115 = arith.divf %113, %114 : vector<2x16xf32>
    %116 = arith.mulf %107, %83 : vector<2x16xf32>
    %117 = arith.mulf %101, %109 : vector<2x16xf32>
    %118 = arith.addf %116, %117 : vector<2x16xf32>
    %119 = math.tanh %118 : vector<2x16xf32>
    %120 = arith.mulf %115, %119 : vector<2x16xf32>
    %121 = arith.addf %86, %120 : vector<2x16xf32>
    %122 = arith.maximumf %87, %120 : vector<2x16xf32>
    %c6 = arith.constant 6 : index
    %c0_41 = arith.constant 0 : index
    %123 = vector.load %arg10[%c6, %c0_41] : memref<20x64xf32, #tpu.memory_space<vmem>>, vector<2x64xf32>
    %c12 = arith.constant 12 : index
    %c0_42 = arith.constant 0 : index
    %124 = vector.load %arg10[%c12, %c0_42] : memref<20x64xf32, #tpu.memory_space<vmem>>, vector<2x64xf32>
    %c0_i32_43 = arith.constant 0 : i32
    %125 = arith.cmpi eq, %arg0, %c0_i32_43 : i32
    %126 = arith.select %125, %123, %124 : vector<2x64xf32>
    %127 = arith.truncf %120 : vector<2x16xf32> to vector<2x16xbf16>
    %cst_44 = arith.constant dense<0.000000e+00> : vector<2x64xf32>
    %128 = tpu.matmul %127, %11, %cst_44 {dimension_numbers = #tpu.dot_dimension_numbers<[1], [0], [0], [1], [0, 0, 1, 1], [], []>} : vector<2x16xbf16>, vector<16x64xbf16>, vector<2x64xf32> -> vector<2x64xf32>
    %129 = arith.addf %126, %128 : vector<2x64xf32>
    %130 = arith.addf %129, %15 : vector<2x64xf32>
    %131 = vector.extract_strided_slice %130 {offsets = [0, 0], sizes = [2, 16], strides = [1, 1]} : vector<2x64xf32> to vector<2x16xf32>
    %132 = arith.negf %131 : vector<2x16xf32>
    %133 = math.exp %132 : vector<2x16xf32>
    %cst_45 = arith.constant 1.000000e+00 : f32
    %134 = vector.broadcast %cst_45 : f32 to vector<2x16xf32>
    %135 = arith.addf %134, %133 : vector<2x16xf32>
    %136 = arith.divf %134, %135 : vector<2x16xf32>
    %137 = vector.extract_strided_slice %130 {offsets = [0, 16], sizes = [2, 16], strides = [1, 1]} : vector<2x64xf32> to vector<2x16xf32>
    %138 = arith.negf %137 : vector<2x16xf32>
    %139 = math.exp %138 : vector<2x16xf32>
    %cst_46 = arith.constant 1.000000e+00 : f32
    %140 = vector.broadcast %cst_46 : f32 to vector<2x16xf32>
    %141 = arith.addf %140, %139 : vector<2x16xf32>
    %142 = arith.divf %140, %141 : vector<2x16xf32>
    %143 = vector.extract_strided_slice %130 {offsets = [0, 32], sizes = [2, 16], strides = [1, 1]} : vector<2x64xf32> to vector<2x16xf32>
    %144 = math.tanh %143 : vector<2x16xf32>
    %145 = vector.extract_strided_slice %130 {offsets = [0, 48], sizes = [2, 16], strides = [1, 1]} : vector<2x64xf32> to vector<2x16xf32>
    %146 = arith.negf %145 : vector<2x16xf32>
    %147 = math.exp %146 : vector<2x16xf32>
    %cst_47 = arith.constant 1.000000e+00 : f32
    %148 = vector.broadcast %cst_47 : f32 to vector<2x16xf32>
    %149 = arith.addf %148, %147 : vector<2x16xf32>
    %150 = arith.divf %148, %149 : vector<2x16xf32>
    %151 = arith.mulf %142, %118 : vector<2x16xf32>
    %152 = arith.mulf %136, %144 : vector<2x16xf32>
    %153 = arith.addf %151, %152 : vector<2x16xf32>
    %154 = math.tanh %153 : vector<2x16xf32>
    %155 = arith.mulf %150, %154 : vector<2x16xf32>
    %156 = arith.addf %121, %155 : vector<2x16xf32>
    %157 = arith.maximumf %122, %155 : vector<2x16xf32>
    %c8 = arith.constant 8 : index
    %c0_48 = arith.constant 0 : index
    %158 = vector.load %arg10[%c8, %c0_48] : memref<20x64xf32, #tpu.memory_space<vmem>>, vector<2x64xf32>
    %c10 = arith.constant 10 : index
    %c0_49 = arith.constant 0 : index
    %159 = vector.load %arg10[%c10, %c0_49] : memref<20x64xf32, #tpu.memory_space<vmem>>, vector<2x64xf32>
    %c0_i32_50 = arith.constant 0 : i32
    %160 = arith.cmpi eq, %arg0, %c0_i32_50 : i32
    %161 = arith.select %160, %158, %159 : vector<2x64xf32>
    %162 = arith.truncf %155 : vector<2x16xf32> to vector<2x16xbf16>
    %cst_51 = arith.constant dense<0.000000e+00> : vector<2x64xf32>
    %163 = tpu.matmul %162, %11, %cst_51 {dimension_numbers = #tpu.dot_dimension_numbers<[1], [0], [0], [1], [0, 0, 1, 1], [], []>} : vector<2x16xbf16>, vector<16x64xbf16>, vector<2x64xf32> -> vector<2x64xf32>
    %164 = arith.addf %161, %163 : vector<2x64xf32>
    %165 = arith.addf %164, %15 : vector<2x64xf32>
    %166 = vector.extract_strided_slice %165 {offsets = [0, 0], sizes = [2, 16], strides = [1, 1]} : vector<2x64xf32> to vector<2x16xf32>
    %167 = arith.negf %166 : vector<2x16xf32>
    %168 = math.exp %167 : vector<2x16xf32>
    %cst_52 = arith.constant 1.000000e+00 : f32
    %169 = vector.broadcast %cst_52 : f32 to vector<2x16xf32>
    %170 = arith.addf %169, %168 : vector<2x16xf32>
    %171 = arith.divf %169, %170 : vector<2x16xf32>
    %172 = vector.extract_strided_slice %165 {offsets = [0, 16], sizes = [2, 16], strides = [1, 1]} : vector<2x64xf32> to vector<2x16xf32>
    %173 = arith.negf %172 : vector<2x16xf32>
    %174 = math.exp %173 : vector<2x16xf32>
    %cst_53 = arith.constant 1.000000e+00 : f32
    %175 = vector.broadcast %cst_53 : f32 to vector<2x16xf32>
    %176 = arith.addf %175, %174 : vector<2x16xf32>
    %177 = arith.divf %175, %176 : vector<2x16xf32>
    %178 = vector.extract_strided_slice %165 {offsets = [0, 32], sizes = [2, 16], strides = [1, 1]} : vector<2x64xf32> to vector<2x16xf32>
    %179 = math.tanh %178 : vector<2x16xf32>
    %180 = vector.extract_strided_slice %165 {offsets = [0, 48], sizes = [2, 16], strides = [1, 1]} : vector<2x64xf32> to vector<2x16xf32>
    %181 = arith.negf %180 : vector<2x16xf32>
    %182 = math.exp %181 : vector<2x16xf32>
    %cst_54 = arith.constant 1.000000e+00 : f32
    %183 = vector.broadcast %cst_54 : f32 to vector<2x16xf32>
    %184 = arith.addf %183, %182 : vector<2x16xf32>
    %185 = arith.divf %183, %184 : vector<2x16xf32>
    %186 = arith.mulf %177, %153 : vector<2x16xf32>
    %187 = arith.mulf %171, %179 : vector<2x16xf32>
    %188 = arith.addf %186, %187 : vector<2x16xf32>
    %189 = math.tanh %188 : vector<2x16xf32>
    %190 = arith.mulf %185, %189 : vector<2x16xf32>
    %191 = arith.addf %156, %190 : vector<2x16xf32>
    %192 = arith.maximumf %157, %190 : vector<2x16xf32>
    %c10_55 = arith.constant 10 : index
    %c0_56 = arith.constant 0 : index
    %193 = vector.load %arg10[%c10_55, %c0_56] : memref<20x64xf32, #tpu.memory_space<vmem>>, vector<2x64xf32>
    %c8_57 = arith.constant 8 : index
    %c0_58 = arith.constant 0 : index
    %194 = vector.load %arg10[%c8_57, %c0_58] : memref<20x64xf32, #tpu.memory_space<vmem>>, vector<2x64xf32>
    %c0_i32_59 = arith.constant 0 : i32
    %195 = arith.cmpi eq, %arg0, %c0_i32_59 : i32
    %196 = arith.select %195, %193, %194 : vector<2x64xf32>
    %197 = arith.truncf %190 : vector<2x16xf32> to vector<2x16xbf16>
    %cst_60 = arith.constant dense<0.000000e+00> : vector<2x64xf32>
    %198 = tpu.matmul %197, %11, %cst_60 {dimension_numbers = #tpu.dot_dimension_numbers<[1], [0], [0], [1], [0, 0, 1, 1], [], []>} : vector<2x16xbf16>, vector<16x64xbf16>, vector<2x64xf32> -> vector<2x64xf32>
    %199 = arith.addf %196, %198 : vector<2x64xf32>
    %200 = arith.addf %199, %15 : vector<2x64xf32>
    %201 = vector.extract_strided_slice %200 {offsets = [0, 0], sizes = [2, 16], strides = [1, 1]} : vector<2x64xf32> to vector<2x16xf32>
    %202 = arith.negf %201 : vector<2x16xf32>
    %203 = math.exp %202 : vector<2x16xf32>
    %cst_61 = arith.constant 1.000000e+00 : f32
    %204 = vector.broadcast %cst_61 : f32 to vector<2x16xf32>
    %205 = arith.addf %204, %203 : vector<2x16xf32>
    %206 = arith.divf %204, %205 : vector<2x16xf32>
    %207 = vector.extract_strided_slice %200 {offsets = [0, 16], sizes = [2, 16], strides = [1, 1]} : vector<2x64xf32> to vector<2x16xf32>
    %208 = arith.negf %207 : vector<2x16xf32>
    %209 = math.exp %208 : vector<2x16xf32>
    %cst_62 = arith.constant 1.000000e+00 : f32
    %210 = vector.broadcast %cst_62 : f32 to vector<2x16xf32>
    %211 = arith.addf %210, %209 : vector<2x16xf32>
    %212 = arith.divf %210, %211 : vector<2x16xf32>
    %213 = vector.extract_strided_slice %200 {offsets = [0, 32], sizes = [2, 16], strides = [1, 1]} : vector<2x64xf32> to vector<2x16xf32>
    %214 = math.tanh %213 : vector<2x16xf32>
    %215 = vector.extract_strided_slice %200 {offsets = [0, 48], sizes = [2, 16], strides = [1, 1]} : vector<2x64xf32> to vector<2x16xf32>
    %216 = arith.negf %215 : vector<2x16xf32>
    %217 = math.exp %216 : vector<2x16xf32>
    %cst_63 = arith.constant 1.000000e+00 : f32
    %218 = vector.broadcast %cst_63 : f32 to vector<2x16xf32>
    %219 = arith.addf %218, %217 : vector<2x16xf32>
    %220 = arith.divf %218, %219 : vector<2x16xf32>
    %221 = arith.mulf %212, %188 : vector<2x16xf32>
    %222 = arith.mulf %206, %214 : vector<2x16xf32>
    %223 = arith.addf %221, %222 : vector<2x16xf32>
    %224 = math.tanh %223 : vector<2x16xf32>
    %225 = arith.mulf %220, %224 : vector<2x16xf32>
    %226 = arith.addf %191, %225 : vector<2x16xf32>
    %227 = arith.maximumf %192, %225 : vector<2x16xf32>
    %c12_64 = arith.constant 12 : index
    %c0_65 = arith.constant 0 : index
    %228 = vector.load %arg10[%c12_64, %c0_65] : memref<20x64xf32, #tpu.memory_space<vmem>>, vector<2x64xf32>
    %c6_66 = arith.constant 6 : index
    %c0_67 = arith.constant 0 : index
    %229 = vector.load %arg10[%c6_66, %c0_67] : memref<20x64xf32, #tpu.memory_space<vmem>>, vector<2x64xf32>
    %c0_i32_68 = arith.constant 0 : i32
    %230 = arith.cmpi eq, %arg0, %c0_i32_68 : i32
    %231 = arith.select %230, %228, %229 : vector<2x64xf32>
    %232 = arith.truncf %225 : vector<2x16xf32> to vector<2x16xbf16>
    %cst_69 = arith.constant dense<0.000000e+00> : vector<2x64xf32>
    %233 = tpu.matmul %232, %11, %cst_69 {dimension_numbers = #tpu.dot_dimension_numbers<[1], [0], [0], [1], [0, 0, 1, 1], [], []>} : vector<2x16xbf16>, vector<16x64xbf16>, vector<2x64xf32> -> vector<2x64xf32>
    %234 = arith.addf %231, %233 : vector<2x64xf32>
    %235 = arith.addf %234, %15 : vector<2x64xf32>
    %236 = vector.extract_strided_slice %235 {offsets = [0, 0], sizes = [2, 16], strides = [1, 1]} : vector<2x64xf32> to vector<2x16xf32>
    %237 = arith.negf %236 : vector<2x16xf32>
    %238 = math.exp %237 : vector<2x16xf32>
    %cst_70 = arith.constant 1.000000e+00 : f32
    %239 = vector.broadcast %cst_70 : f32 to vector<2x16xf32>
    %240 = arith.addf %239, %238 : vector<2x16xf32>
    %241 = arith.divf %239, %240 : vector<2x16xf32>
    %242 = vector.extract_strided_slice %235 {offsets = [0, 16], sizes = [2, 16], strides = [1, 1]} : vector<2x64xf32> to vector<2x16xf32>
    %243 = arith.negf %242 : vector<2x16xf32>
    %244 = math.exp %243 : vector<2x16xf32>
    %cst_71 = arith.constant 1.000000e+00 : f32
    %245 = vector.broadcast %cst_71 : f32 to vector<2x16xf32>
    %246 = arith.addf %245, %244 : vector<2x16xf32>
    %247 = arith.divf %245, %246 : vector<2x16xf32>
    %248 = vector.extract_strided_slice %235 {offsets = [0, 32], sizes = [2, 16], strides = [1, 1]} : vector<2x64xf32> to vector<2x16xf32>
    %249 = math.tanh %248 : vector<2x16xf32>
    %250 = vector.extract_strided_slice %235 {offsets = [0, 48], sizes = [2, 16], strides = [1, 1]} : vector<2x64xf32> to vector<2x16xf32>
    %251 = arith.negf %250 : vector<2x16xf32>
    %252 = math.exp %251 : vector<2x16xf32>
    %cst_72 = arith.constant 1.000000e+00 : f32
    %253 = vector.broadcast %cst_72 : f32 to vector<2x16xf32>
    %254 = arith.addf %253, %252 : vector<2x16xf32>
    %255 = arith.divf %253, %254 : vector<2x16xf32>
    %256 = arith.mulf %247, %223 : vector<2x16xf32>
    %257 = arith.mulf %241, %249 : vector<2x16xf32>
    %258 = arith.addf %256, %257 : vector<2x16xf32>
    %259 = math.tanh %258 : vector<2x16xf32>
    %260 = arith.mulf %255, %259 : vector<2x16xf32>
    %261 = arith.addf %226, %260 : vector<2x16xf32>
    %262 = arith.maximumf %227, %260 : vector<2x16xf32>
    %c14_73 = arith.constant 14 : index
    %c0_74 = arith.constant 0 : index
    %263 = vector.load %arg10[%c14_73, %c0_74] : memref<20x64xf32, #tpu.memory_space<vmem>>, vector<2x64xf32>
    %c4_75 = arith.constant 4 : index
    %c0_76 = arith.constant 0 : index
    %264 = vector.load %arg10[%c4_75, %c0_76] : memref<20x64xf32, #tpu.memory_space<vmem>>, vector<2x64xf32>
    %c0_i32_77 = arith.constant 0 : i32
    %265 = arith.cmpi eq, %arg0, %c0_i32_77 : i32
    %266 = arith.select %265, %263, %264 : vector<2x64xf32>
    %267 = arith.truncf %260 : vector<2x16xf32> to vector<2x16xbf16>
    %cst_78 = arith.constant dense<0.000000e+00> : vector<2x64xf32>
    %268 = tpu.matmul %267, %11, %cst_78 {dimension_numbers = #tpu.dot_dimension_numbers<[1], [0], [0], [1], [0, 0, 1, 1], [], []>} : vector<2x16xbf16>, vector<16x64xbf16>, vector<2x64xf32> -> vector<2x64xf32>
    %269 = arith.addf %266, %268 : vector<2x64xf32>
    %270 = arith.addf %269, %15 : vector<2x64xf32>
    %271 = vector.extract_strided_slice %270 {offsets = [0, 0], sizes = [2, 16], strides = [1, 1]} : vector<2x64xf32> to vector<2x16xf32>
    %272 = arith.negf %271 : vector<2x16xf32>
    %273 = math.exp %272 : vector<2x16xf32>
    %cst_79 = arith.constant 1.000000e+00 : f32
    %274 = vector.broadcast %cst_79 : f32 to vector<2x16xf32>
    %275 = arith.addf %274, %273 : vector<2x16xf32>
    %276 = arith.divf %274, %275 : vector<2x16xf32>
    %277 = vector.extract_strided_slice %270 {offsets = [0, 16], sizes = [2, 16], strides = [1, 1]} : vector<2x64xf32> to vector<2x16xf32>
    %278 = arith.negf %277 : vector<2x16xf32>
    %279 = math.exp %278 : vector<2x16xf32>
    %cst_80 = arith.constant 1.000000e+00 : f32
    %280 = vector.broadcast %cst_80 : f32 to vector<2x16xf32>
    %281 = arith.addf %280, %279 : vector<2x16xf32>
    %282 = arith.divf %280, %281 : vector<2x16xf32>
    %283 = vector.extract_strided_slice %270 {offsets = [0, 32], sizes = [2, 16], strides = [1, 1]} : vector<2x64xf32> to vector<2x16xf32>
    %284 = math.tanh %283 : vector<2x16xf32>
    %285 = vector.extract_strided_slice %270 {offsets = [0, 48], sizes = [2, 16], strides = [1, 1]} : vector<2x64xf32> to vector<2x16xf32>
    %286 = arith.negf %285 : vector<2x16xf32>
    %287 = math.exp %286 : vector<2x16xf32>
    %cst_81 = arith.constant 1.000000e+00 : f32
    %288 = vector.broadcast %cst_81 : f32 to vector<2x16xf32>
    %289 = arith.addf %288, %287 : vector<2x16xf32>
    %290 = arith.divf %288, %289 : vector<2x16xf32>
    %291 = arith.mulf %282, %258 : vector<2x16xf32>
    %292 = arith.mulf %276, %284 : vector<2x16xf32>
    %293 = arith.addf %291, %292 : vector<2x16xf32>
    %294 = math.tanh %293 : vector<2x16xf32>
    %295 = arith.mulf %290, %294 : vector<2x16xf32>
    %296 = arith.addf %261, %295 : vector<2x16xf32>
    %297 = arith.maximumf %262, %295 : vector<2x16xf32>
    %c16_82 = arith.constant 16 : index
    %c0_83 = arith.constant 0 : index
    %298 = vector.load %arg10[%c16_82, %c0_83] : memref<20x64xf32, #tpu.memory_space<vmem>>, vector<2x64xf32>
    %c2_84 = arith.constant 2 : index
    %c0_85 = arith.constant 0 : index
    %299 = vector.load %arg10[%c2_84, %c0_85] : memref<20x64xf32, #tpu.memory_space<vmem>>, vector<2x64xf32>
    %c0_i32_86 = arith.constant 0 : i32
    %300 = arith.cmpi eq, %arg0, %c0_i32_86 : i32
    %301 = arith.select %300, %298, %299 : vector<2x64xf32>
    %302 = arith.truncf %295 : vector<2x16xf32> to vector<2x16xbf16>
    %cst_87 = arith.constant dense<0.000000e+00> : vector<2x64xf32>
    %303 = tpu.matmul %302, %11, %cst_87 {dimension_numbers = #tpu.dot_dimension_numbers<[1], [0], [0], [1], [0, 0, 1, 1], [], []>} : vector<2x16xbf16>, vector<16x64xbf16>, vector<2x64xf32> -> vector<2x64xf32>
    %304 = arith.addf %301, %303 : vector<2x64xf32>
    %305 = arith.addf %304, %15 : vector<2x64xf32>
    %306 = vector.extract_strided_slice %305 {offsets = [0, 0], sizes = [2, 16], strides = [1, 1]} : vector<2x64xf32> to vector<2x16xf32>
    %307 = arith.negf %306 : vector<2x16xf32>
    %308 = math.exp %307 : vector<2x16xf32>
    %cst_88 = arith.constant 1.000000e+00 : f32
    %309 = vector.broadcast %cst_88 : f32 to vector<2x16xf32>
    %310 = arith.addf %309, %308 : vector<2x16xf32>
    %311 = arith.divf %309, %310 : vector<2x16xf32>
    %312 = vector.extract_strided_slice %305 {offsets = [0, 16], sizes = [2, 16], strides = [1, 1]} : vector<2x64xf32> to vector<2x16xf32>
    %313 = arith.negf %312 : vector<2x16xf32>
    %314 = math.exp %313 : vector<2x16xf32>
    %cst_89 = arith.constant 1.000000e+00 : f32
    %315 = vector.broadcast %cst_89 : f32 to vector<2x16xf32>
    %316 = arith.addf %315, %314 : vector<2x16xf32>
    %317 = arith.divf %315, %316 : vector<2x16xf32>
    %318 = vector.extract_strided_slice %305 {offsets = [0, 32], sizes = [2, 16], strides = [1, 1]} : vector<2x64xf32> to vector<2x16xf32>
    %319 = math.tanh %318 : vector<2x16xf32>
    %320 = vector.extract_strided_slice %305 {offsets = [0, 48], sizes = [2, 16], strides = [1, 1]} : vector<2x64xf32> to vector<2x16xf32>
    %321 = arith.negf %320 : vector<2x16xf32>
    %322 = math.exp %321 : vector<2x16xf32>
    %cst_90 = arith.constant 1.000000e+00 : f32
    %323 = vector.broadcast %cst_90 : f32 to vector<2x16xf32>
    %324 = arith.addf %323, %322 : vector<2x16xf32>
    %325 = arith.divf %323, %324 : vector<2x16xf32>
    %326 = arith.mulf %317, %293 : vector<2x16xf32>
    %327 = arith.mulf %311, %319 : vector<2x16xf32>
    %328 = arith.addf %326, %327 : vector<2x16xf32>
    %329 = math.tanh %328 : vector<2x16xf32>
    %330 = arith.mulf %325, %329 : vector<2x16xf32>
    %331 = arith.addf %296, %330 : vector<2x16xf32>
    %332 = arith.maximumf %297, %330 : vector<2x16xf32>
    %c18_91 = arith.constant 18 : index
    %c0_92 = arith.constant 0 : index
    %333 = vector.load %arg10[%c18_91, %c0_92] : memref<20x64xf32, #tpu.memory_space<vmem>>, vector<2x64xf32>
    %c0_93 = arith.constant 0 : index
    %c0_94 = arith.constant 0 : index
    %334 = vector.load %arg10[%c0_93, %c0_94] : memref<20x64xf32, #tpu.memory_space<vmem>>, vector<2x64xf32>
    %c0_i32_95 = arith.constant 0 : i32
    %335 = arith.cmpi eq, %arg0, %c0_i32_95 : i32
    %336 = arith.select %335, %333, %334 : vector<2x64xf32>
    %337 = arith.truncf %330 : vector<2x16xf32> to vector<2x16xbf16>
    %cst_96 = arith.constant dense<0.000000e+00> : vector<2x64xf32>
    %338 = tpu.matmul %337, %11, %cst_96 {dimension_numbers = #tpu.dot_dimension_numbers<[1], [0], [0], [1], [0, 0, 1, 1], [], []>} : vector<2x16xbf16>, vector<16x64xbf16>, vector<2x64xf32> -> vector<2x64xf32>
    %339 = arith.addf %336, %338 : vector<2x64xf32>
    %340 = arith.addf %339, %15 : vector<2x64xf32>
    %341 = vector.extract_strided_slice %340 {offsets = [0, 0], sizes = [2, 16], strides = [1, 1]} : vector<2x64xf32> to vector<2x16xf32>
    %342 = arith.negf %341 : vector<2x16xf32>
    %343 = math.exp %342 : vector<2x16xf32>
    %cst_97 = arith.constant 1.000000e+00 : f32
    %344 = vector.broadcast %cst_97 : f32 to vector<2x16xf32>
    %345 = arith.addf %344, %343 : vector<2x16xf32>
    %346 = arith.divf %344, %345 : vector<2x16xf32>
    %347 = vector.extract_strided_slice %340 {offsets = [0, 16], sizes = [2, 16], strides = [1, 1]} : vector<2x64xf32> to vector<2x16xf32>
    %348 = arith.negf %347 : vector<2x16xf32>
    %349 = math.exp %348 : vector<2x16xf32>
    %cst_98 = arith.constant 1.000000e+00 : f32
    %350 = vector.broadcast %cst_98 : f32 to vector<2x16xf32>
    %351 = arith.addf %350, %349 : vector<2x16xf32>
    %352 = arith.divf %350, %351 : vector<2x16xf32>
    %353 = vector.extract_strided_slice %340 {offsets = [0, 32], sizes = [2, 16], strides = [1, 1]} : vector<2x64xf32> to vector<2x16xf32>
    %354 = math.tanh %353 : vector<2x16xf32>
    %355 = vector.extract_strided_slice %340 {offsets = [0, 48], sizes = [2, 16], strides = [1, 1]} : vector<2x64xf32> to vector<2x16xf32>
    %356 = arith.negf %355 : vector<2x16xf32>
    %357 = math.exp %356 : vector<2x16xf32>
    %cst_99 = arith.constant 1.000000e+00 : f32
    %358 = vector.broadcast %cst_99 : f32 to vector<2x16xf32>
    %359 = arith.addf %358, %357 : vector<2x16xf32>
    %360 = arith.divf %358, %359 : vector<2x16xf32>
    %361 = arith.mulf %352, %328 : vector<2x16xf32>
    %362 = arith.mulf %346, %354 : vector<2x16xf32>
    %363 = arith.addf %361, %362 : vector<2x16xf32>
    %364 = math.tanh %363 : vector<2x16xf32>
    %365 = arith.mulf %360, %364 : vector<2x16xf32>
    %366 = arith.addf %331, %365 : vector<2x16xf32>
    %367 = arith.maximumf %332, %365 : vector<2x16xf32>
    %c0_100 = arith.constant 0 : index
    %c0_101 = arith.constant 0 : index
    %368 = vector.load %arg8[%c0_100, %c0_101] : memref<2x16xf32, #tpu.memory_space<vmem>>, vector<2x16xf32>
    tpu.vector_store %arg8[%c0_100, %c0_101], %365 {strides = array<i32>} : memref<2x16xf32, #tpu.memory_space<vmem>>, vector<2x16xf32>,
    %c0_102 = arith.constant 0 : index
    %c0_103 = arith.constant 0 : index
    %369 = vector.load %arg9[%c0_102, %c0_103] : memref<2x16xf32, #tpu.memory_space<vmem>>, vector<2x16xf32>
    tpu.vector_store %arg9[%c0_102, %c0_103], %363 {strides = array<i32>} : memref<2x16xf32, #tpu.memory_space<vmem>>, vector<2x16xf32>,
    %c0_104 = arith.constant 0 : index
    %c0_105 = arith.constant 0 : index
    %c0_106 = arith.constant 0 : index
    %370 = vector.load %arg6[%c0_104, %c0_105, %c0_106] : memref<1x2x16xf32, #tpu.memory_space<vmem>>, vector<1x2x16xf32>
    %371 = vector.shape_cast %370 : vector<1x2x16xf32> to vector<2x16xf32>
    %372 = arith.addf %371, %366 : vector<2x16xf32>
    %c0_107 = arith.constant 0 : index
    %c0_108 = arith.constant 0 : index
    %c0_109 = arith.constant 0 : index
    %373 = vector.load %arg6[%c0_107, %c0_108, %c0_109] : memref<1x2x16xf32, #tpu.memory_space<vmem>>, vector<1x2x16xf32>
    %374 = vector.shape_cast %373 : vector<1x2x16xf32> to vector<2x16xf32>
    %375 = vector.shape_cast %372 : vector<2x16xf32> to vector<1x2x16xf32>
    tpu.vector_store %arg6[%c0_107, %c0_108, %c0_109], %375 {strides = array<i32>} : memref<1x2x16xf32, #tpu.memory_space<vmem>>, vector<1x2x16xf32>,
    %c0_110 = arith.constant 0 : index
    %c0_111 = arith.constant 0 : index
    %c0_112 = arith.constant 0 : index
    %376 = vector.load %arg7[%c0_110, %c0_111, %c0_112] : memref<1x2x16xf32, #tpu.memory_space<vmem>>, vector<1x2x16xf32>
    %377 = vector.shape_cast %376 : vector<1x2x16xf32> to vector<2x16xf32>
    %378 = arith.maximumf %377, %367 : vector<2x16xf32>
    %c0_113 = arith.constant 0 : index
    %c0_114 = arith.constant 0 : index
    %c0_115 = arith.constant 0 : index
    %379 = vector.load %arg7[%c0_113, %c0_114, %c0_115] : memref<1x2x16xf32, #tpu.memory_space<vmem>>, vector<1x2x16xf32>
    %380 = vector.shape_cast %379 : vector<1x2x16xf32> to vector<2x16xf32>
    %381 = vector.shape_cast %378 : vector<2x16xf32> to vector<1x2x16xf32>
    tpu.vector_store %arg7[%c0_113, %c0_114, %c0_115], %381 {strides = array<i32>} : memref<1x2x16xf32, #tpu.memory_space<vmem>>, vector<1x2x16xf32>,
    return
  }
  func.func @transform_0(%arg0: i32, %arg1: i32) -> (i32, i32) {
    %c2_i32 = arith.constant 2 : i32
    %0 = arith.muli %c2_i32, %arg1 : i32
    %c0_i32 = arith.constant 0 : i32
    %1 = arith.subi %c0_i32, %0 : i32
    %2 = arith.muli %arg0, %1 : i32
    %3 = arith.addi %arg1, %2 : i32
    %c0_i32_0 = arith.constant 0 : i32
    %c0_i32_1 = arith.constant 0 : i32
    return %3, %c0_i32_0 : i32, i32
  }
  func.func @transform_1(%arg0: i32, %arg1: i32) -> (i32, i32, i32) {
    %c0_i32 = arith.constant 0 : i32
    %c0_i32_0 = arith.constant 0 : i32
    %c0_i32_1 = arith.constant 0 : i32
    return %arg0, %c0_i32, %c0_i32_0 : i32, i32, i32
  }
  func.func @transform_2(%arg0: i32, %arg1: i32) -> (i32, i32, i32) {
    %c0_i32 = arith.constant 0 : i32
    %c0_i32_0 = arith.constant 0 : i32
    %c0_i32_1 = arith.constant 0 : i32
    return %arg0, %c0_i32, %c0_i32_0 : i32, i32, i32
  }
  func.func @transform_3(%arg0: i32, %arg1: i32) -> (i32, i32, i32) {
    %c0_i32 = arith.constant 0 : i32
    %c0_i32_0 = arith.constant 0 : i32
    %c0_i32_1 = arith.constant 0 : i32
    return %arg0, %c0_i32, %c0_i32_0 : i32, i32, i32
  }
  func.func @transform_4(%arg0: i32, %arg1: i32) -> (i32, i32, i32) {
    %c0_i32 = arith.constant 0 : i32
    %c0_i32_0 = arith.constant 0 : i32
    %c0_i32_1 = arith.constant 0 : i32
    return %arg0, %c0_i32, %c0_i32_0 : i32, i32, i32
  }
  func.func @transform_5(%arg0: i32, %arg1: i32) -> (i32, i32, i32) {
    %c0_i32 = arith.constant 0 : i32
    %c0_i32_0 = arith.constant 0 : i32
    %c0_i32_1 = arith.constant 0 : i32
    return %arg0, %c0_i32, %c0_i32_0 : i32, i32, i32
  }
}

module attributes {stable_mosaic.version = 11 : i64} {
  func.func @_mlp_kernel(%arg0: i32, %arg1: memref<2x128xf32, #tpu.memory_space<vmem>>, %arg2: memref<128x128xbf16, #tpu.memory_space<vmem>>, %arg3: memref<1x128xf32, #tpu.memory_space<vmem>>, %arg4: memref<128x3xbf16, #tpu.memory_space<vmem>>, %arg5: memref<1x3xf32, #tpu.memory_space<vmem>>, %arg6: memref<2x3xf32, #tpu.memory_space<vmem>>) attributes {dimension_semantics = [#tpu.dimension_semantics<arbitrary>], iteration_bounds = array<i64: 1>, scalar_prefetch = 0 : i64, scratch_operands = 0 : i64, tpu.core_type = #tpu.core_type<tc>, window_params = [{pipeline_mode = #tpu.pipeline_mode<synchronous>, transform_indices = @transform_0, window_bounds = array<i64: 2, 128>}, {pipeline_mode = #tpu.pipeline_mode<synchronous>, transform_indices = @transform_1, window_bounds = array<i64: 128, 128>}, {pipeline_mode = #tpu.pipeline_mode<synchronous>, transform_indices = @transform_2, window_bounds = array<i64: 1, 128>}, {pipeline_mode = #tpu.pipeline_mode<synchronous>, transform_indices = @transform_3, window_bounds = array<i64: 128, 3>}, {pipeline_mode = #tpu.pipeline_mode<synchronous>, transform_indices = @transform_4, window_bounds = array<i64: 1, 3>}, {pipeline_mode = #tpu.pipeline_mode<synchronous>, transform_indices = @transform_5, window_bounds = array<i64: 2, 3>}]} {
    %c0 = arith.constant 0 : index
    %c0_0 = arith.constant 0 : index
    %0 = vector.load %arg1[%c0, %c0_0] : memref<2x128xf32, #tpu.memory_space<vmem>>, vector<2x128xf32>
    %1 = arith.truncf %0 : vector<2x128xf32> to vector<2x128xbf16>
    %c0_1 = arith.constant 0 : index
    %c0_2 = arith.constant 0 : index
    %2 = vector.load %arg2[%c0_1, %c0_2] : memref<128x128xbf16, #tpu.memory_space<vmem>>, vector<128x128xbf16>
    %cst = arith.constant dense<0.000000e+00> : vector<2x128xf32>
    %3 = tpu.matmul %1, %2, %cst {dimension_numbers = #tpu.dot_dimension_numbers<[1], [0], [0], [1], [0, 0, 1, 1], [], []>} : vector<2x128xbf16>, vector<128x128xbf16>, vector<2x128xf32> -> vector<2x128xf32>
    %c0_3 = arith.constant 0 : index
    %c0_4 = arith.constant 0 : index
    %4 = vector.load %arg3[%c0_3, %c0_4] : memref<1x128xf32, #tpu.memory_space<vmem>>, vector<1x128xf32>
    %5 = vector.broadcast %4 : vector<1x128xf32> to vector<2x128xf32>
    %6 = arith.addf %3, %5 : vector<2x128xf32>
    %7 = math.tanh %6 : vector<2x128xf32>
    %8 = arith.truncf %7 : vector<2x128xf32> to vector<2x128xbf16>
    %c0_5 = arith.constant 0 : index
    %c0_6 = arith.constant 0 : index
    %9 = vector.load %arg4[%c0_5, %c0_6] : memref<128x3xbf16, #tpu.memory_space<vmem>>, vector<128x3xbf16>
    %cst_7 = arith.constant dense<0.000000e+00> : vector<2x3xf32>
    %10 = tpu.matmul %8, %9, %cst_7 {dimension_numbers = #tpu.dot_dimension_numbers<[1], [0], [0], [1], [0, 0, 1, 1], [], []>} : vector<2x128xbf16>, vector<128x3xbf16>, vector<2x3xf32> -> vector<2x3xf32>
    %c0_8 = arith.constant 0 : index
    %c0_9 = arith.constant 0 : index
    %11 = vector.load %arg5[%c0_8, %c0_9] : memref<1x3xf32, #tpu.memory_space<vmem>>, vector<1x3xf32>
    %12 = vector.broadcast %11 : vector<1x3xf32> to vector<2x3xf32>
    %13 = arith.addf %10, %12 : vector<2x3xf32>
    %cst_10 = arith.constant dense<0xFF800000> : vector<2xf32>
    %14 = vector.multi_reduction <maximumf>, %13, %cst_10 [1] : vector<2x3xf32> to vector<2xf32>
    %cst_11 = arith.constant 0xFF800000 : f32
    %15 = vector.broadcast %cst_11 : f32 to vector<2xf32>
    %16 = arith.maximumf %15, %14 : vector<2xf32>
    %17 = vector.shape_cast %16 : vector<2xf32> to vector<2x1xf32>
    %18 = vector.broadcast %17 : vector<2x1xf32> to vector<2x3xf32>
    %19 = arith.subf %13, %18 : vector<2x3xf32>
    %20 = math.exp %19 : vector<2x3xf32>
    %cst_12 = arith.constant dense<0.000000e+00> : vector<2xf32>
    %21 = vector.multi_reduction <add>, %20, %cst_12 [1] : vector<2x3xf32> to vector<2xf32>
    %22 = vector.shape_cast %21 : vector<2xf32> to vector<2x1xf32>
    %23 = vector.broadcast %22 : vector<2x1xf32> to vector<2x3xf32>
    %24 = arith.divf %20, %23 : vector<2x3xf32>
    %c0_13 = arith.constant 0 : index
    %c0_14 = arith.constant 0 : index
    %25 = vector.load %arg6[%c0_13, %c0_14] : memref<2x3xf32, #tpu.memory_space<vmem>>, vector<2x3xf32>
    tpu.vector_store %arg6[%c0_13, %c0_14], %24 {strides = array<i32>} : memref<2x3xf32, #tpu.memory_space<vmem>>, vector<2x3xf32>,
    return
  }
  func.func @transform_0(%arg0: i32) -> (i32, i32) {
    %c0_i32 = arith.constant 0 : i32
    %c0_i32_0 = arith.constant 0 : i32
    %c0_i32_1 = arith.constant 0 : i32
    return %c0_i32, %c0_i32_0 : i32, i32
  }
  func.func @transform_1(%arg0: i32) -> (i32, i32) {
    %c0_i32 = arith.constant 0 : i32
    %c0_i32_0 = arith.constant 0 : i32
    %c0_i32_1 = arith.constant 0 : i32
    return %c0_i32, %c0_i32_0 : i32, i32
  }
  func.func @transform_2(%arg0: i32) -> (i32, i32) {
    %c0_i32 = arith.constant 0 : i32
    %c0_i32_0 = arith.constant 0 : i32
    %c0_i32_1 = arith.constant 0 : i32
    return %c0_i32, %c0_i32_0 : i32, i32
  }
  func.func @transform_3(%arg0: i32) -> (i32, i32) {
    %c0_i32 = arith.constant 0 : i32
    %c0_i32_0 = arith.constant 0 : i32
    %c0_i32_1 = arith.constant 0 : i32
    return %c0_i32, %c0_i32_0 : i32, i32
  }
  func.func @transform_4(%arg0: i32) -> (i32, i32) {
    %c0_i32 = arith.constant 0 : i32
    %c0_i32_0 = arith.constant 0 : i32
    %c0_i32_1 = arith.constant 0 : i32
    return %c0_i32, %c0_i32_0 : i32, i32
  }
  func.func @transform_5(%arg0: i32) -> (i32, i32) {
    %c0_i32 = arith.constant 0 : i32
    %c0_i32_0 = arith.constant 0 : i32
    %c0_i32_1 = arith.constant 0 : i32
    return %c0_i32, %c0_i32_0 : i32, i32
  }
}

</mosaic_0001>

<bundles_post_ra>
// kernel: esim_forward.11
= control target key start
LH: loop header
LB: loop body
LE: loop exit
PB: predicated region body
PF: predicated region fallthrough
CT: control target
= control target key end

     0   :  { %v314_v0 = vmov 0.0   ;;  %vm315_vm0 = vmmov 0   ;;  %vm53_vm1 = vcmask 261120   ;;  %vm247_vm2 = vcmask 125952   ;;  %s393_s3 = inlined_call_operand.vmem [shape: bf16[32,16], index: 3, kind: input, shape index: {}]   ;;  %s394_s2 = inlined_call_operand.vmem [shape: bf16[32,16], index: 2, kind: input, shape index: {}]   ;;  %s395_s1 = inlined_call_operand.vmem [shape: bf16[16,32], index: 1, kind: input, shape index: {}]   ;;  %s396_s0 = inlined_call_operand.vmem [shape: bf16[16,32], index: 0, kind: input, shape index: {}]   ;;  %s397_s4 = inlined_call_operand.vmem [shape: bf16[32,16], index: 4, kind: input, shape index: {}]   ;;  %s398_s5 = inlined_call_operand.vmem [shape: f32[1,16], index: 5, kind: input, shape index: {}]   ;;  %s399_s6 = inlined_call_operand.vmem [shape: bf16[16,16], index: 6, kind: output, shape index: {}]  }
   0x1   :  { %280 = vmatprep.subr.bf16.mxu0 %v314_v0  ;;  %288 = vmatprep.subr.bf16.mxu1 %v314_v0  ;;  %v306_v1 = vld [vmem:[%s393_s3 + $0x8] sm:$0xff]   ;;  %v308_v3 = vld [vmem:[%s393_s3] sm:$0xff]  }
   0x2   :  { %v307_v2 = vld [vmem:[%s394_s2 + $0x8] sm:$0xff]   ;;  %284 = vmatprep.mubr.msk.bf16.mxu0 %vm315_vm0, %v314_v0  ;;  %292 = vmatprep.mubr.msk.bf16.mxu1 %vm315_vm0, %v314_v0  ;;  %v309_v4 = vld [vmem:[%s394_s2] sm:$0xff]  }
   0x3   :  { %281 = vmatpush3.bf16.msra.mxu0 %v306_v1  ;;  %289 = vmatpush3.bf16.msra.mxu1 %v307_v2  ;;  %v26_v5 = vld [vmem:[%s395_s1] sm:$0xf]  ;;  %v27_v6 = vld [vmem:[%s395_s1 + $0x4] sm:$0xf]  ;;  %v312_v11 = vld [vmem:[%s397_s4 + $0x8] sm:$0xff]  }
   0x4   :  { %282 = vmatprep.subr.bf16.mxu0 %v314_v0  ;;  %290 = vmatprep.subr.bf16.mxu1 %v314_v0  ;;  %v24_v7 = vld [vmem:[%s396_s0] sm:$0xf]  ;;  %v254_v8 = vcombine.low %v26_v5, %v27_v6  ;;  %v25_v9 = vld [vmem:[%s396_s0 + $0x4] sm:$0xf] }
   0x5   :  { %v258_v10 = vcombine.low %v24_v7, %v25_v9  ;;  %v159_v12 = vmul.bf16 %v26_v5, %v24_v7  ;;  %v160_v13 = vmul.bf16 %v27_v6, %v25_v9  ;;  %v313_v14 = vld [vmem:[%s397_s4] sm:$0xff]  }
   0x6   :  { %v266_v26 = vld [vmem:[%s398_s5] ss:$0 sm:$0xff] }
   0x7   :  { %283 = vmatpush3.bf16.msra.mxu0 %v308_v3  ;;  %291 = vmatpush3.bf16.msra.mxu1 %v309_v4  ;;  %v262_v15 = vcombine.low %v159_v12, %v160_v13 }
   0x8   :  { %296 = vmatprep.subr.bf16.mxu0 %v314_v0 }
   0xa   :  { %285 = vmatmul.mubr.msk.bf16.vlgmr.msra.gmra.mxu0 %vm53_vm1, %v254_v8  ;;  %293 = vmatmul.mubr.msk.bf16.vlgmr.msra.gmra.mxu1 %vm53_vm1, %v258_v10 }
   0xb   :  { %297 = vmatpush3.bf16.msra.mxu0 %v312_v11  ;;  %300 = vmatprep.mubr.msk.bf16.mxu0 %vm315_vm0, %v314_v0 }
   0xc   :  { %298 = vmatprep.subr.bf16.mxu0 %v314_v0 }
   0xf   :  { %299 = vmatpush3.bf16.msra.mxu0 %v313_v14 }
  0x12   :  { %301 = vmatmul.mubr.msk.bf16.vlgmr.msra.gmra.mxu0 %vm53_vm1, %v262_v15 }
  0xca   :  { %v91_v16 = vpop.f32.mrf.mxu0  ;;  %v152_v17 = vpop.f32.mrf.mxu1 }
  0xcb   :  { %v153_v23 = vadd.f32 %v152_v17, %v91_v16 }
  0xcc   :  { %v286_v18 = vpop.f32.mrf.mxu0  ;;  %v294_v19 = vpop.f32.mrf.mxu1 }
  0xce   :  { %v94_v20 = vpop.f32.mrf.mxu0  ;;  %v155_v21 = vpop.f32.mrf.mxu1 }
  0xcf   :  { %v156_v29 = vadd.f32 %v155_v21, %v94_v20 }
  0xd0   :  { %v287_v22 = vpop.f32.mrf.mxu0  ;;  %v295_v24 = vpop.f32.mrf.mxu1 }
  0xd2   :  { %v219_v25 = vpop.f32.mrf.mxu0 }
  0xd3   :  { %v226_v27 = vadd.f32 %v219_v25, %v153_v23 }
  0xd4   :  { %v302_v28 = vpop.f32.mrf.mxu0 }
  0xd5   :  { %v235_v30 = vadd.f32 %v266_v26, %v226_v27 }
  0xd6   :  { %v222_v31 = vpop.f32.mrf.mxu0 }
  0xd7   :  { %v237_v32 = vmax.f32 %v235_v30, 0.0  ;;  %v227_v33 = vadd.f32 %v222_v31, %v156_v29 }
  0xd8   :  { %v303_v34 = vpop.f32.mrf.mxu0 }
  0xd9   :  { %v269_v35 = vpack.c.bf16 %v237_v32, %v237_v32  ;;  %v236_v36 = vadd.f32 %v266_v26, %v227_v33 }
  0xdb   :  { %248 = vst.msk [vmem:[%s399_s6] sm:$0xf] %vm247_vm2, %v269_v35  ;;  %v238_v37 = vmax.f32 %v236_v36, 0.0 }
  0xdd   :  { %v270_v38 = vpack.c.bf16 %v238_v37, %v238_v37 }
  0xdf   :  { %249 = vst.msk [vmem:[%s399_s6 + $0x4] sm:$0xf] %vm247_vm2, %v270_v38 }

// kernel: esim_forward.10
= control target key start
LH: loop header
LB: loop body
LE: loop exit
PB: predicated region body
PF: predicated region fallthrough
CT: control target
= control target key end

     0   :  { %vm31_vm0 = vcmask 261120   ;;  %v556_v0 = vmov 0.0   ;;  %vm557_vm1 = vmmov 0   ;;  %v558_v7 = vmov 0   ;;  %s683_s1 = inlined_call_operand.vmem [shape: bf16[2,10,32], index: 1, kind: input, shape index: {}]   ;;  %s684_s0 = inlined_call_operand.vmem [shape: bf16[2,8,32], index: 0, kind: input, shape index: {}]   ;;  %s685_s2 = inlined_call_operand.vmem [shape: f32[2,8,1], index: 2, kind: input, shape index: {}]   ;;  %s686_s3 = inlined_call_operand.vmem [shape: f32[2,1,10], index: 3, kind: input, shape index: {}]   ;;  %s687_s4 = inlined_call_operand.vmem [shape: bf16[2,8,32], index: 4, kind: output, shape index: {0}]   ;;  %s688_s5 = inlined_call_operand.vmem [shape: bf16[2,10,32], index: 5, kind: output, shape index: {1}]  }
   0x1   :  { %501 = vmatprep.subr.bf16.mxu0 %v556_v0  ;;  %507 = vmatprep.subr.bf16.mxu1 %v556_v0  ;;  %v594_v1 = vld [vmem:[%s683_s1] sm:$0x1f]   ;;  %v599_v2 = vld [vmem:[%s683_s1 + $0x8] sm:$0x1f]   ;;  %vm129_vm2 = vcmask 80896   ;;  %vm187_vm3 = vcmask 1044480  }
   0x2   :  { %503 = vmatprep.mubr.msk.bf16.mxu0 %vm557_vm1, %v556_v0  ;;  %509 = vmatprep.mubr.msk.bf16.mxu1 %vm557_vm1, %v556_v0  ;;  %v36_v3 = vsel %vm31_vm0, %v594_v1, 0  ;;  %v87_v4 = vsel %vm31_vm0, %v599_v2, 0  ;;  %v614_v5 = vld [vmem:[%s684_s0] sm:$0xf]  ;;  %v619_v6 = vld [vmem:[%s684_s0 + $0x4] sm:$0xf] }
   0x3   :  { %502 = vmatpush3.bf16.xpose.msra.mxu0 %v36_v3  ;;  %508 = vmatpush3.bf16.xpose.msra.mxu1 %v87_v4  ;;  %v280_v8 = vld [vmem:[%s685_s2] sm:$0xff]  ;;  %v281_v9 = vld [vmem:[%s685_s2 + $0x8] sm:$0xff]  ;;  %v188_v63 = vsel %vm187_vm3, %v594_v1, 0  ;;  %v233_v3 = vsel %vm187_vm3, %v599_v2, 0  ;;  %vm336_vm4 = vcmask 1043456   ;;  %vm332_vm5 = vcmask 64512  }
   0x4   :  { %513 = vmatprep.subr.bf16.mxu0 %v556_v0  ;;  %519 = vmatprep.subr.bf16.mxu1 %v556_v0  ;;  %v475_v39 = vld [vmem:[%s686_s3] ss:$0 sm:$0xff]  ;;  %v476_v44 = vld [vmem:[%s686_s3 + $0x1] ss:$0 sm:$0xff]  ;;  %vm277_vm6 = vcmask 257024   ;;  %vm459_vm7 = vcmask 253952  }
   0x5   :  { %540 = vset.pattern.permute.xlu1 %v558_v7 }
   0x6   :  { %284 = vperm.xlu1 %540, %v280_v8  }
   0xa   :  { %504 = vmatmul.mubr.msk.bf16.vlgmr.msra.gmra.mxu0 %vm31_vm0, %v614_v5  ;;  %510 = vmatmul.mubr.msk.bf16.vlgmr.msra.gmra.mxu1 %vm31_vm0, %v619_v6 }
   0xb   :  { %515 = vmatprep.mubr.msk.bf16.mxu0 %vm557_vm1, %v556_v0  ;;  %521 = vmatprep.mubr.msk.bf16.mxu1 %vm557_vm1, %v556_v0 }
   0xc   :  { %289 = vperm.xlu1 %540, %v281_v9   ;;  %514 = vmatpush3.bf16.msra.mxu0 %v188_v63 }
   0xd   :  { %520 = vmatpush3.bf16.msra.mxu1 %v233_v3  ;;  %525 = vmatprep.subr.bf16.mxu0 %v556_v0 }
   0xe   :  { %531 = vmatprep.subr.bf16.mxu1 %v556_v0 }
  0x81   :  { %v285_v38 = vpop.permute.xlu1 %284 }
  0x87   :  { %v290_v43 = vpop.permute.xlu1 %289 }
  0xca   :  { %v72_v10 = vpop.f32.mrf.mxu0  ;;  %v123_v11 = vpop.f32.mrf.mxu1 }
  0xcb   :  { %v130_v12 = vsel %vm129_vm2, %v72_v10, -inf  ;;  %v133_v15 = vsel %vm129_vm2, %v123_v11, -inf }
  0xcc   :  { %131 = vmax.xlane.f32.xlu0 %v130_v12  ;;  %v505_v13 = vpop.f32.mrf.mxu0  ;;  %v511_v14 = vpop.f32.mrf.mxu1 }
  0xce   :  { %v75_v16 = vpop.f32.mrf.mxu0  ;;  %v126_v17 = vpop.f32.mrf.mxu1 }
  0xd0   :  { %134 = vmax.xlane.f32.xlu0 %v133_v15  ;;  %v506_v18 = vpop.f32.mrf.mxu0  ;;  %v512_v19 = vpop.f32.mrf.mxu1 }
 0x155   :  { %v132_v20 = vpop.xlane.xlu0 %131 }
 0x156   :  { %v136_v21 = vrot.slane %v132_v20, 4 }
 0x158   :  { %v137_v22 = vmax.f32 %v132_v20, %v136_v21  ;;  %v337_v21 = vsel %vm336_vm4, %v614_v5, 0 }
 0x159   :  { %v135_v23 = vpop.xlane.xlu0 %134 }
 0x15a   :  { %v138_v24 = vrot.slane %v137_v22, 2  ;;  %v142_v25 = vrot.slane %v135_v23, 4 }
 0x15c   :  { %v139_v26 = vmax.f32 %v137_v22, %v138_v24  ;;  %v143_v27 = vmax.f32 %v135_v23, %v142_v25  ;;  %v399_v24 = vsel %vm336_vm4, %v619_v6, 0 }
 0x15e   :  { %v140_v28 = vrot.slane %v139_v26, 1  ;;  %v144_v29 = vrot.slane %v143_v27, 2 }
 0x160   :  { %v141_v30 = vmax.f32 %v139_v26, %v140_v28  ;;  %v145_v31 = vmax.f32 %v143_v27, %v144_v29 }
 0x162   :  { %v148_v32 = vsub.f32 %v72_v10, %v141_v30  ;;  %v146_v33 = vrot.slane %v145_v31, 1 }
 0x164   :  { %v150_v34 = vmul.f32 1.442695, %v148_v32  ;;  %v147_v35 = vmax.f32 %v145_v31, %v146_v33 }
 0x166   :  { %544 = vpow2.f32 %v150_v34  ;;  %v149_v36 = vsub.f32 %v123_v11, %v147_v35 }
 0x168   :  { %v152_v37 = vmul.f32 1.442695, %v149_v36 }
 0x16a   :  { %546 = vpow2.f32 %v152_v37 }
 0x173   :  { %v545_v40 = vpop.eup %544 }
 0x174   :  { %v292_v41 = vmul.f32 %v545_v40, %v285_v38  ;;  %v168_v42 = vmul.f32 %v545_v40, %v475_v39 }
 0x176   :  { %v294_v45 = vsel %vm129_vm2, %v292_v41, 0.0  ;;  %v170_v46 = vsel %vm129_vm2, %v168_v42, 0.0 }
 0x177   :  { %v547_v47 = vpop.eup %546  ;;  %v295_v48 = vrot.slane %v294_v45, 4  ;;  %171 = vadd.xlane.f32.xlu0 %v170_v46 }
 0x178   :  { %v293_v49 = vmul.f32 %v547_v47, %v290_v43  ;;  %v169_v50 = vmul.f32 %v547_v47, %v476_v44 }
 0x179   :  { %v296_v51 = vadd.f32 %v295_v48, %v294_v45 }
 0x17a   :  { %v301_v52 = vsel %vm129_vm2, %v293_v49, 0.0  ;;  %v173_v53 = vsel %vm129_vm2, %v169_v50, 0.0 }
 0x17b   :  { %v297_v54 = vrot.slane %v296_v51, 2  ;;  %v302_v55 = vrot.slane %v301_v52, 4  ;;  %174 = vadd.xlane.f32.xlu1 %v173_v53 }
 0x17d   :  { %v303_v56 = vadd.f32 %v302_v55, %v301_v52  ;;  %v298_v57 = vadd.f32 %v297_v54, %v296_v51 }
 0x17f   :  { %v304_v58 = vrot.slane %v303_v56, 2  ;;  %v299_v59 = vrot.slane %v298_v57, 1 }
 0x181   :  { %v305_v60 = vadd.f32 %v304_v58, %v303_v56  ;;  %v300_v61 = vadd.f32 %v299_v59, %v298_v57 }
 0x183   :  { %v306_v62 = vrot.slane %v305_v60, 1  ;;  %v308_v4 = vadd.f32 1e-20, %v300_v61 }
 0x185   :  { %v307_v8 = vadd.f32 %v306_v62, %v305_v60  ;;  %548 = vrcp.f32 %v308_v4 }
 0x187   :  { %v309_v9 = vadd.f32 1e-20, %v307_v8 }
 0x189   :  { %550 = vrcp.f32 %v309_v9 }
 0x192   :  { %v549_v10 = vpop.eup %548 }
 0x193   :  { %v312_v11 = vmul.f32 %v549_v10, %v292_v41 }
 0x195   :  { %v314_v14 = vpack.c.bf16 %v312_v11, %v312_v11 }
 0x196   :  { %v551_v12 = vpop.eup %550 }
 0x197   :  { %v313_v13 = vmul.f32 %v551_v12, %v293_v49 }
 0x199   :  { %v315_v1 = vpack.c.bf16 %v313_v13, %v313_v13 }
 0x1a4   :  { %316 = vxpose.xlu0.c.b16.start.end [1/1] (short) (narrow) %v314_v14, 16 }
 0x1a8   :  { %380 = vxpose.xlu1.c.b16.start.end [1/1] (short) (narrow) %v315_v1, 16 }
 0x1ad   :  { %541 = vset.pattern.permute.xlu0 %v558_v7 }
 0x200   :  { %v172_v2 = vpop.xlane.xlu0 %171 }
 0x201   :  { %v176_v15 = vadd.f32 1e-20, %v172_v2 }
 0x203   :  { %552 = vrcp.f32 %v176_v15 }
 0x204   :  { %v175_v16 = vpop.xlane.xlu1 %174 }
 0x205   :  { %v177_v17 = vadd.f32 1e-20, %v175_v16 }
 0x206   :  { %v324_v25 = vpop.trf.xlu0 }
 0x207   :  { %554 = vrcp.f32 %v177_v17 }
 0x20a   :  { %v388_v5 = vpop.trf.xlu1 }
 0x210   :  { %v553_v18 = vpop.eup %552 }
 0x211   :  { %v180_v19 = vmul.f32 %v553_v18, %v168_v42 }
 0x213   :  { %v182_v20 = vpack.c.bf16 %v180_v19, %v180_v19 }
 0x214   :  { %v555_v22 = vpop.eup %554 }
 0x215   :  { %516 = vmatmul.mubr.msk.bf16.vlgmr.msra.gmra.mxu0 %vm129_vm2, %v182_v20  ;;  %v181_v23 = vmul.f32 %v555_v22, %v169_v50 }
 0x216   :  { %526 = vmatpush3.bf16.msra.mxu0 %v337_v21  ;;  %527 = vmatprep.mubr.msk.bf16.mxu0 %vm557_vm1, %v556_v0 }
 0x217   :  { %v183_v7 = vpack.c.bf16 %v181_v23, %v181_v23 }
 0x219   :  { %522 = vmatmul.mubr.msk.bf16.vlgmr.msra.gmra.mxu1 %vm129_vm2, %v183_v7 }
 0x21a   :  { %532 = vmatpush3.bf16.msra.mxu1 %v399_v24  ;;  %533 = vmatprep.mubr.msk.bf16.mxu1 %vm557_vm1, %v556_v0 }
 0x21d   :  { %528 = vmatmul.mubr.msk.bf16.vlgmr.msra.gmra.mxu0 %vm332_vm5, %v324_v25 }
 0x221   :  { %534 = vmatmul.mubr.msk.bf16.vlgmr.msra.gmra.mxu1 %vm332_vm5, %v388_v5 }
 0x2d5   :  { %v224_v26 = vpop.f32.mrf.mxu0 }
 0x2d6   :  { %v275_v27 = vpack.c.bf16 %v224_v26, %v224_v26 }
 0x2d7   :  { %v517_v28 = vpop.f32.mrf.mxu0 }
 0x2d8   :  { %278 = vst.msk [vmem:[%s687_s4] sm:$0xf] %vm277_vm6, %v275_v27 }
 0x2d9   :  { %v227_v6 = vpop.f32.mrf.mxu0  ;;  %v269_v29 = vpop.f32.mrf.mxu1 }
 0x2da   :  { %v276_v30 = vpack.c.bf16 %v269_v29, %v269_v29 }
 0x2db   :  { %v518_v31 = vpop.f32.mrf.mxu0  ;;  %v523_v32 = vpop.f32.mrf.mxu1 }
 0x2dc   :  { %279 = vst.msk [vmem:[%s687_s4 + $0x4] sm:$0xf] %vm277_vm6, %v276_v30 }
 0x2dd   :  { %v272_v0 = vpop.f32.mrf.mxu1  ;;  %v373_v33 = vpop.f32.mrf.mxu0 }
 0x2de   :  { %v485_v34 = vpack.c.bf16 %v373_v33, %v373_v33 }
 0x2df   :  { %v524_v35 = vpop.f32.mrf.mxu1  ;;  %v529_v36 = vpop.f32.mrf.mxu0 }
 0x2e0   :  { %458 = vst.msk [vmem:[%s688_s5] sm:$0xf] %vm277_vm6, %v485_v34 }
 0x2e1   :  { %v376_v37 = vpop.f32.mrf.mxu0  ;;  %v435_v38 = vpop.f32.mrf.mxu1 }
 0x2e2   :  { %v486_v39 = vpack.c.bf16 %v376_v37, %v376_v37  ;;  %v487_v40 = vpack.c.bf16 %v435_v38, %v435_v38 }
 0x2e3   :  { %v530_v41 = vpop.f32.mrf.mxu0  ;;  %v535_v42 = vpop.f32.mrf.mxu1 }
 0x2e4   :  { %460 = vst.msk [vmem:[%s688_s5 + $0x4] sm:$0x1] %vm459_vm7, %v486_v39 }
 0x2e5   :  { %461 = vst.msk [vmem:[%s688_s5 + $0x8] sm:$0xf] %vm277_vm6, %v487_v40  ;;  %v438_v43 = vpop.f32.mrf.mxu1 }
 0x2e6   :  { %v488_v44 = vpack.c.bf16 %v438_v43, %v438_v43 }
 0x2e7   :  { %v536_v45 = vpop.f32.mrf.mxu1 }
 0x2e8   :  { %462 = vst.msk [vmem:[%s688_s5 + $0xc] sm:$0x1] %vm459_vm7, %v488_v44 }

// kernel: esim_forward.8
= control target key start
LH: loop header
LB: loop body
LE: loop exit
PB: predicated region body
PF: predicated region fallthrough
CT: control target
= control target key end

     0   :  { %s1622_s15 = smov 0   ;;  %s1624_s16 = smov 0   ;;  %s1882_s0 = inlined_call_operand.vmem [shape: bf16[16,16], index: 0, kind: input, shape index: {}]   ;;  %s1883_s1 = inlined_call_operand.vmem [shape: bf16[2,16,64], index: 1, kind: input, shape index: {}]   ;;  %s1884_s2 = inlined_call_operand.vmem [shape: bf16[2,16,64], index: 2, kind: input, shape index: {}]   ;;  %s1885_s3 = inlined_call_operand.vmem [shape: f32[2,1,64], index: 3, kind: input, shape index: {}]   ;;  %s1886_s4 = inlined_call_operand.vmem [shape: bf16[2,8,2,16], index: 4, kind: output, shape index: {}]  }
   0x1   :  { %s1626_s17 = smov 0  }
   0x2 LB: > { %s26_s18 = sadd.s32 1, %s1583_s16  ;;  %p1360_p0 = scmp.ge.s32.totalorder %s1587_s17, 1  ;;  %s1587_s17 = sphi %s1626_s17, %s14_s17   ;;  %s1583_s16 = sphi %s1624_s16, %s1890_s16   ;;  %s1579_s15 = sphi %s1622_s15, %s1889_s15  }
   0x3   : > { %p28_p1 = scmp.ge.s32.totalorder %s26_s18, 2  ;;  %p229_p2 = scmp.lt.s32.totalorder %s1587_s17, 3 }
   0x5   : > { %s1892_s18 = smov (%p28_p1, %s26_s18), 0  ;;  %p230_p3 = pnand %p1360_p0, %p229_p2 }
   0x6   : > { %p293_p4 = scmp.lt.s32.totalorder (!%p230_p3), %s1579_s15, 1  ;;  %p408_p5 = scmp.eq.s32.totalorder (!%p230_p3), %s1579_s15, 0 }
   0x7   : > { %233 = sbr.rel (%p230_p3) target bundleno = 5586 (0x15d2), region = 36  ;;  %s1591_s7 = smov (!%p230_p3), 96  }
   0x8   : > { %s1592_s8 = smov (!%p230_p3), 16   ;;  %s1593_s9 = smov (!%p230_p3), 32  }
   0x9   : > { %s1594_s10 = smov (!%p230_p3), 80   ;;  %s1812_s11 = smul.u32 (!%p230_p3), 7, %s1579_s15 }
   0xc   : > { %v1589_v0 = vmov 0.0   ;;  %vm1590_vm0 = vmmov 0   ;;  %vm328_vm1 = vcmask 123904   ;;  %s1647_s19 = scalar_select %p293_p4, %s1579_s15, 1  ;;  %v1500_v1 = vld [vmem:[%s1882_s0] sm:$0xff]   ;;  %vm346_vm2 = vcmask 130048  }
   0xd   : > { %1412 = vmatprep.subr.bf16.mxu0 %v1589_v0  ;;  %1414 = vmatprep.mubr.msk.bf16.mxu0 %vm1590_vm0, %v1589_v0  ;;  %329 = vst.msk [vmem:[#allocation2] sm:$0x3] %vm328_vm1, %v1589_v0  ;;  %330 = vst.msk [vmem:[#allocation3] sm:$0x3] %vm328_vm1, %v1589_v0  ;;  %vm391_vm3 = vcmask 523264   ;;  %v498_v15 = vlaneseq  ;;  %vm513_vm5 = vcmask 122880  }
   0xe   : > { %1418 = vmatprep.subr.bf16.mxu1 %v1589_v0  ;;  %1420 = vmatprep.mubr.msk.bf16.mxu1 %vm1590_vm0, %v1589_v0  ;;  %s1657_s20 = sshll.u32 %s1647_s19, 3  ;;  %s305_s6 = scalar_lea.vmem %s1885_s3, %s1647_s19 }
   0xf   : > { %s297_s23 = scalar_lea.vmem %s1883_s1, %s1657_s20  ;;  %s302_s26 = scalar_lea.vmem %s1884_s2, %s1657_s20  ;;  %v1694_v18 = vld [vmem:[%s305_s6] ss:$0 sm:$0xff] }
  0x10   : > { %v1498_v2 = vld [vmem:[%s297_s23] sm:$0xff]   ;;  %s409_s29 = scalar_select %p408_p5, 1, 0 }
  0x11   : > { %v1670_v3 = vld [vmem:[%s302_s26] sm:$0xff]   ;;  %1413 = vmatpush3.bf16.msra.mxu0 %v1498_v2  ;;  %s1818_s14 = scalar_lea.vmem %s1886_s4, %s1657_s20  ;;  %s1373_s20 = sshll.u32 %s1579_s15, 1 }
  0x12   : > { %1419 = vmatpush3.bf16.msra.mxu1 %v1670_v3  ;;  %1424 = vmatprep.subr.bf16.mxu0 %v1589_v0  ;;  %v410_v13 = vstv %s409_s29  ;;  %s512_s19 = scalar_lea.vmem %s1818_s14, %s1812_s11  ;;  %s1837_s21 = ssub.s32 1, %s1373_s20 }
  0x13   : > { %1430 = vmatprep.subr.bf16.mxu1 %v1589_v0  ;;  %vm1690_vm4 = vcmp.eq.s32.totalorder %v410_v13, 1  ;;  %s1376_s22 = sshll.u32 %s1837_s21, 1  ;;  %s517_s23 = sadd.s32 %s1837_s21, %s1812_s11 }
  0x14   : > { %v403_v4 = vld [vmem:[#allocation2] sm:$0x3]  ;;  %1415 = vmatmul.mubr.msk.bf16.vlgmr.msra.gmra.mxu0 %vm346_vm2, %v1500_v1  ;;  %v404_v23 = vld [vmem:[#allocation3] sm:$0x3]  ;;  %s614_s24 = sadd.s32 %s1376_s22, %s1812_s11  ;;  %s710_s25 = smul.u32 3, %s1837_s21 }
  0x15   : > { %v413_v5 = vpack.c.bf16 %v403_v4, %v403_v4  ;;  %1425 = vmatpush3.bf16.msra.mxu0 %v1670_v3  ;;  %1426 = vmatprep.mubr.msk.bf16.mxu0 %vm1590_vm0, %v1589_v0  ;;  %s1381_s26 = sshll.u32 %s1837_s21, 2  ;;  %s611_s15 = scalar_lea.vmem %s1818_s14, %s517_s23 }
  0x16   : > { %1436 = vmatprep.subr.bf16.mxu0 %v1589_v0  ;;  %s708_s27 = scalar_lea.vmem %s1818_s14, %s614_s24  ;;  %s904_s28 = smul.u32 5, %s1837_s21 }
  0x17   : > { %1421 = vmatmul.mubr.msk.bf16.vlgmr.msra.gmra.mxu1 %vm346_vm2, %v413_v5  ;;  %s711_s29 = sadd.s32 %s710_s25, %s1812_s11  ;;  %s1001_s30 = smul.u32 6, %s1837_s21 }
  0x18   : > { %1431 = vmatpush3.bf16.msra.mxu1 %v1670_v3  ;;  %1432 = vmatprep.mubr.msk.bf16.mxu1 %vm1590_vm0, %v1589_v0  ;;  %s808_s5 = sadd.s32 %s1381_s26, %s1812_s11  ;;  %s805_s6 = scalar_lea.vmem %s1818_s14, %s711_s29 }
  0x19   : > { %1442 = vmatprep.subr.bf16.mxu1 %v1589_v0  ;;  %s1098_s20 = smul.u32 7, %s1837_s21 }
  0x1b   : > { %s1099_s22 = sadd.s32 %s1098_s20, %s1812_s11 }
  0x1c   : > { %s1193_s23 = scalar_lea.vmem %s1818_s14, %s1099_s22 }
  0xd4   : > { %v384_v6 = vpop.f32.mrf.mxu0 }
  0xd5   : > { %392 = vst.msk [vmem:[#allocation4] sm:$0xff] %vm391_vm3, %v384_v6 }
  0xd6   : > { %v1416_v8 = vpop.f32.mrf.mxu0 }
  0xd7   : > { %v457_v7 = vpop.f32.mrf.mxu1 }
  0xd8   : > { %v387_v10 = vpop.f32.mrf.mxu0 }
  0xd9   : > { %v1422_v9 = vpop.f32.mrf.mxu1  ;;  %393 = vst.msk [vmem:[#allocation4 + $0x8] sm:$0xff] %vm391_vm3, %v387_v10 }
  0xda   : > { %v1417_v12 = vpop.f32.mrf.mxu0 }
  0xdb   : > { %v460_v11 = vpop.f32.mrf.mxu1 }
  0xdc   : > { %v406_v16 = vld [vmem:[#allocation4] sm:$0x3]  ;;  %v518_v40 = vld [vmem:[#allocation4 + $0x2] sm:$0x3]  ;;  %v615_v1 = vld [vmem:[#allocation4 + $0x4] sm:$0x3] }
  0xdd   : > { %v1423_v14 = vpop.f32.mrf.mxu1 }
  0xe0   : > { %v407_v17 = vld [vmem:[#allocation4 + $0xe] sm:$0x3]  ;;  %v519_v39 = vld [vmem:[#allocation4 + $0xc] sm:$0x3]  ;;  %v616_v63 = vld [vmem:[#allocation4 + $0xa] sm:$0x3] }
  0xe1   : > { %v412_v19 = vsel %vm1690_vm4, %v406_v16, %v407_v17  ;;  %v520_v41 = vsel %vm1690_vm4, %v518_v40, %v519_v39  ;;  %v617_v2 = vsel %vm1690_vm4, %v615_v1, %v616_v63 }
  0xe2   : > { %v463_v20 = vadd.f32 %v457_v7, %v412_v19 }
  0xe4   : > { %v464_v21 = vadd.f32 %v1694_v18, %v463_v20 }
  0xe6   : > { %1501 = vtanh.f32 %v464_v21  ;;  %v1372_v24 = vmul.f32 -1.442695, %v464_v21 }
  0xe8   : > { %1503 = vpow2.f32 %v1372_v24 }
  0xf3   : > { %v1502_v22 = vpop.eup %1501 }
  0xf4   : > { %478 = vrot.lane.b32.xlu0 %v1502_v22, %s1591_s7 }
  0xf5   : > { %v1504_v25 = vpop.eup %1503 }
  0xf6   : > { %v468_v26 = vadd.f32 1.0, %v1504_v25 }
  0xf8   : > { %473 = vrot.lane.b32.xlu0 %v404_v23, %s1592_s8  ;;  %1505 = vrcp.f32 %v468_v26 }
 0x105   : > { %v1506_v27 = vpop.eup %1505 }
 0x166   : > { %v479_v28 = vpop.permute.xlu0 %478 }
 0x167   : > { %v481_v29 = vmul.f32 %v1506_v27, %v479_v28  ;;  %v712_v28 = vld [vmem:[#allocation4 + $0x6] sm:$0x3] }
 0x169   : > { %483 = vrot.lane.b32.xlu1 %v481_v29, %s1592_s8 }
 0x16a   : > { %v474_v30 = vpop.permute.xlu0 %473 }
 0x16b   : > { %v476_v31 = vmul.f32 %v1506_v27, %v474_v30 }
 0x1db   : > { %v484_v32 = vpop.permute.xlu1 %483 }
 0x1dc   : > { %v486_v33 = vadd.f32 %v484_v32, %v476_v31 }
 0x1de   : > { %1507 = vtanh.f32 %v486_v33 }
 0x1eb   : > { %v1508_v34 = vpop.eup %1507 }
 0x1ec   : > { %489 = vrot.lane.b32.xlu1 %v1508_v34, %s1593_s9 }
 0x25e   : > { %v490_v35 = vpop.permute.xlu1 %489 }
 0x25f   : > { %v492_v36 = vmul.f32 %v1506_v27, %v490_v35  ;;  %v713_v27 = vld [vmem:[#allocation4 + $0x8] sm:$0x3] }
 0x260   : > { %v714_v29 = vsel %vm1690_vm4, %v712_v28, %v713_v27 }
 0x261   : > { %v1703_v37 = vpack.c.bf16 %v492_v36, %v492_v36 }
 0x263   : > { %521 = vrot.lane.b32.xlu0 %v1703_v37, %s1594_s10 }
 0x2d5   : > { %v522_v38 = vpop.permute.xlu0 %521 }
 0x2d6   : > { %1427 = vmatmul.mubr.msk.bf16.vlgmr.msra.gmra.mxu0 %vm346_vm2, %v522_v38 }
 0x2d7   : > { %1437 = vmatpush3.bf16.msra.mxu0 %v1670_v3  ;;  %1438 = vmatprep.mubr.msk.bf16.mxu0 %vm1590_vm0, %v1589_v0 }
 0x2d8   : > { %1448 = vmatprep.subr.bf16.mxu0 %v1589_v0 }
 0x396   : > { %v560_v42 = vpop.f32.mrf.mxu0 }
 0x397   : > { %v566_v43 = vadd.f32 %v560_v42, %v520_v41 }
 0x398   : > { %v1428_v44 = vpop.f32.mrf.mxu0 }
 0x399   : > { %v567_v45 = vadd.f32 %v1694_v18, %v566_v43 }
 0x39a   : > { %v563_v46 = vpop.f32.mrf.mxu0 }
 0x39b   : > { %1509 = vtanh.f32 %v567_v45  ;;  %v1375_v49 = vmul.f32 -1.442695, %v567_v45 }
 0x39c   : > { %v1429_v47 = vpop.f32.mrf.mxu0 }
 0x39d   : > { %1511 = vpow2.f32 %v1375_v49 }
 0x3a8   : > { %v1510_v48 = vpop.eup %1509 }
 0x3a9   : > { %577 = vrot.lane.b32.xlu1 %v1510_v48, %s1591_s7 }
 0x3aa   : > { %v1512_v50 = vpop.eup %1511 }
 0x3ab   : > { %v571_v51 = vadd.f32 1.0, %v1512_v50 }
 0x3ad   : > { %1513 = vrcp.f32 %v571_v51 }
 0x3ba   : > { %v1514_v52 = vpop.eup %1513 }
 0x3bb   : > { %v575_v55 = vmul.f32 %v1514_v52, %v486_v33 }
 0x41b   : > { %v578_v53 = vpop.permute.xlu1 %577 }
 0x41c   : > { %v580_v54 = vmul.f32 %v1514_v52, %v578_v53  ;;  %v810_v53 = vld [vmem:[#allocation4 + $0x6] sm:$0x3] }
 0x41e   : > { %582 = vrot.lane.b32.xlu0 %v580_v54, %s1592_s8 }
 0x490   : > { %v583_v56 = vpop.permute.xlu0 %582 }
 0x491   : > { %v585_v57 = vadd.f32 %v583_v56, %v575_v55 }
 0x493   : > { %1515 = vtanh.f32 %v585_v57 }
 0x4a0   : > { %v1516_v58 = vpop.eup %1515 }
 0x4a1   : > { %588 = vrot.lane.b32.xlu1 %v1516_v58, %s1593_s9 }
 0x513   : > { %v589_v59 = vpop.permute.xlu1 %588 }
 0x514   : > { %v591_v60 = vmul.f32 %v1514_v52, %v589_v59  ;;  %v809_v52 = vld [vmem:[#allocation4 + $0x8] sm:$0x3] }
 0x515   : > { %v811_v54 = vsel %vm1690_vm4, %v809_v52, %v810_v53 }
 0x516   : > { %v1718_v61 = vpack.c.bf16 %v591_v60, %v591_v60 }
 0x518   : > { %618 = vrot.lane.b32.xlu0 %v1718_v61, %s1594_s10 }
 0x58a   : > { %v619_v62 = vpop.permute.xlu0 %618 }
 0x58b   : > { %1433 = vmatmul.mubr.msk.bf16.vlgmr.msra.gmra.mxu1 %vm346_vm2, %v619_v62 }
 0x58c   : > { %1443 = vmatpush3.bf16.msra.mxu1 %v1670_v3  ;;  %1444 = vmatprep.mubr.msk.bf16.mxu1 %vm1590_vm0, %v1589_v0 }
 0x58d   : > { %1454 = vmatprep.subr.bf16.mxu1 %v1589_v0 }
 0x64b   : > { %v657_v4 = vpop.f32.mrf.mxu1 }
 0x64c   : > { %v663_v5 = vadd.f32 %v657_v4, %v617_v2 }
 0x64d   : > { %v1434_v6 = vpop.f32.mrf.mxu1 }
 0x64e   : > { %v664_v7 = vadd.f32 %v1694_v18, %v663_v5 }
 0x64f   : > { %v660_v8 = vpop.f32.mrf.mxu1 }
 0x650   : > { %1517 = vtanh.f32 %v664_v7  ;;  %v1378_v11 = vmul.f32 -1.442695, %v664_v7 }
 0x651   : > { %v1435_v9 = vpop.f32.mrf.mxu1 }
 0x652   : > { %1519 = vpow2.f32 %v1378_v11 }
 0x65d   : > { %v1518_v10 = vpop.eup %1517 }
 0x65e   : > { %674 = vrot.lane.b32.xlu1 %v1518_v10, %s1591_s7 }
 0x65f   : > { %v1520_v12 = vpop.eup %1519 }
 0x660   : > { %v668_v13 = vadd.f32 1.0, %v1520_v12 }
 0x662   : > { %1521 = vrcp.f32 %v668_v13 }
 0x66f   : > { %v1522_v14 = vpop.eup %1521 }
 0x670   : > { %v672_v19 = vmul.f32 %v1522_v14, %v585_v57 }
 0x6d0   : > { %v675_v16 = vpop.permute.xlu1 %674 }
 0x6d1   : > { %v677_v17 = vmul.f32 %v1522_v14, %v675_v16  ;;  %v906_v16 = vld [vmem:[#allocation4 + $0xa] sm:$0x3] }
 0x6d3   : > { %679 = vrot.lane.b32.xlu0 %v677_v17, %s1592_s8  ;;  %v907_v17 = vld [vmem:[#allocation4 + $0x4] sm:$0x3] }
 0x745   : > { %v680_v20 = vpop.permute.xlu0 %679 }
 0x746   : > { %v682_v21 = vadd.f32 %v680_v20, %v672_v19  ;;  %v908_v19 = vsel %vm1690_vm4, %v906_v16, %v907_v17 }
 0x748   : > { %1523 = vtanh.f32 %v682_v21 }
 0x755   : > { %v1524_v22 = vpop.eup %1523 }
 0x756   : > { %685 = vrot.lane.b32.xlu1 %v1524_v22, %s1593_s9 }
 0x7c8   : > { %v686_v23 = vpop.permute.xlu1 %685 }
 0x7c9   : > { %v688_v24 = vmul.f32 %v1522_v14, %v686_v23 }
 0x7cb   : > { %v1733_v25 = vpack.c.bf16 %v688_v24, %v688_v24 }
 0x7cd   : > { %715 = vrot.lane.b32.xlu0 %v1733_v25, %s1594_s10 }
 0x83f   : > { %v716_v26 = vpop.permute.xlu0 %715 }
 0x840   : > { %1439 = vmatmul.mubr.msk.bf16.vlgmr.msra.gmra.mxu0 %vm346_vm2, %v716_v26 }
 0x841   : > { %1449 = vmatpush3.bf16.msra.mxu0 %v1670_v3  ;;  %1450 = vmatprep.mubr.msk.bf16.mxu0 %vm1590_vm0, %v1589_v0 }
 0x842   : > { %1460 = vmatprep.subr.bf16.mxu0 %v1589_v0 }
 0x900   : > { %v754_v30 = vpop.f32.mrf.mxu0 }
 0x901   : > { %v760_v31 = vadd.f32 %v754_v30, %v714_v29 }
 0x902   : > { %v1440_v32 = vpop.f32.mrf.mxu0 }
 0x903   : > { %v761_v33 = vadd.f32 %v1694_v18, %v760_v31 }
 0x904   : > { %v757_v34 = vpop.f32.mrf.mxu0 }
 0x905   : > { %1525 = vtanh.f32 %v761_v33  ;;  %v1380_v38 = vmul.f32 -1.442695, %v761_v33 }
 0x906   : > { %v1441_v35 = vpop.f32.mrf.mxu0 }
 0x907   : > { %1527 = vpow2.f32 %v1380_v38 }
 0x912   : > { %v1526_v36 = vpop.eup %1525 }
 0x913   : > { %771 = vrot.lane.b32.xlu1 %v1526_v36, %s1591_s7 }
 0x914   : > { %v1528_v39 = vpop.eup %1527 }
 0x915   : > { %v765_v40 = vadd.f32 1.0, %v1528_v39 }
 0x917   : > { %1529 = vrcp.f32 %v765_v40 }
 0x924   : > { %v1530_v41 = vpop.eup %1529 }
 0x925   : > { %v769_v44 = vmul.f32 %v1530_v41, %v682_v21 }
 0x985   : > { %v772_v42 = vpop.permute.xlu1 %771 }
 0x986   : > { %v774_v43 = vmul.f32 %v1530_v41, %v772_v42  ;;  %v1004_v42 = vld [vmem:[#allocation4 + $0x2] sm:$0x3] }
 0x988   : > { %776 = vrot.lane.b32.xlu0 %v774_v43, %s1592_s8 }
 0x9fa   : > { %v777_v45 = vpop.permute.xlu0 %776 }
 0x9fb   : > { %v779_v46 = vadd.f32 %v777_v45, %v769_v44 }
 0x9fd   : > { %1531 = vtanh.f32 %v779_v46 }
 0xa0a   : > { %v1532_v47 = vpop.eup %1531 }
 0xa0b   : > { %782 = vrot.lane.b32.xlu1 %v1532_v47, %s1593_s9 }
 0xa7d   : > { %v783_v48 = vpop.permute.xlu1 %782 }
 0xa7e   : > { %v785_v49 = vmul.f32 %v1530_v41, %v783_v48  ;;  %v1003_v41 = vld [vmem:[#allocation4 + $0xc] sm:$0x3] }
 0xa7f   : > { %v1005_v43 = vsel %vm1690_vm4, %v1003_v41, %v1004_v42 }
 0xa80   : > { %v1748_v50 = vpack.c.bf16 %v785_v49, %v785_v49 }
 0xa82   : > { %812 = vrot.lane.b32.xlu0 %v1748_v50, %s1594_s10 }
 0xaf4   : > { %v813_v51 = vpop.permute.xlu0 %812 }
 0xaf5   : > { %1445 = vmatmul.mubr.msk.bf16.vlgmr.msra.gmra.mxu1 %vm346_vm2, %v813_v51 }
 0xaf6   : > { %1455 = vmatpush3.bf16.msra.mxu1 %v1670_v3  ;;  %1456 = vmatprep.mubr.msk.bf16.mxu1 %vm1590_vm0, %v1589_v0 }
 0xbb5   : > { %v851_v55 = vpop.f32.mrf.mxu1 }
 0xbb6   : > { %v857_v56 = vadd.f32 %v851_v55, %v811_v54 }
 0xbb7   : > { %v1446_v57 = vpop.f32.mrf.mxu1 }
 0xbb8   : > { %v858_v58 = vadd.f32 %v1694_v18, %v857_v56 }
 0xbb9   : > { %v854_v59 = vpop.f32.mrf.mxu1 }
 0xbba   : > { %1533 = vtanh.f32 %v858_v58  ;;  %v1383_v63 = vmul.f32 -1.442695, %v858_v58 }
 0xbbb   : > { %v1447_v60 = vpop.f32.mrf.mxu1 }
 0xbbc   : > { %1535 = vpow2.f32 %v1383_v63 }
 0xbc7   : > { %v1534_v62 = vpop.eup %1533 }
 0xbc8   : > { %868 = vrot.lane.b32.xlu1 %v1534_v62, %s1591_s7 }
 0xbc9   : > { %v1536_v1 = vpop.eup %1535 }
 0xbca   : > { %v862_v2 = vadd.f32 1.0, %v1536_v1 }
 0xbcc   : > { %1537 = vrcp.f32 %v862_v2 }
 0xbd9   : > { %v1538_v4 = vpop.eup %1537 }
 0xbda   : > { %v866_v7 = vmul.f32 %v1538_v4, %v779_v46 }
 0xc3a   : > { %v869_v5 = vpop.permute.xlu1 %868 }
 0xc3b   : > { %v871_v6 = vmul.f32 %v1538_v4, %v869_v5  ;;  %v1100_v5 = vld [vmem:[#allocation4 + $0xe] sm:$0x3] }
 0xc3d   : > { %873 = vrot.lane.b32.xlu0 %v871_v6, %s1592_s8  ;;  %v1101_v6 = vld [vmem:[#allocation4] sm:$0x3] }
 0xcaf   : > { %v874_v8 = vpop.permute.xlu0 %873 }
 0xcb0   : > { %v876_v9 = vadd.f32 %v874_v8, %v866_v7  ;;  %v1102_v7 = vsel %vm1690_vm4, %v1100_v5, %v1101_v6 }
 0xcb2   : > { %1539 = vtanh.f32 %v876_v9 }
 0xcbf   : > { %v1540_v10 = vpop.eup %1539 }
 0xcc0   : > { %879 = vrot.lane.b32.xlu1 %v1540_v10, %s1593_s9 }
 0xd32   : > { %v880_v11 = vpop.permute.xlu1 %879 }
 0xd33   : > { %v882_v12 = vmul.f32 %v1538_v4, %v880_v11 }
 0xd35   : > { %v1762_v13 = vpack.c.bf16 %v882_v12, %v882_v12 }
 0xd37   : > { %909 = vrot.lane.b32.xlu0 %v1762_v13, %s1594_s10 }
 0xda9   : > { %v910_v14 = vpop.permute.xlu0 %909 }
 0xdaa   : > { %1451 = vmatmul.mubr.msk.bf16.vlgmr.msra.gmra.mxu0 %vm346_vm2, %v910_v14 }
 0xdab   : > { %1461 = vmatpush3.bf16.msra.mxu0 %v1670_v3  ;;  %1462 = vmatprep.mubr.msk.bf16.mxu0 %vm1590_vm0, %v1589_v0 }
 0xe6a   : > { %v948_v20 = vpop.f32.mrf.mxu0 }
 0xe6b   : > { %v954_v21 = vadd.f32 %v948_v20, %v908_v19 }
 0xe6c   : > { %v1452_v22 = vpop.f32.mrf.mxu0 }
 0xe6d   : > { %v955_v23 = vadd.f32 %v1694_v18, %v954_v21  ;;  %v1595_v21 = vmov 1966171168  }
 0xe6e   : > { %v951_v24 = vpop.f32.mrf.mxu0  ;;  %v496_v22 = vunpack.c.l.s4 %v1595_v21 }
 0xe6f   : > { %1541 = vtanh.f32 %v955_v23  ;;  %v1385_v3 = vmul.f32 -1.442695, %v955_v23  ;;  %v499_v24 = vshrl.u32 %v498_v15, 7 }
 0xe70   : > { %v1453_v26 = vpop.f32.mrf.mxu0  ;;  %v497_v23 = vunpack.c.0.s8 %v496_v22 }
 0xe71   : > { %1543 = vpow2.f32 %v1385_v3 }
 0xe72   : > { %v1793_v26 = vsub.s32 %v497_v23, %v499_v24 }
 0xe74   : > { %v501_v3 = vrot.slane %v1703_v37, %v1793_v26 }
 0xe7c   : > { %v1542_v27 = vpop.eup %1541 }
 0xe7d   : > { %965 = vrot.lane.b32.xlu1 %v1542_v27, %s1591_s7 }
 0xe7e   : > { %v1544_v28 = vpop.eup %1543 }
 0xe7f   : > { %v959_v0 = vadd.f32 1.0, %v1544_v28 }
 0xe81   : > { %1545 = vrcp.f32 %v959_v0  ;;  %v697_v0 = vrot.slane %v1733_v25, %v1793_v26 }
 0xe8e   : > { %v1546_v29 = vpop.eup %1545 }
 0xe8f   : > { %v963_v32 = vmul.f32 %v1546_v29, %v876_v9 }
 0xeef   : > { %v966_v30 = vpop.permute.xlu1 %965 }
 0xef0   : > { %v968_v31 = vmul.f32 %v1546_v29, %v966_v30  ;;  %v891_v30 = vrot.slane %v1762_v13, %v1793_v26 }
 0xef2   : > { %970 = vrot.lane.b32.xlu0 %v968_v31, %s1592_s8  ;;  %v704_v31 = vrot.slane %v697_v0, %v1793_v26  ;;  %v898_v37 = vrot.slane %v891_v30, %v1793_v26 }
 0xf64   : > { %v971_v33 = vpop.permute.xlu0 %970 }
 0xf65   : > { %v973_v34 = vadd.f32 %v971_v33, %v963_v32 }
 0xf67   : > { %1547 = vtanh.f32 %v973_v34 }
 0xf74   : > { %v1548_v35 = vpop.eup %1547 }
 0xf75   : > { %976 = vrot.lane.b32.xlu1 %v1548_v35, %s1593_s9 }
 0xfe7   : > { %v977_v36 = vpop.permute.xlu1 %976 }
 0xfe8   : > { %v979_v38 = vmul.f32 %v1546_v29, %v977_v36  ;;  %v508_v29 = vrot.slane %v501_v3, %v1793_v26  ;;  %v600_v36 = vrot.slane %v1718_v61, %v1793_v26 }
 0xfea   : > { %v1776_v39 = vpack.c.bf16 %v979_v38, %v979_v38  ;;  %v607_v41 = vrot.slane %v600_v36, %v1793_v26 }
 0xfec   : > { %1006 = vrot.lane.b32.xlu0 %v1776_v39, %s1594_s10  ;;  %v988_v42 = vrot.slane %v1776_v39, %v1793_v26 }
 0xfee   : > { %v995_v61 = vrot.slane %v988_v42, %v1793_v26 }
0x105e   : > { %v1007_v40 = vpop.permute.xlu0 %1006 }
0x105f   : > { %1457 = vmatmul.mubr.msk.bf16.vlgmr.msra.gmra.mxu1 %vm346_vm2, %v1007_v40  ;;  %v794_v40 = vrot.slane %v1748_v50, %v1793_v26 }
0x111f   : > { %v1045_v44 = vpop.f32.mrf.mxu1 }
0x1120   : > { %v1051_v45 = vadd.f32 %v1045_v44, %v1005_v43  ;;  %v801_v43 = vrot.slane %v794_v40, %v1793_v26 }
0x1121   : > { %v1458_v46 = vpop.f32.mrf.mxu1 }
0x1122   : > { %v1052_v47 = vadd.f32 %v1694_v18, %v1051_v45 }
0x1123   : > { %v1048_v48 = vpop.f32.mrf.mxu1 }
0x1124   : > { %1549 = vtanh.f32 %v1052_v47  ;;  %v1387_v52 = vmul.f32 -1.442695, %v1052_v47 }
0x1125   : > { %v1459_v49 = vpop.f32.mrf.mxu1 }
0x1126   : > { %1551 = vpow2.f32 %v1387_v52 }
0x1131   : > { %v1550_v51 = vpop.eup %1549 }
0x1132   : > { %1062 = vrot.lane.b32.xlu1 %v1550_v51, %s1591_s7 }
0x1133   : > { %v1552_v53 = vpop.eup %1551 }
0x1134   : > { %v1056_v54 = vadd.f32 1.0, %v1552_v53 }
0x1136   : > { %1553 = vrcp.f32 %v1056_v54 }
0x1143   : > { %v1554_v55 = vpop.eup %1553 }
0x1144   : > { %v1060_v58 = vmul.f32 %v1554_v55, %v973_v34 }
0x11a4   : > { %v1063_v56 = vpop.permute.xlu1 %1062 }
0x11a5   : > { %v1065_v57 = vmul.f32 %v1554_v55, %v1063_v56 }
0x11a7   : > { %1067 = vrot.lane.b32.xlu0 %v1065_v57, %s1592_s8 }
0x1219   : > { %v1068_v59 = vpop.permute.xlu0 %1067 }
0x121a   : > { %v1070_v60 = vadd.f32 %v1068_v59, %v1060_v58 }
0x121c   : > { %1555 = vtanh.f32 %v1070_v60 }
0x1229   : > { %v1556_v62 = vpop.eup %1555 }
0x122a   : > { %1073 = vrot.lane.b32.xlu1 %v1556_v62, %s1593_s9 }
0x129c   : > { %v1074_v63 = vpop.permute.xlu1 %1073 }
0x129d   : > { %v1076_v1 = vmul.f32 %v1554_v55, %v1074_v63 }
0x129f   : > { %v1077_v2 = vpack.c.bf16 %v1076_v1, %v1076_v1 }
0x12a1   : > { %1103 = vrot.lane.b32.xlu0 %v1077_v2, %s1594_s10  ;;  %v1085_v32 = vrot.slane %v1077_v2, %v1793_v26 }
0x12a3   : > { %v1092_v33 = vrot.slane %v1085_v32, %v1793_v26 }
0x1313   : > { %v1104_v4 = vpop.permute.xlu0 %1103 }
0x1314   : > { %1463 = vmatmul.mubr.msk.bf16.vlgmr.msra.gmra.mxu0 %vm346_vm2, %v1104_v4 }
0x13d4   : > { %v1142_v8 = vpop.f32.mrf.mxu0 }
0x13d5   : > { %v1148_v9 = vadd.f32 %v1142_v8, %v1102_v7 }
0x13d6   : > { %v1464_v10 = vpop.f32.mrf.mxu0 }
0x13d7   : > { %v1149_v11 = vadd.f32 %v1694_v18, %v1148_v9 }
0x13d8   : > { %v1145_v12 = vpop.f32.mrf.mxu0 }
0x13d9   : > { %1557 = vtanh.f32 %v1149_v11  ;;  %v1389_v17 = vmul.f32 -1.442695, %v1149_v11 }
0x13da   : > { %v1465_v14 = vpop.f32.mrf.mxu0 }
0x13db   : > { %1559 = vpow2.f32 %v1389_v17 }
0x13e6   : > { %v1558_v16 = vpop.eup %1557 }
0x13e7   : > { %1159 = vrot.lane.b32.xlu1 %v1558_v16, %s1591_s7  ;;  %s902_s7 = scalar_lea.vmem %s1818_s14, %s808_s5 }
0x13e8   : > { %v1560_v19 = vpop.eup %1559 }
0x13e9   : > { %v1153_v20 = vadd.f32 1.0, %v1560_v19 }
0x13eb   : > { %1561 = vrcp.f32 %v1153_v20 }
0x13f8   : > { %v1562_v27 = vpop.eup %1561 }
0x13f9   : > { %v1157_v25 = vmul.f32 %v1562_v27, %v1070_v60 }
0x1459   : > { %v1160_v18 = vpop.permute.xlu1 %1159 }
0x145a   : > { %v1162_v28 = vmul.f32 %v1562_v27, %v1160_v18 }
0x145c   : > { %1164 = vrot.lane.b32.xlu0 %v1162_v28, %s1592_s8  ;;  %s905_s8 = sadd.s32 %s904_s28, %s1812_s11 }
0x145d   : > { %s999_s12 = scalar_lea.vmem %s1818_s14, %s905_s8 }
0x1460   : > { %509 = vrot.lane.b32.xlu0 %v508_v29, %s1594_s10 }
0x1464   : > { %705 = vrot.lane.b32.xlu0 %v704_v31, %s1594_s10 }
0x1468   : > { %899 = vrot.lane.b32.xlu0 %v898_v37, %s1594_s10 }
0x146c   : > { %1093 = vrot.lane.b32.xlu0 %v1092_v33, %s1594_s10 }
0x14ce   : > { %v1165_v13 = vpop.permute.xlu0 %1164 }
0x14cf   : > { %v1167_v34 = vadd.f32 %v1165_v13, %v1157_v25 }
0x14d1   : > { %1563 = vtanh.f32 %v1167_v34 }
0x14d2   : > { %v510_v35 = vpop.permute.xlu0 %509 }
0x14d3   : > { %514 = vst.msk [vmem:[%s512_s19] sm:$0x1] %vm513_vm5, %v510_v35  ;;  %s1596_s19 = smov 112  }
0x14d6   : > { %v706_v39 = vpop.permute.xlu0 %705 }
0x14da   : > { %v900_v48 = vpop.permute.xlu0 %899 }
0x14de   : > { %v1564_v38 = vpop.eup %1563  ;;  %v1094_v53 = vpop.permute.xlu0 %1093 }
0x14df   : > { %1170 = vrot.lane.b32.xlu1 %v1564_v38, %s1593_s9  ;;  %s1002_s9 = sadd.s32 %s1001_s30, %s1812_s11 }
0x14e0   : > { %s1096_s13 = scalar_lea.vmem %s1818_s14, %s1002_s9 }
0x14e3   : > { %608 = vrot.lane.b32.xlu1 %v607_v41, %s1594_s10 }
0x14e7   : > { %802 = vrot.lane.b32.xlu1 %v801_v43, %s1594_s10 }
0x14eb   : > { %996 = vrot.lane.b32.xlu1 %v995_v61, %s1594_s10 }
0x1551   : > { %v1171_v50 = vpop.permute.xlu1 %1170 }
0x1552   : > { %v1173_v44 = vmul.f32 %v1562_v27, %v1171_v50 }
0x1554   : > { %v1174_v45 = vpack.c.bf16 %v1173_v44, %v1173_v44  ;;  %1196 = vrot.lane.b32.xlu0 %v1173_v44, %s1594_s10 }
0x1555   : > { %v609_v46 = vpop.permute.xlu1 %608 }
0x1556   : > { %v1182_v47 = vrot.slane %v1174_v45, %v1793_v26  ;;  %612 = vst.msk [vmem:[%s611_s15] sm:$0x1] %vm513_vm5, %v609_v46 }
0x1557   : > { %709 = vst.msk [vmem:[%s708_s27] sm:$0x1] %vm513_vm5, %v706_v39 }
0x1558   : > { %v1189_v49 = vrot.slane %v1182_v47, %v1793_v26 }
0x1559   : > { %v803_v51 = vpop.permute.xlu1 %802 }
0x155a   : > { %806 = vst.msk [vmem:[%s805_s6] sm:$0x1] %vm513_vm5, %v803_v51  ;;  %1190 = vrot.lane.b32.xlu1 %v1189_v49, %s1594_s10 }
0x155b   : > { %903 = vst.msk [vmem:[%s902_s7] sm:$0x1] %vm513_vm5, %v900_v48 }
0x155d   : > { %v997_v52 = vpop.permute.xlu1 %996 }
0x155e   : > { %1000 = vst.msk [vmem:[%s999_s12] sm:$0x1] %vm513_vm5, %v997_v52  ;;  %1202 = vrot.lane.b32.xlu1 %v1167_v34, %s1596_s19 }
0x155f   : > { %1097 = vst.msk [vmem:[%s1096_s13] sm:$0x1] %vm513_vm5, %v1094_v53 }
0x15c6   : > { %v1197_v54 = vpop.permute.xlu0 %1196 }
0x15c7   : > { %1200 = vst.msk [vmem:[#allocation2] sm:$0x3] %vm328_vm1, %v1197_v54 }
0x15cc   : > { %v1191_v55 = vpop.permute.xlu1 %1190 }
0x15cd   : > { %1194 = vst.msk [vmem:[%s1193_s23] sm:$0x1] %vm513_vm5, %v1191_v55 }
0x15d0   : > { %v1203_v56 = vpop.permute.xlu1 %1202 }
0x15d1   : > { %1205 = vst.msk [vmem:[#allocation3] sm:$0x3] %vm328_vm1, %v1203_v56 }
0x15d2 PF: > { %s14_s17 = sadd.s32 1, %s1587_s17   ;;  %s1889_s15 = smov %s1583_s16 }
0x15d3   : > { %p11_p6 = scmp.ge.s32.totalorder %s14_s17, 4   ;;  %s1890_s16 = smov %s1892_s18 }
0x15d5   :  { %13 = sbr.rel (!%p11_p6) target bundleno = 2 (0x2), region = 87 }

// kernel: esim_forward.9
= control target key start
LH: loop header
LB: loop body
LE: loop exit
PB: predicated region body
PF: predicated region fallthrough
CT: control target
= control target key end

     0   :  { %s1881_s15 = smov 0   ;;  %s1883_s16 = smov 0   ;;  %s2184_s0 = inlined_call_operand.vmem [shape: bf16[20,16], index: 0, kind: input, shape index: {}]   ;;  %s2185_s1 = inlined_call_operand.vmem [shape: bf16[2,16,64], index: 1, kind: input, shape index: {}]   ;;  %s2186_s2 = inlined_call_operand.vmem [shape: bf16[2,16,64], index: 2, kind: input, shape index: {}]   ;;  %s2187_s3 = inlined_call_operand.vmem [shape: f32[2,1,64], index: 3, kind: input, shape index: {}]   ;;  %s2188_s4 = inlined_call_operand.vmem [shape: bf16[2,10,2,16], index: 4, kind: output, shape index: {}]  }
   0x1   :  { %s1885_s17 = smov 0  }
   0x2 LB: > { %s26_s18 = sadd.s32 1, %s1842_s16  ;;  %p1578_p0 = scmp.ge.s32.totalorder %s1846_s17, 1  ;;  %s1846_s17 = sphi %s1885_s17, %s14_s17   ;;  %s1842_s16 = sphi %s1883_s16, %s2192_s16   ;;  %s1838_s15 = sphi %s1881_s15, %s2191_s15  }
   0x3   : > { %p28_p1 = scmp.ge.s32.totalorder %s26_s18, 2  ;;  %p229_p2 = scmp.lt.s32.totalorder %s1846_s17, 3 }
   0x5   : > { %s2194_s18 = smov (%p28_p1, %s26_s18), 0  ;;  %p230_p3 = pnand %p1578_p0, %p229_p2 }
   0x6   : > { %p293_p4 = scmp.lt.s32.totalorder (!%p230_p3), %s1838_s15, 1  ;;  %p424_p5 = scmp.eq.s32.totalorder (!%p230_p3), %s1838_s15, 0 }
   0x7   : > { %233 = sbr.rel (%p230_p3) target bundleno = 6971 (0x1b3b), region = 36  ;;  %s1850_s9 = smov (!%p230_p3), 96  }
   0x8   : > { %s1851_s10 = smov (!%p230_p3), 16   ;;  %s1852_s11 = smov (!%p230_p3), 32  }
   0x9   : > { %s1853_s12 = smov (!%p230_p3), 80   ;;  %s2103_s14 = smul.u32 (!%p230_p3), 9, %s1838_s15 }
   0xc   : > { %v1742_v0 = vld [vmem:[%s2184_s0] sm:$0xff]   ;;  %vm350_vm0 = vcmask 130048   ;;  %s1906_s21 = scalar_select %p293_p4, %s1838_s15, 1  ;;  %vm328_vm1 = vcmask 123904   ;;  %v1848_v1 = vmov 0.0   ;;  %vm1849_vm2 = vmmov 0  }
   0xd   : > { %1643 = vmatprep.mubr.msk.bf16.mxu0 %vm350_vm0, %v1742_v0  ;;  %1647 = vmatprep.subr.bf16.mxu1 %v1848_v1  ;;  %329 = vst.msk [vmem:[#allocation2] sm:$0x3] %vm328_vm1, %v1848_v1  ;;  %330 = vst.msk [vmem:[#allocation3] sm:$0x3] %vm328_vm1, %v1848_v1  ;;  %vm408_vm3 = vcmask 519168   ;;  %vm405_vm4 = vcmask 523264   ;;  %v514_v16 = vlaneseq }
   0xe   : > { %1649 = vmatprep.mubr.msk.bf16.mxu1 %vm1849_vm2, %v1848_v1  ;;  %s1616_s22 = sshll.u32 %s1906_s21, 3  ;;  %v1743_v4 = vld [vmem:[%s2184_s0 + $0x8] ss:$0 sps:$4 sm:$0x33]   ;;  %s305_s8 = scalar_lea.vmem %s2187_s3, %s1906_s21  ;;  %vm529_vm6 = vcmask 122880  }
   0xf   : > { %s297_s25 = scalar_lea.vmem %s2185_s1, %s1616_s22  ;;  %s302_s28 = scalar_lea.vmem %s2186_s2, %s1616_s22  ;;  %v1950_v19 = vld [vmem:[%s305_s8] ss:$0 sm:$0xff] }
  0x10   : > { %v1740_v2 = vld [vmem:[%s297_s25] sm:$0xff]   ;;  %s425_s5 = scalar_select %p424_p5, 1, 0 }
  0x11   : > { %v1923_v3 = vld [vmem:[%s302_s28] sm:$0xff]   ;;  %1641 = vmatprep.subr.bf16.mxu0 %v1740_v2  ;;  %s1707_s13 = smul.u32 10, %s1906_s21  ;;  %s1592_s21 = sshll.u32 %s1838_s15, 1 }
  0x12   : > { %1642 = vmatpush3.bf16.msra.mxu0 %v1740_v2  ;;  %1648 = vmatpush3.bf16.msra.mxu1 %v1923_v3  ;;  %v426_v12 = vstv %s425_s5  ;;  %s2131_s24 = ssub.s32 1, %s1592_s21 }
  0x13   : > { %1653 = vmatprep.subr.bf16.mxu0 %v1848_v1  ;;  %1659 = vmatprep.subr.bf16.mxu1 %v1848_v1  ;;  %vm1946_vm5 = vcmp.eq.s32.totalorder %v426_v12, 1  ;;  %s2108_s22 = scalar_lea.vmem %s2188_s4, %s1707_s13  ;;  %s1595_s25 = sshll.u32 %s2131_s24, 1 }
  0x14   : > { %v419_v5 = vld [vmem:[#allocation2] sm:$0x3]  ;;  %v420_v24 = vld [vmem:[#allocation3] sm:$0x3]  ;;  %s528_s23 = scalar_lea.vmem %s2108_s22, %s2103_s14  ;;  %s533_s26 = sadd.s32 %s2131_s24, %s2103_s14 }
  0x15   : > { %v429_v6 = vpack.c.bf16 %v419_v5, %v419_v5  ;;  %1644 = vmatmul.mubr.msk.bf16.vlgmr.msra.gmra.mxu0 %vm350_vm0, %v1743_v4  ;;  %s630_s27 = sadd.s32 %s1595_s25, %s2103_s14  ;;  %s726_s28 = smul.u32 3, %s2131_s24 }
  0x16   : > { %1654 = vmatpush3.bf16.msra.mxu0 %v1923_v3  ;;  %1655 = vmatprep.mubr.msk.bf16.mxu0 %vm1849_vm2, %v1848_v1  ;;  %s1600_s29 = sshll.u32 %s2131_s24, 2  ;;  %s627_s15 = scalar_lea.vmem %s2108_s22, %s533_s26 }
  0x17   : > { %1650 = vmatmul.mubr.msk.bf16.vlgmr.msra.gmra.mxu1 %vm350_vm0, %v429_v6  ;;  %1665 = vmatprep.subr.bf16.mxu0 %v1848_v1  ;;  %s724_s30 = scalar_lea.vmem %s2108_s22, %s630_s27  ;;  %s727_s5 = sadd.s32 %s726_s28, %s2103_s14 }
  0x18   : > { %1660 = vmatpush3.bf16.msra.mxu1 %v1923_v3  ;;  %1661 = vmatprep.mubr.msk.bf16.mxu1 %vm1849_vm2, %v1848_v1  ;;  %s920_s6 = smul.u32 5, %s2131_s24  ;;  %s824_s8 = sadd.s32 %s1600_s29, %s2103_s14 }
  0x19   : > { %1671 = vmatprep.subr.bf16.mxu1 %v1848_v1  ;;  %s1017_s7 = smul.u32 6, %s2131_s24  ;;  %s1609_s20 = sshll.u32 %s2131_s24, 3 }
  0x1a   : > { %s921_s13 = sadd.s32 %s920_s6, %s2103_s14  ;;  %s1212_s26 = sadd.s32 %s1609_s20, %s2103_s14 }
  0x1b   : > { %s1018_s19 = sadd.s32 %s1017_s7, %s2103_s14  ;;  %s1855_s27 = smov 112  }
  0x1c   : > { %s1112_s21 = scalar_lea.vmem %s2108_s22, %s1018_s19  ;;  %s1306_s29 = scalar_lea.vmem %s2108_s22, %s1212_s26 }
  0xd5   : > { %v1645_v7 = vpop.f32.mrf.mxu0 }
  0xd6   : > { %409 = vst.msk [vmem:[#allocation4 + $0x10] sm:$0xf] %vm408_vm3, %v1645_v7 }
  0xd7   : > { %v473_v8 = vpop.f32.mrf.mxu1  ;;  %v391_v9 = vpop.f32.mrf.mxu0 }
  0xd8   : > { %406 = vst.msk [vmem:[#allocation4] sm:$0xff] %vm405_vm4, %v391_v9 }
  0xd9   : > { %v1651_v10 = vpop.f32.mrf.mxu1  ;;  %v1646_v11 = vpop.f32.mrf.mxu0 }
  0xdb   : > { %v476_v13 = vpop.f32.mrf.mxu1  ;;  %v394_v14 = vpop.f32.mrf.mxu0 }
  0xdc   : > { %407 = vst.msk [vmem:[#allocation4 + $0x8] sm:$0xff] %vm405_vm4, %v394_v14 }
  0xdd   : > { %v1652_v15 = vpop.f32.mrf.mxu1  ;;  %v423_v18 = vld [vmem:[#allocation4 + $0x12] sm:$0x3]  ;;  %v535_v41 = vld [vmem:[#allocation4 + $0x10] sm:$0x3] }
  0xdf   : > { %v422_v17 = vld [vmem:[#allocation4] sm:$0x3]  ;;  %v534_v40 = vld [vmem:[#allocation4 + $0x2] sm:$0x3]  ;;  %v631_v2 = vld [vmem:[#allocation4 + $0x4] sm:$0x3] }
  0xe0   : > { %v428_v20 = vsel %vm1946_vm5, %v422_v17, %v423_v18  ;;  %v536_v42 = vsel %vm1946_vm5, %v534_v40, %v535_v41 }
  0xe1   : > { %v479_v21 = vadd.f32 %v473_v8, %v428_v20 }
  0xe3   : > { %v480_v22 = vadd.f32 %v1950_v19, %v479_v21  ;;  %v632_v0 = vld [vmem:[#allocation4 + $0xe] sm:$0x3] }
  0xe4   : > { %v633_v4 = vsel %vm1946_vm5, %v631_v2, %v632_v0 }
  0xe5   : > { %1744 = vtanh.f32 %v480_v22  ;;  %v1591_v25 = vmul.f32 -1.442695, %v480_v22 }
  0xe7   : > { %1746 = vpow2.f32 %v1591_v25 }
  0xf2   : > { %v1745_v23 = vpop.eup %1744 }
  0xf3   : > { %494 = vrot.lane.b32.xlu0 %v1745_v23, %s1850_s9 }
  0xf4   : > { %v1747_v26 = vpop.eup %1746 }
  0xf5   : > { %v484_v27 = vadd.f32 1.0, %v1747_v26 }
  0xf7   : > { %489 = vrot.lane.b32.xlu0 %v420_v24, %s1851_s10  ;;  %1748 = vrcp.f32 %v484_v27 }
 0x104   : > { %v1749_v28 = vpop.eup %1748 }
 0x165   : > { %v495_v29 = vpop.permute.xlu0 %494 }
 0x166   : > { %v497_v30 = vmul.f32 %v1749_v28, %v495_v29  ;;  %v728_v29 = vld [vmem:[#allocation4 + $0x6] sm:$0x3] }
 0x168   : > { %499 = vrot.lane.b32.xlu1 %v497_v30, %s1851_s10 }
 0x169   : > { %v490_v31 = vpop.permute.xlu0 %489 }
 0x16a   : > { %v492_v32 = vmul.f32 %v1749_v28, %v490_v31 }
 0x1da   : > { %v500_v33 = vpop.permute.xlu1 %499 }
 0x1db   : > { %v502_v34 = vadd.f32 %v500_v33, %v492_v32 }
 0x1dd   : > { %1750 = vtanh.f32 %v502_v34 }
 0x1ea   : > { %v1751_v35 = vpop.eup %1750 }
 0x1eb   : > { %505 = vrot.lane.b32.xlu1 %v1751_v35, %s1852_s11 }
 0x25d   : > { %v506_v36 = vpop.permute.xlu1 %505 }
 0x25e   : > { %v508_v37 = vmul.f32 %v1749_v28, %v506_v36  ;;  %v729_v28 = vld [vmem:[#allocation4 + $0xc] sm:$0x3] }
 0x25f   : > { %v730_v30 = vsel %vm1946_vm5, %v728_v29, %v729_v28 }
 0x260   : > { %v1959_v38 = vpack.c.bf16 %v508_v37, %v508_v37 }
 0x262   : > { %537 = vrot.lane.b32.xlu0 %v1959_v38, %s1853_s12 }
 0x2d4   : > { %v538_v39 = vpop.permute.xlu0 %537 }
 0x2d5   : > { %1656 = vmatmul.mubr.msk.bf16.vlgmr.msra.gmra.mxu0 %vm350_vm0, %v538_v39 }
 0x2d6   : > { %1666 = vmatpush3.bf16.msra.mxu0 %v1923_v3  ;;  %1667 = vmatprep.mubr.msk.bf16.mxu0 %vm1849_vm2, %v1848_v1 }
 0x2d7   : > { %1677 = vmatprep.subr.bf16.mxu0 %v1848_v1 }
 0x395   : > { %v576_v43 = vpop.f32.mrf.mxu0 }
 0x396   : > { %v582_v44 = vadd.f32 %v576_v43, %v536_v42 }
 0x397   : > { %v1657_v45 = vpop.f32.mrf.mxu0 }
 0x398   : > { %v583_v46 = vadd.f32 %v1950_v19, %v582_v44 }
 0x399   : > { %v579_v47 = vpop.f32.mrf.mxu0 }
 0x39a   : > { %1752 = vtanh.f32 %v583_v46  ;;  %v1594_v50 = vmul.f32 -1.442695, %v583_v46 }
 0x39b   : > { %v1658_v48 = vpop.f32.mrf.mxu0 }
 0x39c   : > { %1754 = vpow2.f32 %v1594_v50 }
 0x3a7   : > { %v1753_v49 = vpop.eup %1752 }
 0x3a8   : > { %593 = vrot.lane.b32.xlu1 %v1753_v49, %s1850_s9 }
 0x3a9   : > { %v1755_v51 = vpop.eup %1754 }
 0x3aa   : > { %v587_v52 = vadd.f32 1.0, %v1755_v51 }
 0x3ac   : > { %1756 = vrcp.f32 %v587_v52 }
 0x3b9   : > { %v1757_v53 = vpop.eup %1756 }
 0x3ba   : > { %v591_v56 = vmul.f32 %v1757_v53, %v502_v34 }
 0x41a   : > { %v594_v54 = vpop.permute.xlu1 %593 }
 0x41b   : > { %v596_v55 = vmul.f32 %v1757_v53, %v594_v54  ;;  %v826_v54 = vld [vmem:[#allocation4 + $0xa] sm:$0x3] }
 0x41d   : > { %598 = vrot.lane.b32.xlu0 %v596_v55, %s1851_s10 }
 0x48f   : > { %v599_v57 = vpop.permute.xlu0 %598 }
 0x490   : > { %v601_v58 = vadd.f32 %v599_v57, %v591_v56 }
 0x492   : > { %1758 = vtanh.f32 %v601_v58 }
 0x49f   : > { %v1759_v59 = vpop.eup %1758 }
 0x4a0   : > { %604 = vrot.lane.b32.xlu1 %v1759_v59, %s1852_s11 }
 0x512   : > { %v605_v60 = vpop.permute.xlu1 %604 }
 0x513   : > { %v607_v61 = vmul.f32 %v1757_v53, %v605_v60  ;;  %v825_v53 = vld [vmem:[#allocation4 + $0x8] sm:$0x3] }
 0x514   : > { %v827_v55 = vsel %vm1946_vm5, %v825_v53, %v826_v54 }
 0x515   : > { %v1974_v62 = vpack.c.bf16 %v607_v61, %v607_v61 }
 0x517   : > { %634 = vrot.lane.b32.xlu0 %v1974_v62, %s1853_s12 }
 0x589   : > { %v635_v63 = vpop.permute.xlu0 %634 }
 0x58a   : > { %1662 = vmatmul.mubr.msk.bf16.vlgmr.msra.gmra.mxu1 %vm350_vm0, %v635_v63 }
 0x58b   : > { %1672 = vmatpush3.bf16.msra.mxu1 %v1923_v3  ;;  %1673 = vmatprep.mubr.msk.bf16.mxu1 %vm1849_vm2, %v1848_v1 }
 0x58c   : > { %1683 = vmatprep.subr.bf16.mxu1 %v1848_v1 }
 0x64a   : > { %v673_v5 = vpop.f32.mrf.mxu1 }
 0x64b   : > { %v679_v6 = vadd.f32 %v673_v5, %v633_v4 }
 0x64c   : > { %v1663_v7 = vpop.f32.mrf.mxu1 }
 0x64d   : > { %v680_v8 = vadd.f32 %v1950_v19, %v679_v6 }
 0x64e   : > { %v676_v9 = vpop.f32.mrf.mxu1 }
 0x64f   : > { %1760 = vtanh.f32 %v680_v8  ;;  %v1597_v12 = vmul.f32 -1.442695, %v680_v8 }
 0x650   : > { %v1664_v10 = vpop.f32.mrf.mxu1 }
 0x651   : > { %1762 = vpow2.f32 %v1597_v12 }
 0x65c   : > { %v1761_v11 = vpop.eup %1760 }
 0x65d   : > { %690 = vrot.lane.b32.xlu1 %v1761_v11, %s1850_s9 }
 0x65e   : > { %v1763_v13 = vpop.eup %1762 }
 0x65f   : > { %v684_v14 = vadd.f32 1.0, %v1763_v13 }
 0x661   : > { %1764 = vrcp.f32 %v684_v14 }
 0x66e   : > { %v1765_v15 = vpop.eup %1764 }
 0x66f   : > { %v688_v20 = vmul.f32 %v1765_v15, %v601_v58 }
 0x6cf   : > { %v691_v17 = vpop.permute.xlu1 %690 }
 0x6d0   : > { %v693_v18 = vmul.f32 %v1765_v15, %v691_v17  ;;  %v922_v17 = vld [vmem:[#allocation4 + $0xa] sm:$0x3] }
 0x6d2   : > { %695 = vrot.lane.b32.xlu0 %v693_v18, %s1851_s10  ;;  %v923_v18 = vld [vmem:[#allocation4 + $0x8] sm:$0x3] }
 0x744   : > { %v696_v21 = vpop.permute.xlu0 %695 }
 0x745   : > { %v698_v22 = vadd.f32 %v696_v21, %v688_v20  ;;  %v924_v20 = vsel %vm1946_vm5, %v922_v17, %v923_v18 }
 0x747   : > { %1766 = vtanh.f32 %v698_v22 }
 0x754   : > { %v1767_v23 = vpop.eup %1766 }
 0x755   : > { %701 = vrot.lane.b32.xlu1 %v1767_v23, %s1852_s11 }
 0x7c7   : > { %v702_v24 = vpop.permute.xlu1 %701 }
 0x7c8   : > { %v704_v25 = vmul.f32 %v1765_v15, %v702_v24 }
 0x7ca   : > { %v1989_v26 = vpack.c.bf16 %v704_v25, %v704_v25 }
 0x7cc   : > { %731 = vrot.lane.b32.xlu0 %v1989_v26, %s1853_s12 }
 0x83e   : > { %v732_v27 = vpop.permute.xlu0 %731 }
 0x83f   : > { %1668 = vmatmul.mubr.msk.bf16.vlgmr.msra.gmra.mxu0 %vm350_vm0, %v732_v27 }
 0x840   : > { %1678 = vmatpush3.bf16.msra.mxu0 %v1923_v3  ;;  %1679 = vmatprep.mubr.msk.bf16.mxu0 %vm1849_vm2, %v1848_v1 }
 0x841   : > { %1689 = vmatprep.subr.bf16.mxu0 %v1848_v1 }
 0x8ff   : > { %v770_v31 = vpop.f32.mrf.mxu0 }
 0x900   : > { %v776_v32 = vadd.f32 %v770_v31, %v730_v30 }
 0x901   : > { %v1669_v33 = vpop.f32.mrf.mxu0 }
 0x902   : > { %v777_v34 = vadd.f32 %v1950_v19, %v776_v32 }
 0x903   : > { %v773_v35 = vpop.f32.mrf.mxu0 }
 0x904   : > { %1768 = vtanh.f32 %v777_v34  ;;  %v1599_v39 = vmul.f32 -1.442695, %v777_v34 }
 0x905   : > { %v1670_v36 = vpop.f32.mrf.mxu0 }
 0x906   : > { %1770 = vpow2.f32 %v1599_v39 }
 0x911   : > { %v1769_v37 = vpop.eup %1768 }
 0x912   : > { %787 = vrot.lane.b32.xlu1 %v1769_v37, %s1850_s9 }
 0x913   : > { %v1771_v40 = vpop.eup %1770 }
 0x914   : > { %v781_v41 = vadd.f32 1.0, %v1771_v40 }
 0x916   : > { %1772 = vrcp.f32 %v781_v41 }
 0x923   : > { %v1773_v42 = vpop.eup %1772 }
 0x924   : > { %v785_v45 = vmul.f32 %v1773_v42, %v698_v22 }
 0x984   : > { %v788_v43 = vpop.permute.xlu1 %787 }
 0x985   : > { %v790_v44 = vmul.f32 %v1773_v42, %v788_v43 }
 0x987   : > { %792 = vrot.lane.b32.xlu0 %v790_v44, %s1851_s10  ;;  %v1019_v44 = vld [vmem:[#allocation4 + $0xc] sm:$0x3] }
 0x9f9   : > { %v793_v46 = vpop.permute.xlu0 %792 }
 0x9fa   : > { %v795_v47 = vadd.f32 %v793_v46, %v785_v45  ;;  %v1020_v45 = vld [vmem:[#allocation4 + $0x6] sm:$0x3] }
 0x9fb   : > { %v1021_v46 = vsel %vm1946_vm5, %v1019_v44, %v1020_v45 }
 0x9fc   : > { %1774 = vtanh.f32 %v795_v47 }
 0xa09   : > { %v1775_v48 = vpop.eup %1774 }
 0xa0a   : > { %798 = vrot.lane.b32.xlu1 %v1775_v48, %s1852_s11 }
 0xa7c   : > { %v799_v49 = vpop.permute.xlu1 %798 }
 0xa7d   : > { %v801_v50 = vmul.f32 %v1773_v42, %v799_v49 }
 0xa7f   : > { %v2004_v51 = vpack.c.bf16 %v801_v50, %v801_v50 }
 0xa81   : > { %828 = vrot.lane.b32.xlu0 %v2004_v51, %s1853_s12 }
 0xaf3   : > { %v829_v52 = vpop.permute.xlu0 %828 }
 0xaf4   : > { %1674 = vmatmul.mubr.msk.bf16.vlgmr.msra.gmra.mxu1 %vm350_vm0, %v829_v52 }
 0xaf5   : > { %1684 = vmatpush3.bf16.msra.mxu1 %v1923_v3  ;;  %1685 = vmatprep.mubr.msk.bf16.mxu1 %vm1849_vm2, %v1848_v1 }
 0xaf6   : > { %1695 = vmatprep.subr.bf16.mxu1 %v1848_v1 }
 0xbb4   : > { %v867_v56 = vpop.f32.mrf.mxu1 }
 0xbb5   : > { %v873_v57 = vadd.f32 %v867_v56, %v827_v55 }
 0xbb6   : > { %v1675_v58 = vpop.f32.mrf.mxu1 }
 0xbb7   : > { %v874_v59 = vadd.f32 %v1950_v19, %v873_v57 }
 0xbb8   : > { %v870_v60 = vpop.f32.mrf.mxu1 }
 0xbb9   : > { %1776 = vtanh.f32 %v874_v59  ;;  %v1602_v0 = vmul.f32 -1.442695, %v874_v59 }
 0xbba   : > { %v1676_v61 = vpop.f32.mrf.mxu1 }
 0xbbb   : > { %1778 = vpow2.f32 %v1602_v0 }
 0xbc6   : > { %v1777_v63 = vpop.eup %1776 }
 0xbc7   : > { %884 = vrot.lane.b32.xlu1 %v1777_v63, %s1850_s9 }
 0xbc8   : > { %v1779_v2 = vpop.eup %1778 }
 0xbc9   : > { %v878_v4 = vadd.f32 1.0, %v1779_v2 }
 0xbcb   : > { %1780 = vrcp.f32 %v878_v4 }
 0xbd8   : > { %v1781_v5 = vpop.eup %1780 }
 0xbd9   : > { %v882_v8 = vmul.f32 %v1781_v5, %v795_v47 }
 0xc39   : > { %v885_v6 = vpop.permute.xlu1 %884 }
 0xc3a   : > { %v887_v7 = vmul.f32 %v1781_v5, %v885_v6 }
 0xc3c   : > { %889 = vrot.lane.b32.xlu0 %v887_v7, %s1851_s10 }
 0xcae   : > { %v890_v9 = vpop.permute.xlu0 %889 }
 0xcaf   : > { %v892_v10 = vadd.f32 %v890_v9, %v882_v8  ;;  %v1116_v8 = vld [vmem:[#allocation4 + $0xe] sm:$0x3]  ;;  %v1117_v9 = vld [vmem:[#allocation4 + $0x4] sm:$0x3] }
 0xcb1   : > { %1782 = vtanh.f32 %v892_v10 }
 0xcbe   : > { %v1783_v11 = vpop.eup %1782 }
 0xcbf   : > { %895 = vrot.lane.b32.xlu1 %v1783_v11, %s1852_s11 }
 0xd31   : > { %v896_v12 = vpop.permute.xlu1 %895 }
 0xd32   : > { %v898_v13 = vmul.f32 %v1781_v5, %v896_v12 }
 0xd34   : > { %v2019_v14 = vpack.c.bf16 %v898_v13, %v898_v13 }
 0xd36   : > { %925 = vrot.lane.b32.xlu0 %v2019_v14, %s1853_s12 }
 0xda8   : > { %v926_v15 = vpop.permute.xlu0 %925 }
 0xda9   : > { %1680 = vmatmul.mubr.msk.bf16.vlgmr.msra.gmra.mxu0 %vm350_vm0, %v926_v15 }
 0xdaa   : > { %1690 = vmatpush3.bf16.msra.mxu0 %v1923_v3  ;;  %1691 = vmatprep.mubr.msk.bf16.mxu0 %vm1849_vm2, %v1848_v1 }
 0xdab   : > { %1701 = vmatprep.subr.bf16.mxu0 %v1848_v1 }
 0xe69   : > { %v964_v21 = vpop.f32.mrf.mxu0 }
 0xe6a   : > { %v970_v22 = vadd.f32 %v964_v21, %v924_v20 }
 0xe6b   : > { %v1681_v23 = vpop.f32.mrf.mxu0 }
 0xe6c   : > { %v971_v24 = vadd.f32 %v1950_v19, %v970_v22 }
 0xe6d   : > { %v967_v25 = vpop.f32.mrf.mxu0 }
 0xe6e   : > { %1784 = vtanh.f32 %v971_v24  ;;  %v1604_v29 = vmul.f32 -1.442695, %v971_v24 }
 0xe6f   : > { %v1682_v27 = vpop.f32.mrf.mxu0 }
 0xe70   : > { %1786 = vpow2.f32 %v1604_v29 }
 0xe7b   : > { %v1785_v28 = vpop.eup %1784 }
 0xe7c   : > { %981 = vrot.lane.b32.xlu1 %v1785_v28, %s1850_s9 }
 0xe7d   : > { %v1787_v30 = vpop.eup %1786 }
 0xe7e   : > { %v975_v31 = vadd.f32 1.0, %v1787_v30 }
 0xe80   : > { %1788 = vrcp.f32 %v975_v31 }
 0xe8d   : > { %v1789_v32 = vpop.eup %1788 }
 0xe8e   : > { %v979_v35 = vmul.f32 %v1789_v32, %v892_v10  ;;  %v1118_v10 = vsel %vm1946_vm5, %v1116_v8, %v1117_v9 }
 0xeee   : > { %v982_v33 = vpop.permute.xlu1 %981 }
 0xeef   : > { %v984_v34 = vmul.f32 %v1789_v32, %v982_v33 }
 0xef1   : > { %986 = vrot.lane.b32.xlu0 %v984_v34, %s1851_s10  ;;  %v1214_v34 = vld [vmem:[#allocation4 + $0x2] sm:$0x3] }
 0xf63   : > { %v987_v36 = vpop.permute.xlu0 %986 }
 0xf64   : > { %v989_v37 = vadd.f32 %v987_v36, %v979_v35  ;;  %v1213_v35 = vld [vmem:[#allocation4 + $0x10] sm:$0x3] }
 0xf65   : > { %v1215_v36 = vsel %vm1946_vm5, %v1213_v35, %v1214_v34 }
 0xf66   : > { %1790 = vtanh.f32 %v989_v37 }
 0xf73   : > { %v1791_v39 = vpop.eup %1790 }
 0xf74   : > { %992 = vrot.lane.b32.xlu1 %v1791_v39, %s1852_s11 }
 0xfe6   : > { %v993_v40 = vpop.permute.xlu1 %992 }
 0xfe7   : > { %v995_v41 = vmul.f32 %v1789_v32, %v993_v40 }
 0xfe9   : > { %v2034_v42 = vpack.c.bf16 %v995_v41, %v995_v41 }
 0xfeb   : > { %1022 = vrot.lane.b32.xlu0 %v2034_v42, %s1853_s12 }
0x105d   : > { %v1023_v43 = vpop.permute.xlu0 %1022 }
0x105e   : > { %1686 = vmatmul.mubr.msk.bf16.vlgmr.msra.gmra.mxu1 %vm350_vm0, %v1023_v43 }
0x105f   : > { %1696 = vmatpush3.bf16.msra.mxu1 %v1923_v3  ;;  %1697 = vmatprep.mubr.msk.bf16.mxu1 %vm1849_vm2, %v1848_v1 }
0x111e   : > { %v1061_v47 = vpop.f32.mrf.mxu1 }
0x111f   : > { %v1067_v48 = vadd.f32 %v1061_v47, %v1021_v46 }
0x1120   : > { %v1687_v49 = vpop.f32.mrf.mxu1 }
0x1121   : > { %v1068_v50 = vadd.f32 %v1950_v19, %v1067_v48 }
0x1122   : > { %v1064_v52 = vpop.f32.mrf.mxu1 }
0x1123   : > { %1792 = vtanh.f32 %v1068_v50  ;;  %v1606_v55 = vmul.f32 -1.442695, %v1068_v50 }
0x1124   : > { %v1688_v53 = vpop.f32.mrf.mxu1 }
0x1125   : > { %1794 = vpow2.f32 %v1606_v55 }
0x1130   : > { %v1793_v54 = vpop.eup %1792 }
0x1131   : > { %1078 = vrot.lane.b32.xlu1 %v1793_v54, %s1850_s9 }
0x1132   : > { %v1795_v56 = vpop.eup %1794 }
0x1133   : > { %v1072_v57 = vadd.f32 1.0, %v1795_v56 }
0x1135   : > { %1796 = vrcp.f32 %v1072_v57 }
0x1142   : > { %v1797_v58 = vpop.eup %1796 }
0x1143   : > { %v1076_v61 = vmul.f32 %v1797_v58, %v989_v37 }
0x11a3   : > { %v1079_v59 = vpop.permute.xlu1 %1078 }
0x11a4   : > { %v1081_v60 = vmul.f32 %v1797_v58, %v1079_v59 }
0x11a6   : > { %1083 = vrot.lane.b32.xlu0 %v1081_v60, %s1851_s10 }
0x1218   : > { %v1084_v63 = vpop.permute.xlu0 %1083 }
0x1219   : > { %v1086_v0 = vadd.f32 %v1084_v63, %v1076_v61  ;;  %v1311_v61 = vld [vmem:[#allocation4] sm:$0x3]  ;;  %v1310_v63 = vld [vmem:[#allocation4 + $0x12] sm:$0x3] }
0x121b   : > { %1798 = vtanh.f32 %v1086_v0 }
0x1228   : > { %v1799_v2 = vpop.eup %1798 }
0x1229   : > { %1089 = vrot.lane.b32.xlu1 %v1799_v2, %s1852_s11 }
0x129b   : > { %v1090_v4 = vpop.permute.xlu1 %1089 }
0x129c   : > { %v1092_v5 = vmul.f32 %v1797_v58, %v1090_v4 }
0x129e   : > { %v2048_v6 = vpack.c.bf16 %v1092_v5, %v1092_v5 }
0x12a0   : > { %1119 = vrot.lane.b32.xlu0 %v2048_v6, %s1853_s12 }
0x1312   : > { %v1120_v7 = vpop.permute.xlu0 %1119 }
0x1313   : > { %1692 = vmatmul.mubr.msk.bf16.vlgmr.msra.gmra.mxu0 %vm350_vm0, %v1120_v7 }
0x1314   : > { %1702 = vmatpush3.bf16.msra.mxu0 %v1923_v3  ;;  %1703 = vmatprep.mubr.msk.bf16.mxu0 %vm1849_vm2, %v1848_v1 }
0x13d3   : > { %v1158_v11 = vpop.f32.mrf.mxu0 }
0x13d4   : > { %v1164_v12 = vadd.f32 %v1158_v11, %v1118_v10 }
0x13d5   : > { %v1693_v13 = vpop.f32.mrf.mxu0 }
0x13d6   : > { %v1165_v15 = vadd.f32 %v1950_v19, %v1164_v12 }
0x13d7   : > { %v1161_v17 = vpop.f32.mrf.mxu0 }
0x13d8   : > { %1800 = vtanh.f32 %v1165_v15  ;;  %v1608_v3 = vmul.f32 -1.442695, %v1165_v15  ;;  %v1854_v15 = vmov 1966171168  }
0x13d9   : > { %v1694_v18 = vpop.f32.mrf.mxu0  ;;  %v512_v17 = vunpack.c.l.s4 %v1854_v15 }
0x13da   : > { %1802 = vpow2.f32 %v1608_v3 }
0x13db   : > { %v513_v18 = vunpack.c.0.s8 %v512_v17 }
0x13e5   : > { %v1801_v20 = vpop.eup %1800 }
0x13e6   : > { %1175 = vrot.lane.b32.xlu1 %v1801_v20, %s1850_s9  ;;  %v515_v20 = vshrl.u32 %v514_v16, 7 }
0x13e7   : > { %v1803_v21 = vpop.eup %1802 }
0x13e8   : > { %v1169_v1 = vadd.f32 1.0, %v1803_v21  ;;  %v2079_v3 = vsub.s32 %v513_v18, %v515_v20 }
0x13ea   : > { %1804 = vrcp.f32 %v1169_v1  ;;  %v517_v1 = vrot.slane %v1959_v38, %v2079_v3  ;;  %v1101_v38 = vrot.slane %v2048_v6, %v2079_v3  ;;  %v616_v34 = vrot.slane %v1974_v62, %v2079_v3 }
0x13f7   : > { %v1805_v22 = vpop.eup %1804 }
0x13f8   : > { %v1173_v25 = vmul.f32 %v1805_v22, %v1086_v0  ;;  %v1312_v0 = vsel %vm1946_vm5, %v1310_v63, %v1311_v61 }
0x1458   : > { %v1176_v23 = vpop.permute.xlu1 %1175 }
0x1459   : > { %v1178_v24 = vmul.f32 %v1805_v22, %v1176_v23  ;;  %v713_v23 = vrot.slane %v1989_v26, %v2079_v3 }
0x145b   : > { %1180 = vrot.lane.b32.xlu0 %v1178_v24, %s1851_s10  ;;  %v524_v24 = vrot.slane %v517_v1, %v2079_v3 }
0x14cd   : > { %v1181_v27 = vpop.permute.xlu0 %1180 }
0x14ce   : > { %v1183_v28 = vadd.f32 %v1181_v27, %v1173_v25  ;;  %v907_v25 = vrot.slane %v2019_v14, %v2079_v3  ;;  %v720_v27 = vrot.slane %v713_v23, %v2079_v3 }
0x14d0   : > { %1806 = vtanh.f32 %v1183_v28 }
0x14dd   : > { %v1807_v29 = vpop.eup %1806 }
0x14de   : > { %1186 = vrot.lane.b32.xlu1 %v1807_v29, %s1852_s11  ;;  %v1108_v29 = vrot.slane %v1101_v38, %v2079_v3 }
0x1550   : > { %v1187_v30 = vpop.permute.xlu1 %1186 }
0x1551   : > { %v1189_v31 = vmul.f32 %v1805_v22, %v1187_v30 }
0x1553   : > { %v2062_v32 = vpack.c.bf16 %v1189_v31, %v1189_v31 }
0x1555   : > { %1216 = vrot.lane.b32.xlu0 %v2062_v32, %s1853_s12  ;;  %v1198_v62 = vrot.slane %v2062_v32, %v2079_v3 }
0x15c7   : > { %v1217_v33 = vpop.permute.xlu0 %1216 }
0x15c8   : > { %1698 = vmatmul.mubr.msk.bf16.vlgmr.msra.gmra.mxu1 %vm350_vm0, %v1217_v33 }
0x1688   : > { %v1255_v37 = vpop.f32.mrf.mxu1 }
0x1689   : > { %v1261_v39 = vadd.f32 %v1255_v37, %v1215_v36  ;;  %v810_v36 = vrot.slane %v2004_v51, %v2079_v3  ;;  %v623_v37 = vrot.slane %v616_v34, %v2079_v3  ;;  %v1205_v51 = vrot.slane %v1198_v62, %v2079_v3 }
0x168a   : > { %v1699_v40 = vpop.f32.mrf.mxu1 }
0x168b   : > { %v1262_v41 = vadd.f32 %v1950_v19, %v1261_v39  ;;  %v1004_v39 = vrot.slane %v2034_v42, %v2079_v3  ;;  %v817_v40 = vrot.slane %v810_v36, %v2079_v3 }
0x168c   : > { %v1258_v43 = vpop.f32.mrf.mxu1 }
0x168d   : > { %1808 = vtanh.f32 %v1262_v41  ;;  %v1611_v46 = vmul.f32 -1.442695, %v1262_v41  ;;  %v1011_v41 = vrot.slane %v1004_v39, %v2079_v3 }
0x168e   : > { %v1700_v44 = vpop.f32.mrf.mxu1 }
0x168f   : > { %1810 = vpow2.f32 %v1611_v46 }
0x169a   : > { %v1809_v45 = vpop.eup %1808 }
0x169b   : > { %1272 = vrot.lane.b32.xlu1 %v1809_v45, %s1850_s9 }
0x169c   : > { %v1811_v47 = vpop.eup %1810 }
0x169d   : > { %v1266_v48 = vadd.f32 1.0, %v1811_v47 }
0x169f   : > { %1812 = vrcp.f32 %v1266_v48 }
0x16ac   : > { %v1813_v49 = vpop.eup %1812 }
0x16ad   : > { %v1270_v53 = vmul.f32 %v1813_v49, %v1183_v28  ;;  %v914_v28 = vrot.slane %v907_v25, %v2079_v3 }
0x170d   : > { %v1273_v50 = vpop.permute.xlu1 %1272 }
0x170e   : > { %v1275_v52 = vmul.f32 %v1813_v49, %v1273_v50 }
0x1710   : > { %1277 = vrot.lane.b32.xlu0 %v1275_v52, %s1851_s10 }
0x1782   : > { %v1278_v54 = vpop.permute.xlu0 %1277 }
0x1783   : > { %v1280_v55 = vadd.f32 %v1278_v54, %v1270_v53 }
0x1785   : > { %1814 = vtanh.f32 %v1280_v55 }
0x1792   : > { %v1815_v56 = vpop.eup %1814 }
0x1793   : > { %1283 = vrot.lane.b32.xlu1 %v1815_v56, %s1852_s11 }
0x1805   : > { %v1284_v57 = vpop.permute.xlu1 %1283 }
0x1806   : > { %v1286_v58 = vmul.f32 %v1813_v49, %v1284_v57 }
0x1808   : > { %v1287_v59 = vpack.c.bf16 %v1286_v58, %v1286_v58 }
0x180a   : > { %1313 = vrot.lane.b32.xlu0 %v1287_v59, %s1853_s12  ;;  %v1295_v26 = vrot.slane %v1287_v59, %v2079_v3 }
0x180c   : > { %v1302_v30 = vrot.slane %v1295_v26, %v2079_v3 }
0x187c   : > { %v1314_v60 = vpop.permute.xlu0 %1313 }
0x187d   : > { %1704 = vmatmul.mubr.msk.bf16.vlgmr.msra.gmra.mxu0 %vm350_vm0, %v1314_v60 }
0x193d   : > { %v1352_v2 = vpop.f32.mrf.mxu0 }
0x193e   : > { %v1358_v4 = vadd.f32 %v1352_v2, %v1312_v0 }
0x193f   : > { %v1705_v5 = vpop.f32.mrf.mxu0 }
0x1940   : > { %v1359_v7 = vadd.f32 %v1950_v19, %v1358_v4 }
0x1941   : > { %v1355_v8 = vpop.f32.mrf.mxu0 }
0x1942   : > { %1816 = vtanh.f32 %v1359_v7  ;;  %v1613_v11 = vmul.f32 -1.442695, %v1359_v7 }
0x1943   : > { %v1706_v9 = vpop.f32.mrf.mxu0 }
0x1944   : > { %1818 = vpow2.f32 %v1613_v11 }
0x194f   : > { %v1817_v10 = vpop.eup %1816 }
0x1950   : > { %1369 = vrot.lane.b32.xlu1 %v1817_v10, %s1850_s9  ;;  %s1114_s9 = smul.u32 7, %s2131_s24 }
0x1951   : > { %v1819_v12 = vpop.eup %1818 }
0x1952   : > { %v1363_v13 = vadd.f32 1.0, %v1819_v12  ;;  %s1115_s25 = sadd.s32 %s1114_s9, %s2103_s14 }
0x1953   : > { %s1209_s28 = scalar_lea.vmem %s2108_s22, %s1115_s25 }
0x1954   : > { %1820 = vrcp.f32 %v1363_v13 }
0x1961   : > { %v1821_v21 = vpop.eup %1820 }
0x1962   : > { %v1367_v14 = vmul.f32 %v1821_v21, %v1280_v55 }
0x19c2   : > { %v1370_v19 = vpop.permute.xlu1 %1369 }
0x19c3   : > { %v1372_v22 = vmul.f32 %v1821_v21, %v1370_v19 }
0x19c5   : > { %1374 = vrot.lane.b32.xlu0 %v1372_v22, %s1851_s10  ;;  %s821_s10 = scalar_lea.vmem %s2108_s22, %s727_s5 }
0x19c9   : > { %525 = vrot.lane.b32.xlu0 %v524_v24, %s1853_s12 }
0x19cd   : > { %721 = vrot.lane.b32.xlu0 %v720_v27, %s1853_s12 }
0x19d1   : > { %915 = vrot.lane.b32.xlu0 %v914_v28, %s1853_s12 }
0x19d5   : > { %1109 = vrot.lane.b32.xlu0 %v1108_v29, %s1853_s12 }
0x19d9   : > { %1303 = vrot.lane.b32.xlu0 %v1302_v30, %s1853_s12 }
0x1a37   : > { %v1375_v6 = vpop.permute.xlu0 %1374 }
0x1a38   : > { %v1377_v31 = vadd.f32 %v1375_v6, %v1367_v14 }
0x1a3a   : > { %1822 = vtanh.f32 %v1377_v31 }
0x1a3b   : > { %v526_v33 = vpop.permute.xlu0 %525 }
0x1a3c   : > { %530 = vst.msk [vmem:[%s528_s23] sm:$0x1] %vm529_vm6, %v526_v33  ;;  %s1015_s23 = scalar_lea.vmem %s2108_s22, %s921_s13 }
0x1a3f   : > { %v722_v42 = vpop.permute.xlu0 %721 }
0x1a43   : > { %v916_v46 = vpop.permute.xlu0 %915 }
0x1a47   : > { %v1823_v35 = vpop.eup %1822  ;;  %v1110_v50 = vpop.permute.xlu0 %1109 }
0x1a48   : > { %1380 = vrot.lane.b32.xlu1 %v1823_v35, %s1852_s11  ;;  %s918_s11 = scalar_lea.vmem %s2108_s22, %s824_s8 }
0x1a4b   : > { %v1304_v54 = vpop.permute.xlu0 %1303 }
0x1a4c   : > { %624 = vrot.lane.b32.xlu1 %v623_v37, %s1853_s12 }
0x1a50   : > { %818 = vrot.lane.b32.xlu1 %v817_v40, %s1853_s12 }
0x1a54   : > { %1012 = vrot.lane.b32.xlu1 %v1011_v41, %s1853_s12 }
0x1a58   : > { %1206 = vrot.lane.b32.xlu1 %v1205_v51, %s1853_s12 }
0x1aba   : > { %v1381_v32 = vpop.permute.xlu1 %1380 }
0x1abb   : > { %v1383_v43 = vmul.f32 %v1821_v21, %v1381_v32 }
0x1abd   : > { %v1384_v44 = vpack.c.bf16 %v1383_v43, %v1383_v43  ;;  %1406 = vrot.lane.b32.xlu0 %v1383_v43, %s1853_s12 }
0x1abe   : > { %v625_v45 = vpop.permute.xlu1 %624 }
0x1abf   : > { %v1392_v47 = vrot.slane %v1384_v44, %v2079_v3  ;;  %628 = vst.msk [vmem:[%s627_s15] sm:$0x1] %vm529_vm6, %v625_v45 }
0x1ac0   : > { %725 = vst.msk [vmem:[%s724_s30] sm:$0x1] %vm529_vm6, %v722_v42 }
0x1ac1   : > { %v1399_v48 = vrot.slane %v1392_v47, %v2079_v3 }
0x1ac2   : > { %v819_v49 = vpop.permute.xlu1 %818 }
0x1ac3   : > { %822 = vst.msk [vmem:[%s821_s10] sm:$0x1] %vm529_vm6, %v819_v49  ;;  %1400 = vrot.lane.b32.xlu1 %v1399_v48, %s1853_s12  ;;  %s1308_s12 = smul.u32 9, %s2131_s24 }
0x1ac4   : > { %919 = vst.msk [vmem:[%s918_s11] sm:$0x1] %vm529_vm6, %v916_v46 }
0x1ac5   : > { %s1309_s15 = sadd.s32 %s1308_s12, %s2103_s14 }
0x1ac6   : > { %v1013_v52 = vpop.permute.xlu1 %1012  ;;  %s1403_s30 = scalar_lea.vmem %s2108_s22, %s1309_s15 }
0x1ac7   : > { %1016 = vst.msk [vmem:[%s1015_s23] sm:$0x1] %vm529_vm6, %v1013_v52  ;;  %1412 = vrot.lane.b32.xlu1 %v1377_v31, %s1855_s27 }
0x1ac8   : > { %1113 = vst.msk [vmem:[%s1112_s21] sm:$0x1] %vm529_vm6, %v1110_v50 }
0x1aca   : > { %v1207_v53 = vpop.permute.xlu1 %1206 }
0x1acb   : > { %1210 = vst.msk [vmem:[%s1209_s28] sm:$0x1] %vm529_vm6, %v1207_v53 }
0x1acc   : > { %1307 = vst.msk [vmem:[%s1306_s29] sm:$0x1] %vm529_vm6, %v1304_v54 }
0x1b2f   : > { %v1407_v55 = vpop.permute.xlu0 %1406 }
0x1b30   : > { %1410 = vst.msk [vmem:[#allocation2] sm:$0x3] %vm328_vm1, %v1407_v55 }
0x1b35   : > { %v1401_v56 = vpop.permute.xlu1 %1400 }
0x1b36   : > { %1404 = vst.msk [vmem:[%s1403_s30] sm:$0x1] %vm529_vm6, %v1401_v56 }
0x1b39   : > { %v1413_v57 = vpop.permute.xlu1 %1412 }
0x1b3a   : > { %1415 = vst.msk [vmem:[#allocation3] sm:$0x3] %vm328_vm1, %v1413_v57 }
0x1b3b PF: > { %s14_s17 = sadd.s32 1, %s1846_s17   ;;  %s2191_s15 = smov %s1842_s16 }
0x1b3c   : > { %p11_p6 = scmp.ge.s32.totalorder %s14_s17, 4   ;;  %s2192_s16 = smov %s2194_s18 }
0x1b3e   :  { %13 = sbr.rel (!%p11_p6) target bundleno = 2 (0x2), region = 89 }

// kernel: esim_forward.12
= control target key start
LH: loop header
LB: loop body
LE: loop exit
PB: predicated region body
PF: predicated region fallthrough
CT: control target
= control target key end

     0   :  { %vm58_vm0 = vcmask 261120   ;;  %vm300_vm1 = vcmask 123904   ;;  %vm297_vm2 = vcmask 125952   ;;  %s466_s3 = inlined_call_operand.vmem [shape: bf16[32,16], index: 3, kind: input, shape index: {}]   ;;  %s467_s2 = inlined_call_operand.vmem [shape: bf16[32,16], index: 2, kind: input, shape index: {}]   ;;  %s468_s1 = inlined_call_operand.vmem [shape: bf16[20,32], index: 1, kind: input, shape index: {}]   ;;  %s469_s0 = inlined_call_operand.vmem [shape: bf16[20,32], index: 0, kind: input, shape index: {}]   ;;  %s470_s4 = inlined_call_operand.vmem [shape: bf16[32,16], index: 4, kind: input, shape index: {}]   ;;  %s471_s5 = inlined_call_operand.vmem [shape: f32[1,16], index: 5, kind: input, shape index: {}]   ;;  %s472_s6 = inlined_call_operand.vmem [shape: bf16[20,16], index: 6, kind: output, shape index: {}]  }
   0x1   :  { %v367_v0 = vld [vmem:[%s466_s3 + $0x8] sm:$0xff]   ;;  %v369_v2 = vld [vmem:[%s466_s3] sm:$0xff]  }
   0x2   :  { %v368_v1 = vld [vmem:[%s467_s2 + $0x8] sm:$0xff]   ;;  %343 = vmatprep.subr.bf16.mxu0 %v367_v0  ;;  %v370_v3 = vld [vmem:[%s467_s2] sm:$0xff]  }
   0x3   :  { %351 = vmatprep.subr.bf16.mxu1 %v368_v1  ;;  %344 = vmatpush3.bf16.msra.mxu0 %v367_v0  ;;  %v27_v4 = vld [vmem:[%s468_s1] sm:$0xf]  ;;  %v28_v5 = vld [vmem:[%s468_s1 + $0x4] sm:$0xf]  ;;  %v29_v6 = vld [vmem:[%s468_s1 + $0x8] sm:$0x3] }
   0x4   :  { %352 = vmatpush3.bf16.msra.mxu1 %v368_v1  ;;  %345 = vmatprep.subr.bf16.mxu0 %v369_v2  ;;  %v306_v7 = vcombine.low %v27_v4, %v28_v5  ;;  %v24_v8 = vld [vmem:[%s469_s0] sm:$0xf]  ;;  %v25_v9 = vld [vmem:[%s469_s0 + $0x4] sm:$0xf]  ;;  %v26_v10 = vld [vmem:[%s469_s0 + $0x8] sm:$0x3]  ;;  %v307_v14 = vcombine.low %v29_v6, %v29_v6 }
   0x5   :  { %353 = vmatprep.subr.bf16.mxu1 %v370_v3  ;;  %v312_v11 = vcombine.low %v24_v8, %v25_v9  ;;  %v187_v12 = vmul.bf16 %v27_v4, %v24_v8  ;;  %v188_v13 = vmul.bf16 %v28_v5, %v25_v9  ;;  %v375_v15 = vld [vmem:[%s470_s4 + $0x8] sm:$0xff]   ;;  %v313_v16 = vcombine.low %v26_v10, %v26_v10  ;;  %v376_v18 = vld [vmem:[%s470_s4] sm:$0xff]  }
   0x6   :  { %347 = vmatprep.mubr.msk.bf16.mxu0 %vm58_vm0, %v306_v7  ;;  %v189_v19 = vmul.bf16 %v29_v6, %v26_v10  ;;  %v324_v30 = vld [vmem:[%s471_s5] ss:$0 sm:$0xff] }
   0x7   :  { %346 = vmatpush3.bf16.msra.mxu0 %v369_v2  ;;  %355 = vmatprep.mubr.msk.bf16.mxu1 %vm58_vm0, %v312_v11  ;;  %v318_v17 = vcombine.low %v187_v12, %v188_v13 }
   0x8   :  { %354 = vmatpush3.bf16.msra.mxu1 %v370_v3  ;;  %359 = vmatprep.subr.bf16.mxu0 %v375_v15  ;;  %v319_v20 = vcombine.low %v189_v19, %v189_v19 }
   0xa   :  { %348 = vmatmul.mubr.msk.bf16.vlgmr.msra.gmra.mxu0 %vm58_vm0, %v307_v14 }
   0xb   :  { %356 = vmatmul.mubr.msk.bf16.vlgmr.msra.gmra.mxu1 %vm58_vm0, %v313_v16  ;;  %360 = vmatpush3.bf16.msra.mxu0 %v375_v15 }
   0xc   :  { %361 = vmatprep.subr.bf16.mxu0 %v376_v18  ;;  %363 = vmatprep.mubr.msk.bf16.mxu0 %vm58_vm0, %v318_v17 }
   0xf   :  { %362 = vmatpush3.bf16.msra.mxu0 %v376_v18 }
  0x12   :  { %364 = vmatmul.mubr.msk.bf16.vlgmr.msra.gmra.mxu0 %vm58_vm0, %v319_v20 }
  0xca   :  { %v349_v21 = vpop.f32.mrf.mxu0 }
  0xcb   :  { %v357_v22 = vpop.f32.mrf.mxu1 }
  0xcc   :  { %v99_v23 = vpop.f32.mrf.mxu0  ;;  %v182_v28 = vadd.f32 %v357_v22, %v349_v21 }
  0xcd   :  { %v173_v24 = vpop.f32.mrf.mxu1 }
  0xce   :  { %v350_v25 = vpop.f32.mrf.mxu0  ;;  %v174_v31 = vadd.f32 %v173_v24, %v99_v23 }
  0xcf   :  { %v358_v26 = vpop.f32.mrf.mxu1 }
  0xd0   :  { %v102_v27 = vpop.f32.mrf.mxu0 }
  0xd1   :  { %v176_v33 = vpop.f32.mrf.mxu1 }
  0xd2   :  { %v365_v29 = vpop.f32.mrf.mxu0  ;;  %v177_v38 = vadd.f32 %v176_v33, %v102_v27 }
  0xd3   :  { %v270_v32 = vadd.f32 %v365_v29, %v182_v28 }
  0xd4   :  { %v254_v34 = vpop.f32.mrf.mxu0 }
  0xd5   :  { %v280_v35 = vadd.f32 %v324_v30, %v270_v32  ;;  %v268_v36 = vadd.f32 %v254_v34, %v174_v31 }
  0xd6   :  { %v366_v37 = vpop.f32.mrf.mxu0 }
  0xd7   :  { %v283_v39 = vmax.f32 %v280_v35, 0.0  ;;  %v278_v40 = vadd.f32 %v324_v30, %v268_v36 }
  0xd8   :  { %v257_v41 = vpop.f32.mrf.mxu0 }
  0xd9   :  { %v330_v42 = vpack.c.bf16 %v283_v39, %v283_v39  ;;  %v281_v43 = vmax.f32 %v278_v40, 0.0  ;;  %v269_v44 = vadd.f32 %v257_v41, %v177_v38 }
  0xdb   :  { %301 = vst.msk [vmem:[%s472_s6 + $0x8] sm:$0x3] %vm300_vm1, %v330_v42  ;;  %v328_v45 = vpack.c.bf16 %v281_v43, %v281_v43  ;;  %v279_v46 = vadd.f32 %v324_v30, %v269_v44 }
  0xdd   :  { %298 = vst.msk [vmem:[%s472_s6] sm:$0xf] %vm297_vm2, %v328_v45  ;;  %v282_v47 = vmax.f32 %v279_v46, 0.0 }
  0xdf   :  { %v329_v48 = vpack.c.bf16 %v282_v47, %v282_v47 }
  0xe1   :  { %299 = vst.msk [vmem:[%s472_s6 + $0x4] sm:$0xf] %vm297_vm2, %v329_v48 }

// kernel: esim_forward.15
= control target key start
LH: loop header
LB: loop body
LE: loop exit
PB: predicated region body
PF: predicated region fallthrough
CT: control target
= control target key end

     0   :  { %v398_v1 = vmov 0.0   ;;  %vm399_vm0 = vmmov 0   ;;  %s494_s0 = inlined_call_operand.vmem [shape: f32[2,128], index: 0, kind: input, shape index: {}]   ;;  %s495_s1 = inlined_call_operand.vmem [shape: bf16[128,128], index: 1, kind: input, shape index: {}]   ;;  %s496_s2 = inlined_call_operand.vmem [shape: f32[1,128], index: 2, kind: input, shape index: {}]   ;;  %s497_s3 = inlined_call_operand.vmem [shape: bf16[128,3], index: 3, kind: input, shape index: {}]   ;;  %s498_s4 = inlined_call_operand.vmem [shape: f32[1,3], index: 4, kind: input, shape index: {}]   ;;  %s499_s5 = inlined_call_operand.hbm [shape: f32[2,3], index: 5, kind: output, shape index: {}]  }
   0x1   :  { %v354_v0 = vld [vmem:[%s495_s1 + $0x38] sm:$0xff]   ;;  %311 = vmatprep.subr.bf16.mxu0 %v398_v1  ;;  %331 = vmatprep.subr.bf16.mxu1 %v398_v1  ;;  %v355_v2 = vld [vmem:[%s495_s1 + $0x30] sm:$0xff]   ;;  %v356_v3 = vld [vmem:[%s495_s1 + $0x28] sm:$0xff]  }
   0x2   :  { %312 = vmatpush3.bf16.msra.mxu0 %v354_v0  ;;  %327 = vmatprep.mubr.msk.bf16.mxu0 %vm399_vm0, %v398_v1  ;;  %v362_v4 = vld [vmem:[%s497_s3 + $0x38] sm:$0xff]   ;;  %v357_v5 = vld [vmem:[%s495_s1 + $0x20] sm:$0xff]   ;;  %v363_v6 = vld [vmem:[%s497_s3 + $0x30] sm:$0xff]  }
   0x3   :  { %313 = vmatprep.subr.bf16.mxu0 %v398_v1  ;;  %347 = vmatprep.mubr.msk.bf16.mxu1 %vm399_vm0, %v398_v1  ;;  %v358_v7 = vld [vmem:[%s495_s1 + $0x18] sm:$0xff]   ;;  %v364_v8 = vld [vmem:[%s497_s3 + $0x28] sm:$0xff]  }
   0x4   :  { %332 = vmatpush3.bf16.msra.mxu1 %v362_v4 }
   0x5   :  { %333 = vmatprep.subr.bf16.mxu1 %v398_v1 }
   0x6   :  { %314 = vmatpush3.bf16.msra.mxu0 %v355_v2 }
   0x7   :  { %315 = vmatprep.subr.bf16.mxu0 %v398_v1 }
   0x8   :  { %334 = vmatpush3.bf16.msra.mxu1 %v363_v6 }
   0xa   :  { %316 = vmatpush3.bf16.msra.mxu0 %v356_v3 }
   0xb   :  { %317 = vmatprep.subr.bf16.mxu0 %v398_v1 }
   0xe   :  { %318 = vmatpush3.bf16.msra.mxu0 %v357_v5 }
   0xf   :  { %319 = vmatprep.subr.bf16.mxu0 %v398_v1 }
  0x10   :  { %10 = vsyncpa [#allocation3], 0  ;;  %335 = vmatprep.subr.bf16.mxu1 %v398_v1  ;;  %v359_v9 = vld [vmem:[%s495_s1 + $0x10] sm:$0xff]   ;;  %v360_v10 = vld [vmem:[%s495_s1 + $0x8] sm:$0xff]   ;;  %vm248_vm1 = vcmask 17408  }
  0x11   :  { %336 = vmatpush3.bf16.msra.mxu1 %v364_v8  ;;  %v361_v11 = vld [vmem:[%s495_s1] sm:$0xff]   ;;  %v366_v15 = vld [vmem:[%s497_s3 + $0x18] sm:$0xff]   ;;  %v367_v16 = vld [vmem:[%s497_s3 + $0x10] sm:$0xff]  }
  0x12   :  { %320 = vmatpush3.bf16.msra.mxu0 %v358_v7  ;;  %337 = vmatprep.subr.bf16.mxu1 %v398_v1  ;;  %v22_v12 = vld [vmem:[%s494_s0] sm:$0x3]  ;;  %v368_v17 = vld [vmem:[%s497_s3 + $0x8] sm:$0xff]  }
  0x13   :  { %321 = vmatprep.subr.bf16.mxu0 %v398_v1  ;;  %v23_v13 = vpack.c.bf16 %v22_v12, %v22_v12  ;;  %v365_v14 = vld [vmem:[%s497_s3 + $0x20] sm:$0xff]  }
  0x14   :  { %v369_v18 = vld [vmem:[%s497_s3] sm:$0xff]  }
  0x15   :  { %338 = vmatpush3.bf16.msra.mxu1 %v365_v14  ;;  %v275_v19 = vld [vmem:[%s496_s2] ss:$0 sm:$0xff]  ;;  %s400_s2 = smov [#allocation2]  }
  0x16   :  { %322 = vmatpush3.bf16.msra.mxu0 %v359_v9  ;;  %339 = vmatprep.subr.bf16.mxu1 %v398_v1  ;;  %v284_v27 = vld [vmem:[%s498_s4] ss:$0 sm:$0xff]  ;;  %s267_s3 = sshll.u32 %s400_s2, 4  ;;  %s268_s3 = int_to_ptr.vmem [resolvable:$true] %s267_s3 }
  0x17   :  { %323 = vmatprep.subr.bf16.mxu0 %v398_v1  ;;  %s376_s4 = scalar_lea.vmem %s268_s3, 32  ;;  %p381_p1 = scmp.lt.s32.totalorder %s268_s3, %s268_s3 }
  0x18   :  { %p377_p0 = scmp.ne.s32.totalorder %s268_s3, %s376_s4  ;;  %p382_p2 = scmp.lt.s32.totalorder %s376_s4, %s376_s4 }
  0x19   :  { %340 = vmatpush3.bf16.msra.mxu1 %v366_v15 }
  0x1a   :  { %324 = vmatpush3.bf16.msra.mxu0 %v360_v10  ;;  %341 = vmatprep.subr.bf16.mxu1 %v398_v1  ;;  %p383_p3 = por %p382_p2, %p381_p1 }
  0x1b   :  { %325 = vmatprep.subr.bf16.mxu0 %v398_v1 }
  0x1c   :  { %p384_p4 = pnand %p383_p3, %p377_p0 }
  0x1d   :  { %342 = vmatpush3.bf16.msra.mxu1 %v367_v16 }
  0x1e   :  { %326 = vmatpush3.bf16.msra.mxu0 %v361_v11  ;;  %343 = vmatprep.subr.bf16.mxu1 %v398_v1 }
  0x21   :  { %328 = vmatmul.mubr.bf16.vlgmr.msra.gmra.mxu0 %v23_v13  ;;  %344 = vmatpush3.bf16.msra.mxu1 %v368_v17 }
  0x22   :  { %345 = vmatprep.subr.bf16.mxu1 %v398_v1 }
  0x25   :  { %346 = vmatpush3.bf16.msra.mxu1 %v369_v18 }
  0xe1   :  { %v129_v20 = vpop.f32.mrf.mxu0 }
  0xe2   :  { %v130_v21 = vadd.f32 %v275_v19, %v129_v20 }
  0xe3   :  { %v329_v22 = vpop.f32.mrf.mxu0 }
  0xe4   :  { %370 = vtanh.f32 %v130_v21 }
  0xe5   :  { %v132_v23 = vpop.f32.mrf.mxu0 }
  0xe7   :  { %v330_v24 = vpop.f32.mrf.mxu0 }
  0xf1   :  { %v371_v25 = vpop.eup %370 }
  0xf2   :  { %v136_v26 = vpack.c.bf16 %v371_v25, %v371_v25 }
  0xf4   :  { %348 = vmatmul.mubr.bf16.vlgmr.msra.gmra.mxu1 %v136_v26 }
 0x1b4   :  { %v242_v28 = vpop.f32.mrf.mxu1 }
 0x1b5   :  { %v243_v29 = vadd.f32 %v284_v27, %v242_v28 }
 0x1b6   :  { %v349_v30 = vpop.f32.mrf.mxu1 }
 0x1b7   :  { %v249_v31 = vsel %vm248_vm1, %v243_v29, -inf }
 0x1b8   :  { %250 = vmax.xlane.f32.xlu0 %v249_v31  ;;  %v245_v32 = vpop.f32.mrf.mxu1 }
 0x1ba   :  { %v350_v33 = vpop.f32.mrf.mxu1 }
 0x241   :  { %v251_v34 = vpop.xlane.xlu0 %250 }
 0x242   :  { %v252_v35 = vsub.f32 %v243_v29, %v251_v34 }
 0x244   :  { %v253_v36 = vmul.f32 1.442695, %v252_v35 }
 0x246   :  { %372 = vpow2.f32 %v253_v36 }
 0x253   :  { %v373_v37 = vpop.eup %372 }
 0x254   :  { %v255_v38 = vsel %vm248_vm1, %v373_v37, 0.0 }
 0x255   :  { %256 = vadd.xlane.f32.xlu0 %v255_v38 }
 0x2de   :  { %v257_v39 = vpop.xlane.xlu0 %256 }
 0x2df   :  { %374 = vrcp.f32 %v257_v39 }
 0x2ec   :  { %v375_v40 = vpop.eup %374 }
 0x2ed   :  { %v259_v41 = vmul.f32 %v375_v40, %v373_v37 }
 0x2ef   :  { %260 = vst.msk [vmem:[#allocation2] sm:$0x3] %vm248_vm1, %v259_v41 }
 0x2f0   :  { %387 = shalt.err (!%p384_p4)
}
 0x2f1   :  { %270 = dma.vmem_to_hbm [thread:$0]  %s268_s3, 32, %s499_s5, [#allocation3]  }
 0x2f2   :  { %396 = dma.done.wait [#allocation3], 32  }
 0x2f3   :  { %397 = vsyncadd [#allocation3], 4294967264 }
 0x2f4   :  { %274 = vsyncpa [#allocation3], 1 }

// kernel: esim_forward.13
= control target key start
LH: loop header
LB: loop body
LE: loop exit
PB: predicated region body
PF: predicated region fallthrough
CT: control target
= control target key end

     0   :  { %s1460_s18 = smov 0   ;;  %s1462_s19 = smov 0   ;;  %s1701_s0 = inlined_call_operand.vmem [shape: bf16[16,16], index: 0, kind: input, shape index: {}]   ;;  %s1702_s1 = inlined_call_operand.vmem [shape: bf16[2,16,64], index: 1, kind: input, shape index: {}]   ;;  %s1703_s2 = inlined_call_operand.vmem [shape: bf16[2,16,64], index: 2, kind: input, shape index: {}]   ;;  %s1704_s3 = inlined_call_operand.vmem [shape: f32[2,1,64], index: 3, kind: input, shape index: {}]   ;;  %s1705_s4 = inlined_call_operand.vmem [shape: f32[2,2,16], index: 4, kind: output, shape index: {0}]   ;;  %s1706_s5 = inlined_call_operand.vmem [shape: f32[2,2,16], index: 5, kind: output, shape index: {1}]  }
   0x1   :  { %s1464_s20 = smov 0  }
   0x2 LB: > { %s28_s21 = sadd.s32 1, %s1416_s19  ;;  %p1195_p0 = scmp.ge.s32.totalorder %s1420_s20, 1  ;;  %s1420_s20 = sphi %s1464_s20, %s16_s20   ;;  %s1416_s19 = sphi %s1462_s19, %s1710_s19   ;;  %s1412_s18 = sphi %s1460_s18, %s1709_s18  }
   0x3   : > { %p30_p1 = scmp.ge.s32.totalorder %s28_s21, 2  ;;  %p247_p2 = scmp.lt.s32.totalorder %s1420_s20, 3 }
   0x5   : > { %s1712_s21 = smov (%p30_p1, %s28_s21), 0  ;;  %p248_p3 = pnand %p1195_p0, %p247_p2 }
   0x6   : > { %p309_p4 = scmp.lt.s32.totalorder (!%p248_p3), %s1412_s18, 1  ;;  %p416_p5 = scmp.eq.s32.totalorder (!%p248_p3), %s1412_s18, 0 }
   0x7   : > { %251 = sbr.rel (%p248_p3) target bundleno = 5582 (0x15ce), region = 36  ;;  %s1424_s11 = smov (!%p248_p3), 96  }
   0x8   : > { %s1425_s12 = smov (!%p248_p3), 16   ;;  %s1426_s13 = smov (!%p248_p3), 32  }
   0x9   : > { %s1427_s14 = smov (!%p248_p3), 80  }
   0xc   : > { %v1422_v0 = vmov 0.0   ;;  %vm1423_vm0 = vmmov 0   ;;  %vm335_vm1 = vcmask 123904   ;;  %s1485_s22 = scalar_select %p309_p4, %s1412_s18, 1  ;;  %v1333_v1 = vld [vmem:[%s1701_s0] sm:$0xff]   ;;  %vm355_vm2 = vcmask 130048  }
   0xd   : > { %1245 = vmatprep.subr.bf16.mxu0 %v1422_v0  ;;  %1247 = vmatprep.mubr.msk.bf16.mxu0 %vm1423_vm0, %v1422_v0  ;;  %336 = vst.msk [vmem:[#allocation2] sm:$0x3] %vm335_vm1, %v1422_v0  ;;  %337 = vst.msk [vmem:[#allocation3] sm:$0x3] %vm335_vm1, %v1422_v0  ;;  %vm400_vm3 = vcmask 523264  }
   0xe   : > { %1251 = vmatprep.subr.bf16.mxu1 %v1422_v0  ;;  %1253 = vmatprep.mubr.msk.bf16.mxu1 %vm1423_vm0, %v1422_v0  ;;  %s1225_s23 = sshll.u32 %s1485_s22, 3  ;;  %s321_s10 = scalar_lea.vmem %s1704_s3, %s1485_s22 }
   0xf   : > { %s313_s26 = scalar_lea.vmem %s1702_s1, %s1225_s23  ;;  %s318_s29 = scalar_lea.vmem %s1703_s2, %s1225_s23  ;;  %v1528_v16 = vld [vmem:[%s321_s10] ss:$0 sm:$0xff] }
  0x10   : > { %v1331_v2 = vld [vmem:[%s313_s26] sm:$0xff]   ;;  %s417_s7 = scalar_select %p416_p5, 1, 0 }
  0x11   : > { %v1504_v3 = vld [vmem:[%s318_s29] sm:$0xff]   ;;  %1246 = vmatpush3.bf16.msra.mxu0 %v1331_v2  ;;  %s1200_s15 = sshll.u32 %s1485_s22, 1  ;;  %s1429_s22 = smov 112  }
  0x12   : > { %1252 = vmatpush3.bf16.msra.mxu1 %v1504_v3  ;;  %1257 = vmatprep.subr.bf16.mxu0 %v1422_v0  ;;  %v418_v13 = vstv %s417_s7  ;;  %s329_s18 = scalar_lea.vmem %s1706_s5, %s1200_s15  ;;  %s325_s25 = scalar_lea.vmem %s1705_s4, %s1200_s15 }
  0x13   : > { %1263 = vmatprep.subr.bf16.mxu1 %v1422_v0  ;;  %vm1524_vm4 = vcmp.eq.s32.totalorder %v418_v13, 1  ;;  %338 = vst.msk [vmem:[%s325_s25] sm:$0x3] %vm335_vm1, %v1422_v0 }
  0x14   : > { %v412_v4 = vld [vmem:[#allocation2] sm:$0x3]  ;;  %1248 = vmatmul.mubr.msk.bf16.vlgmr.msra.gmra.mxu0 %vm355_vm2, %v1333_v1  ;;  %v413_v33 = vld [vmem:[#allocation3] sm:$0x3] }
  0x15   : > { %v421_v5 = vpack.c.bf16 %v412_v4, %v412_v4  ;;  %1258 = vmatpush3.bf16.msra.mxu0 %v1504_v3  ;;  %1259 = vmatprep.mubr.msk.bf16.mxu0 %vm1423_vm0, %v1422_v0 }
  0x16   : > { %1269 = vmatprep.subr.bf16.mxu0 %v1422_v0 }
  0x17   : > { %1254 = vmatmul.mubr.msk.bf16.vlgmr.msra.gmra.mxu1 %vm355_vm2, %v421_v5 }
  0x18   : > { %1264 = vmatpush3.bf16.msra.mxu1 %v1504_v3  ;;  %1265 = vmatprep.mubr.msk.bf16.mxu1 %vm1423_vm0, %v1422_v0 }
  0x19   : > { %1275 = vmatprep.subr.bf16.mxu1 %v1422_v0 }
  0xd4   : > { %v393_v6 = vpop.f32.mrf.mxu0 }
  0xd5   : > { %401 = vst.msk [vmem:[#allocation4] sm:$0xff] %vm400_vm3, %v393_v6 }
  0xd6   : > { %v1249_v8 = vpop.f32.mrf.mxu0 }
  0xd7   : > { %v465_v7 = vpop.f32.mrf.mxu1 }
  0xd8   : > { %v396_v10 = vpop.f32.mrf.mxu0 }
  0xd9   : > { %v1255_v9 = vpop.f32.mrf.mxu1  ;;  %402 = vst.msk [vmem:[#allocation4 + $0x8] sm:$0xff] %vm400_vm3, %v396_v10 }
  0xda   : > { %v1250_v12 = vpop.f32.mrf.mxu0 }
  0xdb   : > { %v468_v11 = vpop.f32.mrf.mxu1 }
  0xdc   : > { %v1530_v17 = vld [vmem:[#allocation4] sm:$0x3]  ;;  %v1532_v18 = vld [vmem:[#allocation4 + $0x4] sm:$0x3]  ;;  %v1544_v23 = vld [vmem:[#allocation4 + $0x2] sm:$0x3] }
  0xdd   : > { %v1256_v14 = vpop.f32.mrf.mxu1  ;;  %v1546_v24 = vld [vmem:[#allocation4 + $0x6] sm:$0x3] }
  0xe0   : > { %v1534_v19 = vld [vmem:[#allocation4 + $0xe] sm:$0x3]  ;;  %v1536_v20 = vld [vmem:[#allocation4 + $0xc] sm:$0x3]  ;;  %v1538_v21 = vld [vmem:[#allocation4 + $0xa] sm:$0x3] }
  0xe1   : > { %v420_v22 = vsel %vm1524_vm4, %v1530_v17, %v1534_v19  ;;  %v1548_v25 = vld [vmem:[#allocation4 + $0x8] sm:$0x3]  ;;  %v812_v26 = vsel %vm1524_vm4, %v1538_v21, %v1532_v18  ;;  %v888_v29 = vsel %vm1524_vm4, %v1536_v20, %v1544_v23  ;;  %v964_v30 = vsel %vm1524_vm4, %v1534_v19, %v1530_v17 }
  0xe2   : > { %v471_v27 = vadd.f32 %v465_v7, %v420_v22  ;;  %v736_v28 = vsel %vm1524_vm4, %v1548_v25, %v1546_v24  ;;  %v504_v49 = vsel %vm1524_vm4, %v1544_v23, %v1536_v20  ;;  %v582_v9 = vsel %vm1524_vm4, %v1532_v18, %v1538_v21 }
  0xe4   : > { %v472_v31 = vadd.f32 %v1528_v16, %v471_v27 }
  0xe6   : > { %1334 = vtanh.f32 %v472_v31  ;;  %v1208_v34 = vmul.f32 -1.442695, %v472_v31 }
  0xe8   : > { %1336 = vpow2.f32 %v1208_v34 }
  0xf3   : > { %v1335_v32 = vpop.eup %1334 }
  0xf4   : > { %486 = vrot.lane.b32.xlu0 %v1335_v32, %s1424_s11 }
  0xf5   : > { %v1337_v35 = vpop.eup %1336 }
  0xf6   : > { %v476_v36 = vadd.f32 1.0, %v1337_v35 }
  0xf8   : > { %481 = vrot.lane.b32.xlu0 %v413_v33, %s1425_s12  ;;  %1338 = vrcp.f32 %v476_v36 }
 0x105   : > { %v1339_v37 = vpop.eup %1338 }
 0x166   : > { %v487_v38 = vpop.permute.xlu0 %486 }
 0x167   : > { %v489_v39 = vmul.f32 %v1339_v37, %v487_v38 }
 0x169   : > { %491 = vrot.lane.b32.xlu1 %v489_v39, %s1425_s12 }
 0x16a   : > { %v482_v40 = vpop.permute.xlu0 %481 }
 0x16b   : > { %v484_v41 = vmul.f32 %v1339_v37, %v482_v40 }
 0x1db   : > { %v492_v42 = vpop.permute.xlu1 %491 }
 0x1dc   : > { %v494_v43 = vadd.f32 %v492_v42, %v484_v41 }
 0x1de   : > { %1340 = vtanh.f32 %v494_v43 }
 0x1eb   : > { %v1341_v44 = vpop.eup %1340 }
 0x1ec   : > { %497 = vrot.lane.b32.xlu1 %v1341_v44, %s1426_s13 }
 0x25e   : > { %v498_v45 = vpop.permute.xlu1 %497 }
 0x25f   : > { %v1571_v46 = vmul.f32 %v1339_v37, %v498_v45 }
 0x261   : > { %v505_v47 = vpack.c.bf16 %v1571_v46, %v1571_v46 }
 0x263   : > { %507 = vrot.lane.b32.xlu0 %v505_v47, %s1427_s14 }
 0x2d5   : > { %v508_v48 = vpop.permute.xlu0 %507 }
 0x2d6   : > { %1260 = vmatmul.mubr.msk.bf16.vlgmr.msra.gmra.mxu0 %vm355_vm2, %v508_v48 }
 0x2d7   : > { %1270 = vmatpush3.bf16.msra.mxu0 %v1504_v3  ;;  %1271 = vmatprep.mubr.msk.bf16.mxu0 %vm1423_vm0, %v1422_v0 }
 0x2d8   : > { %1281 = vmatprep.subr.bf16.mxu0 %v1422_v0 }
 0x396   : > { %v546_v50 = vpop.f32.mrf.mxu0 }
 0x397   : > { %v552_v51 = vadd.f32 %v546_v50, %v504_v49 }
 0x398   : > { %v1261_v52 = vpop.f32.mrf.mxu0 }
 0x399   : > { %v553_v53 = vadd.f32 %v1528_v16, %v552_v51 }
 0x39a   : > { %v549_v54 = vpop.f32.mrf.mxu0 }
 0x39b   : > { %1342 = vtanh.f32 %v553_v53  ;;  %v1210_v57 = vmul.f32 -1.442695, %v553_v53 }
 0x39c   : > { %v1262_v55 = vpop.f32.mrf.mxu0 }
 0x39d   : > { %1344 = vpow2.f32 %v1210_v57 }
 0x3a8   : > { %v1343_v56 = vpop.eup %1342 }
 0x3a9   : > { %563 = vrot.lane.b32.xlu1 %v1343_v56, %s1424_s11 }
 0x3aa   : > { %v1345_v58 = vpop.eup %1344 }
 0x3ab   : > { %v557_v59 = vadd.f32 1.0, %v1345_v58 }
 0x3ad   : > { %1346 = vrcp.f32 %v557_v59 }
 0x3ba   : > { %v1347_v60 = vpop.eup %1346 }
 0x3bb   : > { %v561_v63 = vmul.f32 %v1347_v60, %v494_v43 }
 0x41b   : > { %v564_v61 = vpop.permute.xlu1 %563 }
 0x41c   : > { %v566_v62 = vmul.f32 %v1347_v60, %v564_v61 }
 0x41e   : > { %568 = vrot.lane.b32.xlu0 %v566_v62, %s1425_s12 }
 0x490   : > { %v569_v1 = vpop.permute.xlu0 %568 }
 0x491   : > { %v571_v2 = vadd.f32 %v569_v1, %v561_v63 }
 0x493   : > { %1348 = vtanh.f32 %v571_v2 }
 0x4a0   : > { %v1349_v4 = vpop.eup %1348 }
 0x4a1   : > { %574 = vrot.lane.b32.xlu1 %v1349_v4, %s1426_s13 }
 0x513   : > { %v575_v5 = vpop.permute.xlu1 %574 }
 0x514   : > { %v577_v6 = vmul.f32 %v1347_v60, %v575_v5 }
 0x516   : > { %v583_v7 = vpack.c.bf16 %v577_v6, %v577_v6  ;;  %v578_v42 = vadd.f32 %v577_v6, %v1571_v46  ;;  %v579_v43 = vmax.f32 %v1571_v46, %v577_v6  ;;  %v660_v46 = vsel %vm1524_vm4, %v1546_v24, %v1548_v25 }
 0x518   : > { %585 = vrot.lane.b32.xlu0 %v583_v7, %s1427_s14 }
 0x58a   : > { %v586_v8 = vpop.permute.xlu0 %585 }
 0x58b   : > { %1266 = vmatmul.mubr.msk.bf16.vlgmr.msra.gmra.mxu1 %vm355_vm2, %v586_v8 }
 0x58c   : > { %1276 = vmatpush3.bf16.msra.mxu1 %v1504_v3  ;;  %1277 = vmatprep.mubr.msk.bf16.mxu1 %vm1423_vm0, %v1422_v0 }
 0x58d   : > { %1287 = vmatprep.subr.bf16.mxu1 %v1422_v0 }
 0x64b   : > { %v624_v10 = vpop.f32.mrf.mxu1 }
 0x64c   : > { %v630_v11 = vadd.f32 %v624_v10, %v582_v9 }
 0x64d   : > { %v1267_v12 = vpop.f32.mrf.mxu1 }
 0x64e   : > { %v631_v13 = vadd.f32 %v1528_v16, %v630_v11 }
 0x64f   : > { %v627_v14 = vpop.f32.mrf.mxu1 }
 0x650   : > { %1350 = vtanh.f32 %v631_v13  ;;  %v1212_v31 = vmul.f32 -1.442695, %v631_v13 }
 0x651   : > { %v1268_v22 = vpop.f32.mrf.mxu1 }
 0x652   : > { %1352 = vpow2.f32 %v1212_v31 }
 0x65d   : > { %v1351_v27 = vpop.eup %1350 }
 0x65e   : > { %641 = vrot.lane.b32.xlu1 %v1351_v27, %s1424_s11 }
 0x65f   : > { %v1353_v32 = vpop.eup %1352 }
 0x660   : > { %v635_v33 = vadd.f32 1.0, %v1353_v32 }
 0x662   : > { %1354 = vrcp.f32 %v635_v33 }
 0x66f   : > { %v1355_v34 = vpop.eup %1354 }
 0x670   : > { %v639_v37 = vmul.f32 %v1355_v34, %v571_v2 }
 0x6d0   : > { %v642_v35 = vpop.permute.xlu1 %641 }
 0x6d1   : > { %v644_v36 = vmul.f32 %v1355_v34, %v642_v35 }
 0x6d3   : > { %646 = vrot.lane.b32.xlu0 %v644_v36, %s1425_s12 }
 0x745   : > { %v647_v38 = vpop.permute.xlu0 %646 }
 0x746   : > { %v649_v39 = vadd.f32 %v647_v38, %v639_v37 }
 0x748   : > { %1356 = vtanh.f32 %v649_v39 }
 0x755   : > { %v1357_v40 = vpop.eup %1356 }
 0x756   : > { %652 = vrot.lane.b32.xlu1 %v1357_v40, %s1426_s13 }
 0x7c8   : > { %v653_v41 = vpop.permute.xlu1 %652 }
 0x7c9   : > { %v655_v44 = vmul.f32 %v1355_v34, %v653_v41 }
 0x7cb   : > { %v656_v45 = vadd.f32 %v655_v44, %v578_v42  ;;  %v1605_v47 = vmax.f32 %v579_v43, %v655_v44  ;;  %v661_v48 = vpack.c.bf16 %v655_v44, %v655_v44 }
 0x7cd   : > { %663 = vrot.lane.b32.xlu0 %v661_v48, %s1427_s14 }
 0x83f   : > { %v664_v49 = vpop.permute.xlu0 %663 }
 0x840   : > { %1272 = vmatmul.mubr.msk.bf16.vlgmr.msra.gmra.mxu0 %vm355_vm2, %v664_v49 }
 0x841   : > { %1282 = vmatpush3.bf16.msra.mxu0 %v1504_v3  ;;  %1283 = vmatprep.mubr.msk.bf16.mxu0 %vm1423_vm0, %v1422_v0 }
 0x842   : > { %1293 = vmatprep.subr.bf16.mxu0 %v1422_v0 }
 0x900   : > { %v702_v50 = vpop.f32.mrf.mxu0 }
 0x901   : > { %v708_v51 = vadd.f32 %v702_v50, %v660_v46 }
 0x902   : > { %v1273_v52 = vpop.f32.mrf.mxu0 }
 0x903   : > { %v709_v53 = vadd.f32 %v1528_v16, %v708_v51 }
 0x904   : > { %v705_v54 = vpop.f32.mrf.mxu0 }
 0x905   : > { %1358 = vtanh.f32 %v709_v53  ;;  %v1214_v57 = vmul.f32 -1.442695, %v709_v53 }
 0x906   : > { %v1274_v55 = vpop.f32.mrf.mxu0 }
 0x907   : > { %1360 = vpow2.f32 %v1214_v57 }
 0x912   : > { %v1359_v56 = vpop.eup %1358 }
 0x913   : > { %719 = vrot.lane.b32.xlu1 %v1359_v56, %s1424_s11 }
 0x914   : > { %v1361_v58 = vpop.eup %1360 }
 0x915   : > { %v713_v59 = vadd.f32 1.0, %v1361_v58 }
 0x917   : > { %1362 = vrcp.f32 %v713_v59 }
 0x924   : > { %v1363_v60 = vpop.eup %1362 }
 0x925   : > { %v717_v63 = vmul.f32 %v1363_v60, %v649_v39 }
 0x985   : > { %v720_v61 = vpop.permute.xlu1 %719 }
 0x986   : > { %v722_v62 = vmul.f32 %v1363_v60, %v720_v61 }
 0x988   : > { %724 = vrot.lane.b32.xlu0 %v722_v62, %s1425_s12 }
 0x9fa   : > { %v725_v1 = vpop.permute.xlu0 %724 }
 0x9fb   : > { %v727_v2 = vadd.f32 %v725_v1, %v717_v63 }
 0x9fd   : > { %1364 = vtanh.f32 %v727_v2 }
 0xa0a   : > { %v1365_v4 = vpop.eup %1364 }
 0xa0b   : > { %730 = vrot.lane.b32.xlu1 %v1365_v4, %s1426_s13 }
 0xa7d   : > { %v731_v5 = vpop.permute.xlu1 %730 }
 0xa7e   : > { %v733_v6 = vmul.f32 %v1363_v60, %v731_v5 }
 0xa80   : > { %v734_v7 = vadd.f32 %v733_v6, %v656_v45  ;;  %v735_v8 = vmax.f32 %v1605_v47, %v733_v6  ;;  %v737_v9 = vpack.c.bf16 %v733_v6, %v733_v6 }
 0xa82   : > { %739 = vrot.lane.b32.xlu0 %v737_v9, %s1427_s14 }
 0xaf4   : > { %v740_v10 = vpop.permute.xlu0 %739 }
 0xaf5   : > { %1278 = vmatmul.mubr.msk.bf16.vlgmr.msra.gmra.mxu1 %vm355_vm2, %v740_v10 }
 0xaf6   : > { %1288 = vmatpush3.bf16.msra.mxu1 %v1504_v3  ;;  %1289 = vmatprep.mubr.msk.bf16.mxu1 %vm1423_vm0, %v1422_v0 }
 0xbb5   : > { %v778_v11 = vpop.f32.mrf.mxu1 }
 0xbb6   : > { %v784_v12 = vadd.f32 %v778_v11, %v736_v28 }
 0xbb7   : > { %v1279_v13 = vpop.f32.mrf.mxu1 }
 0xbb8   : > { %v785_v14 = vadd.f32 %v1528_v16, %v784_v12 }
 0xbb9   : > { %v781_v22 = vpop.f32.mrf.mxu1 }
 0xbba   : > { %1366 = vtanh.f32 %v785_v14  ;;  %v1216_v32 = vmul.f32 -1.442695, %v785_v14 }
 0xbbb   : > { %v1280_v27 = vpop.f32.mrf.mxu1 }
 0xbbc   : > { %1368 = vpow2.f32 %v1216_v32 }
 0xbc7   : > { %v1367_v31 = vpop.eup %1366 }
 0xbc8   : > { %795 = vrot.lane.b32.xlu1 %v1367_v31, %s1424_s11 }
 0xbc9   : > { %v1369_v33 = vpop.eup %1368 }
 0xbca   : > { %v789_v34 = vadd.f32 1.0, %v1369_v33 }
 0xbcc   : > { %1370 = vrcp.f32 %v789_v34 }
 0xbd9   : > { %v1371_v35 = vpop.eup %1370 }
 0xbda   : > { %v793_v24 = vmul.f32 %v1371_v35, %v727_v2 }
 0xc3a   : > { %v796_v36 = vpop.permute.xlu1 %795 }
 0xc3b   : > { %v798_v37 = vmul.f32 %v1371_v35, %v796_v36 }
 0xc3d   : > { %800 = vrot.lane.b32.xlu0 %v798_v37, %s1425_s12 }
 0xcaf   : > { %v801_v25 = vpop.permute.xlu0 %800 }
 0xcb0   : > { %v803_v28 = vadd.f32 %v801_v25, %v793_v24 }
 0xcb2   : > { %1372 = vtanh.f32 %v803_v28 }
 0xcbf   : > { %v1373_v38 = vpop.eup %1372 }
 0xcc0   : > { %806 = vrot.lane.b32.xlu1 %v1373_v38, %s1426_s13 }
 0xd32   : > { %v807_v39 = vpop.permute.xlu1 %806 }
 0xd33   : > { %v809_v40 = vmul.f32 %v1371_v35, %v807_v39 }
 0xd35   : > { %v810_v41 = vadd.f32 %v809_v40, %v734_v7  ;;  %v1636_v42 = vmax.f32 %v735_v8, %v809_v40  ;;  %v813_v43 = vpack.c.bf16 %v809_v40, %v809_v40 }
 0xd37   : > { %815 = vrot.lane.b32.xlu0 %v813_v43, %s1427_s14 }
 0xda9   : > { %v816_v44 = vpop.permute.xlu0 %815 }
 0xdaa   : > { %1284 = vmatmul.mubr.msk.bf16.vlgmr.msra.gmra.mxu0 %vm355_vm2, %v816_v44 }
 0xdab   : > { %1294 = vmatpush3.bf16.msra.mxu0 %v1504_v3  ;;  %1295 = vmatprep.mubr.msk.bf16.mxu0 %vm1423_vm0, %v1422_v0 }
 0xe6a   : > { %v854_v45 = vpop.f32.mrf.mxu0 }
 0xe6b   : > { %v860_v47 = vadd.f32 %v854_v45, %v812_v26 }
 0xe6c   : > { %v1285_v48 = vpop.f32.mrf.mxu0 }
 0xe6d   : > { %v861_v49 = vadd.f32 %v1528_v16, %v860_v47 }
 0xe6e   : > { %v857_v46 = vpop.f32.mrf.mxu0 }
 0xe6f   : > { %1374 = vtanh.f32 %v861_v49  ;;  %v1218_v3 = vmul.f32 -1.442695, %v861_v49 }
 0xe70   : > { %v1286_v50 = vpop.f32.mrf.mxu0 }
 0xe71   : > { %1376 = vpow2.f32 %v1218_v3 }
 0xe7c   : > { %v1375_v51 = vpop.eup %1374 }
 0xe7d   : > { %871 = vrot.lane.b32.xlu1 %v1375_v51, %s1424_s11  ;;  %v1051_v51 = vld [vmem:[%s325_s25] sm:$0x3] }
 0xe7e   : > { %v1377_v52 = vpop.eup %1376 }
 0xe7f   : > { %v865_v53 = vadd.f32 1.0, %v1377_v52 }
 0xe81   : > { %1378 = vrcp.f32 %v865_v53 }
 0xe8e   : > { %v1379_v54 = vpop.eup %1378 }
 0xe8f   : > { %v869_v18 = vmul.f32 %v1379_v54, %v803_v28 }
 0xeef   : > { %v872_v55 = vpop.permute.xlu1 %871 }
 0xef0   : > { %v874_v56 = vmul.f32 %v1379_v54, %v872_v55 }
 0xef2   : > { %876 = vrot.lane.b32.xlu0 %v874_v56, %s1425_s12 }
 0xf64   : > { %v877_v21 = vpop.permute.xlu0 %876 }
 0xf65   : > { %v879_v26 = vadd.f32 %v877_v21, %v869_v18 }
 0xf67   : > { %1380 = vtanh.f32 %v879_v26 }
 0xf74   : > { %v1381_v57 = vpop.eup %1380 }
 0xf75   : > { %882 = vrot.lane.b32.xlu1 %v1381_v57, %s1426_s13 }
 0xfe7   : > { %v883_v58 = vpop.permute.xlu1 %882 }
 0xfe8   : > { %v885_v59 = vmul.f32 %v1379_v54, %v883_v58 }
 0xfea   : > { %v886_v60 = vadd.f32 %v885_v59, %v810_v41  ;;  %v887_v61 = vmax.f32 %v1636_v42, %v885_v59  ;;  %v889_v62 = vpack.c.bf16 %v885_v59, %v885_v59 }
 0xfec   : > { %891 = vrot.lane.b32.xlu0 %v889_v62, %s1427_s14 }
0x105e   : > { %v892_v63 = vpop.permute.xlu0 %891 }
0x105f   : > { %1290 = vmatmul.mubr.msk.bf16.vlgmr.msra.gmra.mxu1 %vm355_vm2, %v892_v63 }
0x111f   : > { %v930_v1 = vpop.f32.mrf.mxu1 }
0x1120   : > { %v936_v2 = vadd.f32 %v930_v1, %v888_v29 }
0x1121   : > { %v1291_v4 = vpop.f32.mrf.mxu1 }
0x1122   : > { %v937_v5 = vadd.f32 %v1528_v16, %v936_v2 }
0x1123   : > { %v933_v6 = vpop.f32.mrf.mxu1 }
0x1124   : > { %1382 = vtanh.f32 %v937_v5  ;;  %v1220_v9 = vmul.f32 -1.442695, %v937_v5 }
0x1125   : > { %v1292_v7 = vpop.f32.mrf.mxu1 }
0x1126   : > { %1384 = vpow2.f32 %v1220_v9 }
0x1131   : > { %v1383_v8 = vpop.eup %1382 }
0x1132   : > { %947 = vrot.lane.b32.xlu1 %v1383_v8, %s1424_s11 }
0x1133   : > { %v1385_v10 = vpop.eup %1384 }
0x1134   : > { %v941_v11 = vadd.f32 1.0, %v1385_v10 }
0x1136   : > { %1386 = vrcp.f32 %v941_v11 }
0x1143   : > { %v1387_v12 = vpop.eup %1386 }
0x1144   : > { %v945_v20 = vmul.f32 %v1387_v12, %v879_v26 }
0x11a4   : > { %v948_v13 = vpop.permute.xlu1 %947 }
0x11a5   : > { %v950_v14 = vmul.f32 %v1387_v12, %v948_v13 }
0x11a7   : > { %952 = vrot.lane.b32.xlu0 %v950_v14, %s1425_s12 }
0x1219   : > { %v953_v23 = vpop.permute.xlu0 %952 }
0x121a   : > { %v955_v29 = vadd.f32 %v953_v23, %v945_v20 }
0x121c   : > { %1388 = vtanh.f32 %v955_v29 }
0x1229   : > { %v1389_v22 = vpop.eup %1388 }
0x122a   : > { %958 = vrot.lane.b32.xlu1 %v1389_v22, %s1426_s13 }
0x129c   : > { %v959_v27 = vpop.permute.xlu1 %958 }
0x129d   : > { %v961_v31 = vmul.f32 %v1387_v12, %v959_v27 }
0x129f   : > { %v962_v32 = vadd.f32 %v961_v31, %v886_v60  ;;  %v963_v33 = vmax.f32 %v887_v61, %v961_v31  ;;  %v965_v34 = vpack.c.bf16 %v961_v31, %v961_v31 }
0x12a1   : > { %967 = vrot.lane.b32.xlu0 %v965_v34, %s1427_s14 }
0x1313   : > { %v968_v35 = vpop.permute.xlu0 %967 }
0x1314   : > { %1296 = vmatmul.mubr.msk.bf16.vlgmr.msra.gmra.mxu0 %vm355_vm2, %v968_v35 }
0x13d4   : > { %v1006_v36 = vpop.f32.mrf.mxu0 }
0x13d5   : > { %v1012_v37 = vadd.f32 %v1006_v36, %v964_v30  ;;  %v1428_v30 = vmov -inf  }
0x13d6   : > { %v1297_v24 = vpop.f32.mrf.mxu0  ;;  %339 = vst.msk [vmem:[%s329_s18] sm:$0x3] %vm335_vm1, %v1428_v30 }
0x13d7   : > { %v1013_v25 = vadd.f32 %v1528_v16, %v1012_v37 }
0x13d8   : > { %v1009_v28 = vpop.f32.mrf.mxu0 }
0x13d9   : > { %1390 = vtanh.f32 %v1013_v25  ;;  %v1222_v40 = vmul.f32 -1.442695, %v1013_v25 }
0x13da   : > { %v1298_v38 = vpop.f32.mrf.mxu0 }
0x13db   : > { %1392 = vpow2.f32 %v1222_v40 }
0x13dd   : > { %v1058_v50 = vld [vmem:[%s329_s18] sm:$0x3] }
0x13e6   : > { %v1391_v39 = vpop.eup %1390 }
0x13e7   : > { %1023 = vrot.lane.b32.xlu1 %v1391_v39, %s1424_s11 }
0x13e8   : > { %v1393_v41 = vpop.eup %1392 }
0x13e9   : > { %v1017_v42 = vadd.f32 1.0, %v1393_v41 }
0x13eb   : > { %1394 = vrcp.f32 %v1017_v42 }
0x13f8   : > { %v1395_v15 = vpop.eup %1394 }
0x13f9   : > { %v1021_v17 = vmul.f32 %v1395_v15, %v955_v29 }
0x1459   : > { %v1024_v43 = vpop.permute.xlu1 %1023 }
0x145a   : > { %v1026_v44 = vmul.f32 %v1395_v15, %v1024_v43 }
0x145c   : > { %1028 = vrot.lane.b32.xlu0 %v1026_v44, %s1425_s12 }
0x14ce   : > { %v1029_v19 = vpop.permute.xlu0 %1028 }
0x14cf   : > { %v1031_v16 = vadd.f32 %v1029_v19, %v1021_v17 }
0x14d1   : > { %1396 = vtanh.f32 %v1031_v16 }
0x14de   : > { %v1397_v45 = vpop.eup %1396 }
0x14df   : > { %1034 = vrot.lane.b32.xlu1 %v1397_v45, %s1426_s13 }
0x1551   : > { %v1035_v47 = vpop.permute.xlu1 %1034 }
0x1552   : > { %v1037_v48 = vmul.f32 %v1395_v15, %v1035_v47 }
0x1554   : > { %v1039_v49 = vmax.f32 %v963_v33, %v1037_v48  ;;  %v1038_v46 = vadd.f32 %v1037_v48, %v962_v32 }
0x1556   : > { %1060 = vrot.lane.b32.xlu1 %v1039_v49, %s1427_s14  ;;  %1053 = vrot.lane.b32.xlu0 %v1038_v46, %s1427_s14 }
0x155a   : > { %1047 = vrot.lane.b32.xlu1 %v1031_v16, %s1429_s22  ;;  %1041 = vrot.lane.b32.xlu0 %v1037_v48, %s1427_s14 }
0x15c8   : > { %v1061_v3 = vpop.permute.xlu1 %1060  ;;  %v1054_v52 = vpop.permute.xlu0 %1053 }
0x15c9   : > { %v1063_v53 = vmax.f32 %v1058_v50, %v1061_v3  ;;  %v1056_v54 = vadd.f32 %v1054_v52, %v1051_v51 }
0x15cb   : > { %1064 = vst.msk [vmem:[%s329_s18] sm:$0x3] %vm335_vm1, %v1063_v53  ;;  %1057 = vst.msk [vmem:[%s325_s25] sm:$0x3] %vm335_vm1, %v1056_v54 }
0x15cc   : > { %v1048_v0 = vpop.permute.xlu1 %1047  ;;  %v1042_v55 = vpop.permute.xlu0 %1041 }
0x15cd   : > { %1050 = vst.msk [vmem:[#allocation3] sm:$0x3] %vm335_vm1, %v1048_v0  ;;  %1045 = vst.msk [vmem:[#allocation2] sm:$0x3] %vm335_vm1, %v1042_v55 }
0x15ce PF: > { %s16_s20 = sadd.s32 1, %s1420_s20   ;;  %s1709_s18 = smov %s1416_s19 }
0x15cf   : > { %p13_p6 = scmp.ge.s32.totalorder %s16_s20, 4   ;;  %s1710_s19 = smov %s1712_s21 }
0x15d1   :  { %15 = sbr.rel (!%p13_p6) target bundleno = 2 (0x2), region = 91 }

// kernel: esim_forward.14
= control target key start
LH: loop header
LB: loop body
LE: loop exit
PB: predicated region body
PF: predicated region fallthrough
CT: control target
= control target key end

     0   :  { %s1670_s18 = smov 0   ;;  %s1672_s19 = smov 0   ;;  %s1952_s0 = inlined_call_operand.vmem [shape: bf16[20,16], index: 0, kind: input, shape index: {}]   ;;  %s1953_s1 = inlined_call_operand.vmem [shape: bf16[2,16,64], index: 1, kind: input, shape index: {}]   ;;  %s1954_s2 = inlined_call_operand.vmem [shape: bf16[2,16,64], index: 2, kind: input, shape index: {}]   ;;  %s1955_s3 = inlined_call_operand.vmem [shape: f32[2,1,64], index: 3, kind: input, shape index: {}]   ;;  %s1956_s4 = inlined_call_operand.vmem [shape: f32[2,2,16], index: 4, kind: output, shape index: {0}]   ;;  %s1957_s5 = inlined_call_operand.vmem [shape: f32[2,2,16], index: 5, kind: output, shape index: {1}]  }
   0x1   :  { %s1674_s20 = smov 0  }
   0x2 LB: > { %s28_s21 = sadd.s32 1, %s1626_s19  ;;  %p1365_p0 = scmp.ge.s32.totalorder %s1630_s20, 1  ;;  %s1630_s20 = sphi %s1674_s20, %s16_s20   ;;  %s1626_s19 = sphi %s1672_s19, %s1961_s19   ;;  %s1622_s18 = sphi %s1670_s18, %s1960_s18  }
   0x3   : > { %p30_p1 = scmp.ge.s32.totalorder %s28_s21, 2  ;;  %p247_p2 = scmp.lt.s32.totalorder %s1630_s20, 3 }
   0x5   : > { %s1963_s21 = smov (%p30_p1, %s28_s21), 0  ;;  %p248_p3 = pnand %p1365_p0, %p247_p2 }
   0x6   : > { %p309_p4 = scmp.lt.s32.totalorder (!%p248_p3), %s1622_s18, 1  ;;  %p432_p5 = scmp.eq.s32.totalorder (!%p248_p3), %s1622_s18, 0 }
   0x7   : > { %251 = sbr.rel (%p248_p3) target bundleno = 6967 (0x1b37), region = 36  ;;  %s1634_s13 = smov (!%p248_p3), 96  }
   0x8   : > { %s1635_s14 = smov (!%p248_p3), 16   ;;  %s1636_s15 = smov (!%p248_p3), 32  }
   0x9   : > { %s1637_s16 = smov (!%p248_p3), 80  }
   0xc   : > { %v1526_v0 = vld [vmem:[%s1952_s0] sm:$0xff]   ;;  %vm359_vm0 = vcmask 130048   ;;  %s1695_s24 = scalar_select %p309_p4, %s1622_s18, 1  ;;  %vm335_vm1 = vcmask 123904   ;;  %v1632_v1 = vmov 0.0   ;;  %vm1633_vm2 = vmmov 0  }
   0xd   : > { %1428 = vmatprep.mubr.msk.bf16.mxu0 %vm359_vm0, %v1526_v0  ;;  %1432 = vmatprep.subr.bf16.mxu1 %v1632_v1  ;;  %336 = vst.msk [vmem:[#allocation2] sm:$0x3] %vm335_vm1, %v1632_v1  ;;  %337 = vst.msk [vmem:[#allocation3] sm:$0x3] %vm335_vm1, %v1632_v1  ;;  %vm417_vm3 = vcmask 519168   ;;  %vm414_vm4 = vcmask 523264  }
   0xe   : > { %1434 = vmatprep.mubr.msk.bf16.mxu1 %vm1633_vm2, %v1632_v1  ;;  %s1401_s25 = sshll.u32 %s1695_s24, 3  ;;  %v1527_v4 = vld [vmem:[%s1952_s0 + $0x8] ss:$0 sps:$4 sm:$0x33]   ;;  %s321_s12 = scalar_lea.vmem %s1955_s3, %s1695_s24 }
   0xf   : > { %s313_s28 = scalar_lea.vmem %s1953_s1, %s1401_s25  ;;  %s318_s6 = scalar_lea.vmem %s1954_s2, %s1401_s25  ;;  %v1747_v21 = vld [vmem:[%s321_s12] ss:$0 sm:$0xff] }
  0x10   : > { %v1524_v2 = vld [vmem:[%s313_s28] sm:$0xff]   ;;  %s433_s9 = scalar_select %p432_p5, 1, 0 }
  0x11   : > { %v1712_v3 = vld [vmem:[%s318_s6] sm:$0xff]   ;;  %1426 = vmatprep.subr.bf16.mxu0 %v1524_v2  ;;  %s1370_s17 = sshll.u32 %s1695_s24, 1  ;;  %s1639_s24 = smov 112  }
  0x12   : > { %1427 = vmatpush3.bf16.msra.mxu0 %v1524_v2  ;;  %1433 = vmatpush3.bf16.msra.mxu1 %v1712_v3  ;;  %v434_v12 = vstv %s433_s9  ;;  %s329_s23 = scalar_lea.vmem %s1957_s5, %s1370_s17  ;;  %s325_s27 = scalar_lea.vmem %s1956_s4, %s1370_s17 }
  0x13   : > { %1438 = vmatprep.subr.bf16.mxu0 %v1632_v1  ;;  %1444 = vmatprep.subr.bf16.mxu1 %v1632_v1  ;;  %vm1735_vm5 = vcmp.eq.s32.totalorder %v434_v12, 1  ;;  %338 = vst.msk [vmem:[%s325_s27] sm:$0x3] %vm335_vm1, %v1632_v1 }
  0x14   : > { %v428_v5 = vld [vmem:[#allocation2] sm:$0x3]  ;;  %v429_v37 = vld [vmem:[#allocation3] sm:$0x3] }
  0x15   : > { %v437_v6 = vpack.c.bf16 %v428_v5, %v428_v5  ;;  %1429 = vmatmul.mubr.msk.bf16.vlgmr.msra.gmra.mxu0 %vm359_vm0, %v1527_v4 }
  0x16   : > { %1439 = vmatpush3.bf16.msra.mxu0 %v1712_v3  ;;  %1440 = vmatprep.mubr.msk.bf16.mxu0 %vm1633_vm2, %v1632_v1 }
  0x17   : > { %1435 = vmatmul.mubr.msk.bf16.vlgmr.msra.gmra.mxu1 %vm359_vm0, %v437_v6  ;;  %1450 = vmatprep.subr.bf16.mxu0 %v1632_v1 }
  0x18   : > { %1445 = vmatpush3.bf16.msra.mxu1 %v1712_v3  ;;  %1446 = vmatprep.mubr.msk.bf16.mxu1 %vm1633_vm2, %v1632_v1 }
  0x19   : > { %1456 = vmatprep.subr.bf16.mxu1 %v1632_v1 }
  0xd5   : > { %v1430_v7 = vpop.f32.mrf.mxu0 }
  0xd6   : > { %418 = vst.msk [vmem:[#allocation4 + $0x10] sm:$0xf] %vm417_vm3, %v1430_v7 }
  0xd7   : > { %v481_v8 = vpop.f32.mrf.mxu1  ;;  %v400_v9 = vpop.f32.mrf.mxu0 }
  0xd8   : > { %415 = vst.msk [vmem:[#allocation4] sm:$0xff] %vm414_vm4, %v400_v9 }
  0xd9   : > { %v1436_v10 = vpop.f32.mrf.mxu1  ;;  %v1431_v11 = vpop.f32.mrf.mxu0 }
  0xdb   : > { %v484_v13 = vpop.f32.mrf.mxu1  ;;  %v403_v14 = vpop.f32.mrf.mxu0 }
  0xdc   : > { %416 = vst.msk [vmem:[#allocation4 + $0x8] sm:$0xff] %vm414_vm4, %v403_v14 }
  0xdd   : > { %v1437_v15 = vpop.f32.mrf.mxu1  ;;  %v1739_v17 = vld [vmem:[#allocation4 + $0x12] sm:$0x3]  ;;  %v1745_v20 = vld [vmem:[#allocation4 + $0x10] sm:$0x3] }
  0xdf   : > { %v1741_v18 = vld [vmem:[#allocation4] sm:$0x3]  ;;  %v1743_v19 = vld [vmem:[#allocation4 + $0x2] sm:$0x3]  ;;  %v1761_v26 = vld [vmem:[#allocation4 + $0x4] sm:$0x3] }
  0xe0   : > { %v436_v22 = vsel %vm1735_vm5, %v1741_v18, %v1739_v17  ;;  %v1058_v23 = vsel %vm1735_vm5, %v1745_v20, %v1743_v19  ;;  %v1134_v24 = vsel %vm1735_vm5, %v1739_v17, %v1741_v18  ;;  %v1763_v27 = vld [vmem:[#allocation4 + $0x6] sm:$0x3]  ;;  %v520_v53 = vsel %vm1735_vm5, %v1743_v19, %v1745_v20 }
  0xe1   : > { %v487_v25 = vadd.f32 %v481_v8, %v436_v22 }
  0xe3   : > { %v488_v28 = vadd.f32 %v1747_v21, %v487_v25  ;;  %v1766_v29 = vld [vmem:[#allocation4 + $0xe] sm:$0x3]  ;;  %v1768_v30 = vld [vmem:[#allocation4 + $0xc] sm:$0x3]  ;;  %v1770_v31 = vld [vmem:[#allocation4 + $0x8] sm:$0x3] }
  0xe4   : > { %v1772_v32 = vld [vmem:[#allocation4 + $0xa] sm:$0x3]  ;;  %v906_v33 = vsel %vm1735_vm5, %v1768_v30, %v1763_v27  ;;  %v982_v34 = vsel %vm1735_vm5, %v1766_v29, %v1761_v26  ;;  %v598_v13 = vsel %vm1735_vm5, %v1761_v26, %v1766_v29 }
  0xe5   : > { %1528 = vtanh.f32 %v488_v28  ;;  %v830_v35 = vsel %vm1735_vm5, %v1772_v32, %v1770_v31  ;;  %v1380_v38 = vmul.f32 -1.442695, %v488_v28 }
  0xe7   : > { %1530 = vpow2.f32 %v1380_v38 }
  0xf2   : > { %v1529_v36 = vpop.eup %1528 }
  0xf3   : > { %502 = vrot.lane.b32.xlu0 %v1529_v36, %s1634_s13 }
  0xf4   : > { %v1531_v39 = vpop.eup %1530 }
  0xf5   : > { %v492_v40 = vadd.f32 1.0, %v1531_v39 }
  0xf7   : > { %497 = vrot.lane.b32.xlu0 %v429_v37, %s1635_s14  ;;  %1532 = vrcp.f32 %v492_v40 }
 0x104   : > { %v1533_v41 = vpop.eup %1532 }
 0x165   : > { %v503_v42 = vpop.permute.xlu0 %502 }
 0x166   : > { %v505_v43 = vmul.f32 %v1533_v41, %v503_v42 }
 0x168   : > { %507 = vrot.lane.b32.xlu1 %v505_v43, %s1635_s14 }
 0x169   : > { %v498_v44 = vpop.permute.xlu0 %497 }
 0x16a   : > { %v500_v45 = vmul.f32 %v1533_v41, %v498_v44 }
 0x1da   : > { %v508_v46 = vpop.permute.xlu1 %507 }
 0x1db   : > { %v510_v47 = vadd.f32 %v508_v46, %v500_v45 }
 0x1dd   : > { %1534 = vtanh.f32 %v510_v47 }
 0x1ea   : > { %v1535_v48 = vpop.eup %1534 }
 0x1eb   : > { %513 = vrot.lane.b32.xlu1 %v1535_v48, %s1636_s15 }
 0x25d   : > { %v514_v49 = vpop.permute.xlu1 %513 }
 0x25e   : > { %v1790_v50 = vmul.f32 %v1533_v41, %v514_v49 }
 0x260   : > { %v521_v51 = vpack.c.bf16 %v1790_v50, %v1790_v50 }
 0x262   : > { %523 = vrot.lane.b32.xlu0 %v521_v51, %s1637_s16 }
 0x2d4   : > { %v524_v52 = vpop.permute.xlu0 %523 }
 0x2d5   : > { %1441 = vmatmul.mubr.msk.bf16.vlgmr.msra.gmra.mxu0 %vm359_vm0, %v524_v52 }
 0x2d6   : > { %1451 = vmatpush3.bf16.msra.mxu0 %v1712_v3  ;;  %1452 = vmatprep.mubr.msk.bf16.mxu0 %vm1633_vm2, %v1632_v1 }
 0x2d7   : > { %1462 = vmatprep.subr.bf16.mxu0 %v1632_v1 }
 0x395   : > { %v562_v54 = vpop.f32.mrf.mxu0 }
 0x396   : > { %v568_v55 = vadd.f32 %v562_v54, %v520_v53 }
 0x397   : > { %v1442_v56 = vpop.f32.mrf.mxu0 }
 0x398   : > { %v569_v57 = vadd.f32 %v1747_v21, %v568_v55 }
 0x399   : > { %v565_v58 = vpop.f32.mrf.mxu0 }
 0x39a   : > { %1536 = vtanh.f32 %v569_v57  ;;  %v1382_v61 = vmul.f32 -1.442695, %v569_v57 }
 0x39b   : > { %v1443_v59 = vpop.f32.mrf.mxu0 }
 0x39c   : > { %1538 = vpow2.f32 %v1382_v61 }
 0x3a7   : > { %v1537_v60 = vpop.eup %1536 }
 0x3a8   : > { %579 = vrot.lane.b32.xlu1 %v1537_v60, %s1634_s13 }
 0x3a9   : > { %v1539_v62 = vpop.eup %1538 }
 0x3aa   : > { %v573_v63 = vadd.f32 1.0, %v1539_v62 }
 0x3ac   : > { %1540 = vrcp.f32 %v573_v63 }
 0x3b9   : > { %v1541_v0 = vpop.eup %1540 }
 0x3ba   : > { %v577_v5 = vmul.f32 %v1541_v0, %v510_v47 }
 0x41a   : > { %v580_v2 = vpop.permute.xlu1 %579 }
 0x41b   : > { %v582_v4 = vmul.f32 %v1541_v0, %v580_v2 }
 0x41d   : > { %584 = vrot.lane.b32.xlu0 %v582_v4, %s1635_s14 }
 0x48f   : > { %v585_v6 = vpop.permute.xlu0 %584 }
 0x490   : > { %v587_v7 = vadd.f32 %v585_v6, %v577_v5 }
 0x492   : > { %1542 = vtanh.f32 %v587_v7 }
 0x49f   : > { %v1543_v8 = vpop.eup %1542 }
 0x4a0   : > { %590 = vrot.lane.b32.xlu1 %v1543_v8, %s1636_s15 }
 0x512   : > { %v591_v9 = vpop.permute.xlu1 %590 }
 0x513   : > { %v593_v10 = vmul.f32 %v1541_v0, %v591_v9 }
 0x515   : > { %v599_v11 = vpack.c.bf16 %v593_v10, %v593_v10  ;;  %v594_v49 = vadd.f32 %v593_v10, %v1790_v50  ;;  %v595_v51 = vmax.f32 %v1790_v50, %v593_v10  ;;  %v676_v50 = vsel %vm1735_vm5, %v1763_v27, %v1768_v30 }
 0x517   : > { %601 = vrot.lane.b32.xlu0 %v599_v11, %s1637_s16 }
 0x589   : > { %v602_v12 = vpop.permute.xlu0 %601 }
 0x58a   : > { %1447 = vmatmul.mubr.msk.bf16.vlgmr.msra.gmra.mxu1 %vm359_vm0, %v602_v12 }
 0x58b   : > { %1457 = vmatpush3.bf16.msra.mxu1 %v1712_v3  ;;  %1458 = vmatprep.mubr.msk.bf16.mxu1 %vm1633_vm2, %v1632_v1 }
 0x58c   : > { %1468 = vmatprep.subr.bf16.mxu1 %v1632_v1 }
 0x64a   : > { %v640_v14 = vpop.f32.mrf.mxu1 }
 0x64b   : > { %v646_v15 = vadd.f32 %v640_v14, %v598_v13 }
 0x64c   : > { %v1448_v22 = vpop.f32.mrf.mxu1 }
 0x64d   : > { %v647_v25 = vadd.f32 %v1747_v21, %v646_v15 }
 0x64e   : > { %v643_v28 = vpop.f32.mrf.mxu1 }
 0x64f   : > { %1544 = vtanh.f32 %v647_v25  ;;  %v1384_v38 = vmul.f32 -1.442695, %v647_v25  ;;  %v754_v28 = vsel %vm1735_vm5, %v1770_v31, %v1772_v32 }
 0x650   : > { %v1449_v36 = vpop.f32.mrf.mxu1 }
 0x651   : > { %1546 = vpow2.f32 %v1384_v38 }
 0x65c   : > { %v1545_v37 = vpop.eup %1544 }
 0x65d   : > { %657 = vrot.lane.b32.xlu1 %v1545_v37, %s1634_s13 }
 0x65e   : > { %v1547_v39 = vpop.eup %1546 }
 0x65f   : > { %v651_v40 = vadd.f32 1.0, %v1547_v39 }
 0x661   : > { %1548 = vrcp.f32 %v651_v40 }
 0x66e   : > { %v1549_v41 = vpop.eup %1548 }
 0x66f   : > { %v655_v44 = vmul.f32 %v1549_v41, %v587_v7 }
 0x6cf   : > { %v658_v42 = vpop.permute.xlu1 %657 }
 0x6d0   : > { %v660_v43 = vmul.f32 %v1549_v41, %v658_v42 }
 0x6d2   : > { %662 = vrot.lane.b32.xlu0 %v660_v43, %s1635_s14 }
 0x744   : > { %v663_v45 = vpop.permute.xlu0 %662 }
 0x745   : > { %v665_v46 = vadd.f32 %v663_v45, %v655_v44 }
 0x747   : > { %1550 = vtanh.f32 %v665_v46 }
 0x754   : > { %v1551_v47 = vpop.eup %1550 }
 0x755   : > { %668 = vrot.lane.b32.xlu1 %v1551_v47, %s1636_s15 }
 0x7c7   : > { %v669_v48 = vpop.permute.xlu1 %668 }
 0x7c8   : > { %v671_v52 = vmul.f32 %v1549_v41, %v669_v48 }
 0x7ca   : > { %v672_v53 = vadd.f32 %v671_v52, %v594_v49  ;;  %v1824_v54 = vmax.f32 %v595_v51, %v671_v52  ;;  %v677_v55 = vpack.c.bf16 %v671_v52, %v671_v52 }
 0x7cc   : > { %679 = vrot.lane.b32.xlu0 %v677_v55, %s1637_s16 }
 0x83e   : > { %v680_v56 = vpop.permute.xlu0 %679 }
 0x83f   : > { %1453 = vmatmul.mubr.msk.bf16.vlgmr.msra.gmra.mxu0 %vm359_vm0, %v680_v56 }
 0x840   : > { %1463 = vmatpush3.bf16.msra.mxu0 %v1712_v3  ;;  %1464 = vmatprep.mubr.msk.bf16.mxu0 %vm1633_vm2, %v1632_v1 }
 0x841   : > { %1474 = vmatprep.subr.bf16.mxu0 %v1632_v1 }
 0x8ff   : > { %v718_v57 = vpop.f32.mrf.mxu0 }
 0x900   : > { %v724_v58 = vadd.f32 %v718_v57, %v676_v50 }
 0x901   : > { %v1454_v59 = vpop.f32.mrf.mxu0 }
 0x902   : > { %v725_v60 = vadd.f32 %v1747_v21, %v724_v58 }
 0x903   : > { %v721_v61 = vpop.f32.mrf.mxu0 }
 0x904   : > { %1552 = vtanh.f32 %v725_v60  ;;  %v1386_v0 = vmul.f32 -1.442695, %v725_v60 }
 0x905   : > { %v1455_v62 = vpop.f32.mrf.mxu0 }
 0x906   : > { %1554 = vpow2.f32 %v1386_v0 }
 0x911   : > { %v1553_v63 = vpop.eup %1552 }
 0x912   : > { %735 = vrot.lane.b32.xlu1 %v1553_v63, %s1634_s13 }
 0x913   : > { %v1555_v2 = vpop.eup %1554 }
 0x914   : > { %v729_v4 = vadd.f32 1.0, %v1555_v2 }
 0x916   : > { %1556 = vrcp.f32 %v729_v4 }
 0x923   : > { %v1557_v5 = vpop.eup %1556 }
 0x924   : > { %v733_v8 = vmul.f32 %v1557_v5, %v665_v46 }
 0x984   : > { %v736_v6 = vpop.permute.xlu1 %735 }
 0x985   : > { %v738_v7 = vmul.f32 %v1557_v5, %v736_v6 }
 0x987   : > { %740 = vrot.lane.b32.xlu0 %v738_v7, %s1635_s14 }
 0x9f9   : > { %v741_v9 = vpop.permute.xlu0 %740 }
 0x9fa   : > { %v743_v10 = vadd.f32 %v741_v9, %v733_v8 }
 0x9fc   : > { %1558 = vtanh.f32 %v743_v10 }
 0xa09   : > { %v1559_v11 = vpop.eup %1558 }
 0xa0a   : > { %746 = vrot.lane.b32.xlu1 %v1559_v11, %s1636_s15 }
 0xa7c   : > { %v747_v12 = vpop.permute.xlu1 %746 }
 0xa7d   : > { %v749_v13 = vmul.f32 %v1557_v5, %v747_v12 }
 0xa7f   : > { %v750_v14 = vadd.f32 %v749_v13, %v672_v53  ;;  %v751_v15 = vmax.f32 %v1824_v54, %v749_v13  ;;  %v755_v22 = vpack.c.bf16 %v749_v13, %v749_v13 }
 0xa81   : > { %757 = vrot.lane.b32.xlu0 %v755_v22, %s1637_s16 }
 0xaf3   : > { %v758_v25 = vpop.permute.xlu0 %757 }
 0xaf4   : > { %1459 = vmatmul.mubr.msk.bf16.vlgmr.msra.gmra.mxu1 %vm359_vm0, %v758_v25 }
 0xaf5   : > { %1469 = vmatpush3.bf16.msra.mxu1 %v1712_v3  ;;  %1470 = vmatprep.mubr.msk.bf16.mxu1 %vm1633_vm2, %v1632_v1 }
 0xaf6   : > { %1480 = vmatprep.subr.bf16.mxu1 %v1632_v1 }
 0xbb4   : > { %v796_v36 = vpop.f32.mrf.mxu1 }
 0xbb5   : > { %v802_v37 = vadd.f32 %v796_v36, %v754_v28 }
 0xbb6   : > { %v1460_v38 = vpop.f32.mrf.mxu1 }
 0xbb7   : > { %v803_v39 = vadd.f32 %v1747_v21, %v802_v37 }
 0xbb8   : > { %v799_v40 = vpop.f32.mrf.mxu1 }
 0xbb9   : > { %1560 = vtanh.f32 %v803_v39  ;;  %v1388_v43 = vmul.f32 -1.442695, %v803_v39 }
 0xbba   : > { %v1461_v41 = vpop.f32.mrf.mxu1 }
 0xbbb   : > { %1562 = vpow2.f32 %v1388_v43 }
 0xbc6   : > { %v1561_v42 = vpop.eup %1560 }
 0xbc7   : > { %813 = vrot.lane.b32.xlu1 %v1561_v42, %s1634_s13 }
 0xbc8   : > { %v1563_v44 = vpop.eup %1562 }
 0xbc9   : > { %v807_v45 = vadd.f32 1.0, %v1563_v44 }
 0xbcb   : > { %1564 = vrcp.f32 %v807_v45 }
 0xbd8   : > { %v1565_v46 = vpop.eup %1564 }
 0xbd9   : > { %v811_v49 = vmul.f32 %v1565_v46, %v743_v10 }
 0xc39   : > { %v814_v47 = vpop.permute.xlu1 %813 }
 0xc3a   : > { %v816_v48 = vmul.f32 %v1565_v46, %v814_v47 }
 0xc3c   : > { %818 = vrot.lane.b32.xlu0 %v816_v48, %s1635_s14 }
 0xcae   : > { %v819_v51 = vpop.permute.xlu0 %818 }
 0xcaf   : > { %v821_v52 = vadd.f32 %v819_v51, %v811_v49 }
 0xcb1   : > { %1566 = vtanh.f32 %v821_v52 }
 0xcbe   : > { %v1567_v53 = vpop.eup %1566 }
 0xcbf   : > { %824 = vrot.lane.b32.xlu1 %v1567_v53, %s1636_s15 }
 0xd31   : > { %v825_v54 = vpop.permute.xlu1 %824 }
 0xd32   : > { %v827_v55 = vmul.f32 %v1565_v46, %v825_v54 }
 0xd34   : > { %v828_v56 = vadd.f32 %v827_v55, %v750_v14  ;;  %v1855_v50 = vmax.f32 %v751_v15, %v827_v55  ;;  %v831_v57 = vpack.c.bf16 %v827_v55, %v827_v55 }
 0xd36   : > { %833 = vrot.lane.b32.xlu0 %v831_v57, %s1637_s16 }
 0xda8   : > { %v834_v58 = vpop.permute.xlu0 %833 }
 0xda9   : > { %1465 = vmatmul.mubr.msk.bf16.vlgmr.msra.gmra.mxu0 %vm359_vm0, %v834_v58 }
 0xdaa   : > { %1475 = vmatpush3.bf16.msra.mxu0 %v1712_v3  ;;  %1476 = vmatprep.mubr.msk.bf16.mxu0 %vm1633_vm2, %v1632_v1 }
 0xdab   : > { %1486 = vmatprep.subr.bf16.mxu0 %v1632_v1 }
 0xe69   : > { %v872_v59 = vpop.f32.mrf.mxu0 }
 0xe6a   : > { %v878_v60 = vadd.f32 %v872_v59, %v830_v35 }
 0xe6b   : > { %v1466_v61 = vpop.f32.mrf.mxu0 }
 0xe6c   : > { %v879_v62 = vadd.f32 %v1747_v21, %v878_v60 }
 0xe6d   : > { %v875_v63 = vpop.f32.mrf.mxu0 }
 0xe6e   : > { %1568 = vtanh.f32 %v879_v62  ;;  %v1390_v4 = vmul.f32 -1.442695, %v879_v62 }
 0xe6f   : > { %v1467_v0 = vpop.f32.mrf.mxu0 }
 0xe70   : > { %1570 = vpow2.f32 %v1390_v4 }
 0xe7b   : > { %v1569_v2 = vpop.eup %1568 }
 0xe7c   : > { %889 = vrot.lane.b32.xlu1 %v1569_v2, %s1634_s13 }
 0xe7d   : > { %v1571_v5 = vpop.eup %1570 }
 0xe7e   : > { %v883_v6 = vadd.f32 1.0, %v1571_v5 }
 0xe80   : > { %1572 = vrcp.f32 %v883_v6 }
 0xe8d   : > { %v1573_v7 = vpop.eup %1572 }
 0xe8e   : > { %v887_v31 = vmul.f32 %v1573_v7, %v821_v52 }
 0xeee   : > { %v890_v8 = vpop.permute.xlu1 %889 }
 0xeef   : > { %v892_v9 = vmul.f32 %v1573_v7, %v890_v8 }
 0xef1   : > { %894 = vrot.lane.b32.xlu0 %v892_v9, %s1635_s14 }
 0xf63   : > { %v895_v32 = vpop.permute.xlu0 %894 }
 0xf64   : > { %v897_v35 = vadd.f32 %v895_v32, %v887_v31 }
 0xf66   : > { %1574 = vtanh.f32 %v897_v35 }
 0xf73   : > { %v1575_v10 = vpop.eup %1574 }
 0xf74   : > { %900 = vrot.lane.b32.xlu1 %v1575_v10, %s1636_s15 }
 0xfe6   : > { %v901_v11 = vpop.permute.xlu1 %900 }
 0xfe7   : > { %v903_v12 = vmul.f32 %v1573_v7, %v901_v11 }
 0xfe9   : > { %v904_v13 = vadd.f32 %v903_v12, %v828_v56  ;;  %v905_v14 = vmax.f32 %v1855_v50, %v903_v12  ;;  %v907_v15 = vpack.c.bf16 %v903_v12, %v903_v12 }
 0xfeb   : > { %909 = vrot.lane.b32.xlu0 %v907_v15, %s1637_s16 }
0x105d   : > { %v910_v22 = vpop.permute.xlu0 %909 }
0x105e   : > { %1471 = vmatmul.mubr.msk.bf16.vlgmr.msra.gmra.mxu1 %vm359_vm0, %v910_v22 }
0x105f   : > { %1481 = vmatpush3.bf16.msra.mxu1 %v1712_v3  ;;  %1482 = vmatprep.mubr.msk.bf16.mxu1 %vm1633_vm2, %v1632_v1 }
0x111e   : > { %v948_v25 = vpop.f32.mrf.mxu1 }
0x111f   : > { %v954_v28 = vadd.f32 %v948_v25, %v906_v33 }
0x1120   : > { %v1472_v36 = vpop.f32.mrf.mxu1 }
0x1121   : > { %v955_v37 = vadd.f32 %v1747_v21, %v954_v28 }
0x1122   : > { %v951_v38 = vpop.f32.mrf.mxu1 }
0x1123   : > { %1576 = vtanh.f32 %v955_v37  ;;  %v1392_v41 = vmul.f32 -1.442695, %v955_v37 }
0x1124   : > { %v1473_v39 = vpop.f32.mrf.mxu1 }
0x1125   : > { %1578 = vpow2.f32 %v1392_v41 }
0x1130   : > { %v1577_v40 = vpop.eup %1576 }
0x1131   : > { %965 = vrot.lane.b32.xlu1 %v1577_v40, %s1634_s13 }
0x1132   : > { %v1579_v42 = vpop.eup %1578 }
0x1133   : > { %v959_v43 = vadd.f32 1.0, %v1579_v42 }
0x1135   : > { %1580 = vrcp.f32 %v959_v43 }
0x1142   : > { %v1581_v44 = vpop.eup %1580 }
0x1143   : > { %v963_v27 = vmul.f32 %v1581_v44, %v897_v35 }
0x11a3   : > { %v966_v45 = vpop.permute.xlu1 %965 }
0x11a4   : > { %v968_v46 = vmul.f32 %v1581_v44, %v966_v45 }
0x11a6   : > { %970 = vrot.lane.b32.xlu0 %v968_v46, %s1635_s14 }
0x1218   : > { %v971_v30 = vpop.permute.xlu0 %970 }
0x1219   : > { %v973_v33 = vadd.f32 %v971_v30, %v963_v27 }
0x121b   : > { %1582 = vtanh.f32 %v973_v33 }
0x1228   : > { %v1583_v47 = vpop.eup %1582 }
0x1229   : > { %976 = vrot.lane.b32.xlu1 %v1583_v47, %s1636_s15 }
0x129b   : > { %v977_v48 = vpop.permute.xlu1 %976 }
0x129c   : > { %v979_v49 = vmul.f32 %v1581_v44, %v977_v48 }
0x129e   : > { %v980_v51 = vadd.f32 %v979_v49, %v904_v13  ;;  %v1887_v52 = vmax.f32 %v905_v14, %v979_v49  ;;  %v983_v53 = vpack.c.bf16 %v979_v49, %v979_v49 }
0x12a0   : > { %985 = vrot.lane.b32.xlu0 %v983_v53, %s1637_s16 }
0x1312   : > { %v986_v54 = vpop.permute.xlu0 %985 }
0x1313   : > { %1477 = vmatmul.mubr.msk.bf16.vlgmr.msra.gmra.mxu0 %vm359_vm0, %v986_v54 }
0x1314   : > { %1487 = vmatpush3.bf16.msra.mxu0 %v1712_v3  ;;  %1488 = vmatprep.mubr.msk.bf16.mxu0 %vm1633_vm2, %v1632_v1 }
0x13d3   : > { %v1024_v55 = vpop.f32.mrf.mxu0 }
0x13d4   : > { %v1030_v56 = vadd.f32 %v1024_v55, %v982_v34 }
0x13d5   : > { %v1478_v50 = vpop.f32.mrf.mxu0 }
0x13d6   : > { %v1031_v57 = vadd.f32 %v1747_v21, %v1030_v56 }
0x13d7   : > { %v1027_v58 = vpop.f32.mrf.mxu0 }
0x13d8   : > { %1584 = vtanh.f32 %v1031_v57  ;;  %v1394_v3 = vmul.f32 -1.442695, %v1031_v57 }
0x13d9   : > { %v1479_v59 = vpop.f32.mrf.mxu0 }
0x13da   : > { %1586 = vpow2.f32 %v1394_v3 }
0x13e5   : > { %v1585_v60 = vpop.eup %1584 }
0x13e6   : > { %1041 = vrot.lane.b32.xlu1 %v1585_v60, %s1634_s13  ;;  %v1221_v60 = vld [vmem:[%s325_s27] sm:$0x3] }
0x13e7   : > { %v1587_v61 = vpop.eup %1586 }
0x13e8   : > { %v1035_v62 = vadd.f32 1.0, %v1587_v61 }
0x13ea   : > { %1588 = vrcp.f32 %v1035_v62 }
0x13f7   : > { %v1589_v63 = vpop.eup %1588 }
0x13f8   : > { %v1039_v26 = vmul.f32 %v1589_v63, %v973_v33 }
0x1458   : > { %v1042_v0 = vpop.permute.xlu1 %1041 }
0x1459   : > { %v1044_v2 = vmul.f32 %v1589_v63, %v1042_v0 }
0x145b   : > { %1046 = vrot.lane.b32.xlu0 %v1044_v2, %s1635_s14 }
0x14cd   : > { %v1047_v29 = vpop.permute.xlu0 %1046 }
0x14ce   : > { %v1049_v34 = vadd.f32 %v1047_v29, %v1039_v26 }
0x14d0   : > { %1590 = vtanh.f32 %v1049_v34 }
0x14dd   : > { %v1591_v4 = vpop.eup %1590 }
0x14de   : > { %1052 = vrot.lane.b32.xlu1 %v1591_v4, %s1636_s15 }
0x1550   : > { %v1053_v5 = vpop.permute.xlu1 %1052 }
0x1551   : > { %v1055_v6 = vmul.f32 %v1589_v63, %v1053_v5 }
0x1553   : > { %v1056_v7 = vadd.f32 %v1055_v6, %v980_v51  ;;  %v1057_v8 = vmax.f32 %v1887_v52, %v1055_v6  ;;  %v1059_v9 = vpack.c.bf16 %v1055_v6, %v1055_v6 }
0x1555   : > { %1061 = vrot.lane.b32.xlu0 %v1059_v9, %s1637_s16 }
0x15c7   : > { %v1062_v31 = vpop.permute.xlu0 %1061 }
0x15c8   : > { %1483 = vmatmul.mubr.msk.bf16.vlgmr.msra.gmra.mxu1 %vm359_vm0, %v1062_v31 }
0x1688   : > { %v1100_v32 = vpop.f32.mrf.mxu1 }
0x1689   : > { %v1106_v35 = vadd.f32 %v1100_v32, %v1058_v23 }
0x168a   : > { %v1484_v10 = vpop.f32.mrf.mxu1 }
0x168b   : > { %v1107_v11 = vadd.f32 %v1747_v21, %v1106_v35 }
0x168c   : > { %v1103_v12 = vpop.f32.mrf.mxu1 }
0x168d   : > { %1592 = vtanh.f32 %v1107_v11  ;;  %v1396_v15 = vmul.f32 -1.442695, %v1107_v11 }
0x168e   : > { %v1485_v13 = vpop.f32.mrf.mxu1 }
0x168f   : > { %1594 = vpow2.f32 %v1396_v15 }
0x169a   : > { %v1593_v14 = vpop.eup %1592 }
0x169b   : > { %1117 = vrot.lane.b32.xlu1 %v1593_v14, %s1634_s13 }
0x169c   : > { %v1595_v22 = vpop.eup %1594 }
0x169d   : > { %v1111_v25 = vadd.f32 1.0, %v1595_v22 }
0x169f   : > { %1596 = vrcp.f32 %v1111_v25 }
0x16ac   : > { %v1597_v28 = vpop.eup %1596 }
0x16ad   : > { %v1115_v19 = vmul.f32 %v1597_v28, %v1049_v34 }
0x170d   : > { %v1118_v36 = vpop.permute.xlu1 %1117 }
0x170e   : > { %v1120_v37 = vmul.f32 %v1597_v28, %v1118_v36 }
0x1710   : > { %1122 = vrot.lane.b32.xlu0 %v1120_v37, %s1635_s14 }
0x1782   : > { %v1123_v20 = vpop.permute.xlu0 %1122 }
0x1783   : > { %v1125_v23 = vadd.f32 %v1123_v20, %v1115_v19 }
0x1785   : > { %1598 = vtanh.f32 %v1125_v23 }
0x1792   : > { %v1599_v38 = vpop.eup %1598 }
0x1793   : > { %1128 = vrot.lane.b32.xlu1 %v1599_v38, %s1636_s15 }
0x1805   : > { %v1129_v39 = vpop.permute.xlu1 %1128 }
0x1806   : > { %v1131_v40 = vmul.f32 %v1597_v28, %v1129_v39 }
0x1808   : > { %v1132_v41 = vadd.f32 %v1131_v40, %v1056_v7  ;;  %v1133_v42 = vmax.f32 %v1057_v8, %v1131_v40  ;;  %v1135_v43 = vpack.c.bf16 %v1131_v40, %v1131_v40 }
0x180a   : > { %1137 = vrot.lane.b32.xlu0 %v1135_v43, %s1637_s16 }
0x187c   : > { %v1138_v44 = vpop.permute.xlu0 %1137 }
0x187d   : > { %1489 = vmatmul.mubr.msk.bf16.vlgmr.msra.gmra.mxu0 %vm359_vm0, %v1138_v44 }
0x193d   : > { %v1176_v45 = vpop.f32.mrf.mxu0 }
0x193e   : > { %v1182_v46 = vadd.f32 %v1176_v45, %v1134_v24  ;;  %v1638_v24 = vmov -inf  }
0x193f   : > { %v1490_v27 = vpop.f32.mrf.mxu0  ;;  %339 = vst.msk [vmem:[%s329_s23] sm:$0x3] %vm335_vm1, %v1638_v24 }
0x1940   : > { %v1183_v30 = vadd.f32 %v1747_v21, %v1182_v46 }
0x1941   : > { %v1179_v33 = vpop.f32.mrf.mxu0 }
0x1942   : > { %1600 = vtanh.f32 %v1183_v30  ;;  %v1398_v49 = vmul.f32 -1.442695, %v1183_v30 }
0x1943   : > { %v1491_v47 = vpop.f32.mrf.mxu0 }
0x1944   : > { %1602 = vpow2.f32 %v1398_v49 }
0x1946   : > { %v1228_v59 = vld [vmem:[%s329_s23] sm:$0x3] }
0x194f   : > { %v1601_v48 = vpop.eup %1600 }
0x1950   : > { %1193 = vrot.lane.b32.xlu1 %v1601_v48, %s1634_s13 }
0x1951   : > { %v1603_v51 = vpop.eup %1602 }
0x1952   : > { %v1187_v52 = vadd.f32 1.0, %v1603_v51 }
0x1954   : > { %1604 = vrcp.f32 %v1187_v52 }
0x1961   : > { %v1605_v16 = vpop.eup %1604 }
0x1962   : > { %v1191_v17 = vmul.f32 %v1605_v16, %v1125_v23 }
0x19c2   : > { %v1194_v53 = vpop.permute.xlu1 %1193 }
0x19c3   : > { %v1196_v54 = vmul.f32 %v1605_v16, %v1194_v53 }
0x19c5   : > { %1198 = vrot.lane.b32.xlu0 %v1196_v54, %s1635_s14 }
0x1a37   : > { %v1199_v18 = vpop.permute.xlu0 %1198 }
0x1a38   : > { %v1201_v21 = vadd.f32 %v1199_v18, %v1191_v17 }
0x1a3a   : > { %1606 = vtanh.f32 %v1201_v21 }
0x1a47   : > { %v1607_v55 = vpop.eup %1606 }
0x1a48   : > { %1204 = vrot.lane.b32.xlu1 %v1607_v55, %s1636_s15 }
0x1aba   : > { %v1205_v56 = vpop.permute.xlu1 %1204 }
0x1abb   : > { %v1207_v50 = vmul.f32 %v1605_v16, %v1205_v56 }
0x1abd   : > { %v1209_v57 = vmax.f32 %v1133_v42, %v1207_v50  ;;  %v1208_v58 = vadd.f32 %v1207_v50, %v1132_v41 }
0x1abf   : > { %1230 = vrot.lane.b32.xlu1 %v1209_v57, %s1637_s16  ;;  %1223 = vrot.lane.b32.xlu0 %v1208_v58, %s1637_s16 }
0x1ac3   : > { %1217 = vrot.lane.b32.xlu1 %v1201_v21, %s1639_s24  ;;  %1211 = vrot.lane.b32.xlu0 %v1207_v50, %s1637_s16 }
0x1b31   : > { %v1231_v3 = vpop.permute.xlu1 %1230  ;;  %v1224_v61 = vpop.permute.xlu0 %1223 }
0x1b32   : > { %v1233_v62 = vmax.f32 %v1228_v59, %v1231_v3  ;;  %v1226_v63 = vadd.f32 %v1224_v61, %v1221_v60 }
0x1b34   : > { %1234 = vst.msk [vmem:[%s329_s23] sm:$0x3] %vm335_vm1, %v1233_v62  ;;  %1227 = vst.msk [vmem:[%s325_s27] sm:$0x3] %vm335_vm1, %v1226_v63 }
0x1b35   : > { %v1218_v1 = vpop.permute.xlu1 %1217  ;;  %v1212_v0 = vpop.permute.xlu0 %1211 }
0x1b36   : > { %1220 = vst.msk [vmem:[#allocation3] sm:$0x3] %vm335_vm1, %v1218_v1  ;;  %1215 = vst.msk [vmem:[#allocation2] sm:$0x3] %vm335_vm1, %v1212_v0 }
0x1b37 PF: > { %s16_s20 = sadd.s32 1, %s1630_s20   ;;  %s1960_s18 = smov %s1626_s19 }
0x1b38   : > { %p13_p6 = scmp.ge.s32.totalorder %s16_s20, 4   ;;  %s1961_s19 = smov %s1963_s21 }
0x1b3a   :  { %15 = sbr.rel (!%p13_p6) target bundleno = 2 (0x2), region = 91 }

</bundles_post_ra>
